<compile_context>
chip_gen: v5e
topology: v5e:2x2
jax: 0.10.0
libtpu: 0.0.40
codegen_flags: <defaults>
</compile_context>

<pallas_src>
import functools

import jax
import jax.numpy as jnp
from jax.experimental import pallas as pl
from jax.experimental.pallas import tpu as pltpu


# --------------------------------------------------------------------------
# Kernel: one (batch, input-row-tile) grid step writing final NCHW rows.
# --------------------------------------------------------------------------
def _convt_bn_silu_kernel(x_ref, w_ref, b_ref, e0_ref, e1_ref, o_ref, *,
                          t_h, c2, apply_act, approx_act):
    # x_ref : (C1, t_h, W)       input rows (compute dtype)
    # w_ref : (4*C2, C1)         BN-folded weight, rows ordered (dj, di, c2)
    # b_ref : (4*C2, 1)          BN-folded bias (f32), same row order
    # e0/e1 : (W, 2W)            0/1 lane-spread selectors: E0[j,2j]=1, E1[j,2j+1]=1
    # o_ref : (C2, 2*t_h, 2*W)   final NCHW output rows for this tile
    w = w_ref[...]
    bias = b_ref[...]
    e0 = e0_ref[...]
    e1 = e1_ref[...]
    ep_dtype = e0.dtype

    for ii in range(t_h):                              # static unroll (t_h <= 32)
        x_col = x_ref[:, ii, :]                        # (C1, W)
        y = jnp.dot(w, x_col, preferred_element_type=jnp.float32) + bias
        if apply_act:
            # SiLU: y * sigmoid(y); reciprocal rides the EUP slot.
            y = y * pl.reciprocal(1.0 + jnp.exp(-y), approx=approx_act)
        y = y.astype(ep_dtype)                         # (4*C2, W)

        for di in range(2):
            y_dj0 = y[di * c2:(di + 1) * c2, :]        # (C2, W)  rows (dj=0, di)
            y_dj1 = y[(2 + di) * c2:(3 + di) * c2, :]  # (C2, W)  rows (dj=1, di)
            # Width interleave on the MXU (exact: E are 0/1 selectors):
            #   row[:, 2j] = y_dj0[:, j] ; row[:, 2j+1] = y_dj1[:, j]
            row = (jnp.dot(y_dj0, e0, preferred_element_type=jnp.float32) +
                   jnp.dot(y_dj1, e1, preferred_element_type=jnp.float32))
            o_ref[:, 2 * ii + di, :] = row.astype(o_ref.dtype)


# --------------------------------------------------------------------------
# Row-tile auto-pick: legal second-minor block dims, VMEM bound, enough steps.
# --------------------------------------------------------------------------
def _pick_row_tile(B, H, W, C1, C2, in_bytes, out_bytes, k=2):
    cands = sorted({d for d in range(8, H + 1, 8) if H % d == 0} | {H},
                   reverse=True)

    def step_bytes(t):  # double-buffered in + out blocks
        return 2 * (C1 * t * W * in_bytes + C2 * (k * t) * (k * W) * out_bytes)

    budget = 8 * 1024 * 1024        # safe under v5e/v6e/v7x scoped-VMEM defaults
    ok = [t for t in cands if step_bytes(t) <= budget and t <= 32]
    if not ok:
        ok = [cands[-1]]
    t_h = ok[0]
    for t in ok:                    # descending: shrink until >=4 grid steps
        t_h = t                     # (also >=2 spatial tiles for v7x when B==1)
        if B * (H // t) >= 4:
            break
    return t_h


# --------------------------------------------------------------------------
# Wrapper: fold BN into weights/bias, build spread matrices, call the kernel.
# --------------------------------------------------------------------------
def conv_transpose_forward(
    x,                      # (B, C1, H, W)  NCHW, like the PyTorch module
    weight,                 # (C1, C2, k, k) PyTorch ConvTranspose2d weight
    conv_bias=None,         # (C2,) or None (None when bn=True)
    bn_params=None,         # (gamma, beta, running_mean, running_var, eps) or None
    *,
    k=2, s=2, p=0,
    act=True,
    compute_dtype=jnp.bfloat16,   # matmul operand dtype (bf16 = full-rate MXU + half read bytes)
    out_dtype=jnp.bfloat16,       # output dtype (bf16 halves the dominant store bytes)
    approx_act=True,              # approx reciprocal in SiLU (EUP vrcp)
    row_tile=None,
):
    assert k == 2 and s == 2 and p == 0, "only k == s == 2, p == 0 supported"

    B, C1, H, W = x.shape
    C1w, C2, kh, kw = weight.shape
    assert C1w == C1 and kh == k and kw == k
    K4 = C2 * k * k

    # ---- fold inference-mode BatchNorm (+ optional conv bias) -------------
    if bn_params is not None:
        gamma, beta, mean, var, eps = bn_params
        scale = (gamma / jnp.sqrt(var + eps)).astype(jnp.float32)     # (C2,)
        shift = (beta - mean * scale).astype(jnp.float32)             # (C2,)
    else:
        scale = jnp.ones((C2,), jnp.float32)
        shift = jnp.zeros((C2,), jnp.float32)
    if conv_bias is not None:
        shift = shift + conv_bias.astype(jnp.float32) * scale

    # Weight (C1, C2, di, dj) -> rows (dj, di, c2), cols c1, BN scale folded.
    w_folded = (jnp.transpose(weight.astype(jnp.float32), (3, 2, 1, 0))
                * scale[None, None, :, None]).reshape(K4, C1).astype(compute_dtype)
    bias_rows = jnp.tile(shift, k * k).reshape(K4, 1).astype(jnp.float32)

    # Exact 0/1 lane-spread matrices for the width interleave (tiny, constant).
    ep_dtype = (jnp.float32 if jnp.dtype(out_dtype) == jnp.dtype(jnp.float32)
                else jnp.dtype(compute_dtype))
    eye = jnp.eye(W, dtype=ep_dtype)
    e0 = jnp.zeros((W, 2 * W), ep_dtype).at[:, 0::2].set(eye)
    e1 = jnp.zeros((W, 2 * W), ep_dtype).at[:, 1::2].set(eye)

    x_c = x.astype(compute_dtype)

    # ---- row tiling --------------------------------------------------------
    in_b = jnp.dtype(compute_dtype).itemsize
    out_b = jnp.dtype(out_dtype).itemsize
    t_h = row_tile if row_tile is not None else _pick_row_tile(
        B, H, W, C1, C2, in_b, out_b, k=k)
    assert H % t_h == 0 and (t_h % 8 == 0 or t_h == H), (H, t_h)
    n_t = H // t_h

    kernel = functools.partial(
        _convt_bn_silu_kernel, t_h=t_h, c2=C2,
        apply_act=bool(act), approx_act=bool(approx_act))

    out = pl.pallas_call(
        kernel,
        out_shape=jax.ShapeDtypeStruct((B, C2, k * H, k * W), out_dtype),
        grid_spec=pltpu.PrefetchScalarGridSpec(
            num_scalar_prefetch=0,
            grid=(B, n_t),
            in_specs=[
                pl.BlockSpec((None, C1, t_h, W), lambda b, t: (b, 0, t, 0)),
                pl.BlockSpec((K4, C1), lambda b, t: (0, 0)),
                pl.BlockSpec((K4, 1), lambda b, t: (0, 0)),
                pl.BlockSpec((W, 2 * W), lambda b, t: (0, 0)),
                pl.BlockSpec((W, 2 * W), lambda b, t: (0, 0)),
            ],
            out_specs=pl.BlockSpec((None, C2, k * t_h, k * W),
                                   lambda b, t: (b, 0, t, 0)),
        ),
        compiler_params=pltpu.CompilerParams(
            dimension_semantics=("parallel", "parallel"),
            vmem_limit_bytes=32 * 1024 * 1024,   # v5e's default scoped limit is 16 MiB
        ),
    )(x_c, w_folded, bias_rows, e0, e1)

    return out  # already final NCHW (B, C2, 2H, 2W); no post-processing


# --------------------------------------------------------------------------
# Pure-JAX reference: ConvTranspose2d via lhs-dilated conv, then BN, then SiLU.
# --------------------------------------------------------------------------
def _reference(x, weight, conv_bias, bn_params, *, k, s, p, act):
    w_oihw = jnp.transpose(weight, (1, 0, 2, 3))[:, :, ::-1, ::-1]
    y = jax.lax.conv_general_dilated(
        x, w_oihw,
        window_strides=(1, 1),
        padding=[(k - 1 - p, k - 1 - p), (k - 1 - p, k - 1 - p)],
        lhs_dilation=(s, s),
        dimension_numbers=("NCHW", "OIHW", "NCHW"),
        precision=jax.lax.Precision.HIGHEST,
    )
    if conv_bias is not None:
        y = y + conv_bias[None, :, None, None]
    if bn_params is not None:
        gamma, beta, mean, var, eps = bn_params
        y = (y - mean[None, :, None, None]) / jnp.sqrt(var + eps)[None, :, None, None]
        y = y * gamma[None, :, None, None] + beta[None, :, None, None]
    if act:
        y = y * jax.nn.sigmoid(y)
    return y


# --------------------------------------------------------------------------
if __name__ == "__main__":
    # Module config: ConvTranspose(c1=16, c2=32, k=2, s=2, p=0, bn=True, act=True)
    B, C1, C2, H, W = 2, 16, 32, 16, 16
    K, STRIDE, PAD = 2, 2, 0

    key = jax.random.PRNGKey(0)
    kx, kw, kg, kb, km, kv = jax.random.split(key, 6)

    x = jax.random.normal(kx, (B, C1, H, W), jnp.float32)
    bound = 1.0 / jnp.sqrt(jnp.float32(C2 * K * K))
    weight = jax.random.uniform(kw, (C1, C2, K, K), jnp.float32, -bound, bound)

    gamma = jax.random.uniform(kg, (C2,), jnp.float32, 0.5, 1.5)
    beta = 0.1 * jax.random.normal(kb, (C2,), jnp.float32)
    running_mean = 0.1 * jax.random.normal(km, (C2,), jnp.float32)
    running_var = jax.random.uniform(kv, (C2,), jnp.float32, 0.5, 1.5)
    bn_params = (gamma, beta, running_mean, running_var, 1e-5)

    ref = _reference(x, weight, None, bn_params, k=K, s=STRIDE, p=PAD, act=True)

    # 1) deployment config: bf16 operands, bf16 output, approx-reciprocal SiLU
    out_bf16 = conv_transpose_forward(
        x, weight, conv_bias=None, bn_params=bn_params,
        k=K, s=STRIDE, p=PAD, act=True)
    jax.block_until_ready(out_bf16)
    assert out_bf16.shape == (B, C2, STRIDE * H, STRIDE * W), out_bf16.shape
    assert out_bf16.dtype == jnp.bfloat16
    assert jnp.allclose(out_bf16.astype(jnp.float32), ref, atol=3e-2, rtol=3e-2), \
        float(jnp.max(jnp.abs(out_bf16.astype(jnp.float32) - ref)))

    # 2) exact config: f32 operands/output, exact sigmoid -> tight check
    out_f32 = conv_transpose_forward(
        x, weight, conv_bias=None, bn_params=bn_params,
        k=K, s=STRIDE, p=PAD, act=True,
        compute_dtype=jnp.float32, out_dtype=jnp.float32, approx_act=False)
    jax.block_until_ready(out_f32)
    assert out_f32.shape == (B, C2, STRIDE * H, STRIDE * W), out_f32.shape
    assert jnp.allclose(out_f32, ref, atol=5e-4, rtol=5e-4), \
        float(jnp.max(jnp.abs(out_f32 - ref)))

    print("KERNEL_OK")
</pallas_src>

<mosaic_0001>
module attributes {stable_mosaic.version = 11 : i64} {
  func.func @_convt_bn_silu_kernel(%arg0: i32, %arg1: i32, %arg2: memref<1x16x8x16xbf16, #tpu.memory_space<vmem>>, %arg3: memref<128x16xbf16, #tpu.memory_space<vmem>>, %arg4: memref<128x1xf32, #tpu.memory_space<vmem>>, %arg5: memref<16x32xbf16, #tpu.memory_space<vmem>>, %arg6: memref<16x32xbf16, #tpu.memory_space<vmem>>, %arg7: memref<1x32x16x32xbf16, #tpu.memory_space<vmem>>) attributes {dimension_semantics = [#tpu.dimension_semantics<parallel>, #tpu.dimension_semantics<parallel>], iteration_bounds = array<i64: 2, 2>, scalar_prefetch = 0 : i64, scratch_operands = 0 : i64, tpu.core_type = #tpu.core_type<tc>, window_params = [{transform_indices = @transform_0, window_bounds = array<i64: 1, 16, 8, 16>}, {pipeline_mode = #tpu.pipeline_mode<synchronous>, transform_indices = @transform_1, window_bounds = array<i64: 128, 16>}, {pipeline_mode = #tpu.pipeline_mode<synchronous>, transform_indices = @transform_2, window_bounds = array<i64: 128, 1>}, {pipeline_mode = #tpu.pipeline_mode<synchronous>, transform_indices = @transform_3, window_bounds = array<i64: 16, 32>}, {pipeline_mode = #tpu.pipeline_mode<synchronous>, transform_indices = @transform_4, window_bounds = array<i64: 16, 32>}, {transform_indices = @transform_5, window_bounds = array<i64: 1, 32, 16, 32>}]} {
    %c0 = arith.constant 0 : index
    %c0_0 = arith.constant 0 : index
    %0 = vector.load %arg3[%c0, %c0_0] : memref<128x16xbf16, #tpu.memory_space<vmem>>, vector<128x16xbf16>
    %c0_1 = arith.constant 0 : index
    %c0_2 = arith.constant 0 : index
    %1 = vector.load %arg4[%c0_1, %c0_2] : memref<128x1xf32, #tpu.memory_space<vmem>>, vector<128x1xf32>
    %c0_3 = arith.constant 0 : index
    %c0_4 = arith.constant 0 : index
    %2 = vector.load %arg5[%c0_3, %c0_4] : memref<16x32xbf16, #tpu.memory_space<vmem>>, vector<16x32xbf16>
    %c0_5 = arith.constant 0 : index
    %c0_6 = arith.constant 0 : index
    %3 = vector.load %arg6[%c0_5, %c0_6] : memref<16x32xbf16, #tpu.memory_space<vmem>>, vector<16x32xbf16>
    %c0_7 = arith.constant 0 : index
    %c0_8 = arith.constant 0 : index
    %c0_9 = arith.constant 0 : index
    %c0_10 = arith.constant 0 : index
    %4 = vector.load %arg2[%c0_7, %c0_8, %c0_9, %c0_10] : memref<1x16x8x16xbf16, #tpu.memory_space<vmem>>, vector<1x16x1x16xbf16>
    %5 = vector.shape_cast %4 : vector<1x16x1x16xbf16> to vector<16x16xbf16>
    %cst = arith.constant dense<0.000000e+00> : vector<128x16xf32>
    %6 = tpu.matmul %0, %5, %cst {dimension_numbers = #tpu.dot_dimension_numbers<[1], [0], [0], [1], [0, 0, 1, 1], [], []>} : vector<128x16xbf16>, vector<16x16xbf16>, vector<128x16xf32> -> vector<128x16xf32>
    %7 = vector.broadcast %1 : vector<128x1xf32> to vector<128x16xf32>
    %8 = arith.addf %6, %7 : vector<128x16xf32>
    %cst_11 = arith.constant 0.000000e+00 : f32
    %9 = vector.broadcast %cst_11 : f32 to vector<128x16xf32>
    %10 = arith.subf %9, %8 : vector<128x16xf32>
    %11 = math.exp %10 : vector<128x16xf32>
    %cst_12 = arith.constant 1.000000e+00 : f32
    %12 = vector.broadcast %cst_12 : f32 to vector<128x16xf32>
    %13 = arith.addf %12, %11 : vector<128x16xf32>
    %14 = tpu.reciprocal %13 {approx = true} : vector<128x16xf32> -> vector<128x16xf32>
    %15 = arith.mulf %8, %14 : vector<128x16xf32>
    %16 = arith.truncf %15 : vector<128x16xf32> to vector<128x16xbf16>
    %17 = vector.extract_strided_slice %16 {offsets = [0, 0], sizes = [32, 16], strides = [1, 1]} : vector<128x16xbf16> to vector<32x16xbf16>
    %18 = vector.extract_strided_slice %16 {offsets = [64, 0], sizes = [32, 16], strides = [1, 1]} : vector<128x16xbf16> to vector<32x16xbf16>
    %cst_13 = arith.constant dense<0.000000e+00> : vector<32x32xf32>
    %19 = tpu.matmul %17, %2, %cst_13 {dimension_numbers = #tpu.dot_dimension_numbers<[1], [0], [0], [1], [0, 0, 1, 1], [], []>} : vector<32x16xbf16>, vector<16x32xbf16>, vector<32x32xf32> -> vector<32x32xf32>
    %cst_14 = arith.constant dense<0.000000e+00> : vector<32x32xf32>
    %20 = tpu.matmul %18, %3, %cst_14 {dimension_numbers = #tpu.dot_dimension_numbers<[1], [0], [0], [1], [0, 0, 1, 1], [], []>} : vector<32x16xbf16>, vector<16x32xbf16>, vector<32x32xf32> -> vector<32x32xf32>
    %21 = arith.addf %19, %20 : vector<32x32xf32>
    %22 = arith.truncf %21 : vector<32x32xf32> to vector<32x32xbf16>
    %c0_15 = arith.constant 0 : index
    %c0_16 = arith.constant 0 : index
    %c0_17 = arith.constant 0 : index
    %c0_18 = arith.constant 0 : index
    %23 = vector.load %arg7[%c0_15, %c0_16, %c0_17, %c0_18] : memref<1x32x16x32xbf16, #tpu.memory_space<vmem>>, vector<1x32x1x32xbf16>
    %24 = vector.shape_cast %23 : vector<1x32x1x32xbf16> to vector<32x32xbf16>
    %25 = vector.shape_cast %22 : vector<32x32xbf16> to vector<1x32x1x32xbf16>
    tpu.vector_store %arg7[%c0_15, %c0_16, %c0_17, %c0_18], %25 {strides = array<i32>} : memref<1x32x16x32xbf16, #tpu.memory_space<vmem>>, vector<1x32x1x32xbf16>,
    %26 = vector.extract_strided_slice %16 {offsets = [32, 0], sizes = [32, 16], strides = [1, 1]} : vector<128x16xbf16> to vector<32x16xbf16>
    %27 = vector.extract_strided_slice %16 {offsets = [96, 0], sizes = [32, 16], strides = [1, 1]} : vector<128x16xbf16> to vector<32x16xbf16>
    %cst_19 = arith.constant dense<0.000000e+00> : vector<32x32xf32>
    %28 = tpu.matmul %26, %2, %cst_19 {dimension_numbers = #tpu.dot_dimension_numbers<[1], [0], [0], [1], [0, 0, 1, 1], [], []>} : vector<32x16xbf16>, vector<16x32xbf16>, vector<32x32xf32> -> vector<32x32xf32>
    %cst_20 = arith.constant dense<0.000000e+00> : vector<32x32xf32>
    %29 = tpu.matmul %27, %3, %cst_20 {dimension_numbers = #tpu.dot_dimension_numbers<[1], [0], [0], [1], [0, 0, 1, 1], [], []>} : vector<32x16xbf16>, vector<16x32xbf16>, vector<32x32xf32> -> vector<32x32xf32>
    %30 = arith.addf %28, %29 : vector<32x32xf32>
    %31 = arith.truncf %30 : vector<32x32xf32> to vector<32x32xbf16>
    %c0_21 = arith.constant 0 : index
    %c0_22 = arith.constant 0 : index
    %c1 = arith.constant 1 : index
    %c0_23 = arith.constant 0 : index
    %32 = vector.load %arg7[%c0_21, %c0_22, %c1, %c0_23] : memref<1x32x16x32xbf16, #tpu.memory_space<vmem>>, vector<1x32x1x32xbf16>
    %33 = vector.shape_cast %32 : vector<1x32x1x32xbf16> to vector<32x32xbf16>
    %34 = vector.shape_cast %31 : vector<32x32xbf16> to vector<1x32x1x32xbf16>
    tpu.vector_store %arg7[%c0_21, %c0_22, %c1, %c0_23], %34 {strides = array<i32>} : memref<1x32x16x32xbf16, #tpu.memory_space<vmem>>, vector<1x32x1x32xbf16>,
    %c0_24 = arith.constant 0 : index
    %c0_25 = arith.constant 0 : index
    %c1_26 = arith.constant 1 : index
    %c0_27 = arith.constant 0 : index
    %35 = vector.load %arg2[%c0_24, %c0_25, %c1_26, %c0_27] : memref<1x16x8x16xbf16, #tpu.memory_space<vmem>>, vector<1x16x1x16xbf16>
    %36 = vector.shape_cast %35 : vector<1x16x1x16xbf16> to vector<16x16xbf16>
    %cst_28 = arith.constant dense<0.000000e+00> : vector<128x16xf32>
    %37 = tpu.matmul %0, %36, %cst_28 {dimension_numbers = #tpu.dot_dimension_numbers<[1], [0], [0], [1], [0, 0, 1, 1], [], []>} : vector<128x16xbf16>, vector<16x16xbf16>, vector<128x16xf32> -> vector<128x16xf32>
    %38 = vector.broadcast %1 : vector<128x1xf32> to vector<128x16xf32>
    %39 = arith.addf %37, %38 : vector<128x16xf32>
    %cst_29 = arith.constant 0.000000e+00 : f32
    %40 = vector.broadcast %cst_29 : f32 to vector<128x16xf32>
    %41 = arith.subf %40, %39 : vector<128x16xf32>
    %42 = math.exp %41 : vector<128x16xf32>
    %cst_30 = arith.constant 1.000000e+00 : f32
    %43 = vector.broadcast %cst_30 : f32 to vector<128x16xf32>
    %44 = arith.addf %43, %42 : vector<128x16xf32>
    %45 = tpu.reciprocal %44 {approx = true} : vector<128x16xf32> -> vector<128x16xf32>
    %46 = arith.mulf %39, %45 : vector<128x16xf32>
    %47 = arith.truncf %46 : vector<128x16xf32> to vector<128x16xbf16>
    %48 = vector.extract_strided_slice %47 {offsets = [0, 0], sizes = [32, 16], strides = [1, 1]} : vector<128x16xbf16> to vector<32x16xbf16>
    %49 = vector.extract_strided_slice %47 {offsets = [64, 0], sizes = [32, 16], strides = [1, 1]} : vector<128x16xbf16> to vector<32x16xbf16>
    %cst_31 = arith.constant dense<0.000000e+00> : vector<32x32xf32>
    %50 = tpu.matmul %48, %2, %cst_31 {dimension_numbers = #tpu.dot_dimension_numbers<[1], [0], [0], [1], [0, 0, 1, 1], [], []>} : vector<32x16xbf16>, vector<16x32xbf16>, vector<32x32xf32> -> vector<32x32xf32>
    %cst_32 = arith.constant dense<0.000000e+00> : vector<32x32xf32>
    %51 = tpu.matmul %49, %3, %cst_32 {dimension_numbers = #tpu.dot_dimension_numbers<[1], [0], [0], [1], [0, 0, 1, 1], [], []>} : vector<32x16xbf16>, vector<16x32xbf16>, vector<32x32xf32> -> vector<32x32xf32>
    %52 = arith.addf %50, %51 : vector<32x32xf32>
    %53 = arith.truncf %52 : vector<32x32xf32> to vector<32x32xbf16>
    %c0_33 = arith.constant 0 : index
    %c0_34 = arith.constant 0 : index
    %c2 = arith.constant 2 : index
    %c0_35 = arith.constant 0 : index
    %54 = vector.load %arg7[%c0_33, %c0_34, %c2, %c0_35] : memref<1x32x16x32xbf16, #tpu.memory_space<vmem>>, vector<1x32x1x32xbf16>
    %55 = vector.shape_cast %54 : vector<1x32x1x32xbf16> to vector<32x32xbf16>
    %56 = vector.shape_cast %53 : vector<32x32xbf16> to vector<1x32x1x32xbf16>
    tpu.vector_store %arg7[%c0_33, %c0_34, %c2, %c0_35], %56 {strides = array<i32>} : memref<1x32x16x32xbf16, #tpu.memory_space<vmem>>, vector<1x32x1x32xbf16>,
    %57 = vector.extract_strided_slice %47 {offsets = [32, 0], sizes = [32, 16], strides = [1, 1]} : vector<128x16xbf16> to vector<32x16xbf16>
    %58 = vector.extract_strided_slice %47 {offsets = [96, 0], sizes = [32, 16], strides = [1, 1]} : vector<128x16xbf16> to vector<32x16xbf16>
    %cst_36 = arith.constant dense<0.000000e+00> : vector<32x32xf32>
    %59 = tpu.matmul %57, %2, %cst_36 {dimension_numbers = #tpu.dot_dimension_numbers<[1], [0], [0], [1], [0, 0, 1, 1], [], []>} : vector<32x16xbf16>, vector<16x32xbf16>, vector<32x32xf32> -> vector<32x32xf32>
    %cst_37 = arith.constant dense<0.000000e+00> : vector<32x32xf32>
    %60 = tpu.matmul %58, %3, %cst_37 {dimension_numbers = #tpu.dot_dimension_numbers<[1], [0], [0], [1], [0, 0, 1, 1], [], []>} : vector<32x16xbf16>, vector<16x32xbf16>, vector<32x32xf32> -> vector<32x32xf32>
    %61 = arith.addf %59, %60 : vector<32x32xf32>
    %62 = arith.truncf %61 : vector<32x32xf32> to vector<32x32xbf16>
    %c0_38 = arith.constant 0 : index
    %c0_39 = arith.constant 0 : index
    %c3 = arith.constant 3 : index
    %c0_40 = arith.constant 0 : index
    %63 = vector.load %arg7[%c0_38, %c0_39, %c3, %c0_40] : memref<1x32x16x32xbf16, #tpu.memory_space<vmem>>, vector<1x32x1x32xbf16>
    %64 = vector.shape_cast %63 : vector<1x32x1x32xbf16> to vector<32x32xbf16>
    %65 = vector.shape_cast %62 : vector<32x32xbf16> to vector<1x32x1x32xbf16>
    tpu.vector_store %arg7[%c0_38, %c0_39, %c3, %c0_40], %65 {strides = array<i32>} : memref<1x32x16x32xbf16, #tpu.memory_space<vmem>>, vector<1x32x1x32xbf16>,
    %c0_41 = arith.constant 0 : index
    %c0_42 = arith.constant 0 : index
    %c2_43 = arith.constant 2 : index
    %c0_44 = arith.constant 0 : index
    %66 = vector.load %arg2[%c0_41, %c0_42, %c2_43, %c0_44] : memref<1x16x8x16xbf16, #tpu.memory_space<vmem>>, vector<1x16x1x16xbf16>
    %67 = vector.shape_cast %66 : vector<1x16x1x16xbf16> to vector<16x16xbf16>
    %cst_45 = arith.constant dense<0.000000e+00> : vector<128x16xf32>
    %68 = tpu.matmul %0, %67, %cst_45 {dimension_numbers = #tpu.dot_dimension_numbers<[1], [0], [0], [1], [0, 0, 1, 1], [], []>} : vector<128x16xbf16>, vector<16x16xbf16>, vector<128x16xf32> -> vector<128x16xf32>
    %69 = vector.broadcast %1 : vector<128x1xf32> to vector<128x16xf32>
    %70 = arith.addf %68, %69 : vector<128x16xf32>
    %cst_46 = arith.constant 0.000000e+00 : f32
    %71 = vector.broadcast %cst_46 : f32 to vector<128x16xf32>
    %72 = arith.subf %71, %70 : vector<128x16xf32>
    %73 = math.exp %72 : vector<128x16xf32>
    %cst_47 = arith.constant 1.000000e+00 : f32
    %74 = vector.broadcast %cst_47 : f32 to vector<128x16xf32>
    %75 = arith.addf %74, %73 : vector<128x16xf32>
    %76 = tpu.reciprocal %75 {approx = true} : vector<128x16xf32> -> vector<128x16xf32>
    %77 = arith.mulf %70, %76 : vector<128x16xf32>
    %78 = arith.truncf %77 : vector<128x16xf32> to vector<128x16xbf16>
    %79 = vector.extract_strided_slice %78 {offsets = [0, 0], sizes = [32, 16], strides = [1, 1]} : vector<128x16xbf16> to vector<32x16xbf16>
    %80 = vector.extract_strided_slice %78 {offsets = [64, 0], sizes = [32, 16], strides = [1, 1]} : vector<128x16xbf16> to vector<32x16xbf16>
    %cst_48 = arith.constant dense<0.000000e+00> : vector<32x32xf32>
    %81 = tpu.matmul %79, %2, %cst_48 {dimension_numbers = #tpu.dot_dimension_numbers<[1], [0], [0], [1], [0, 0, 1, 1], [], []>} : vector<32x16xbf16>, vector<16x32xbf16>, vector<32x32xf32> -> vector<32x32xf32>
    %cst_49 = arith.constant dense<0.000000e+00> : vector<32x32xf32>
    %82 = tpu.matmul %80, %3, %cst_49 {dimension_numbers = #tpu.dot_dimension_numbers<[1], [0], [0], [1], [0, 0, 1, 1], [], []>} : vector<32x16xbf16>, vector<16x32xbf16>, vector<32x32xf32> -> vector<32x32xf32>
    %83 = arith.addf %81, %82 : vector<32x32xf32>
    %84 = arith.truncf %83 : vector<32x32xf32> to vector<32x32xbf16>
    %c0_50 = arith.constant 0 : index
    %c0_51 = arith.constant 0 : index
    %c4 = arith.constant 4 : index
    %c0_52 = arith.constant 0 : index
    %85 = vector.load %arg7[%c0_50, %c0_51, %c4, %c0_52] : memref<1x32x16x32xbf16, #tpu.memory_space<vmem>>, vector<1x32x1x32xbf16>
    %86 = vector.shape_cast %85 : vector<1x32x1x32xbf16> to vector<32x32xbf16>
    %87 = vector.shape_cast %84 : vector<32x32xbf16> to vector<1x32x1x32xbf16>
    tpu.vector_store %arg7[%c0_50, %c0_51, %c4, %c0_52], %87 {strides = array<i32>} : memref<1x32x16x32xbf16, #tpu.memory_space<vmem>>, vector<1x32x1x32xbf16>,
    %88 = vector.extract_strided_slice %78 {offsets = [32, 0], sizes = [32, 16], strides = [1, 1]} : vector<128x16xbf16> to vector<32x16xbf16>
    %89 = vector.extract_strided_slice %78 {offsets = [96, 0], sizes = [32, 16], strides = [1, 1]} : vector<128x16xbf16> to vector<32x16xbf16>
    %cst_53 = arith.constant dense<0.000000e+00> : vector<32x32xf32>
    %90 = tpu.matmul %88, %2, %cst_53 {dimension_numbers = #tpu.dot_dimension_numbers<[1], [0], [0], [1], [0, 0, 1, 1], [], []>} : vector<32x16xbf16>, vector<16x32xbf16>, vector<32x32xf32> -> vector<32x32xf32>
    %cst_54 = arith.constant dense<0.000000e+00> : vector<32x32xf32>
    %91 = tpu.matmul %89, %3, %cst_54 {dimension_numbers = #tpu.dot_dimension_numbers<[1], [0], [0], [1], [0, 0, 1, 1], [], []>} : vector<32x16xbf16>, vector<16x32xbf16>, vector<32x32xf32> -> vector<32x32xf32>
    %92 = arith.addf %90, %91 : vector<32x32xf32>
    %93 = arith.truncf %92 : vector<32x32xf32> to vector<32x32xbf16>
    %c0_55 = arith.constant 0 : index
    %c0_56 = arith.constant 0 : index
    %c5 = arith.constant 5 : index
    %c0_57 = arith.constant 0 : index
    %94 = vector.load %arg7[%c0_55, %c0_56, %c5, %c0_57] : memref<1x32x16x32xbf16, #tpu.memory_space<vmem>>, vector<1x32x1x32xbf16>
    %95 = vector.shape_cast %94 : vector<1x32x1x32xbf16> to vector<32x32xbf16>
    %96 = vector.shape_cast %93 : vector<32x32xbf16> to vector<1x32x1x32xbf16>
    tpu.vector_store %arg7[%c0_55, %c0_56, %c5, %c0_57], %96 {strides = array<i32>} : memref<1x32x16x32xbf16, #tpu.memory_space<vmem>>, vector<1x32x1x32xbf16>,
    %c0_58 = arith.constant 0 : index
    %c0_59 = arith.constant 0 : index
    %c3_60 = arith.constant 3 : index
    %c0_61 = arith.constant 0 : index
    %97 = vector.load %arg2[%c0_58, %c0_59, %c3_60, %c0_61] : memref<1x16x8x16xbf16, #tpu.memory_space<vmem>>, vector<1x16x1x16xbf16>
    %98 = vector.shape_cast %97 : vector<1x16x1x16xbf16> to vector<16x16xbf16>
    %cst_62 = arith.constant dense<0.000000e+00> : vector<128x16xf32>
    %99 = tpu.matmul %0, %98, %cst_62 {dimension_numbers = #tpu.dot_dimension_numbers<[1], [0], [0], [1], [0, 0, 1, 1], [], []>} : vector<128x16xbf16>, vector<16x16xbf16>, vector<128x16xf32> -> vector<128x16xf32>
    %100 = vector.broadcast %1 : vector<128x1xf32> to vector<128x16xf32>
    %101 = arith.addf %99, %100 : vector<128x16xf32>
    %cst_63 = arith.constant 0.000000e+00 : f32
    %102 = vector.broadcast %cst_63 : f32 to vector<128x16xf32>
    %103 = arith.subf %102, %101 : vector<128x16xf32>
    %104 = math.exp %103 : vector<128x16xf32>
    %cst_64 = arith.constant 1.000000e+00 : f32
    %105 = vector.broadcast %cst_64 : f32 to vector<128x16xf32>
    %106 = arith.addf %105, %104 : vector<128x16xf32>
    %107 = tpu.reciprocal %106 {approx = true} : vector<128x16xf32> -> vector<128x16xf32>
    %108 = arith.mulf %101, %107 : vector<128x16xf32>
    %109 = arith.truncf %108 : vector<128x16xf32> to vector<128x16xbf16>
    %110 = vector.extract_strided_slice %109 {offsets = [0, 0], sizes = [32, 16], strides = [1, 1]} : vector<128x16xbf16> to vector<32x16xbf16>
    %111 = vector.extract_strided_slice %109 {offsets = [64, 0], sizes = [32, 16], strides = [1, 1]} : vector<128x16xbf16> to vector<32x16xbf16>
    %cst_65 = arith.constant dense<0.000000e+00> : vector<32x32xf32>
    %112 = tpu.matmul %110, %2, %cst_65 {dimension_numbers = #tpu.dot_dimension_numbers<[1], [0], [0], [1], [0, 0, 1, 1], [], []>} : vector<32x16xbf16>, vector<16x32xbf16>, vector<32x32xf32> -> vector<32x32xf32>
    %cst_66 = arith.constant dense<0.000000e+00> : vector<32x32xf32>
    %113 = tpu.matmul %111, %3, %cst_66 {dimension_numbers = #tpu.dot_dimension_numbers<[1], [0], [0], [1], [0, 0, 1, 1], [], []>} : vector<32x16xbf16>, vector<16x32xbf16>, vector<32x32xf32> -> vector<32x32xf32>
    %114 = arith.addf %112, %113 : vector<32x32xf32>
    %115 = arith.truncf %114 : vector<32x32xf32> to vector<32x32xbf16>
    %c0_67 = arith.constant 0 : index
    %c0_68 = arith.constant 0 : index
    %c6 = arith.constant 6 : index
    %c0_69 = arith.constant 0 : index
    %116 = vector.load %arg7[%c0_67, %c0_68, %c6, %c0_69] : memref<1x32x16x32xbf16, #tpu.memory_space<vmem>>, vector<1x32x1x32xbf16>
    %117 = vector.shape_cast %116 : vector<1x32x1x32xbf16> to vector<32x32xbf16>
    %118 = vector.shape_cast %115 : vector<32x32xbf16> to vector<1x32x1x32xbf16>
    tpu.vector_store %arg7[%c0_67, %c0_68, %c6, %c0_69], %118 {strides = array<i32>} : memref<1x32x16x32xbf16, #tpu.memory_space<vmem>>, vector<1x32x1x32xbf16>,
    %119 = vector.extract_strided_slice %109 {offsets = [32, 0], sizes = [32, 16], strides = [1, 1]} : vector<128x16xbf16> to vector<32x16xbf16>
    %120 = vector.extract_strided_slice %109 {offsets = [96, 0], sizes = [32, 16], strides = [1, 1]} : vector<128x16xbf16> to vector<32x16xbf16>
    %cst_70 = arith.constant dense<0.000000e+00> : vector<32x32xf32>
    %121 = tpu.matmul %119, %2, %cst_70 {dimension_numbers = #tpu.dot_dimension_numbers<[1], [0], [0], [1], [0, 0, 1, 1], [], []>} : vector<32x16xbf16>, vector<16x32xbf16>, vector<32x32xf32> -> vector<32x32xf32>
    %cst_71 = arith.constant dense<0.000000e+00> : vector<32x32xf32>
    %122 = tpu.matmul %120, %3, %cst_71 {dimension_numbers = #tpu.dot_dimension_numbers<[1], [0], [0], [1], [0, 0, 1, 1], [], []>} : vector<32x16xbf16>, vector<16x32xbf16>, vector<32x32xf32> -> vector<32x32xf32>
    %123 = arith.addf %121, %122 : vector<32x32xf32>
    %124 = arith.truncf %123 : vector<32x32xf32> to vector<32x32xbf16>
    %c0_72 = arith.constant 0 : index
    %c0_73 = arith.constant 0 : index
    %c7 = arith.constant 7 : index
    %c0_74 = arith.constant 0 : index
    %125 = vector.load %arg7[%c0_72, %c0_73, %c7, %c0_74] : memref<1x32x16x32xbf16, #tpu.memory_space<vmem>>, vector<1x32x1x32xbf16>
    %126 = vector.shape_cast %125 : vector<1x32x1x32xbf16> to vector<32x32xbf16>
    %127 = vector.shape_cast %124 : vector<32x32xbf16> to vector<1x32x1x32xbf16>
    tpu.vector_store %arg7[%c0_72, %c0_73, %c7, %c0_74], %127 {strides = array<i32>} : memref<1x32x16x32xbf16, #tpu.memory_space<vmem>>, vector<1x32x1x32xbf16>,
    %c0_75 = arith.constant 0 : index
    %c0_76 = arith.constant 0 : index
    %c4_77 = arith.constant 4 : index
    %c0_78 = arith.constant 0 : index
    %128 = vector.load %arg2[%c0_75, %c0_76, %c4_77, %c0_78] : memref<1x16x8x16xbf16, #tpu.memory_space<vmem>>, vector<1x16x1x16xbf16>
    %129 = vector.shape_cast %128 : vector<1x16x1x16xbf16> to vector<16x16xbf16>
    %cst_79 = arith.constant dense<0.000000e+00> : vector<128x16xf32>
    %130 = tpu.matmul %0, %129, %cst_79 {dimension_numbers = #tpu.dot_dimension_numbers<[1], [0], [0], [1], [0, 0, 1, 1], [], []>} : vector<128x16xbf16>, vector<16x16xbf16>, vector<128x16xf32> -> vector<128x16xf32>
    %131 = vector.broadcast %1 : vector<128x1xf32> to vector<128x16xf32>
    %132 = arith.addf %130, %131 : vector<128x16xf32>
    %cst_80 = arith.constant 0.000000e+00 : f32
    %133 = vector.broadcast %cst_80 : f32 to vector<128x16xf32>
    %134 = arith.subf %133, %132 : vector<128x16xf32>
    %135 = math.exp %134 : vector<128x16xf32>
    %cst_81 = arith.constant 1.000000e+00 : f32
    %136 = vector.broadcast %cst_81 : f32 to vector<128x16xf32>
    %137 = arith.addf %136, %135 : vector<128x16xf32>
    %138 = tpu.reciprocal %137 {approx = true} : vector<128x16xf32> -> vector<128x16xf32>
    %139 = arith.mulf %132, %138 : vector<128x16xf32>
    %140 = arith.truncf %139 : vector<128x16xf32> to vector<128x16xbf16>
    %141 = vector.extract_strided_slice %140 {offsets = [0, 0], sizes = [32, 16], strides = [1, 1]} : vector<128x16xbf16> to vector<32x16xbf16>
    %142 = vector.extract_strided_slice %140 {offsets = [64, 0], sizes = [32, 16], strides = [1, 1]} : vector<128x16xbf16> to vector<32x16xbf16>
    %cst_82 = arith.constant dense<0.000000e+00> : vector<32x32xf32>
    %143 = tpu.matmul %141, %2, %cst_82 {dimension_numbers = #tpu.dot_dimension_numbers<[1], [0], [0], [1], [0, 0, 1, 1], [], []>} : vector<32x16xbf16>, vector<16x32xbf16>, vector<32x32xf32> -> vector<32x32xf32>
    %cst_83 = arith.constant dense<0.000000e+00> : vector<32x32xf32>
    %144 = tpu.matmul %142, %3, %cst_83 {dimension_numbers = #tpu.dot_dimension_numbers<[1], [0], [0], [1], [0, 0, 1, 1], [], []>} : vector<32x16xbf16>, vector<16x32xbf16>, vector<32x32xf32> -> vector<32x32xf32>
    %145 = arith.addf %143, %144 : vector<32x32xf32>
    %146 = arith.truncf %145 : vector<32x32xf32> to vector<32x32xbf16>
    %c0_84 = arith.constant 0 : index
    %c0_85 = arith.constant 0 : index
    %c8 = arith.constant 8 : index
    %c0_86 = arith.constant 0 : index
    %147 = vector.load %arg7[%c0_84, %c0_85, %c8, %c0_86] : memref<1x32x16x32xbf16, #tpu.memory_space<vmem>>, vector<1x32x1x32xbf16>
    %148 = vector.shape_cast %147 : vector<1x32x1x32xbf16> to vector<32x32xbf16>
    %149 = vector.shape_cast %146 : vector<32x32xbf16> to vector<1x32x1x32xbf16>
    tpu.vector_store %arg7[%c0_84, %c0_85, %c8, %c0_86], %149 {strides = array<i32>} : memref<1x32x16x32xbf16, #tpu.memory_space<vmem>>, vector<1x32x1x32xbf16>,
    %150 = vector.extract_strided_slice %140 {offsets = [32, 0], sizes = [32, 16], strides = [1, 1]} : vector<128x16xbf16> to vector<32x16xbf16>
    %151 = vector.extract_strided_slice %140 {offsets = [96, 0], sizes = [32, 16], strides = [1, 1]} : vector<128x16xbf16> to vector<32x16xbf16>
    %cst_87 = arith.constant dense<0.000000e+00> : vector<32x32xf32>
    %152 = tpu.matmul %150, %2, %cst_87 {dimension_numbers = #tpu.dot_dimension_numbers<[1], [0], [0], [1], [0, 0, 1, 1], [], []>} : vector<32x16xbf16>, vector<16x32xbf16>, vector<32x32xf32> -> vector<32x32xf32>
    %cst_88 = arith.constant dense<0.000000e+00> : vector<32x32xf32>
    %153 = tpu.matmul %151, %3, %cst_88 {dimension_numbers = #tpu.dot_dimension_numbers<[1], [0], [0], [1], [0, 0, 1, 1], [], []>} : vector<32x16xbf16>, vector<16x32xbf16>, vector<32x32xf32> -> vector<32x32xf32>
    %154 = arith.addf %152, %153 : vector<32x32xf32>
    %155 = arith.truncf %154 : vector<32x32xf32> to vector<32x32xbf16>
    %c0_89 = arith.constant 0 : index
    %c0_90 = arith.constant 0 : index
    %c9 = arith.constant 9 : index
    %c0_91 = arith.constant 0 : index
    %156 = vector.load %arg7[%c0_89, %c0_90, %c9, %c0_91] : memref<1x32x16x32xbf16, #tpu.memory_space<vmem>>, vector<1x32x1x32xbf16>
    %157 = vector.shape_cast %156 : vector<1x32x1x32xbf16> to vector<32x32xbf16>
    %158 = vector.shape_cast %155 : vector<32x32xbf16> to vector<1x32x1x32xbf16>
    tpu.vector_store %arg7[%c0_89, %c0_90, %c9, %c0_91], %158 {strides = array<i32>} : memref<1x32x16x32xbf16, #tpu.memory_space<vmem>>, vector<1x32x1x32xbf16>,
    %c0_92 = arith.constant 0 : index
    %c0_93 = arith.constant 0 : index
    %c5_94 = arith.constant 5 : index
    %c0_95 = arith.constant 0 : index
    %159 = vector.load %arg2[%c0_92, %c0_93, %c5_94, %c0_95] : memref<1x16x8x16xbf16, #tpu.memory_space<vmem>>, vector<1x16x1x16xbf16>
    %160 = vector.shape_cast %159 : vector<1x16x1x16xbf16> to vector<16x16xbf16>
    %cst_96 = arith.constant dense<0.000000e+00> : vector<128x16xf32>
    %161 = tpu.matmul %0, %160, %cst_96 {dimension_numbers = #tpu.dot_dimension_numbers<[1], [0], [0], [1], [0, 0, 1, 1], [], []>} : vector<128x16xbf16>, vector<16x16xbf16>, vector<128x16xf32> -> vector<128x16xf32>
    %162 = vector.broadcast %1 : vector<128x1xf32> to vector<128x16xf32>
    %163 = arith.addf %161, %162 : vector<128x16xf32>
    %cst_97 = arith.constant 0.000000e+00 : f32
    %164 = vector.broadcast %cst_97 : f32 to vector<128x16xf32>
    %165 = arith.subf %164, %163 : vector<128x16xf32>
    %166 = math.exp %165 : vector<128x16xf32>
    %cst_98 = arith.constant 1.000000e+00 : f32
    %167 = vector.broadcast %cst_98 : f32 to vector<128x16xf32>
    %168 = arith.addf %167, %166 : vector<128x16xf32>
    %169 = tpu.reciprocal %168 {approx = true} : vector<128x16xf32> -> vector<128x16xf32>
    %170 = arith.mulf %163, %169 : vector<128x16xf32>
    %171 = arith.truncf %170 : vector<128x16xf32> to vector<128x16xbf16>
    %172 = vector.extract_strided_slice %171 {offsets = [0, 0], sizes = [32, 16], strides = [1, 1]} : vector<128x16xbf16> to vector<32x16xbf16>
    %173 = vector.extract_strided_slice %171 {offsets = [64, 0], sizes = [32, 16], strides = [1, 1]} : vector<128x16xbf16> to vector<32x16xbf16>
    %cst_99 = arith.constant dense<0.000000e+00> : vector<32x32xf32>
    %174 = tpu.matmul %172, %2, %cst_99 {dimension_numbers = #tpu.dot_dimension_numbers<[1], [0], [0], [1], [0, 0, 1, 1], [], []>} : vector<32x16xbf16>, vector<16x32xbf16>, vector<32x32xf32> -> vector<32x32xf32>
    %cst_100 = arith.constant dense<0.000000e+00> : vector<32x32xf32>
    %175 = tpu.matmul %173, %3, %cst_100 {dimension_numbers = #tpu.dot_dimension_numbers<[1], [0], [0], [1], [0, 0, 1, 1], [], []>} : vector<32x16xbf16>, vector<16x32xbf16>, vector<32x32xf32> -> vector<32x32xf32>
    %176 = arith.addf %174, %175 : vector<32x32xf32>
    %177 = arith.truncf %176 : vector<32x32xf32> to vector<32x32xbf16>
    %c0_101 = arith.constant 0 : index
    %c0_102 = arith.constant 0 : index
    %c10 = arith.constant 10 : index
    %c0_103 = arith.constant 0 : index
    %178 = vector.load %arg7[%c0_101, %c0_102, %c10, %c0_103] : memref<1x32x16x32xbf16, #tpu.memory_space<vmem>>, vector<1x32x1x32xbf16>
    %179 = vector.shape_cast %178 : vector<1x32x1x32xbf16> to vector<32x32xbf16>
    %180 = vector.shape_cast %177 : vector<32x32xbf16> to vector<1x32x1x32xbf16>
    tpu.vector_store %arg7[%c0_101, %c0_102, %c10, %c0_103], %180 {strides = array<i32>} : memref<1x32x16x32xbf16, #tpu.memory_space<vmem>>, vector<1x32x1x32xbf16>,
    %181 = vector.extract_strided_slice %171 {offsets = [32, 0], sizes = [32, 16], strides = [1, 1]} : vector<128x16xbf16> to vector<32x16xbf16>
    %182 = vector.extract_strided_slice %171 {offsets = [96, 0], sizes = [32, 16], strides = [1, 1]} : vector<128x16xbf16> to vector<32x16xbf16>
    %cst_104 = arith.constant dense<0.000000e+00> : vector<32x32xf32>
    %183 = tpu.matmul %181, %2, %cst_104 {dimension_numbers = #tpu.dot_dimension_numbers<[1], [0], [0], [1], [0, 0, 1, 1], [], []>} : vector<32x16xbf16>, vector<16x32xbf16>, vector<32x32xf32> -> vector<32x32xf32>
    %cst_105 = arith.constant dense<0.000000e+00> : vector<32x32xf32>
    %184 = tpu.matmul %182, %3, %cst_105 {dimension_numbers = #tpu.dot_dimension_numbers<[1], [0], [0], [1], [0, 0, 1, 1], [], []>} : vector<32x16xbf16>, vector<16x32xbf16>, vector<32x32xf32> -> vector<32x32xf32>
    %185 = arith.addf %183, %184 : vector<32x32xf32>
    %186 = arith.truncf %185 : vector<32x32xf32> to vector<32x32xbf16>
    %c0_106 = arith.constant 0 : index
    %c0_107 = arith.constant 0 : index
    %c11 = arith.constant 11 : index
    %c0_108 = arith.constant 0 : index
    %187 = vector.load %arg7[%c0_106, %c0_107, %c11, %c0_108] : memref<1x32x16x32xbf16, #tpu.memory_space<vmem>>, vector<1x32x1x32xbf16>
    %188 = vector.shape_cast %187 : vector<1x32x1x32xbf16> to vector<32x32xbf16>
    %189 = vector.shape_cast %186 : vector<32x32xbf16> to vector<1x32x1x32xbf16>
    tpu.vector_store %arg7[%c0_106, %c0_107, %c11, %c0_108], %189 {strides = array<i32>} : memref<1x32x16x32xbf16, #tpu.memory_space<vmem>>, vector<1x32x1x32xbf16>,
    %c0_109 = arith.constant 0 : index
    %c0_110 = arith.constant 0 : index
    %c6_111 = arith.constant 6 : index
    %c0_112 = arith.constant 0 : index
    %190 = vector.load %arg2[%c0_109, %c0_110, %c6_111, %c0_112] : memref<1x16x8x16xbf16, #tpu.memory_space<vmem>>, vector<1x16x1x16xbf16>
    %191 = vector.shape_cast %190 : vector<1x16x1x16xbf16> to vector<16x16xbf16>
    %cst_113 = arith.constant dense<0.000000e+00> : vector<128x16xf32>
    %192 = tpu.matmul %0, %191, %cst_113 {dimension_numbers = #tpu.dot_dimension_numbers<[1], [0], [0], [1], [0, 0, 1, 1], [], []>} : vector<128x16xbf16>, vector<16x16xbf16>, vector<128x16xf32> -> vector<128x16xf32>
    %193 = vector.broadcast %1 : vector<128x1xf32> to vector<128x16xf32>
    %194 = arith.addf %192, %193 : vector<128x16xf32>
    %cst_114 = arith.constant 0.000000e+00 : f32
    %195 = vector.broadcast %cst_114 : f32 to vector<128x16xf32>
    %196 = arith.subf %195, %194 : vector<128x16xf32>
    %197 = math.exp %196 : vector<128x16xf32>
    %cst_115 = arith.constant 1.000000e+00 : f32
    %198 = vector.broadcast %cst_115 : f32 to vector<128x16xf32>
    %199 = arith.addf %198, %197 : vector<128x16xf32>
    %200 = tpu.reciprocal %199 {approx = true} : vector<128x16xf32> -> vector<128x16xf32>
    %201 = arith.mulf %194, %200 : vector<128x16xf32>
    %202 = arith.truncf %201 : vector<128x16xf32> to vector<128x16xbf16>
    %203 = vector.extract_strided_slice %202 {offsets = [0, 0], sizes = [32, 16], strides = [1, 1]} : vector<128x16xbf16> to vector<32x16xbf16>
    %204 = vector.extract_strided_slice %202 {offsets = [64, 0], sizes = [32, 16], strides = [1, 1]} : vector<128x16xbf16> to vector<32x16xbf16>
    %cst_116 = arith.constant dense<0.000000e+00> : vector<32x32xf32>
    %205 = tpu.matmul %203, %2, %cst_116 {dimension_numbers = #tpu.dot_dimension_numbers<[1], [0], [0], [1], [0, 0, 1, 1], [], []>} : vector<32x16xbf16>, vector<16x32xbf16>, vector<32x32xf32> -> vector<32x32xf32>
    %cst_117 = arith.constant dense<0.000000e+00> : vector<32x32xf32>
    %206 = tpu.matmul %204, %3, %cst_117 {dimension_numbers = #tpu.dot_dimension_numbers<[1], [0], [0], [1], [0, 0, 1, 1], [], []>} : vector<32x16xbf16>, vector<16x32xbf16>, vector<32x32xf32> -> vector<32x32xf32>
    %207 = arith.addf %205, %206 : vector<32x32xf32>
    %208 = arith.truncf %207 : vector<32x32xf32> to vector<32x32xbf16>
    %c0_118 = arith.constant 0 : index
    %c0_119 = arith.constant 0 : index
    %c12 = arith.constant 12 : index
    %c0_120 = arith.constant 0 : index
    %209 = vector.load %arg7[%c0_118, %c0_119, %c12, %c0_120] : memref<1x32x16x32xbf16, #tpu.memory_space<vmem>>, vector<1x32x1x32xbf16>
    %210 = vector.shape_cast %209 : vector<1x32x1x32xbf16> to vector<32x32xbf16>
    %211 = vector.shape_cast %208 : vector<32x32xbf16> to vector<1x32x1x32xbf16>
    tpu.vector_store %arg7[%c0_118, %c0_119, %c12, %c0_120], %211 {strides = array<i32>} : memref<1x32x16x32xbf16, #tpu.memory_space<vmem>>, vector<1x32x1x32xbf16>,
    %212 = vector.extract_strided_slice %202 {offsets = [32, 0], sizes = [32, 16], strides = [1, 1]} : vector<128x16xbf16> to vector<32x16xbf16>
    %213 = vector.extract_strided_slice %202 {offsets = [96, 0], sizes = [32, 16], strides = [1, 1]} : vector<128x16xbf16> to vector<32x16xbf16>
    %cst_121 = arith.constant dense<0.000000e+00> : vector<32x32xf32>
    %214 = tpu.matmul %212, %2, %cst_121 {dimension_numbers = #tpu.dot_dimension_numbers<[1], [0], [0], [1], [0, 0, 1, 1], [], []>} : vector<32x16xbf16>, vector<16x32xbf16>, vector<32x32xf32> -> vector<32x32xf32>
    %cst_122 = arith.constant dense<0.000000e+00> : vector<32x32xf32>
    %215 = tpu.matmul %213, %3, %cst_122 {dimension_numbers = #tpu.dot_dimension_numbers<[1], [0], [0], [1], [0, 0, 1, 1], [], []>} : vector<32x16xbf16>, vector<16x32xbf16>, vector<32x32xf32> -> vector<32x32xf32>
    %216 = arith.addf %214, %215 : vector<32x32xf32>
    %217 = arith.truncf %216 : vector<32x32xf32> to vector<32x32xbf16>
    %c0_123 = arith.constant 0 : index
    %c0_124 = arith.constant 0 : index
    %c13 = arith.constant 13 : index
    %c0_125 = arith.constant 0 : index
    %218 = vector.load %arg7[%c0_123, %c0_124, %c13, %c0_125] : memref<1x32x16x32xbf16, #tpu.memory_space<vmem>>, vector<1x32x1x32xbf16>
    %219 = vector.shape_cast %218 : vector<1x32x1x32xbf16> to vector<32x32xbf16>
    %220 = vector.shape_cast %217 : vector<32x32xbf16> to vector<1x32x1x32xbf16>
    tpu.vector_store %arg7[%c0_123, %c0_124, %c13, %c0_125], %220 {strides = array<i32>} : memref<1x32x16x32xbf16, #tpu.memory_space<vmem>>, vector<1x32x1x32xbf16>,
    %c0_126 = arith.constant 0 : index
    %c0_127 = arith.constant 0 : index
    %c7_128 = arith.constant 7 : index
    %c0_129 = arith.constant 0 : index
    %221 = vector.load %arg2[%c0_126, %c0_127, %c7_128, %c0_129] : memref<1x16x8x16xbf16, #tpu.memory_space<vmem>>, vector<1x16x1x16xbf16>
    %222 = vector.shape_cast %221 : vector<1x16x1x16xbf16> to vector<16x16xbf16>
    %cst_130 = arith.constant dense<0.000000e+00> : vector<128x16xf32>
    %223 = tpu.matmul %0, %222, %cst_130 {dimension_numbers = #tpu.dot_dimension_numbers<[1], [0], [0], [1], [0, 0, 1, 1], [], []>} : vector<128x16xbf16>, vector<16x16xbf16>, vector<128x16xf32> -> vector<128x16xf32>
    %224 = vector.broadcast %1 : vector<128x1xf32> to vector<128x16xf32>
    %225 = arith.addf %223, %224 : vector<128x16xf32>
    %cst_131 = arith.constant 0.000000e+00 : f32
    %226 = vector.broadcast %cst_131 : f32 to vector<128x16xf32>
    %227 = arith.subf %226, %225 : vector<128x16xf32>
    %228 = math.exp %227 : vector<128x16xf32>
    %cst_132 = arith.constant 1.000000e+00 : f32
    %229 = vector.broadcast %cst_132 : f32 to vector<128x16xf32>
    %230 = arith.addf %229, %228 : vector<128x16xf32>
    %231 = tpu.reciprocal %230 {approx = true} : vector<128x16xf32> -> vector<128x16xf32>
    %232 = arith.mulf %225, %231 : vector<128x16xf32>
    %233 = arith.truncf %232 : vector<128x16xf32> to vector<128x16xbf16>
    %234 = vector.extract_strided_slice %233 {offsets = [0, 0], sizes = [32, 16], strides = [1, 1]} : vector<128x16xbf16> to vector<32x16xbf16>
    %235 = vector.extract_strided_slice %233 {offsets = [64, 0], sizes = [32, 16], strides = [1, 1]} : vector<128x16xbf16> to vector<32x16xbf16>
    %cst_133 = arith.constant dense<0.000000e+00> : vector<32x32xf32>
    %236 = tpu.matmul %234, %2, %cst_133 {dimension_numbers = #tpu.dot_dimension_numbers<[1], [0], [0], [1], [0, 0, 1, 1], [], []>} : vector<32x16xbf16>, vector<16x32xbf16>, vector<32x32xf32> -> vector<32x32xf32>
    %cst_134 = arith.constant dense<0.000000e+00> : vector<32x32xf32>
    %237 = tpu.matmul %235, %3, %cst_134 {dimension_numbers = #tpu.dot_dimension_numbers<[1], [0], [0], [1], [0, 0, 1, 1], [], []>} : vector<32x16xbf16>, vector<16x32xbf16>, vector<32x32xf32> -> vector<32x32xf32>
    %238 = arith.addf %236, %237 : vector<32x32xf32>
    %239 = arith.truncf %238 : vector<32x32xf32> to vector<32x32xbf16>
    %c0_135 = arith.constant 0 : index
    %c0_136 = arith.constant 0 : index
    %c14 = arith.constant 14 : index
    %c0_137 = arith.constant 0 : index
    %240 = vector.load %arg7[%c0_135, %c0_136, %c14, %c0_137] : memref<1x32x16x32xbf16, #tpu.memory_space<vmem>>, vector<1x32x1x32xbf16>
    %241 = vector.shape_cast %240 : vector<1x32x1x32xbf16> to vector<32x32xbf16>
    %242 = vector.shape_cast %239 : vector<32x32xbf16> to vector<1x32x1x32xbf16>
    tpu.vector_store %arg7[%c0_135, %c0_136, %c14, %c0_137], %242 {strides = array<i32>} : memref<1x32x16x32xbf16, #tpu.memory_space<vmem>>, vector<1x32x1x32xbf16>,
    %243 = vector.extract_strided_slice %233 {offsets = [32, 0], sizes = [32, 16], strides = [1, 1]} : vector<128x16xbf16> to vector<32x16xbf16>
    %244 = vector.extract_strided_slice %233 {offsets = [96, 0], sizes = [32, 16], strides = [1, 1]} : vector<128x16xbf16> to vector<32x16xbf16>
    %cst_138 = arith.constant dense<0.000000e+00> : vector<32x32xf32>
    %245 = tpu.matmul %243, %2, %cst_138 {dimension_numbers = #tpu.dot_dimension_numbers<[1], [0], [0], [1], [0, 0, 1, 1], [], []>} : vector<32x16xbf16>, vector<16x32xbf16>, vector<32x32xf32> -> vector<32x32xf32>
    %cst_139 = arith.constant dense<0.000000e+00> : vector<32x32xf32>
    %246 = tpu.matmul %244, %3, %cst_139 {dimension_numbers = #tpu.dot_dimension_numbers<[1], [0], [0], [1], [0, 0, 1, 1], [], []>} : vector<32x16xbf16>, vector<16x32xbf16>, vector<32x32xf32> -> vector<32x32xf32>
    %247 = arith.addf %245, %246 : vector<32x32xf32>
    %248 = arith.truncf %247 : vector<32x32xf32> to vector<32x32xbf16>
    %c0_140 = arith.constant 0 : index
    %c0_141 = arith.constant 0 : index
    %c15 = arith.constant 15 : index
    %c0_142 = arith.constant 0 : index
    %249 = vector.load %arg7[%c0_140, %c0_141, %c15, %c0_142] : memref<1x32x16x32xbf16, #tpu.memory_space<vmem>>, vector<1x32x1x32xbf16>
    %250 = vector.shape_cast %249 : vector<1x32x1x32xbf16> to vector<32x32xbf16>
    %251 = vector.shape_cast %248 : vector<32x32xbf16> to vector<1x32x1x32xbf16>
    tpu.vector_store %arg7[%c0_140, %c0_141, %c15, %c0_142], %251 {strides = array<i32>} : memref<1x32x16x32xbf16, #tpu.memory_space<vmem>>, vector<1x32x1x32xbf16>,
    return
  }
  func.func @transform_0(%arg0: i32, %arg1: i32) -> (i32, i32, i32, i32) {
    %c0_i32 = arith.constant 0 : i32
    %c0_i32_0 = arith.constant 0 : i32
    %c0_i32_1 = arith.constant 0 : i32
    return %arg0, %c0_i32, %arg1, %c0_i32_0 : i32, i32, i32, i32
  }
  func.func @transform_1(%arg0: i32, %arg1: i32) -> (i32, i32) {
    %c0_i32 = arith.constant 0 : i32
    %c0_i32_0 = arith.constant 0 : i32
    %c0_i32_1 = arith.constant 0 : i32
    return %c0_i32, %c0_i32_0 : i32, i32
  }
  func.func @transform_2(%arg0: i32, %arg1: i32) -> (i32, i32) {
    %c0_i32 = arith.constant 0 : i32
    %c0_i32_0 = arith.constant 0 : i32
    %c0_i32_1 = arith.constant 0 : i32
    return %c0_i32, %c0_i32_0 : i32, i32
  }
  func.func @transform_3(%arg0: i32, %arg1: i32) -> (i32, i32) {
    %c0_i32 = arith.constant 0 : i32
    %c0_i32_0 = arith.constant 0 : i32
    %c0_i32_1 = arith.constant 0 : i32
    return %c0_i32, %c0_i32_0 : i32, i32
  }
  func.func @transform_4(%arg0: i32, %arg1: i32) -> (i32, i32) {
    %c0_i32 = arith.constant 0 : i32
    %c0_i32_0 = arith.constant 0 : i32
    %c0_i32_1 = arith.constant 0 : i32
    return %c0_i32, %c0_i32_0 : i32, i32
  }
  func.func @transform_5(%arg0: i32, %arg1: i32) -> (i32, i32, i32, i32) {
    %c0_i32 = arith.constant 0 : i32
    %c0_i32_0 = arith.constant 0 : i32
    %c0_i32_1 = arith.constant 0 : i32
    return %arg0, %c0_i32, %arg1, %c0_i32_0 : i32, i32, i32, i32
  }
}

</mosaic_0001>

<bundles_post_ra>
// kernel: tpu_custom_call.1
= control target key start
LH: loop header
LB: loop body
LE: loop exit
PB: predicated region body
PF: predicated region fallthrough
CT: control target
= control target key end

     0   :  { %10 = vsyncpa [#allocation3], 0  ;;  %s16934_s0 = inlined_call_operand.hbm [shape: bf16[2,16,16,16], index: 0, kind: input, shape index: {}]   ;;  %s16935_s1 = inlined_call_operand.vmem [shape: bf16[128,16], index: 1, kind: input, shape index: {}]   ;;  %s16936_s2 = inlined_call_operand.vmem [shape: f32[128,1], index: 2, kind: input, shape index: {}]   ;;  %s16937_s3 = inlined_call_operand.vmem [shape: bf16[16,32], index: 3, kind: input, shape index: {}]   ;;  %s16938_s4 = inlined_call_operand.vmem [shape: bf16[16,32], index: 4, kind: input, shape index: {}]   ;;  %s16939_s5 = inlined_call_operand.hbm [shape: bf16[2,32,32,32], index: 5, kind: output, shape index: {}]  }
   0x1   :  { %12 = vsyncpa [#allocation3 + $0x1], 0 }
   0x2   :  { %13 = vsyncpa [#allocation4], 0 }
   0x3   :  { %15 = vsyncpa [#allocation4 + $0x1], 0  ;;  %s11412_s18 = smov 0   ;;  %s11414_s19 = smov 0  }
   0x4   :  { %s11416_s20 = smov 0   ;;  %s11418_s21 = smov 0  }
   0x5   :  { %s11420_s22 = smov 0   ;;  %s11422_s23 = smov 0  }
   0x6   :  { %s11424_s24 = smov 0   ;;  %s11426_s25 = smov 0  }
   0x7 LB: > { %17023 = sst [smem:[#allocation10_spill]] %s11348_s20  ;;  %s10047_s26 = sadd.s32 4294967295, %s11368_s25   ;;  %s11368_s25 = sphi %s11426_s25, %s21_s25   ;;  %s11364_s24 = sphi %s11424_s24, %s17227_s24   ;;  %s11360_s23 = sphi %s11422_s23, %s17226_s23   ;;  %s11356_s22 = sphi %s11420_s22, %s17225_s22   ;;  %s11352_s21 = sphi %s11418_s21, %s17224_s21   ;;  %s11348_s20 = sphi %s11416_s20, %s17223_s20   ;;  %s11344_s19 = sphi %s11414_s19, %s17222_s19   ;;  %s11340_s18 = sphi %s11412_s18, %s17221_s18  }
   0x8   : > { %s10048_s27 = sadd.s32 4294967294, %s11368_s25   ;;  %s30_s28 = sadd.s32 1, %s11360_s23 }
   0x9   : > { %s33_s29 = sadd.s32 1, %s11364_s24  ;;  %p31_p0 = scmp.ge.s32.totalorder %s30_s28, 2 }
   0xa   : > { %s42_s30 = sadd.s32 1, %s11348_s20  ;;  %p49_p1 = scmp.ne.s32.totalorder %s11348_s20, %s11344_s19 }
   0xb   : > { %p50_p2 = scmp.eq.s32.totalorder %s11368_s25, 0  ;;  %s17229_s28 = smov (%p31_p0, %s30_s28), 0 }
   0xc   : > { %17024 = sst [smem:[#allocation11_spill]] %s17229_s28  ;;  %s17231_s29 = smov (!%p31_p0, %s33_s29), %s11364_s24 }
   0xd   : > { %s38_s6 = ssub.s32 %s11360_s23, %s17229_s28  ;;  %p11465_p3 = por %p50_p2, %p49_p1 }
   0xe   : > { %p35_p4 = scmp.ge.s32.totalorder %s17231_s29, 2  ;;  %p55_p5 = scmp.ne.s32.totalorder %s11344_s19, %s11340_s18 }
   0xf   : > { %p56_p6 = scmp.eq.s32.totalorder %s10047_s26, 0  ;;  %p165_p7 = scmp.eq.s32.totalorder %s10047_s26, 3 }
  0x10   : > { %s17233_s29 = smov (%p35_p4, %s17231_s29), 0  ;;  %p171_p10 = scmp.eq.s32.totalorder %s10048_s27, 3 }
  0x11   : > { %17026 = sst [smem:[#allocation12_spill]] %s17233_s29  ;;  %p11473_p8 = por %p56_p6, %p55_p5 }
  0x12   : > { %p11477_p9 = por %p165_p7, %p49_p1  ;;  %s37_s10 = ssub.s32 %s11364_s24, %s17233_s29 }
  0x13   : > { %s39_s11 = sor.u32 %s38_s6, %s37_s10  ;;  %p11483_p12 = por %p171_p10, %p55_p5 }
  0x14   : > { %p40_p11 = scmp.eq.s32.totalorder %s39_s11, 0  ;;  %p10643_p13 = scmp.lt.s32.totalorder %s11368_s25, 4 }
  0x15   : > { %s17029_s12 = scalar_select %p11483_p12, 1, 0 }
  0x16   : > { %s203_s13 = sand.u32 1, %s11348_s20   ;;  %s10052_s16 = sshll.u32 %s11364_s24, 5 }
  0x17   : > { %17030 = sst [smem:[#allocation13_spill]] %s17029_s12  ;;  %s10051_s15 = sshll.u32 %s203_s13, 6 }
  0x18   : > { %s11490_s14 = scalar_select %p40_p11, %s11348_s20, %s42_s30  }
  0x19   : > { %s211_s17 = sadd.s32 %s11360_s23, %s10052_s16  ;;  %s207_s26 = scalar_lea.vmem [#allocation2], %s10051_s15 }
  0x1a   : > { %17031 = sst [smem:[#allocation14_spill]] %s11490_s14  ;;  %s216_s28 = sshll.u32 %s207_s26, 4  ;;  %s217_s28 = int_to_ptr.vmem [resolvable:$true] %s216_s28 }
  0x1b   : > { %s10053_s29 = sshll.u32 %s211_s17, 2  ;;  %p10636_p0 = pnand %p10643_p13, %p11465_p3 }
  0x1c   : > { %s213_s10 = scalar_lea.hbm %s16934_s0, %s10053_s29  ;;  %s204_s12 = scalar_lea.sflag [#allocation3], %s203_s13 }
  0x1d   : > { %s214_s11 = sshll.u32 %s213_s10, 4  ;;  %s11370_s30 = smov 128   ;;  %s215_s11 = int_to_ptr.hbm [resolvable:$true] %s214_s11 }
  0x1e   : > { %s11371_s14 = smov 64   ;;  %s11372_s20 = smov 4  }
  0x1f   : > { %10638 = dma.hbm_to_vmem [thread:$0]  (!%p10636_p0), %s215_s11, 1024, %s217_s28, %s204_s12, %s11370_s30, %s11371_s14, %s11372_s20  }
  0x20   : > { %p10054_p1 = scmp.ge.s32.totalorder %s11368_s25, 1  ;;  %p224_p2 = scmp.lt.s32.totalorder %s11368_s25, 5 }
  0x22   : > { %p225_p4 = pnand %p10054_p1, %p224_p2 }
  0x24   : > { %228 = sbr.rel (%p225_p4) target bundleno = 1395 (0x573), region = 40 }
  0x29   : > { %s11502_s15 = sand.u32 1, %s11344_s19  }
  0x2a   : > { %s10055_s29 = sshll.u32 %s11502_s15, 6  ;;  %s231_s7 = scalar_lea.sflag [#allocation3], %s11502_s15 }
  0x2b   : > { %s11506_s16 = scalar_lea.vmem [#allocation2], %s10055_s29 }
  0x2c   : > { %11331 = dma.done.wait (%p11473_p8), %s231_s7, 1024  }
  0x2d   : > { %11333 = vsyncadd (%p11473_p8), %s231_s7, 4294966272  ;;  %v300_v0 = vld [vmem:[%s11506_s16] sm:$0x1]  ;;  %v301_v1 = vld [vmem:[%s11506_s16 + $0x4] sm:$0x1]  ;;  %vm501_vm0 = vcmask 1041409  }
  0x2e   : > { %v302_v2 = vld [vmem:[%s11506_s16 + $0x8] sm:$0x1]  ;;  %v303_v3 = vld [vmem:[%s11506_s16 + $0xc] sm:$0x1]  ;;  %v304_v4 = vld [vmem:[%s11506_s16 + $0x10] sm:$0x1]  ;;  %v453_v6 = vunpack.c.l.b16 %v301_v1  ;;  %v452_v17 = vunpack.c.l.b16 %v300_v0 }
  0x2f   : > { %v305_v5 = vld [vmem:[%s11506_s16 + $0x14] sm:$0x1]  ;;  %v454_v7 = vunpack.c.l.b16 %v302_v2  ;;  %vm504_vm1 = vcmask 1042434   ;;  %v306_v8 = vld [vmem:[%s11506_s16 + $0x18] sm:$0x1]  ;;  %v455_v11 = vunpack.c.l.b16 %v303_v3  ;;  %v456_v12 = vunpack.c.l.b16 %v304_v4  ;;  %s10056_s17 = sshll.u32 %s11502_s15, 8 }
  0x30   : > { %v307_v9 = vld [vmem:[%s11506_s16 + $0x1c] sm:$0x1]  ;;  %v308_v10 = vld [vmem:[%s11506_s16 + $0x20] sm:$0x1]  ;;  %v457_v13 = vunpack.c.l.b16 %v305_v5  ;;  %vm507_vm2 = vcmask 1043459   ;;  %v458_v18 = vunpack.c.l.b16 %v306_v8  ;;  %vm510_vm3 = vcmask 1044484  }
  0x31   : > { %v309_v14 = vld [vmem:[%s11506_s16 + $0x24] sm:$0x1]  ;;  %v310_v15 = vld [vmem:[%s11506_s16 + $0x28] sm:$0x1]  ;;  %v311_v16 = vld [vmem:[%s11506_s16 + $0x2c] sm:$0x1]  ;;  %v459_v19 = vunpack.c.l.b16 %v307_v9  ;;  %v460_v20 = vunpack.c.l.b16 %v308_v10  ;;  %v10090_v27 = vunpack.i.l.s16 %v453_v6  ;;  %v10091_v32 = vunpack.i.l.s16 %v454_v7 }
  0x32   : > { %v312_v21 = vld [vmem:[%s11506_s16 + $0x30] sm:$0x1]  ;;  %v313_v22 = vld [vmem:[%s11506_s16 + $0x34] sm:$0x1]  ;;  %v314_v23 = vld [vmem:[%s11506_s16 + $0x38] sm:$0x1]  ;;  %v461_v24 = vunpack.c.l.b16 %v309_v14  ;;  %v462_v25 = vunpack.c.l.b16 %v310_v15  ;;  %v463_v26 = vunpack.c.l.b16 %v311_v16  ;;  %v10092_v34 = vunpack.i.l.s16 %v455_v11 }
  0x33   : > { %vm513_vm4 = vcmask 1045509   ;;  %v315_v28 = vld [vmem:[%s11506_s16 + $0x3c] sm:$0x1]  ;;  %v464_v29 = vunpack.c.l.b16 %v312_v21  ;;  %v465_v30 = vunpack.c.l.b16 %v313_v22  ;;  %v466_v31 = vunpack.c.l.b16 %v314_v23  ;;  %v1649_v53 = vld [vmem:[%s11506_s16] sm:$0x1]  ;;  %s12266_s6 = scalar_lea.vmem [#allocation5], %s10056_s17 }
  0x34   : > { %vm516_vm5 = vcmask 1046534   ;;  %v467_v33 = vunpack.c.l.b16 %v315_v28  ;;  %v10093_v35 = vunpack.i.l.s16 %v456_v12  ;;  %v10094_v36 = vunpack.i.l.s16 %v457_v13  ;;  %v1650_v58 = vld [vmem:[%s11506_s16 + $0x4] sm:$0x1]  ;;  %v1651_v63 = vld [vmem:[%s11506_s16 + $0x8] sm:$0x1] }
  0x35   : > { %vm519_vm6 = vcmask 1047559   ;;  %v10089_v37 = vunpack.i.l.s16 %v452_v17  ;;  %v10095_v38 = vunpack.i.l.s16 %v458_v18  ;;  %v10096_v39 = vunpack.i.l.s16 %v459_v19  ;;  %v1652_v4 = vld [vmem:[%s11506_s16 + $0xc] sm:$0x1]  ;;  %v1653_v5 = vld [vmem:[%s11506_s16 + $0x10] sm:$0x1] }
  0x36   : > { %v10098_v40 = vunpack.i.l.s16 %v461_v24  ;;  %v10097_v41 = vunpack.i.l.s16 %v460_v20  ;;  %v10099_v42 = vunpack.i.l.s16 %v462_v25  ;;  %v10100_v43 = vunpack.i.l.s16 %v463_v26  ;;  %v1654_v9 = vld [vmem:[%s11506_s16 + $0x14] sm:$0x1]  ;;  %v1655_v10 = vld [vmem:[%s11506_s16 + $0x18] sm:$0x1]  ;;  %v1656_v14 = vld [vmem:[%s11506_s16 + $0x1c] sm:$0x1] }
  0x37   : > { %v10101_v44 = vunpack.i.l.s16 %v464_v29  ;;  %v10102_v45 = vunpack.i.l.s16 %v465_v30  ;;  %v10103_v46 = vunpack.i.l.s16 %v466_v31  ;;  %v500_v47 = vrot.slane %v10090_v27, 7  ;;  %v1657_v15 = vld [vmem:[%s11506_s16 + $0x20] sm:$0x1]  ;;  %v1658_v16 = vld [vmem:[%s11506_s16 + $0x24] sm:$0x1] }
  0x38   : > { %v503_v48 = vrot.slane %v10091_v32, 6  ;;  %v10104_v49 = vunpack.i.l.s16 %v467_v33  ;;  %v506_v50 = vrot.slane %v10092_v34, 5  ;;  %v509_v51 = vrot.slane %v10093_v35, 4  ;;  %v1659_v21 = vld [vmem:[%s11506_s16 + $0x28] sm:$0x1] }
  0x39   : > { %v512_v52 = vrot.slane %v10094_v36, 3  ;;  %v502_v54 = vsel %vm501_vm0, %v500_v47, %v10089_v37  ;;  %v515_v55 = vrot.slane %v10095_v38, 2  ;;  %v521_v56 = vrot.slane %v10098_v40, 7  ;;  %v1660_v22 = vld [vmem:[%s11506_s16 + $0x2c] sm:$0x1] }
  0x3a   : > { %v523_v57 = vrot.slane %v10099_v42, 6  ;;  %v505_v59 = vsel %vm504_vm1, %v503_v48, %v502_v54  ;;  %v518_v60 = vrot.slane %v10096_v39, 1  ;;  %v525_v61 = vrot.slane %v10100_v43, 5  ;;  %v1661_v23 = vld [vmem:[%s11506_s16 + $0x30] sm:$0x1] }
  0x3b   : > { %v527_v62 = vrot.slane %v10101_v44, 4  ;;  %v508_v0 = vsel %vm507_vm2, %v506_v50, %v505_v59  ;;  %v522_v1 = vsel %vm501_vm0, %v521_v56, %v10097_v41  ;;  %v529_v2 = vrot.slane %v10102_v45, 3  ;;  %v1662_v28 = vld [vmem:[%s11506_s16 + $0x34] sm:$0x1]  ;;  %v1663_v29 = vld [vmem:[%s11506_s16 + $0x38] sm:$0x1] }
  0x3c   : > { %v531_v3 = vrot.slane %v10103_v46, 2  ;;  %v511_v6 = vsel %vm510_vm3, %v509_v51, %v508_v0  ;;  %v524_v7 = vsel %vm504_vm1, %v523_v57, %v522_v1  ;;  %v533_v8 = vrot.slane %v10104_v49, 1  ;;  %v1664_v33 = vld [vmem:[%s11506_s16 + $0x3c] sm:$0x1] }
  0x3d   : > { %v1681_v11 = vunpack.c.l.b16 %v1649_v53  ;;  %v514_v12 = vsel %vm513_vm4, %v512_v52, %v511_v6  ;;  %v526_v13 = vsel %vm507_vm2, %v525_v61, %v524_v7  ;;  %v1682_v17 = vunpack.c.l.b16 %v1650_v58 }
  0x3e   : > { %v1683_v18 = vunpack.c.l.b16 %v1651_v63  ;;  %v517_v19 = vsel %vm516_vm5, %v515_v55, %v514_v12  ;;  %v528_v20 = vsel %vm510_vm3, %v527_v62, %v526_v13  ;;  %v1684_v24 = vunpack.c.l.b16 %v1652_v4 }
  0x3f   : > { %v1685_v25 = vunpack.c.l.b16 %v1653_v5  ;;  %v520_v26 = vsel %vm519_vm6, %v518_v60, %v517_v19  ;;  %v530_v27 = vsel %vm513_vm4, %v529_v2, %v528_v20  ;;  %v1686_v30 = vunpack.c.l.b16 %v1654_v9  ;;  %v11562_v5 = vld [vmem:[%s16935_s1] sm:$0xff] }
  0x40   : > { %v1687_v31 = vunpack.c.l.b16 %v1655_v10  ;;  %v532_v32 = vsel %vm516_vm5, %v531_v3, %v530_v27  ;;  %v1688_v34 = vunpack.c.l.b16 %v1656_v14  ;;  %v1689_v35 = vunpack.c.l.b16 %v1657_v15 }
  0x41   : > { %v1690_v36 = vunpack.c.l.b16 %v1658_v16  ;;  %v534_v37 = vsel %vm519_vm6, %v533_v8, %v532_v32  ;;  %v1691_v38 = vunpack.c.l.b16 %v1659_v21  ;;  %v1692_v39 = vunpack.c.l.b16 %v1660_v22  ;;  %v11596_v32 = vld [vmem:[%s16935_s1 + $0x8] sm:$0xff] }
  0x42   : > { %v1693_v40 = vunpack.c.l.b16 %v1661_v23  ;;  %v535_v41 = vpack.c.b16 %v534_v37, %v520_v26  ;;  %v1694_v42 = vunpack.c.l.b16 %v1662_v28  ;;  %v1695_v43 = vunpack.c.l.b16 %v1663_v29  ;;  %v292_v37 = vld [vmem:[%s16936_s2 + $0x60] sm:$0xff] }
  0x43   : > { %v10161_v44 = vunpack.i.l.s16 %v1681_v11  ;;  %v1696_v45 = vunpack.c.l.b16 %v1664_v33  ;;  %v10163_v46 = vunpack.i.l.s16 %v1683_v18  ;;  %v10164_v47 = vunpack.i.l.s16 %v1684_v24  ;;  %v282_v18 = vld [vmem:[%s16936_s2 + $0x10] sm:$0xff] }
  0x44   : > { %v10165_v48 = vunpack.i.l.s16 %v1685_v25  ;;  %569 = vmatpush.bf16.msra.mxu0 %v535_v41  ;;  %v10162_v49 = vunpack.i.l.s16 %v1682_v17  ;;  %v10166_v50 = vunpack.i.l.s16 %v1686_v30  ;;  %v10167_v51 = vunpack.i.l.s16 %v1687_v31  ;;  %v280_v17 = vld [vmem:[%s16936_s2] sm:$0xff]  ;;  %v281_v30 = vld [vmem:[%s16936_s2 + $0x8] sm:$0xff]  ;;  %v283_v31 = vld [vmem:[%s16936_s2 + $0x18] sm:$0xff] }
  0x45   : > { %v10169_v52 = vunpack.i.l.s16 %v1689_v35  ;;  %v10168_v53 = vunpack.i.l.s16 %v1688_v34  ;;  %v10171_v54 = vunpack.i.l.s16 %v1691_v38  ;;  %v10172_v55 = vunpack.i.l.s16 %v1692_v39  ;;  %v294_v33 = vld [vmem:[%s16936_s2 + $0x70] sm:$0xff]  ;;  %v295_v34 = vld [vmem:[%s16936_s2 + $0x78] sm:$0xff]  ;;  %v289_v35 = vld [vmem:[%s16936_s2 + $0x48] sm:$0xff] }
  0x46   : > { %v10173_v56 = vunpack.i.l.s16 %v1693_v40  ;;  %v10170_v57 = vunpack.i.l.s16 %v1690_v36  ;;  %v10174_v58 = vunpack.i.l.s16 %v1694_v42  ;;  %v10175_v59 = vunpack.i.l.s16 %v1695_v43  ;;  %v290_v36 = vld [vmem:[%s16936_s2 + $0x50] sm:$0xff]  ;;  %v284_v39 = vld [vmem:[%s16936_s2 + $0x20] sm:$0xff]  ;;  %v285_v40 = vld [vmem:[%s16936_s2 + $0x28] sm:$0xff] }
  0x47   : > { %v1729_v60 = vrot.slane %v10161_v44, 1  ;;  %v10176_v61 = vunpack.i.l.s16 %v1696_v45  ;;  %v1731_v62 = vrot.slane %v10163_v46, 7  ;;  %v1733_v63 = vrot.slane %v10164_v47, 6  ;;  %v11620_v38 = vld [vmem:[%s16935_s1 + $0x10] sm:$0xff]  ;;  %v293_v41 = vld [vmem:[%s16936_s2 + $0x68] sm:$0xff]  ;;  %v288_v42 = vld [vmem:[%s16936_s2 + $0x40] sm:$0xff] }
  0x48   : > { %v1735_v0 = vrot.slane %v10165_v48, 5  ;;  %v1737_v2 = vrot.slane %v10166_v50, 4  ;;  %v1739_v3 = vrot.slane %v10167_v51, 3  ;;  %v1743_v4 = vrot.slane %v10169_v52, 1  ;;  %v287_v43 = vld [vmem:[%s16936_s2 + $0x38] sm:$0xff]  ;;  %v286_v46 = vld [vmem:[%s16936_s2 + $0x30] sm:$0xff] }
  0x49   : > { %v1730_v1 = vsel %vm501_vm0, %v10162_v49, %v1729_v60  ;;  %v1745_v7 = vrot.slane %v10171_v54, 7  ;;  %v1747_v8 = vrot.slane %v10172_v55, 6  ;;  %v1749_v9 = vrot.slane %v10173_v56, 5  ;;  %v11644_v44 = vld [vmem:[%s16935_s1 + $0x18] sm:$0xff]  ;;  %v11659_v47 = vld [vmem:[%s16935_s1 + $0x20] sm:$0xff]  ;;  %v11668_v48 = vld [vmem:[%s16935_s1 + $0x28] sm:$0xff] }
  0x4a   : > { %v1732_v6 = vsel %vm504_vm1, %v1731_v62, %v1730_v1  ;;  %v1741_v11 = vrot.slane %v10168_v53, 2  ;;  %v1744_v12 = vsel %vm501_vm0, %v10170_v57, %v1743_v4  ;;  %v1751_v13 = vrot.slane %v10174_v58, 4  ;;  %v291_v45 = vld [vmem:[%s16936_s2 + $0x58] sm:$0xff]  ;;  %v4017_v49 = vld [vmem:[%s11506_s16] sm:$0x2]  ;;  %v11683_v58 = vld [vmem:[%s16935_s1 + $0x30] sm:$0xff] }
  0x4b   : > { %v1734_v10 = vsel %vm507_vm2, %v1733_v63, %v1732_v6  ;;  %v1746_v15 = vsel %vm504_vm1, %v1745_v7, %v1744_v12  ;;  %v1753_v16 = vrot.slane %v10175_v59, 3  ;;  %vm537_vm7 = vcmask 130048   ;;  %v4018_v50 = vld [vmem:[%s11506_s16 + $0x4] sm:$0x2]  ;;  %v4025_v51 = vld [vmem:[%s11506_s16 + $0x20] sm:$0x2] }
  0x4c   : > { %v1736_v14 = vsel %vm510_vm3, %v1735_v0, %v1734_v10  ;;  %v1748_v20 = vsel %vm507_vm2, %v1747_v8, %v1746_v15  ;;  %v1755_v21 = vrot.slane %v10176_v61, 2  ;;  %10105 = vmatmul.msk.bf16.vlgmr.msra.gmra.mxu0 %vm537_vm7, %v11562_v5  ;;  %v11373_v24 = vmov 0   ;;  %v4019_v52 = vld [vmem:[%s11506_s16 + $0x8] sm:$0x2]  ;;  %v4026_v53 = vld [vmem:[%s11506_s16 + $0x24] sm:$0x2] }
  0x4d   : > { %v1738_v19 = vsel %vm513_vm4, %v1737_v2, %v1736_v14  ;;  %v1750_v23 = vsel %vm510_vm3, %v1749_v9, %v1748_v20  ;;  %10721 = vset.pattern.permute.xlu0 %v11373_v24  ;;  %10722 = vset.pattern.permute.xlu1 %v11373_v24  ;;  %v4027_v54 = vld [vmem:[%s11506_s16 + $0x28] sm:$0x2]  ;;  %v4049_v55 = vunpack.c.l.b16 %v4017_v49  ;;  %v4050_v56 = vunpack.c.l.b16 %v4018_v50  ;;  %v4020_v59 = vld [vmem:[%s11506_s16 + $0xc] sm:$0x2]  ;;  %v4021_v60 = vld [vmem:[%s11506_s16 + $0x10] sm:$0x2] }
  0x4e   : > { %v1740_v22 = vsel %vm516_vm5, %v1739_v3, %v1738_v19  ;;  %v1752_v26 = vsel %vm513_vm4, %v1751_v13, %v1750_v23  ;;  %318 = vperm.xlu0 %10721, %v280_v17   ;;  %328 = vperm.xlu1 %10722, %v282_v18   ;;  %v4051_v57 = vunpack.c.l.b16 %v4019_v52  ;;  %v4022_v61 = vld [vmem:[%s11506_s16 + $0x14] sm:$0x2]  ;;  %v4057_v62 = vunpack.c.l.b16 %v4025_v51  ;;  %v4023_v1 = vld [vmem:[%s11506_s16 + $0x18] sm:$0x2]  ;;  %v4024_v2 = vld [vmem:[%s11506_s16 + $0x1c] sm:$0x2] }
  0x4f   : > { %v1742_v25 = vsel %vm519_vm6, %v1741_v11, %v1740_v22  ;;  %v1754_v27 = vsel %vm516_vm5, %v1753_v16, %v1752_v26  ;;  %10723 = vset.pattern.permute.xlu2 %v11373_v24  ;;  %v4058_v63 = vunpack.c.l.b16 %v4026_v53  ;;  %v4059_v0 = vunpack.c.l.b16 %v4027_v54  ;;  %v4028_v3 = vld [vmem:[%s11506_s16 + $0x2c] sm:$0x2]  ;;  %v4029_v9 = vld [vmem:[%s11506_s16 + $0x30] sm:$0x2]  ;;  %v4030_v10 = vld [vmem:[%s11506_s16 + $0x34] sm:$0x2] }
  0x50   : > { %v1756_v28 = vsel %vm519_vm6, %v1755_v21, %v1754_v27  ;;  %378 = vperm.xlu2 %10723, %v292_v37   ;;  %v4052_v4 = vunpack.c.l.b16 %v4020_v59  ;;  %v4053_v6 = vunpack.c.l.b16 %v4021_v60  ;;  %v4054_v7 = vunpack.c.l.b16 %v4022_v61  ;;  %v4031_v11 = vld [vmem:[%s11506_s16 + $0x38] sm:$0x2]  ;;  %v4032_v16 = vld [vmem:[%s11506_s16 + $0x3c] sm:$0x2] }
  0x51   : > { %v1757_v29 = vpack.c.b16 %v1756_v28, %v1742_v25  ;;  %v10289_v8 = vunpack.i.l.s16 %v4049_v55  ;;  %v4055_v12 = vunpack.c.l.b16 %v4023_v1  ;;  %v4056_v13 = vunpack.c.l.b16 %v4024_v2 }
  0x52   : > { %v10290_v14 = vunpack.i.l.s16 %v4050_v56  ;;  %v10291_v15 = vunpack.i.l.s16 %v4051_v57  ;;  %v4060_v17 = vunpack.c.l.b16 %v4028_v3  ;;  %v4061_v18 = vunpack.c.l.b16 %v4029_v9 }
  0x53   : > { %1766 = vmatpush.bf16.msra.mxu2 %v1757_v29  ;;  %v4062_v19 = vunpack.c.l.b16 %v4030_v10  ;;  %v4063_v20 = vunpack.c.l.b16 %v4031_v11  ;;  %v4064_v21 = vunpack.c.l.b16 %v4032_v16  ;;  %v10293_v22 = vunpack.i.l.s16 %v4053_v6 }
  0x54   : > { %v10297_v23 = vunpack.i.l.s16 %v4057_v62  ;;  %v10298_v24 = vunpack.i.l.s16 %v4058_v63  ;;  %v10292_v25 = vunpack.i.l.s16 %v4052_v4  ;;  %v10294_v26 = vunpack.i.l.s16 %v4054_v7  ;;  %v11716_v7 = vld [vmem:[%s16935_s1 + $0x38] sm:$0xff] }
  0x55   : > { %v10299_v27 = vunpack.i.l.s16 %v4059_v0  ;;  %v10301_v28 = vunpack.i.l.s16 %v4061_v18  ;;  %v10295_v29 = vunpack.i.l.s16 %v4055_v12  ;;  %v4100_v37 = vrot.slane %v10291_v15, 1 }
  0x56   : > { %10177 = vmatmul.msk.bf16.vlgmr.msra.gmra.mxu2 %vm537_vm7, %v11562_v5  ;;  %323 = vperm.xlu0 %10721, %v281_v30   ;;  %v10296_v30 = vunpack.i.l.s16 %v4056_v13  ;;  %vm817_vm8 = vcmask 1040384   ;;  %vm1094_vm9 = vcmask 253952   ;;  %vm1095_vm10 = vsmask.f32 256 }
  0x57   : > { %333 = vperm.xlu1 %10722, %v283_v31   ;;  %v10302_v31 = vunpack.i.l.s16 %v4062_v19  ;;  %v4117_v49 = vrot.slane %v10301_v28, 7  ;;  %v4107_v51 = vrot.slane %v10295_v29, 5  ;;  %vm12262_vm11 = vmand %vm1094_vm9, %vm1095_vm10  ;;  %vm1551_vm12 = vsmask.f32 7938 }
  0x58   : > { %383 = vperm.xlu2 %10723, %v293_v41   ;;  %v4111_v41 = vrot.slane %v10297_v23, 3  ;;  %v4109_v55 = vrot.slane %v10296_v30, 4  ;;  %vm12539_vm13 = vmand %vm1094_vm9, %vm1551_vm12  ;;  %vm2278_vm14 = vcmask 254977   ;;  %vm2279_vm15 = vsmask.f32 1280 }
  0x59   : > { %v4119_v53 = vrot.slane %v10302_v31, 6  ;;  %vm12767_vm9 = vmand %vm2278_vm14, %vm2279_vm15  ;;  %vm2735_vm10 = vsmask.f32 7942  ;;  %vm4646_vm15 = vcmask 257027  }
  0x5a   : > { %vm13031_vm12 = vmand %vm2278_vm14, %vm2735_vm10  ;;  %vm4647_vm10 = vsmask.f32 3328 }
  0x5c   : > { %10106 = vmatmul.msk.bf16.gmra.mxu0 %vm537_vm7, %v11596_v32 }
  0x5e   : > { %388 = vperm.xlu0 %10721, %v294_v33   ;;  %v4097_v33 = vrot.slane %v10289_v8, 3 }
  0x5f   : > { %393 = vperm.xlu1 %10722, %v295_v34   ;;  %v10300_v34 = vunpack.i.l.s16 %v4060_v17  ;;  %v11731_v17 = vld [vmem:[%s16937_s3] sm:$0xff] }
  0x60   : > { %358 = vperm.xlu2 %10723, %v288_v42   ;;  %v4112_v42 = vrot.slane %v10298_v24, 2  ;;  %793 = vmatpush.bf16.msra.mxu3 %v11731_v17 }
  0x62   : > { %v4113_v52 = vsel %vm501_vm0, %v4112_v42, %v4111_v41 }
  0x66   : > { %10178 = vmatmul.msk.bf16.gmra.mxu2 %vm537_vm7, %v11596_v32  ;;  %363 = vperm.xlu0 %10721, %v289_v35   ;;  %v10303_v35 = vunpack.i.l.s16 %v4063_v20 }
  0x67   : > { %368 = vperm.xlu1 %10722, %v290_v36   ;;  %v4098_v36 = vrot.slane %v10290_v14, 2 }
  0x68   : > { %373 = vperm.xlu2 %10723, %v291_v45   ;;  %v4105_v45 = vrot.slane %v10294_v26, 6  ;;  %v4121_v57 = vrot.slane %v10303_v35, 5 }
  0x6c   : > { %10107 = vmatmul.msk.bf16.gmra.mxu0 %vm537_vm7, %v11620_v38 }
  0x6e   : > { %338 = vperm.xlu0 %10721, %v284_v39   ;;  %v10304_v39 = vunpack.i.l.s16 %v4064_v21 }
  0x6f   : > { %343 = vperm.xlu1 %10722, %v285_v40   ;;  %v4103_v40 = vrot.slane %v10293_v22, 7 }
  0x70   : > { %348 = vperm.xlu2 %10723, %v286_v46   ;;  %v4114_v46 = vrot.slane %v10299_v27, 1  ;;  %v4123_v61 = vrot.slane %v10304_v39, 4 }
  0x72   : > { %v4115_v56 = vsel %vm504_vm1, %v4114_v46, %v4113_v52 }
  0x73   : > { %v4116_v60 = vsel %vm507_vm2, %v10300_v34, %v4115_v56 }
  0x74   : > { %v4118_v63 = vsel %vm510_vm3, %v4117_v49, %v4116_v60 }
  0x75   : > { %v4120_v1 = vsel %vm513_vm4, %v4119_v53, %v4118_v63 }
  0x76   : > { %10179 = vmatmul.msk.bf16.gmra.mxu2 %vm537_vm7, %v11620_v38  ;;  %353 = vperm.xlu0 %10721, %v287_v43   ;;  %v4099_v43 = vsel %vm501_vm0, %v4098_v36, %v4097_v33  ;;  %v4122_v3 = vsel %vm516_vm5, %v4121_v57, %v4120_v1 }
  0x77   : > { %v4101_v50 = vsel %vm504_vm1, %v4100_v37, %v4099_v43  ;;  %v4124_v4 = vsel %vm519_vm6, %v4123_v61, %v4122_v3 }
  0x78   : > { %v4102_v54 = vsel %vm507_vm2, %v10292_v25, %v4101_v50 }
  0x79   : > { %v4104_v59 = vsel %vm510_vm3, %v4103_v40, %v4102_v54 }
  0x7a   : > { %v4106_v62 = vsel %vm513_vm4, %v4105_v45, %v4104_v59 }
  0x7b   : > { %v4108_v0 = vsel %vm516_vm5, %v4107_v51, %v4106_v62 }
  0x7c   : > { %10108 = vmatmul.msk.bf16.gmra.mxu0 %vm537_vm7, %v11644_v44  ;;  %v4110_v2 = vsel %vm519_vm6, %v4109_v55, %v4108_v0 }
  0x7d   : > { %v4125_v6 = vpack.c.b16 %v4124_v4, %v4110_v2 }
  0x7f   : > { %4134 = vmatpush.bf16.msrb.mxu2 %v4125_v6 }
  0x86   : > { %10180 = vmatmul.msk.bf16.gmra.mxu2 %vm537_vm7, %v11644_v44 }
  0x8c   : > { %10109 = vmatmul.msk.bf16.gmra.mxu0 %vm537_vm7, %v11659_v47 }
  0x96   : > { %10181 = vmatmul.msk.bf16.gmra.mxu2 %vm537_vm7, %v11659_v47 }
  0x9c   : > { %10110 = vmatmul.msk.bf16.gmra.mxu0 %vm537_vm7, %v11668_v48 }
  0xa6   : > { %10182 = vmatmul.msk.bf16.gmra.mxu2 %vm537_vm7, %v11668_v48 }
  0xaa   : > { %v11743_v31 = vpop.permute.xlu2 %378 }
  0xab   : > { %17035 = vst [vmem:[#allocation18_spill] sm:$0xff] %v11743_v31 }
  0xac   : > { %10111 = vmatmul.msk.bf16.gmra.mxu0 %vm537_vm7, %v11683_v58 }
  0xb2   : > { %v11761_v61 = vpop.permute.xlu2 %383 }
  0xb6   : > { %10183 = vmatmul.msk.bf16.gmra.mxu2 %vm537_vm7, %v11683_v58 }
  0xbc   : > { %10112 = vmatmul.msk.bf16.gmra.mxu0 %vm537_vm7, %v11716_v7 }
  0xc0   : > { %v11720_v8 = vpop.permute.xlu0 %318  ;;  %v11735_v19 = vpop.permute.xlu1 %328 }
  0xc1   : > { %17032 = vst [vmem:[#allocation15_spill] sm:$0xff] %v11720_v8 }
  0xc2   : > { %17034 = vst [vmem:[#allocation17_spill] sm:$0xff] %v11735_v19 }
  0xc6   : > { %10184 = vmatmul.msk.bf16.gmra.mxu2 %vm537_vm7, %v11716_v7 }
  0xc8   : > { %v11725_v13 = vpop.permute.xlu0 %323 }
  0xc9   : > { %v571_v9 = vpop.f32.mrf.mxu0  ;;  %17033 = vst [vmem:[#allocation16_spill] sm:$0xff] %v11725_v13  ;;  %v11745_v33 = vpop.permute.xlu1 %333 }
  0xca   : > { %v572_v10 = vadd.f32 %v571_v9, %v11720_v8  ;;  %17036 = vst [vmem:[#allocation19_spill] sm:$0xff] %v11745_v33 }
  0xcc   : > { %v611_v11 = vsub.f32 0.0, %v572_v10 }
  0xce   : > { %v627_v12 = vmul.f32 1.442695, %v611_v11 }
  0xd0   : > { %10724 = vpow2.f32 %v627_v12  ;;  %v11751_v42 = vpop.permute.xlu0 %388 }
  0xd1   : > { %v573_v14 = vpop.f32.mrf.mxu0  ;;  %v11764_v0 = vpop.permute.xlu1 %393 }
  0xd2   : > { %v574_v15 = vadd.f32 %v573_v14, %v11725_v13  ;;  %17037 = vst [vmem:[#allocation20_spill] sm:$0xff] %v11764_v0 }
  0xd4   : > { %v612_v16 = vsub.f32 0.0, %v574_v15 }
  0xd6   : > { %v10725_v18 = vpop.eup %10724  ;;  %10305 = vmatmul.msk.bf16.vlgmr.msrb.gmra.mxu2 %vm537_vm7, %v11562_v5  ;;  %v629_v20 = vmul.f32 1.442695, %v612_v16 }
  0xd7   : > { %v659_v21 = vadd.f32 1.0, %v10725_v18 }
  0xd8   : > { %10726 = vpow2.f32 %v629_v20  ;;  %v11766_v3 = vpop.permute.xlu0 %363 }
  0xd9   : > { %v1768_v22 = vpop.f32.mrf.mxu2  ;;  %v576_v23 = vpop.f32.mrf.mxu0  ;;  %10728 = vrcp.f32 %v659_v21  ;;  %17038 = vst [vmem:[#allocation21_spill] sm:$0xff] %v11766_v3 }
  0xda   : > { %v1769_v24 = vadd.f32 %v1768_v22, %v11720_v8  ;;  %v11740_v25 = vadd.f32 %v576_v23, %v11735_v19  ;;  %v11772_v21 = vpop.permute.xlu2 %358 }
  0xdb   : > { %17039 = vst [vmem:[#allocation22_spill] sm:$0xff] %v11772_v21 }
  0xdc   : > { %v1808_v26 = vsub.f32 0.0, %v1769_v24  ;;  %v613_v27 = vsub.f32 0.0, %v11740_v25 }
  0xde   : > { %v10727_v28 = vpop.eup %10726  ;;  %v1824_v5 = vmul.f32 1.442695, %v1808_v26  ;;  %v631_v29 = vmul.f32 1.442695, %v613_v27 }
  0xdf   : > { %v660_v30 = vadd.f32 1.0, %v10727_v28  ;;  %v10729_v34 = vpop.eup %10728  ;;  %v11775_v28 = vpop.permute.xlu1 %368 }
  0xe0   : > { %10730 = vpow2.f32 %v1824_v5  ;;  %v691_v40 = vmul.f32 %v10729_v34, %v572_v10  ;;  %17040 = vst [vmem:[#allocation23_spill] sm:$0xff] %v11775_v28 }
  0xe1   : > { %10732 = vrcp.f32 %v660_v30  ;;  %v1770_v35 = vpop.f32.mrf.mxu2  ;;  %v578_v36 = vpop.f32.mrf.mxu0 }
  0xe2   : > { %v1771_v37 = vadd.f32 %v1770_v35, %v11725_v13  ;;  %10734 = vpow2.f32 %v631_v29  ;;  %v11749_v39 = vadd.f32 %v578_v36, %v11745_v33  ;;  %v707_v53 = vpack.c.bf16 %v691_v40, %v691_v40  ;;  %v11779_v30 = vpop.permute.xlu0 %338 }
  0xe3   : > { %17041 = vst [vmem:[#allocation24_spill] sm:$0xff] %v11779_v30 }
  0xe4   : > { %v1809_v41 = vsub.f32 0.0, %v1771_v37  ;;  %v614_v43 = vsub.f32 0.0, %v11749_v39 }
  0xe6   : > { %v10731_v45 = vpop.eup %10730  ;;  %v1826_v46 = vmul.f32 1.442695, %v1809_v41  ;;  %10306 = vmatmul.msk.bf16.gmra.mxu2 %vm537_vm7, %v11596_v32  ;;  %v633_v49 = vmul.f32 1.442695, %v614_v43  ;;  %v768_v32 = vunpack.c.l.b16 %v707_v53 }
  0xe7   : > { %v10733_v50 = vpop.eup %10732  ;;  %v1856_v51 = vadd.f32 1.0, %v10731_v45 }
  0xe8   : > { %v10735_v52 = vpop.eup %10734  ;;  %v692_v54 = vmul.f32 %v10733_v50, %v574_v15  ;;  %10736 = vpow2.f32 %v1826_v46 }
  0xe9   : > { %10738 = vrcp.f32 %v1856_v51  ;;  %v661_v55 = vadd.f32 1.0, %v10735_v52  ;;  %v1773_v56 = vpop.f32.mrf.mxu2  ;;  %v11756_v57 = vpop.f32.mrf.mxu0 }
  0xea   : > { %v708_v59 = vpack.c.bf16 %v692_v54, %v692_v54  ;;  %v11759_v60 = vadd.f32 %v1773_v56, %v11735_v19  ;;  %10740 = vpow2.f32 %v633_v49  ;;  %v11791_v54 = vpop.permute.xlu2 %373 }
  0xeb   : > { %10742 = vrcp.f32 %v661_v55  ;;  %17044 = vst [vmem:[#allocation27_spill] sm:$0xff] %v11791_v54 }
  0xec   : > { %v769_v62 = vunpack.c.l.b16 %v708_v59  ;;  %v1810_v63 = vsub.f32 0.0, %v11759_v60  ;;  %v11793_v59 = vpop.permute.xlu1 %343 }
  0xed   : > { %17045 = vst [vmem:[#allocation28_spill] sm:$0xff] %v11793_v59 }
  0xee   : > { %v10737_v1 = vpop.eup %10736  ;;  %v1828_v2 = vmul.f32 1.442695, %v1810_v63  ;;  %v772_v4 = vpack.c.b16 %v769_v62, %v768_v32 }
  0xef   : > { %v10739_v6 = vpop.eup %10738  ;;  %v1857_v9 = vadd.f32 1.0, %v10737_v1 }
  0xf0   : > { %v10741_v10 = vpop.eup %10740  ;;  %10744 = vpow2.f32 %v1828_v2  ;;  %10123 = vmatmul.msk.bf16.vlgmr.msra.gmra.mxu3 %vm537_vm7, %v772_v4  ;;  %v1888_v11 = vmul.f32 %v10739_v6, %v1769_v24 }
  0xf1   : > { %10746 = vrcp.f32 %v1857_v9  ;;  %v662_v12 = vadd.f32 1.0, %v10741_v10  ;;  %v1775_v14 = vpop.f32.mrf.mxu2  ;;  %v11769_v15 = vpop.f32.mrf.mxu0 }
  0xf2   : > { %v1776_v16 = vadd.f32 %v1775_v14, %v11745_v33  ;;  %v10743_v18 = vpop.eup %10742  ;;  %v1904_v22 = vpack.c.bf16 %v1888_v11, %v1888_v11  ;;  %v11802_v14 = vpop.permute.xlu2 %348 }
  0xf3   : > { %10748 = vrcp.f32 %v662_v12  ;;  %v693_v26 = vmul.f32 %v10743_v18, %v11740_v25  ;;  %17046 = vst [vmem:[#allocation29_spill] sm:$0xff] %v11802_v14 }
  0xf4   : > { %v1811_v20 = vsub.f32 0.0, %v1776_v16  ;;  %v11781_v35 = vunpack.c.l.b16 %v1904_v22 }
  0xf5   : > { %v709_v41 = vpack.c.bf16 %v693_v26, %v693_v26 }
  0xf6   : > { %v10745_v23 = vpop.eup %10744  ;;  %v1830_v27 = vmul.f32 1.442695, %v1811_v20  ;;  %10307 = vmatmul.msk.bf16.gmra.mxu2 %vm537_vm7, %v11620_v38  ;;  %17042 = vst [vmem:[#allocation25_spill] sm:$0xff] %v11781_v35 }
  0xf7   : > { %v10747_v24 = vpop.eup %10746  ;;  %v1858_v5 = vadd.f32 1.0, %v10745_v23  ;;  %v770_v51 = vunpack.c.l.b16 %v709_v41 }
  0xf8   : > { %v1889_v29 = vmul.f32 %v10747_v24, %v1771_v37  ;;  %10750 = vpow2.f32 %v1830_v27 }
  0xf9   : > { %v10749_v34 = vpop.eup %10748  ;;  %10752 = vrcp.f32 %v1858_v5  ;;  %v1778_v36 = vpop.f32.mrf.mxu2 }
  0xfa   : > { %v11783_v40 = vpop.f32.mrf.mxu0  ;;  %v1905_v25 = vpack.c.bf16 %v1889_v29, %v1889_v29  ;;  %v694_v43 = vmul.f32 %v10749_v34, %v11749_v39  ;;  %v1779_v45 = vadd.f32 %v1778_v36, %v11779_v30 }
  0xfc   : > { %v11787_v38 = vunpack.c.l.b16 %v1905_v25  ;;  %v710_v46 = vpack.c.bf16 %v694_v43, %v694_v43  ;;  %v1812_v37 = vsub.f32 0.0, %v1779_v45  ;;  %v11818_v25 = vpop.permute.xlu0 %353 }
  0xfd   : > { %17049 = vst [vmem:[#allocation32_spill] sm:$0xff] %v11818_v25 }
  0xfe   : > { %17043 = vst [vmem:[#allocation26_spill] sm:$0xff] %v11787_v38  ;;  %v10751_v49 = vpop.eup %10750  ;;  %v771_v52 = vunpack.c.l.b16 %v710_v46  ;;  %v1832_v53 = vmul.f32 1.442695, %v1812_v37  ;;  %v11822_v37 = vadd.f32 %v11756_v57, %v11779_v30  ;;  %v11839_v57 = vld [vmem:[%s16938_s4] sm:$0xff] }
  0xff   : > { %v10753_v55 = vpop.eup %10752  ;;  %v1859_v56 = vadd.f32 1.0, %v10751_v49  ;;  %752 = vmatpush.bf16.msra.mxu1 %v11839_v57  ;;  %1216 = vmatpush.bf16.msrb.mxu3 %v11839_v57 }
 0x100   : > { %10754 = vpow2.f32 %v1832_v53  ;;  %v773_v39 = vpack.c.b16 %v771_v52, %v770_v51  ;;  %v1890_v63 = vmul.f32 %v10753_v55, %v11759_v60  ;;  %v11832_v53 = vadd.f32 %v11769_v15, %v11793_v59  ;;  %3127 = vmatpush.bf16.msrb.mxu0 %v11839_v57 }
 0x101   : > { %10756 = vrcp.f32 %v1859_v56  ;;  %v1780_v32 = vpop.f32.mrf.mxu2 }
 0x102   : > { %v11795_v62 = vpop.f32.mrf.mxu0  ;;  %v1781_v1 = vadd.f32 %v1780_v32, %v11793_v59  ;;  %10124 = vmatmul.msk.bf16.gmra.mxu3 %vm537_vm7, %v773_v39  ;;  %v1906_v6 = vpack.c.bf16 %v1890_v63, %v1890_v63  ;;  %v615_v39 = vsub.f32 0.0, %v11822_v37 }
 0x103   : > { %1251 = vmatpush.bf16.msrb.mxu1 %v11731_v17  ;;  %1943 = vmatpush.bf16.msra.mxu3 %v11839_v57 }
 0x104   : > { %v1813_v2 = vsub.f32 0.0, %v1781_v1  ;;  %v11804_v60 = vunpack.c.l.b16 %v1906_v6  ;;  %3584 = vmatpush.bf16.msra.mxu0 %v11839_v57 }
 0x106   : > { %v10755_v4 = vpop.eup %10754  ;;  %v1834_v9 = vmul.f32 1.442695, %v1813_v2  ;;  %10308 = vmatmul.msk.bf16.gmra.mxu2 %vm537_vm7, %v11644_v44  ;;  %17047 = vst [vmem:[#allocation30_spill] sm:$0xff] %v11804_v60  ;;  %v616_v2 = vsub.f32 0.0, %v11832_v53 }
 0x107   : > { %v10757_v10 = vpop.eup %10756  ;;  %v1860_v11 = vadd.f32 1.0, %v10755_v4 }
 0x108   : > { %v1891_v12 = vmul.f32 %v10757_v10, %v1776_v16  ;;  %10758 = vpow2.f32 %v1834_v9 }
 0x109   : > { %v1783_v18 = vpop.f32.mrf.mxu2  ;;  %10760 = vrcp.f32 %v1860_v11 }
 0x10a   : > { %v591_v20 = vpop.f32.mrf.mxu0  ;;  %v1907_v22 = vpack.c.bf16 %v1891_v12, %v1891_v12  ;;  %v11807_v23 = vadd.f32 %v1783_v18, %v11802_v14  ;;  %v635_v12 = vmul.f32 1.442695, %v615_v39  ;;  %v11869_v39 = vadd.f32 %v11795_v62, %v11818_v25 }
 0x10b   : > { %v11810_v26 = vadd.f32 %v591_v20, %v11772_v21 }
 0x10c   : > { %v11812_v27 = vunpack.c.l.b16 %v1907_v22  ;;  %v1814_v44 = vsub.f32 0.0, %v11807_v23  ;;  %v637_v22 = vmul.f32 1.442695, %v616_v2  ;;  %v618_v62 = vsub.f32 0.0, %v11869_v39 }
 0x10d   : > { %v619_v16 = vsub.f32 0.0, %v11810_v26 }
 0x10e   : > { %17048 = vst [vmem:[#allocation31_spill] sm:$0xff] %v11812_v27  ;;  %v10759_v24 = vpop.eup %10758  ;;  %v1836_v36 = vmul.f32 1.442695, %v1814_v44 }
 0x10f   : > { %v1861_v29 = vadd.f32 1.0, %v10759_v24  ;;  %v643_v34 = vmul.f32 1.442695, %v619_v16  ;;  %v10761_v41 = vpop.eup %10760 }
 0x110   : > { %v1892_v52 = vmul.f32 %v10761_v41, %v1779_v45  ;;  %v11865_v41 = vadd.f32 %v11783_v40, %v11802_v14 }
 0x111   : > { %10762 = vrcp.f32 %v1861_v29  ;;  %v1785_v43 = vpop.f32.mrf.mxu2 }
 0x112   : > { %v593_v46 = vpop.f32.mrf.mxu0  ;;  %v11825_v49 = vadd.f32 %v1785_v43, %v11818_v25  ;;  %10764 = vpow2.f32 %v643_v34  ;;  %v1908_v63 = vpack.c.bf16 %v1892_v52, %v1892_v52 }
 0x113   : > { %v11828_v51 = vadd.f32 %v593_v46, %v11766_v3  ;;  %10766 = vpow2.f32 %v1836_v36 }
 0x114   : > { %v1815_v55 = vsub.f32 0.0, %v11825_v49 }
 0x115   : > { %v620_v56 = vsub.f32 0.0, %v11828_v51 }
 0x116   : > { %10309 = vmatmul.msk.bf16.gmra.mxu2 %vm537_vm7, %v11659_v47  ;;  %v1838_v6 = vmul.f32 1.442695, %v1815_v55 }
 0x117   : > { %v10763_v45 = vpop.eup %10762  ;;  %v645_v32 = vmul.f32 1.442695, %v620_v56 }
 0x118   : > { %v10765_v15 = vpop.eup %10764  ;;  %v1893_v4 = vmul.f32 %v10763_v45, %v1781_v1  ;;  %v11856_v1 = vunpack.c.l.b16 %v1908_v63 }
 0x119   : > { %v667_v9 = vadd.f32 1.0, %v10765_v15  ;;  %v11849_v10 = vpop.f32.mrf.mxu2  ;;  %v10767_v11 = vpop.eup %10766  ;;  %10768 = vpow2.f32 %v645_v32  ;;  %v617_v15 = vsub.f32 0.0, %v11865_v41 }
 0x11a   : > { %v596_v47 = vpop.f32.mrf.mxu0  ;;  %v1909_v18 = vpack.c.bf16 %v1893_v4, %v1893_v4  ;;  %17050 = vst [vmem:[#allocation33_spill] sm:$0xff] %v11856_v1  ;;  %10770 = vpow2.f32 %v1838_v6  ;;  %v1862_v16 = vadd.f32 1.0, %v10767_v11 }
 0x11b   : > { %v11854_v20 = vadd.f32 %v596_v47, %v11775_v28  ;;  %10772 = vrcp.f32 %v667_v9 }
 0x11c   : > { %v11858_v44 = vunpack.c.l.b16 %v1909_v18  ;;  %10774 = vpow2.f32 %v635_v12  ;;  %v639_v12 = vmul.f32 1.442695, %v617_v15  ;;  %v6382_v15 = vld [vmem:[%s11506_s16 + $0x8] sm:$0x4] }
 0x11d   : > { %v621_v24 = vsub.f32 0.0, %v11854_v20  ;;  %10776 = vpow2.f32 %v637_v22 }
 0x11e   : > { %17051 = vst [vmem:[#allocation34_spill] sm:$0xff] %v11858_v44  ;;  %10778 = vrcp.f32 %v1862_v16 }
 0x11f   : > { %v647_v34 = vmul.f32 1.442695, %v621_v24  ;;  %v10769_v36 = vpop.eup %10768 }
 0x120   : > { %v668_v43 = vadd.f32 1.0, %v10769_v36  ;;  %v10771_v55 = vpop.eup %10770  ;;  %v641_v36 = vmul.f32 1.442695, %v618_v62 }
 0x121   : > { %v1790_v46 = vpop.f32.mrf.mxu2  ;;  %10780 = vpow2.f32 %v647_v34  ;;  %v10773_v56 = vpop.eup %10772  ;;  %v1863_v40 = vadd.f32 1.0, %v10771_v55 }
 0x122   : > { %v598_v52 = vpop.f32.mrf.mxu0  ;;  %10782 = vrcp.f32 %v668_v43  ;;  %v10775_v32 = vpop.eup %10774  ;;  %v699_v4 = vmul.f32 %v10773_v56, %v11810_v26 }
 0x123   : > { %v11872_v45 = vadd.f32 %v598_v52, %v11791_v54  ;;  %v10777_v2 = vpop.eup %10776  ;;  %v663_v9 = vadd.f32 1.0, %v10775_v32  ;;  %10784 = vrcp.f32 %v1863_v40  ;;  %v6380_v52 = vld [vmem:[%s11506_s16] sm:$0x4]  ;;  %v6381_v32 = vld [vmem:[%s11506_s16 + $0x4] sm:$0x4] }
 0x124   : > { %v10779_v6 = vpop.eup %10778  ;;  %v664_v26 = vadd.f32 1.0, %v10777_v2  ;;  %v715_v34 = vpack.c.bf16 %v699_v4, %v699_v4  ;;  %v6383_v40 = vld [vmem:[%s11506_s16 + $0xc] sm:$0x4]  ;;  %v6384_v4 = vld [vmem:[%s11506_s16 + $0x10] sm:$0x4]  ;;  %v6412_v62 = vunpack.c.l.b16 %v6380_v52  ;;  %v11913_v52 = vadd.f32 %v1790_v46, %v11766_v3 }
 0x125   : > { %v622_v63 = vsub.f32 0.0, %v11872_v45  ;;  %v11888_v55 = vmul.f32 %v10779_v6, %v11807_v23  ;;  %v11899_v6 = vld [vmem:[%s11506_s16 + $0x24] sm:$0x4]  ;;  %v6386_v46 = vld [vmem:[%s11506_s16 + $0x18] sm:$0x4] }
 0x126   : > { %10310 = vmatmul.msk.bf16.gmra.mxu2 %vm537_vm7, %v11668_v48  ;;  %v6421_v5 = vunpack.c.l.b16 %v11899_v6  ;;  %v10417_v50 = vunpack.i.l.s16 %v6412_v62 }
 0x127   : > { %v649_v47 = vmul.f32 1.442695, %v622_v63  ;;  %v10781_v11 = vpop.eup %10780  ;;  %v727_v63 = vunpack.c.l.b16 %v715_v34  ;;  %v11908_v34 = vld [vmem:[%s11506_s16 + $0x28] sm:$0x4] }
 0x128   : > { %v10783_v18 = vpop.eup %10782  ;;  %v669_v22 = vadd.f32 1.0, %v10781_v11  ;;  %v6413_v11 = vunpack.c.l.b16 %v6381_v32 }
 0x129   : > { %v11880_v16 = vpop.f32.mrf.mxu2  ;;  %v700_v48 = vmul.f32 %v10783_v18, %v11828_v51  ;;  %10786 = vpow2.f32 %v649_v47  ;;  %v10785_v47 = vpop.eup %10784 }
 0x12a   : > { %v601_v24 = vpop.f32.mrf.mxu0  ;;  %10788 = vrcp.f32 %v663_v9  ;;  %v11896_v9 = vld [vmem:[%s11506_s16 + $0x20] sm:$0x4]  ;;  %v10418_v3 = vunpack.i.l.s16 %v6413_v11  ;;  %v6395_v11 = vld [vmem:[%s11506_s16 + $0x3c] sm:$0x4] }
 0x12b   : > { %v11884_v43 = vadd.f32 %v601_v24, %v11743_v31  ;;  %10790 = vpow2.f32 %v639_v12  ;;  %v716_v56 = vpack.c.bf16 %v700_v48, %v700_v48  ;;  %v6414_v12 = vunpack.c.l.b16 %v6382_v15 }
 0x12c   : > { %10792 = vrcp.f32 %v669_v22  ;;  %v11905_v24 = vadd.f32 %v11849_v10, %v11772_v21  ;;  %v6415_v48 = vunpack.c.l.b16 %v6383_v40  ;;  %v11921_v10 = vld [vmem:[%s11506_s16 + $0x30] sm:$0x4]  ;;  %v11927_v40 = vmul.f32 %v10785_v47, %v11825_v49 }
 0x12d   : > { %v623_v51 = vsub.f32 0.0, %v11884_v43  ;;  %10794 = vrcp.f32 %v664_v26  ;;  %v728_v2 = vunpack.c.l.b16 %v716_v56  ;;  %v10419_v49 = vunpack.i.l.s16 %v6414_v12 }
 0x12e   : > { %10796 = vpow2.f32 %v641_v36  ;;  %v6424_v62 = vunpack.c.l.b16 %v11921_v10  ;;  %v10420_v21 = vunpack.i.l.s16 %v6415_v48  ;;  %v6418_v12 = vunpack.c.l.b16 %v6386_v46 }
 0x12f   : > { %v651_v23 = vmul.f32 1.442695, %v623_v51  ;;  %v10787_v18 = vpop.eup %10786  ;;  %v731_v26 = vpack.c.b16 %v728_v2, %v727_v63  ;;  %v11918_v51 = vld [vmem:[%s11506_s16 + $0x2c] sm:$0x4]  ;;  %v6416_v63 = vunpack.c.l.b16 %v6384_v4  ;;  %v6420_v2 = vunpack.c.l.b16 %v11896_v9  ;;  %v6385_v9 = vld [vmem:[%s11506_s16 + $0x14] sm:$0x4] }
 0x130   : > { %v11910_v36 = vpop.eup %10788  ;;  %v670_v56 = vadd.f32 1.0, %v10787_v18  ;;  %v11932_v18 = vld [vmem:[%s11506_s16 + $0x38] sm:$0x4]  ;;  %v6423_v6 = vunpack.c.l.b16 %v11918_v51  ;;  %v1911_v14 = vpack.c.bf16 %v11927_v40, %v11927_v40  ;;  %v6417_v48 = vunpack.c.l.b16 %v6385_v9 }
 0x131   : > { %v11915_v32 = vpop.f32.mrf.mxu2  ;;  %v11924_v29 = vpop.eup %10790  ;;  %10798 = vpow2.f32 %v651_v23  ;;  %10117 = vmatmul.msk.bf16.vlgmr.msra.gmra.mxu1 %vm537_vm7, %v731_v26  ;;  %v6387_v23 = vld [vmem:[%s11506_s16 + $0x1c] sm:$0x4]  ;;  %v6422_v26 = vunpack.c.l.b16 %v11908_v34  ;;  %v6426_v44 = vunpack.c.l.b16 %v11932_v18  ;;  %v10421_v25 = vunpack.i.l.s16 %v6416_v63 }
 0x132   : > { %v603_v15 = vpop.f32.mrf.mxu0  ;;  %v10793_v22 = vpop.eup %10792  ;;  %10800 = vrcp.f32 %v670_v56  ;;  %1978 = vmatpush.bf16.msra.mxu1 %v11731_v17  ;;  %v6460_v51 = vrot.slane %v10417_v50, 5  ;;  %v6419_v60 = vunpack.c.l.b16 %v6387_v23  ;;  %v6461_v27 = vrot.slane %v10418_v3, 4 }
 0x133   : > { %v11936_v4 = vadd.f32 %v603_v15, %v11761_v61  ;;  %v11940_v47 = vpop.eup %10794  ;;  %v11950_v15 = vld [vmem:[%s11506_s16 + $0x34] sm:$0x4]  ;;  %v701_v34 = vmul.f32 %v10793_v22, %v11854_v20  ;;  %v6463_v59 = vrot.slane %v10419_v49, 3  ;;  %v6427_v35 = vunpack.c.l.b16 %v6395_v11 }
 0x134   : > { %v11946_v1 = vpop.eup %10796  ;;  %v6425_v46 = vunpack.c.l.b16 %v11950_v15  ;;  %v10425_v18 = vunpack.i.l.s16 %v6420_v2  ;;  %v6465_v63 = vrot.slane %v10420_v21, 2  ;;  %v10426_v22 = vunpack.i.l.s16 %v6421_v5 }
 0x135   : > { %v624_v56 = vsub.f32 0.0, %v11936_v4  ;;  %v6467_v9 = vrot.slane %v10421_v25, 1  ;;  %v717_v50 = vpack.c.bf16 %v701_v34, %v701_v34  ;;  %v10423_v3 = vunpack.i.l.s16 %v6418_v12 }
 0x136   : > { %10311 = vmatmul.msk.bf16.gmra.mxu2 %vm537_vm7, %v11683_v58  ;;  %v6462_v58 = vsel %vm501_vm0, %v6461_v27, %v6460_v51  ;;  %v10427_v2 = vunpack.i.l.s16 %v6422_v26  ;;  %v10428_v15 = vunpack.i.l.s16 %v6423_v6  ;;  %v6474_v11 = vrot.slane %v10425_v18, 5 }
 0x137   : > { %v653_v10 = vmul.f32 1.442695, %v624_v56  ;;  %v10799_v30 = vpop.eup %10798  ;;  %v10422_v56 = vunpack.i.l.s16 %v6417_v48  ;;  %v6464_v21 = vsel %vm504_vm1, %v6463_v59, %v6462_v58  ;;  %v10424_v34 = vunpack.i.l.s16 %v6419_v60 }
 0x138   : > { %v10801_v38 = vpop.eup %10800  ;;  %v671_v33 = vadd.f32 1.0, %v10799_v30  ;;  %v6466_v5 = vsel %vm507_vm2, %v6465_v63, %v6464_v21  ;;  %v6470_v51 = vrot.slane %v10423_v3, 7  ;;  %v17052_v26 = vpack.c.bf16 %v11888_v55, %v11888_v55 }
 0x139   : > { %v11960_v40 = vpop.f32.mrf.mxu2  ;;  %v702_v23 = vmul.f32 %v10801_v38, %v11872_v45  ;;  %10802 = vpow2.f32 %v653_v10  ;;  %v6468_v25 = vsel %vm510_vm3, %v6467_v9, %v6466_v5  ;;  %v6475_v38 = vrot.slane %v10426_v22, 4 }
 0x13a   : > { %v606_v20 = vpop.f32.mrf.mxu0  ;;  %10804 = vrcp.f32 %v671_v33  ;;  %v729_v45 = vunpack.c.l.b16 %v717_v50  ;;  %v11974_v48 = vunpack.c.l.b16 %v17052_v26  ;;  %v10429_v33 = vunpack.i.l.s16 %v6424_v62 }
 0x13b   : > { %v11965_v49 = vadd.f32 %v606_v20, %v11751_v42  ;;  %v718_v30 = vpack.c.bf16 %v702_v23, %v702_v23  ;;  %v6469_v6 = vsel %vm513_vm4, %v10422_v56, %v6468_v25  ;;  %v11977_v63 = vunpack.c.l.b16 %v1911_v14 }
 0x13c   : > { %v10431_v58 = vunpack.i.l.s16 %v6426_v44  ;;  %v6476_v18 = vsel %vm501_vm0, %v6475_v38, %v6474_v11  ;;  %v10432_v50 = vunpack.i.l.s16 %v6427_v35  ;;  %v6477_v23 = vrot.slane %v10427_v2, 3 }
 0x13d   : > { %v625_v27 = vsub.f32 0.0, %v11965_v49  ;;  %v730_v12 = vunpack.c.l.b16 %v718_v30  ;;  %v6479_v55 = vrot.slane %v10428_v15, 2  ;;  %v10430_v62 = vunpack.i.l.s16 %v6425_v46 }
 0x13e   : > { %v6471_v56 = vsel %vm516_vm5, %v6470_v51, %v6469_v6  ;;  %v6472_v14 = vrot.slane %v10424_v34, 6  ;;  %v6478_v21 = vsel %vm504_vm1, %v6477_v23, %v6476_v18  ;;  %v6481_v30 = vrot.slane %v10429_v33, 1 }
 0x13f   : > { %v655_v59 = vmul.f32 1.442695, %v625_v27  ;;  %v10803_v10 = vpop.eup %10802  ;;  %v732_v20 = vpack.c.b16 %v730_v12, %v729_v45  ;;  %v695_v35 = vmul.f32 %v11910_v36, %v11822_v37  ;;  %v696_v2 = vmul.f32 %v11940_v47, %v11832_v53 }
 0x140   : > { %v672_v22 = vadd.f32 1.0, %v10803_v10  ;;  %v10805_v3 = vpop.eup %10804  ;;  %v1817_v15 = vsub.f32 0.0, %v11913_v52  ;;  %v6480_v46 = vsel %vm507_vm2, %v6479_v55, %v6478_v21  ;;  %v6484_v25 = vrot.slane %v10431_v58, 7 }
 0x141   : > { %v11980_v9 = vpop.f32.mrf.mxu2  ;;  %10806 = vpow2.f32 %v655_v59  ;;  %10118 = vmatmul.msk.bf16.gmra.mxu1 %vm537_vm7, %v732_v20  ;;  %v6482_v27 = vsel %vm510_vm3, %v6481_v30, %v6480_v46  ;;  %v6486_v11 = vrot.slane %v10432_v50, 6  ;;  %v703_v38 = vmul.f32 %v10805_v3, %v11884_v43 }
 0x142   : > { %v608_v60 = vpop.f32.mrf.mxu0  ;;  %10808 = vrcp.f32 %v672_v22  ;;  %v6473_v37 = vsel %vm519_vm6, %v6472_v14, %v6471_v56  ;;  %v6483_v36 = vsel %vm513_vm4, %v10430_v62, %v6482_v27  ;;  %v666_v47 = vadd.f32 1.0, %v11946_v1 }
 0x143   : > { %v11985_v44 = vadd.f32 %v608_v60, %v11764_v0  ;;  %v1816_v45 = vsub.f32 0.0, %v11905_v24  ;;  %v6485_v34 = vsel %vm516_vm5, %v6484_v25, %v6483_v36  ;;  %v712_v26 = vpack.c.bf16 %v696_v2, %v696_v2 }
 0x144   : > { %v665_v43 = vadd.f32 1.0, %v11924_v29  ;;  %v711_v33 = vpack.c.bf16 %v695_v35, %v695_v35  ;;  %v1842_v58 = vmul.f32 1.442695, %v1817_v15  ;;  %v719_v18 = vpack.c.bf16 %v703_v38, %v703_v38 }
 0x145   : > { %v626_v5 = vsub.f32 0.0, %v11985_v44  ;;  %v1840_v22 = vmul.f32 1.442695, %v1816_v45  ;;  %v1233_v60 = vunpack.c.l.b16 %v712_v26  ;;  %v12019_v15 = vadd.f32 %v11880_v16, %v11775_v28  ;;  %v12030_v16 = vld [vmem:[%s16935_s1] sm:$0xff] }
 0x146   : > { %10312 = vmatmul.msk.bf16.gmra.mxu2 %vm537_vm7, %v11716_v7  ;;  %v6487_v7 = vsel %vm519_vm6, %v6486_v11, %v6485_v34  ;;  %v1232_v29 = vunpack.c.l.b16 %v711_v33  ;;  %v1197_v23 = vunpack.c.l.b16 %v719_v18 }
 0x147   : > { %v657_v12 = vmul.f32 1.442695, %v626_v5  ;;  %v10807_v51 = vpop.eup %10806  ;;  %v6488_v20 = vpack.c.b16 %v6487_v7, %v6473_v37  ;;  %v1818_v38 = vsub.f32 0.0, %v12019_v15 }
 0x148   : > { %v10809_v59 = vpop.eup %10808  ;;  %v673_v6 = vadd.f32 1.0, %v10807_v51  ;;  %v1236_v62 = vpack.c.b16 %v1233_v60, %v1232_v29 }
 0x149   : > { %v12008_v10 = vpop.f32.mrf.mxu2  ;;  %v704_v1 = vmul.f32 %v10809_v59, %v11936_v4  ;;  %10810 = vpow2.f32 %v657_v12  ;;  %6497 = vmatpush.bf16.msra.mxu2 %v6488_v20  ;;  %v12013_v4 = vadd.f32 %v11915_v32, %v11791_v54  ;;  %v1844_v26 = vmul.f32 1.442695, %v1818_v38 }
 0x14a   : > { %10812 = vrcp.f32 %v666_v47 }
 0x14b   : > { %10814 = vrcp.f32 %v665_v43  ;;  %v720_v50 = vpack.c.bf16 %v704_v1, %v704_v1  ;;  %v1819_v27 = vsub.f32 0.0, %v12013_v4  ;;  %v12045_v43 = vadd.f32 %v11960_v40, %v11743_v31 }
 0x14c   : > { %10816 = vrcp.f32 %v673_v6 }
 0x14d   : > { %10818 = vpow2.f32 %v1842_v58  ;;  %v1198_v55 = vunpack.c.l.b16 %v720_v50  ;;  %v1846_v47 = vmul.f32 1.442695, %v1819_v27  ;;  %v1820_v18 = vsub.f32 0.0, %v12045_v43  ;;  %v12069_v27 = vld [vmem:[%s16935_s1 + $0x8] sm:$0xff] }
 0x14e   : > { %10820 = vpow2.f32 %v1840_v22 }
 0x14f   : > { %v10811_v3 = vpop.eup %10810  ;;  %v1201_v56 = vpack.c.b16 %v1198_v55, %v1197_v23  ;;  %v12052_v23 = vadd.f32 %v12008_v10, %v11751_v42 }
 0x150   : > { %v10813_v14 = vpop.eup %10812  ;;  %v674_v21 = vadd.f32 1.0, %v10811_v3 }
 0x151   : > { %v1805_v30 = vpop.f32.mrf.mxu2  ;;  %v10815_v35 = vpop.eup %10814  ;;  %10141 = vmatmul.msk.bf16.vlgmr.msrb.gmra.mxu3 %vm537_vm7, %v1201_v56  ;;  %10143 = vmatmul.msk.bf16.vlgmr.msrb.gmra.mxu1 %vm537_vm7, %v1236_v62  ;;  %v698_v32 = vmul.f32 %v10813_v14, %v11869_v39  ;;  %v1848_v62 = vmul.f32 1.442695, %v1820_v18 }
 0x152   : > { %v10817_v2 = vpop.eup %10816  ;;  %10822 = vrcp.f32 %v674_v21  ;;  %2400 = vmatpush.bf16.msrb.mxu3 %v11839_v57  ;;  %2435 = vmatpush.bf16.msrb.mxu1 %v11731_v17  ;;  %v697_v25 = vmul.f32 %v10815_v35, %v11865_v41  ;;  %v12037_v41 = vadd.f32 %v11980_v9, %v11761_v61  ;;  %v12060_v56 = vadd.f32 %v1805_v30, %v11764_v0 }
 0x153   : > { %v10819_v46 = vpop.eup %10818  ;;  %v705_v11 = vmul.f32 %v10817_v2, %v11965_v49  ;;  %v714_v37 = vpack.c.bf16 %v698_v32, %v698_v32  ;;  %v1822_v32 = vsub.f32 0.0, %v12052_v23 }
 0x154   : > { %v10821_v5 = vpop.eup %10820  ;;  %v1865_v57 = vadd.f32 1.0, %v10819_v46  ;;  %v713_v45 = vpack.c.bf16 %v697_v25, %v697_v25  ;;  %v1821_v33 = vsub.f32 0.0, %v12037_v41 }
 0x155   : > { %v1864_v39 = vadd.f32 1.0, %v10821_v5  ;;  %v721_v12 = vpack.c.bf16 %v705_v11, %v705_v11  ;;  %v1235_v7 = vunpack.c.l.b16 %v714_v37  ;;  %v1852_v38 = vmul.f32 1.442695, %v1822_v32 }
 0x156   : > { %10433 = vmatmul.msk.bf16.vlgmr.msra.gmra.mxu2 %vm537_vm7, %v12030_v16  ;;  %10824 = vrcp.f32 %v1865_v57  ;;  %v1234_v6 = vunpack.c.l.b16 %v713_v45  ;;  %v1850_v60 = vmul.f32 1.442695, %v1821_v33 }
 0x157   : > { %10826 = vrcp.f32 %v1864_v39  ;;  %v1199_v20 = vunpack.c.l.b16 %v721_v12 }
 0x158   : > { %v10823_v36 = vpop.eup %10822  ;;  %10828 = vpow2.f32 %v1846_v47  ;;  %v1237_v22 = vpack.c.b16 %v1235_v7, %v1234_v6 }
 0x159   : > { %v4136_v49 = vpop.f32.mrf.mxu2  ;;  %v706_v34 = vmul.f32 %v10823_v36, %v11985_v44  ;;  %10830 = vpow2.f32 %v1844_v26 }
 0x15a   : > { %v12041_v51 = vadd.f32 %v4136_v49, %v11720_v8 }
 0x15b   : > { %v722_v59 = vpack.c.bf16 %v706_v34, %v706_v34 }
 0x15c   : > { %v4176_v9 = vsub.f32 0.0, %v12041_v51  ;;  %v10825_v40 = vpop.eup %10824 }
 0x15d   : > { %v1200_v44 = vunpack.c.l.b16 %v722_v59  ;;  %v10827_v29 = vpop.eup %10826  ;;  %v1897_v14 = vmul.f32 %v10825_v40, %v11913_v52  ;;  %v1823_v52 = vsub.f32 0.0, %v12060_v56 }
 0x15e   : > { %v4192_v58 = vmul.f32 1.442695, %v4176_v9  ;;  %v10829_v3 = vpop.eup %10828  ;;  %v1896_v2 = vmul.f32 %v10827_v29, %v11905_v24 }
 0x15f   : > { %v1202_v1 = vpack.c.b16 %v1200_v44, %v1199_v20  ;;  %v10831_v35 = vpop.eup %10830  ;;  %v1867_v46 = vadd.f32 1.0, %v10829_v3  ;;  %v1913_v25 = vpack.c.bf16 %v1897_v14, %v1897_v14  ;;  %v1854_v36 = vmul.f32 1.442695, %v1823_v52 }
 0x160   : > { %10832 = vpow2.f32 %v4192_v58  ;;  %v1866_v11 = vadd.f32 1.0, %v10831_v35  ;;  %v1912_v57 = vpack.c.bf16 %v1896_v2, %v1896_v2  ;;  %v17053_v58 = vld [vmem:[#allocation19_spill] sm:$0xff]  ;;  %v12094_v2 = vld [vmem:[%s16935_s1 + $0x10] sm:$0xff] }
 0x161   : > { %v4138_v50 = vpop.f32.mrf.mxu2  ;;  %10142 = vmatmul.msk.bf16.gmra.mxu3 %vm537_vm7, %v1202_v1  ;;  %10144 = vmatmul.msk.bf16.gmra.mxu1 %vm537_vm7, %v1237_v22  ;;  %10834 = vpow2.f32 %v1850_v60  ;;  %v1925_v47 = vunpack.c.l.b16 %v1913_v25  ;;  %v17054_v1 = vld [vmem:[#allocation26_spill] sm:$0xff]  ;;  %v17055_v22 = vld [vmem:[#allocation25_spill] sm:$0xff] }
 0x162   : > { %v12055_v55 = vadd.f32 %v4138_v50, %v11725_v13  ;;  %10836 = vpow2.f32 %v1848_v62  ;;  %v1924_v34 = vunpack.c.l.b16 %v1912_v57  ;;  %v17056_v40 = vpack.c.b16 %v17054_v1, %v17055_v22  ;;  %v17057_v57 = vld [vmem:[#allocation24_spill] sm:$0xff] }
 0x164   : > { %v4177_v21 = vsub.f32 0.0, %v12055_v55  ;;  %v1928_v33 = vpack.c.b16 %v1925_v47, %v1924_v34 }
 0x166   : > { %v10833_v10 = vpop.eup %10832  ;;  %v4194_v5 = vmul.f32 1.442695, %v4177_v21  ;;  %10434 = vmatmul.msk.bf16.gmra.mxu2 %vm537_vm7, %v12069_v27 }
 0x167   : > { %v4224_v30 = vadd.f32 1.0, %v10833_v10  ;;  %v10835_v39 = vpop.eup %10834 }
 0x168   : > { %10838 = vpow2.f32 %v4194_v5  ;;  %v10837_v45 = vpop.eup %10836  ;;  %v1869_v26 = vadd.f32 1.0, %v10835_v39 }
 0x169   : > { %v4141_v24 = vpop.f32.mrf.mxu2  ;;  %10840 = vrcp.f32 %v1867_v46  ;;  %v1868_v6 = vadd.f32 1.0, %v10837_v45 }
 0x16a   : > { %v12075_v37 = vadd.f32 %v4141_v24, %v11735_v19  ;;  %10842 = vrcp.f32 %v4224_v30 }
 0x16b   : > { %10844 = vrcp.f32 %v1866_v11 }
 0x16c   : > { %v4178_v49 = vsub.f32 0.0, %v12075_v37  ;;  %10846 = vpow2.f32 %v1852_v38 }
 0x16d   : > { %10848 = vpow2.f32 %v1854_v36 }
 0x16e   : > { %v10839_v12 = vpop.eup %10838  ;;  %v4196_v7 = vmul.f32 1.442695, %v4178_v49 }
 0x16f   : > { %v4225_v59 = vadd.f32 1.0, %v10839_v12  ;;  %v10841_v9 = vpop.eup %10840 }
 0x170   : > { %10850 = vpow2.f32 %v4196_v7  ;;  %v10843_v20 = vpop.eup %10842  ;;  %v1899_v50 = vmul.f32 %v10841_v9, %v12013_v4 }
 0x171   : > { %10852 = vrcp.f32 %v4225_v59  ;;  %v4143_v44 = vpop.f32.mrf.mxu2  ;;  %10185 = vmatmul.msk.bf16.vlgmr.msra.gmra.mxu3 %vm537_vm7, %v1928_v33  ;;  %10187 = vmatmul.msk.bf16.vlgmr.msra.gmra.mxu1 %vm537_vm7, %v17056_v40  ;;  %v10845_v60 = vpop.eup %10844  ;;  %v4256_v3 = vmul.f32 %v10843_v20, %v12041_v51  ;;  %v17060_v40 = vld [vmem:[#allocation28_spill] sm:$0xff] }
 0x172   : > { %10854 = vrcp.f32 %v1869_v26  ;;  %v12079_v18 = vadd.f32 %v4143_v44, %v17053_v58  ;;  %3162 = vmatpush.bf16.msra.mxu1 %v11731_v17  ;;  %v10847_v29 = vpop.eup %10846  ;;  %v1898_v35 = vmul.f32 %v10845_v60, %v12019_v15  ;;  %v1915_v4 = vpack.c.bf16 %v1899_v50, %v1899_v50  ;;  %v17061_v60 = vld [vmem:[#allocation31_spill] sm:$0xff]  ;;  %v17062_v50 = vld [vmem:[#allocation30_spill] sm:$0xff] }
 0x173   : > { %10856 = vrcp.f32 %v1868_v6  ;;  %v10849_v14 = vpop.eup %10848  ;;  %v1870_v46 = vadd.f32 1.0, %v10847_v29  ;;  %v4272_v52 = vpack.c.bf16 %v4256_v3, %v4256_v3  ;;  %v17063_v29 = vpack.c.b16 %v17061_v60, %v17062_v50 }
 0x174   : > { %v4179_v62 = vsub.f32 0.0, %v12079_v18  ;;  %v1871_v5 = vadd.f32 1.0, %v10849_v14  ;;  %v1914_v11 = vpack.c.bf16 %v1898_v35, %v1898_v35  ;;  %v1927_v39 = vunpack.c.l.b16 %v1915_v4  ;;  %v12134_v4 = vld [vmem:[%s16935_s1 + $0x18] sm:$0xff] }
 0x175   : > { %v12103_v47 = vunpack.c.l.b16 %v4272_v52 }
 0x176   : > { %v10851_v21 = vpop.eup %10850  ;;  %v4198_v10 = vmul.f32 1.442695, %v4179_v62  ;;  %10435 = vmatmul.msk.bf16.gmra.mxu2 %vm537_vm7, %v12094_v2  ;;  %v1926_v34 = vunpack.c.l.b16 %v1914_v11 }
 0x177   : > { %v10853_v17 = vpop.eup %10852  ;;  %v4226_v32 = vadd.f32 1.0, %v10851_v21  ;;  %17058 = vst [vmem:[#allocation26_spill] sm:$0xff] %v12103_v47 }
 0x178   : > { %v10855_v51 = vpop.eup %10854  ;;  %v4257_v30 = vmul.f32 %v10853_v17, %v12055_v55  ;;  %10858 = vpow2.f32 %v4198_v10 }
 0x179   : > { %10860 = vrcp.f32 %v4226_v32  ;;  %v4146_v15 = vpop.f32.mrf.mxu2  ;;  %v10857_v25 = vpop.eup %10856  ;;  %v1901_v36 = vmul.f32 %v10855_v51, %v12037_v41  ;;  %v1929_v41 = vpack.c.b16 %v1927_v39, %v1926_v34  ;;  %v2834_v51 = vld [vmem:[%s11506_s16 + $0x4] sm:$0x2] }
 0x17a   : > { %v4273_v24 = vpack.c.bf16 %v4257_v30, %v4257_v30  ;;  %v12100_v38 = vadd.f32 %v4146_v15, %v17057_v57  ;;  %10862 = vrcp.f32 %v1870_v46  ;;  %v1900_v45 = vmul.f32 %v10857_v25, %v12045_v43  ;;  %v2841_v30 = vld [vmem:[%s11506_s16 + $0x20] sm:$0x2]  ;;  %v2842_v15 = vld [vmem:[%s11506_s16 + $0x24] sm:$0x2] }
 0x17b   : > { %10864 = vrcp.f32 %v1871_v5  ;;  %v1917_v9 = vpack.c.bf16 %v1901_v36, %v1901_v36  ;;  %v2836_v36 = vld [vmem:[%s11506_s16 + $0xc] sm:$0x2] }
 0x17c   : > { %v12105_v49 = vunpack.c.l.b16 %v4273_v24  ;;  %v4180_v55 = vsub.f32 0.0, %v12100_v38  ;;  %v1916_v20 = vpack.c.bf16 %v1900_v45, %v1900_v45  ;;  %v2866_v45 = vunpack.c.l.b16 %v2834_v51 }
 0x17d   : > { %v12120_v3 = vunpack.c.l.b16 %v1917_v9  ;;  %v2843_v9 = vld [vmem:[%s11506_s16 + $0x28] sm:$0x2] }
 0x17e   : > { %17059 = vst [vmem:[#allocation25_spill] sm:$0xff] %v12105_v49  ;;  %v10859_v12 = vpop.eup %10858  ;;  %v4200_v7 = vmul.f32 1.442695, %v4180_v55  ;;  %v12126_v14 = vunpack.c.l.b16 %v1916_v20  ;;  %v2844_v55 = vld [vmem:[%s11506_s16 + $0x2c] sm:$0x2]  ;;  %v10226_v5 = vunpack.i.l.s16 %v2866_v45  ;;  %v17069_v45 = vld [vmem:[#allocation34_spill] sm:$0xff] }
 0x17f   : > { %v10861_v59 = vpop.eup %10860  ;;  %v4227_v33 = vadd.f32 1.0, %v10859_v12  ;;  %v2845_v20 = vld [vmem:[%s11506_s16 + $0x30] sm:$0x2]  ;;  %v2876_v50 = vunpack.c.l.b16 %v2844_v55 }
 0x180   : > { %10866 = vpow2.f32 %v4200_v7  ;;  %v10863_v6 = vpop.eup %10862  ;;  %v4258_v44 = vmul.f32 %v10861_v59, %v12075_v37  ;;  %v2835_v7 = vld [vmem:[%s11506_s16 + $0x8] sm:$0x2]  ;;  %v2837_v59 = vld [vmem:[%s11506_s16 + $0x10] sm:$0x2] }
 0x181   : > { %10868 = vrcp.f32 %v4227_v33  ;;  %v4148_v1 = vpop.f32.mrf.mxu2  ;;  %v10865_v22 = vpop.eup %10864  ;;  %10186 = vmatmul.msk.bf16.gmra.mxu3 %vm537_vm7, %v1929_v41  ;;  %10188 = vmatmul.msk.bf16.gmra.mxu1 %vm537_vm7, %v17063_v29  ;;  %v12123_v62 = vmul.f32 %v10863_v6, %v12052_v23  ;;  %v2873_v33 = vunpack.c.l.b16 %v2841_v30  ;;  %v2874_v41 = vunpack.c.l.b16 %v2842_v15  ;;  %v2838_v6 = vld [vmem:[%s11506_s16 + $0x14] sm:$0x2] }
 0x182   : > { %v12113_v43 = vadd.f32 %v4148_v1, %v17060_v40  ;;  %v12129_v21 = vmul.f32 %v10865_v22, %v12060_v56  ;;  %v4274_v35 = vpack.c.bf16 %v4258_v44, %v4258_v44  ;;  %v2833_v56 = vld [vmem:[%s11506_s16] sm:$0x2]  ;;  %v2846_v44 = vld [vmem:[%s11506_s16 + $0x34] sm:$0x2]  ;;  %v2867_v1 = vunpack.c.l.b16 %v2835_v7 }
 0x183   : > { %v2865_v25 = vunpack.c.l.b16 %v2833_v56  ;;  %v2868_v22 = vunpack.c.l.b16 %v2836_v36  ;;  %v2869_v60 = vunpack.c.l.b16 %v2837_v59  ;;  %v2848_v56 = vld [vmem:[%s11506_s16 + $0x3c] sm:$0x2]  ;;  %v2870_v51 = vunpack.c.l.b16 %v2838_v6  ;;  %v17067_v36 = vld [vmem:[#allocation32_spill] sm:$0xff] }
 0x184   : > { %v4181_v37 = vsub.f32 0.0, %v12113_v43  ;;  %v12149_v24 = vunpack.c.l.b16 %v4274_v35  ;;  %v2839_v35 = vld [vmem:[%s11506_s16 + $0x18] sm:$0x2]  ;;  %v2877_v30 = vunpack.c.l.b16 %v2845_v20  ;;  %v2878_v15 = vunpack.c.l.b16 %v2846_v44 }
 0x185   : > { %v2880_v53 = vunpack.c.l.b16 %v2848_v56  ;;  %v10227_v11 = vunpack.i.l.s16 %v2867_v1  ;;  %v10229_v6 = vunpack.i.l.s16 %v2869_v60  ;;  %v10230_v44 = vunpack.i.l.s16 %v2870_v51  ;;  %v17070_v1 = vld [vmem:[#allocation33_spill] sm:$0xff] }
 0x186   : > { %v10867_v10 = vpop.eup %10866  ;;  %v4202_v17 = vmul.f32 1.442695, %v4181_v37  ;;  %10436 = vmatmul.msk.bf16.gmra.mxu2 %vm537_vm7, %v12134_v4  ;;  %17064 = vst [vmem:[#allocation31_spill] sm:$0xff] %v12149_v24  ;;  %v10237_v56 = vunpack.i.l.s16 %v2877_v30  ;;  %v10238_v51 = vunpack.i.l.s16 %v2878_v15 }
 0x187   : > { %v10869_v23 = vpop.eup %10868  ;;  %v4228_v32 = vadd.f32 1.0, %v10867_v10  ;;  %v2847_v10 = vld [vmem:[%s11506_s16 + $0x38] sm:$0x2] }
 0x188   : > { %v4259_v52 = vmul.f32 %v10869_v23, %v12079_v18  ;;  %10870 = vpow2.f32 %v4202_v17  ;;  %v17065_v18 = vld [vmem:[#allocation29_spill] sm:$0xff]  ;;  %v2875_v17 = vunpack.c.l.b16 %v2843_v9  ;;  %v10225_v23 = vunpack.i.l.s16 %v2865_v25 }
 0x189   : > { %10872 = vrcp.f32 %v4228_v32  ;;  %v4151_v39 = vpop.f32.mrf.mxu2  ;;  %v2840_v32 = vld [vmem:[%s11506_s16 + $0x1c] sm:$0x2]  ;;  %v10228_v9 = vunpack.i.l.s16 %v2868_v22  ;;  %v10233_v22 = vunpack.i.l.s16 %v2873_v33 }
 0x18a   : > { %v4275_v12 = vpack.c.bf16 %v4259_v52, %v4259_v52  ;;  %v12154_v34 = vadd.f32 %v4151_v39, %v17065_v18  ;;  %v2871_v52 = vunpack.c.l.b16 %v2839_v35  ;;  %v2872_v55 = vunpack.c.l.b16 %v2840_v32 }
 0x18b   : > { %v10235_v60 = vunpack.i.l.s16 %v2875_v17  ;;  %v10236_v32 = vunpack.i.l.s16 %v2876_v50  ;;  %v12190_v50 = vld [vmem:[%s16935_s1 + $0x20] sm:$0xff]  ;;  %v2927_v15 = vrot.slane %v10233_v22, 2 }
 0x18c   : > { %v12162_v29 = vunpack.c.l.b16 %v4275_v12  ;;  %v4182_v37 = vsub.f32 0.0, %v12154_v34  ;;  %v2879_v12 = vunpack.c.l.b16 %v2847_v10  ;;  %v10231_v35 = vunpack.i.l.s16 %v2871_v52  ;;  %v11240_v52 = vld [vmem:[%s16937_s3] sm:$0xff] }
 0x18d   : > { %v10232_v46 = vunpack.i.l.s16 %v2872_v55  ;;  %v17068_v10 = vpack.c.b16 %v12120_v3, %v12126_v14  ;;  %v10240_v55 = vunpack.i.l.s16 %v2880_v53 }
 0x18e   : > { %17066 = vst [vmem:[#allocation30_spill] sm:$0xff] %v12162_v29  ;;  %v10871_v39 = vpop.eup %10870  ;;  %v4204_v7 = vmul.f32 1.442695, %v4182_v37  ;;  %v10239_v14 = vunpack.i.l.s16 %v2879_v12  ;;  %v2923_v30 = vrot.slane %v10231_v35, 4  ;;  %v2326_v29 = vld [vmem:[%s12266_s6 + $0x78] sm:$0x2] }
 0x18f   : > { %v10873_v59 = vpop.eup %10872  ;;  %v4229_v26 = vadd.f32 1.0, %v10871_v39  ;;  %v2913_v39 = vrot.slane %v10225_v23, 2 }
 0x190   : > { %v4260_v25 = vmul.f32 %v10873_v59, %v12100_v38  ;;  %10874 = vpow2.f32 %v4204_v7  ;;  %v17071_v38 = vpack.c.b16 %v17069_v45, %v17070_v1  ;;  %v2914_v7 = vrot.slane %v10226_v5, 1 }
 0x191   : > { %10876 = vrcp.f32 %v4229_v26  ;;  %v4153_v20 = vpop.f32.mrf.mxu2  ;;  %10205 = vmatmul.msk.bf16.vlgmr.msrb.gmra.mxu3 %vm537_vm7, %v17068_v10  ;;  %v10234_v26 = vunpack.i.l.s16 %v2874_v41  ;;  %v2917_v59 = vrot.slane %v10228_v9, 7  ;;  %v2931_v9 = vrot.slane %v10236_v32, 7 }
 0x192   : > { %v4276_v47 = vpack.c.bf16 %v4260_v25, %v4260_v25  ;;  %v12173_v37 = vadd.f32 %v4153_v20, %v17067_v36  ;;  %10207 = vmatmul.msk.bf16.vlgmr.msrb.gmra.mxu1 %vm537_vm7, %v17071_v38  ;;  %v2919_v25 = vrot.slane %v10229_v6, 6  ;;  %v2921_v20 = vrot.slane %v10230_v44, 5 }
 0x193   : > { %3619 = vmatpush.bf16.msrb.mxu1 %v11240_v52  ;;  %v2915_v17 = vsel %vm501_vm0, %v2914_v7, %v2913_v39  ;;  %v2928_v12 = vrot.slane %v10234_v26, 1  ;;  %v2933_v10 = vrot.slane %v10237_v56, 6  ;;  %v2925_v1 = vrot.slane %v10232_v46, 3 }
 0x194   : > { %v4183_v3 = vsub.f32 0.0, %v12173_v37  ;;  %v2916_v53 = vsel %vm504_vm1, %v10227_v11, %v2915_v17  ;;  %v2935_v52 = vrot.slane %v10238_v51, 5  ;;  %v2937_v32 = vrot.slane %v10239_v14, 4 }
 0x195   : > { %v2918_v44 = vsel %vm507_vm2, %v2917_v59, %v2916_v53  ;;  %v2929_v38 = vsel %vm501_vm0, %v2928_v12, %v2927_v15  ;;  %v12204_v39 = vunpack.c.l.b16 %v4276_v47  ;;  %v17074_v51 = vpack.c.bf16 %v12129_v21, %v12129_v21 }
 0x196   : > { %v10875_v33 = vpop.eup %10874  ;;  %v4206_v41 = vmul.f32 1.442695, %v4183_v3  ;;  %10437 = vmatmul.msk.bf16.gmra.mxu2 %vm537_vm7, %v12190_v50  ;;  %v2920_v45 = vsel %vm510_vm3, %v2919_v25, %v2918_v44  ;;  %v2930_v11 = vsel %vm504_vm1, %v10235_v60, %v2929_v38  ;;  %v2939_v3 = vrot.slane %v10240_v55, 3  ;;  %v795_v44 = vpop.f32.mrf.mxu3 }
 0x197   : > { %v10877_v23 = vpop.eup %10876  ;;  %v4230_v5 = vadd.f32 1.0, %v10875_v33  ;;  %v2922_v22 = vsel %vm513_vm4, %v2921_v20, %v2920_v45  ;;  %17072 = vst [vmem:[#allocation34_spill] sm:$0xff] %v12204_v39  ;;  %v2384_v7 = vunpack.c.l.b16 %v17074_v51  ;;  %v17075_v47 = vpack.c.bf16 %v12123_v62, %v12123_v62  ;;  %v12230_v62 = vld [vmem:[%s16935_s1 + $0x28] sm:$0xff] }
 0x198   : > { %v4261_v6 = vmul.f32 %v10877_v23, %v12113_v43  ;;  %10878 = vpow2.f32 %v4206_v41  ;;  %v2924_v26 = vsel %vm516_vm5, %v2923_v30, %v2922_v22  ;;  %v2932_v43 = vsel %vm507_vm2, %v2931_v9, %v2930_v11 }
 0x199   : > { %10880 = vrcp.f32 %v4230_v5  ;;  %v2934_v46 = vsel %vm510_vm3, %v2933_v10, %v2932_v43  ;;  %v2926_v59 = vsel %vm519_vm6, %v2925_v1, %v2924_v26  ;;  %v2383_v55 = vunpack.c.l.b16 %v17075_v47 }
 0x19a   : > { %v4277_v35 = vpack.c.bf16 %v4261_v6, %v4261_v6  ;;  %v2936_v60 = vsel %vm513_vm4, %v2935_v52, %v2934_v46  ;;  %v17076_v15 = vpack.c.b16 %v11977_v63, %v11974_v48  ;;  %v12241_v6 = vpop.f32.mrf.mxu2 }
 0x19b   : > { %v2938_v14 = vsel %vm516_vm5, %v2937_v32, %v2936_v60  ;;  %v2386_v30 = vpack.c.b16 %v2384_v7, %v2383_v55 }
 0x19c   : > { %v12206_v56 = vunpack.c.l.b16 %v4277_v35  ;;  %v2940_v41 = vsel %vm519_vm6, %v2939_v3, %v2938_v14  ;;  %v12249_v35 = vld [vmem:[%s16935_s1 + $0x30] sm:$0xff] }
 0x19d   : > { %v2941_v21 = vpack.c.b16 %v2940_v41, %v2926_v59 }
 0x19e   : > { %17073 = vst [vmem:[#allocation33_spill] sm:$0xff] %v12206_v56  ;;  %v10879_v25 = vpop.eup %10878 }
 0x19f   : > { %v4231_v33 = vadd.f32 1.0, %v10879_v25  ;;  %v10881_v17 = vpop.eup %10880  ;;  %2950 = vmatpush.bf16.msra.mxu3 %v2941_v21 }
 0x1a0   : > { %v4262_v23 = vmul.f32 %v10881_v17, %v12154_v34 }
 0x1a1   : > { %10882 = vrcp.f32 %v4231_v33  ;;  %10206 = vmatmul.msk.bf16.gmra.mxu3 %vm537_vm7, %v2386_v30  ;;  %v17080_v30 = vmov 0 }
 0x1a2   : > { %10208 = vmatmul.msk.bf16.gmra.mxu1 %vm537_vm7, %v17076_v15  ;;  %v4278_v53 = vpack.c.bf16 %v4262_v23, %v4262_v23  ;;  %v12257_v3 = vpop.f32.mrf.mxu2  ;;  %v17081_v30 = vsel %vm12262_vm11, 4294967295, %v17080_v30  ;;  %v1097_v15 = vld [vmem:[%s12266_s6] sm:$0x1] }
 0x1a3   : > { %17082 = vst [vmem:[#allocation38_spill] sm:$0xff] %v17081_v30 }
 0x1a4   : > { %v12235_v63 = vunpack.c.l.b16 %v4278_v53 }
 0x1a6   : > { %10438 = vmatmul.msk.bf16.gmra.mxu2 %vm537_vm7, %v12230_v62  ;;  %17077 = vst [vmem:[#allocation35_spill] sm:$0xff] %v12235_v63 }
 0x1a7   : > { %v10883_v5 = vpop.eup %10882 }
 0x1a8   : > { %v4263_v12 = vmul.f32 %v10883_v5, %v12173_v37  ;;  %v11374_v37 = vmov 286326784  }
 0x1a9   : > { %v935_v52 = vunpack.c.l.s4 %v11374_v37  ;;  %v1109_v37 = vld [vmem:[%s12266_s6 + $0x20] sm:$0x1] }
 0x1aa   : > { %v4279_v48 = vpack.c.bf16 %v4263_v12, %v4263_v12  ;;  %v1100_v12 = vld [vmem:[%s12266_s6 + $0x8] sm:$0x1] }
 0x1ab   : > { %v12259_v7 = vunpack.c.0.s8 %v935_v52 }
 0x1ac   : > { %v12237_v9 = vunpack.c.l.b16 %v4279_v48  ;;  %v1103_v48 = vld [vmem:[%s12266_s6 + $0x10] sm:$0x1] }
 0x1ad   : > { %17079 = vst [vmem:[#allocation37_spill] sm:$0xff] %v12259_v7 }
 0x1ae   : > { %17078 = vst [vmem:[#allocation36_spill] sm:$0xff] %v12237_v9  ;;  %v754_v10 = vpop.f32.mrf.mxu1 }
 0x1af   : > { %v796_v45 = vadd.f32 %v795_v44, %v754_v10  ;;  %v1106_v44 = vld [vmem:[%s12266_s6 + $0x18] sm:$0x1] }
 0x1b1   : > { %v805_v1 = vpack.c.bf16 %v796_v45, %v796_v45  ;;  %10241 = vmatmul.msk.bf16.vlgmr.msra.gmra.mxu3 %vm537_vm7, %v12030_v16 }
 0x1b3   : > { %v813_v38 = vrot.slane %v805_v1, 3 }
 0x1b5   : > { %v820_v22 = vsel %vm817_vm8, %v805_v1, %v813_v38  ;;  %v822_v11 = vsel %vm501_vm0, %v805_v1, %v813_v38  ;;  %v825_v26 = vsel %vm504_vm1, %v805_v1, %v813_v38  ;;  %v828_v32 = vsel %vm507_vm2, %v805_v1, %v813_v38 }
 0x1b6   : > { %10439 = vmatmul.msk.bf16.gmra.mxu2 %vm537_vm7, %v12249_v35  ;;  %v824_v43 = vrot.slane %v822_v11, 1  ;;  %v827_v16 = vrot.slane %v825_v26, 2  ;;  %v830_v46 = vrot.slane %v828_v32, 3  ;;  %v871_v51 = vunpack.i.h.s16 %v820_v22  ;;  %v1112_v11 = vld [vmem:[%s12266_s6 + $0x28] sm:$0x1] }
 0x1b7   : > { %v10125_v25 = vpack.i.b16 %v820_v22, %v820_v22  ;;  %v1115_v26 = vld [vmem:[%s12266_s6 + $0x30] sm:$0x1] }
 0x1b8   : > { %v873_v59 = vunpack.i.h.s16 %v824_v43  ;;  %v875_v60 = vunpack.i.h.s16 %v827_v16  ;;  %v877_v14 = vunpack.i.h.s16 %v830_v46  ;;  %v903_v47 = vpack.i.b16 %v871_v51, %v871_v51  ;;  %v1118_v51 = vld [vmem:[%s12266_s6 + $0x38] sm:$0x1] }
 0x1b9   : > { %v10126_v55 = vpack.i.b16 %v824_v43, %v824_v43  ;;  %v10127_v41 = vpack.i.b16 %v827_v16, %v827_v16  ;;  %v10128_v21 = vpack.i.b16 %v830_v46, %v830_v46  ;;  %v937_v5 = vperm.slane %v10125_v25, %v12259_v7  ;;  %v5202_v25 = vld [vmem:[%s11506_s16 + $0x4] sm:$0x4] }
 0x1ba   : > { %v905_v33 = vpack.i.b16 %v873_v59, %v873_v59  ;;  %v907_v17 = vpack.i.b16 %v875_v60, %v875_v60  ;;  %v909_v23 = vpack.i.b16 %v877_v14, %v877_v14  ;;  %v941_v53 = vperm.slane %v903_v47, %v12259_v7  ;;  %v5201_v59 = vld [vmem:[%s11506_s16] sm:$0x4]  ;;  %v5203_v14 = vld [vmem:[%s11506_s16 + $0x8] sm:$0x4] }
 0x1bb   : > { %v945_v10 = vperm.slane %v10126_v55, %v12259_v7  ;;  %v953_v1 = vperm.slane %v10127_v41, %v12259_v7  ;;  %v961_v52 = vperm.slane %v10128_v21, %v12259_v7  ;;  %v1098_v22 = vsel %vm12262_vm11, %v937_v5, %v1097_v15  ;;  %v5204_v55 = vld [vmem:[%s11506_s16 + $0xc] sm:$0x4]  ;;  %v12304_v41 = vpop.f32.mrf.mxu2  ;;  %v5206_v21 = vld [vmem:[%s11506_s16 + $0x14] sm:$0x4]  ;;  %v5209_v15 = vld [vmem:[%s11506_s16 + $0x20] sm:$0x4] }
 0x1bc   : > { %v949_v45 = vperm.slane %v905_v33, %v12259_v7  ;;  %v957_v38 = vperm.slane %v907_v17, %v12259_v7  ;;  %v965_v43 = vperm.slane %v909_v23, %v12259_v7  ;;  %1099 = vst [vmem:[%s12266_s6] sm:$0x1] %v1098_v22  ;;  %v1101_v16 = vsel %vm12262_vm11, %v941_v53, %v1100_v12  ;;  %v5205_v33 = vld [vmem:[%s11506_s16 + $0x10] sm:$0x4]  ;;  %v5207_v5 = vld [vmem:[%s11506_s16 + $0x18] sm:$0x4] }
 0x1bd   : > { %v1104_v32 = vsel %vm12262_vm11, %v945_v10, %v1103_v48  ;;  %1102 = vst [vmem:[%s12266_s6 + $0x8] sm:$0x1] %v1101_v16  ;;  %v1110_v60 = vsel %vm12262_vm11, %v953_v1, %v1109_v37  ;;  %v1116_v17 = vsel %vm12262_vm11, %v961_v52, %v1115_v26  ;;  %v5210_v53 = vld [vmem:[%s11506_s16 + $0x24] sm:$0x4]  ;;  %v5233_v12 = vunpack.c.l.b16 %v5201_v59  ;;  %v5212_v10 = vld [vmem:[%s11506_s16 + $0x2c] sm:$0x4] }
 0x1be   : > { %v1107_v46 = vsel %vm12262_vm11, %v949_v45, %v1106_v44  ;;  %1105 = vst [vmem:[%s12266_s6 + $0x10] sm:$0x1] %v1104_v32  ;;  %v1113_v47 = vsel %vm12262_vm11, %v957_v38, %v1112_v11  ;;  %v1119_v23 = vsel %vm12262_vm11, %v965_v43, %v1118_v51  ;;  %v5234_v48 = vunpack.c.l.b16 %v5202_v25  ;;  %v5211_v44 = vld [vmem:[%s11506_s16 + $0x28] sm:$0x4]  ;;  %v5208_v38 = vld [vmem:[%s11506_s16 + $0x1c] sm:$0x4] }
 0x1bf   : > { %1108 = vst [vmem:[%s12266_s6 + $0x18] sm:$0x1] %v1107_v46  ;;  %v5235_v45 = vunpack.c.l.b16 %v5203_v14  ;;  %v5236_v1 = vunpack.c.l.b16 %v5204_v55  ;;  %v5214_v37 = vld [vmem:[%s11506_s16 + $0x34] sm:$0x4]  ;;  %v5238_v52 = vunpack.c.l.b16 %v5206_v21  ;;  %v5241_v22 = vunpack.c.l.b16 %v5209_v15  ;;  %v5213_v11 = vld [vmem:[%s11506_s16 + $0x30] sm:$0x4]  ;;  %v756_v46 = vpop.f32.mrf.mxu1 }
 0x1c0   : > { %1111 = vst [vmem:[%s12266_s6 + $0x20] sm:$0x1] %v1110_v60  ;;  %v5215_v26 = vld [vmem:[%s11506_s16 + $0x38] sm:$0x4]  ;;  %v5237_v43 = vunpack.c.l.b16 %v5205_v33  ;;  %v5239_v16 = vunpack.c.l.b16 %v5207_v5  ;;  %v5242_v32 = vunpack.c.l.b16 %v5210_v53  ;;  %v5216_v51 = vld [vmem:[%s11506_s16 + $0x3c] sm:$0x4]  ;;  %v5243_v59 = vunpack.c.l.b16 %v5211_v44 }
 0x1c1   : > { %10242 = vmatmul.msk.bf16.gmra.mxu3 %vm537_vm7, %v12069_v27  ;;  %1114 = vst [vmem:[%s12266_s6 + $0x28] sm:$0x1] %v1113_v47  ;;  %v12330_v27 = vld [vmem:[%s16935_s1 + $0x38] sm:$0xff]  ;;  %v5244_v60 = vunpack.c.l.b16 %v5212_v10  ;;  %v10353_v25 = vunpack.i.l.s16 %v5233_v12  ;;  %v10354_v14 = vunpack.i.l.s16 %v5234_v48  ;;  %v797_v47 = vpop.f32.mrf.mxu3  ;;  %v5240_v55 = vunpack.c.l.b16 %v5208_v38 }
 0x1c2   : > { %1117 = vst [vmem:[%s12266_s6 + $0x30] sm:$0x1] %v1116_v17  ;;  %v5246_v17 = vunpack.c.l.b16 %v5214_v37  ;;  %v10355_v33 = vunpack.i.l.s16 %v5235_v45  ;;  %v10356_v21 = vunpack.i.l.s16 %v5236_v1  ;;  %v5245_v15 = vunpack.c.l.b16 %v5213_v11 }
 0x1c3   : > { %1120 = vst [vmem:[%s12266_s6 + $0x38] sm:$0x1] %v1119_v23  ;;  %v5247_v23 = vunpack.c.l.b16 %v5215_v26  ;;  %v10358_v5 = vunpack.i.l.s16 %v5238_v52  ;;  %v10361_v53 = vunpack.i.l.s16 %v5241_v22  ;;  %v5248_v34 = vunpack.c.l.b16 %v5216_v51  ;;  %v12335_v10 = vpop.f32.mrf.mxu2 }
 0x1c4   : > { %v10357_v20 = vunpack.i.l.s16 %v5237_v43  ;;  %v10359_v63 = vunpack.i.l.s16 %v5239_v16  ;;  %v10362_v9 = vunpack.i.l.s16 %v5242_v32  ;;  %v10363_v39 = vunpack.i.l.s16 %v5243_v59 }
 0x1c5   : > { %v10364_v56 = vunpack.i.l.s16 %v5244_v60  ;;  %v5281_v24 = vrot.slane %v10353_v25, 4  ;;  %v5282_v44 = vrot.slane %v10354_v14, 3  ;;  %v10360_v12 = vunpack.i.l.s16 %v5240_v55 }
 0x1c6   : > { %10440 = vmatmul.msk.bf16.gmra.mxu2 %vm537_vm7, %v12330_v27  ;;  %v10366_v48 = vunpack.i.l.s16 %v5246_v17  ;;  %v5284_v38 = vrot.slane %v10355_v33, 2  ;;  %v5286_v37 = vrot.slane %v10356_v21, 1  ;;  %v10367_v45 = vunpack.i.l.s16 %v5247_v23 }
 0x1c7   : > { %v5283_v1 = vsel %vm501_vm0, %v5282_v44, %v5281_v24  ;;  %v5289_v11 = vrot.slane %v10358_v5, 7  ;;  %v5295_v52 = vrot.slane %v10361_v53, 4  ;;  %v10368_v22 = vunpack.i.l.s16 %v5248_v34  ;;  %v759_v33 = vpop.f32.mrf.mxu1 }
 0x1c8   : > { %v5285_v26 = vsel %vm504_vm1, %v5284_v38, %v5283_v1  ;;  %v5291_v43 = vrot.slane %v10359_v63, 6  ;;  %v5296_v16 = vrot.slane %v10362_v9, 3  ;;  %v10365_v32 = vunpack.i.l.s16 %v5245_v15 }
 0x1c9   : > { %v5287_v51 = vsel %vm507_vm2, %v5286_v37, %v5285_v26  ;;  %v5298_v59 = vrot.slane %v10363_v39, 2  ;;  %v5300_v60 = vrot.slane %v10364_v56, 1  ;;  %v5293_v14 = vrot.slane %v10360_v12, 5  ;;  %v800_v63 = vpop.f32.mrf.mxu3 }
 0x1ca   : > { %v5288_v25 = vsel %vm510_vm3, %v10357_v20, %v5287_v51  ;;  %v5297_v55 = vsel %vm501_vm0, %v5296_v16, %v5295_v52  ;;  %v5303_v17 = vrot.slane %v10366_v48, 7  ;;  %v5305_v21 = vrot.slane %v10367_v45, 6 }
 0x1cb   : > { %v5290_v24 = vsel %vm513_vm4, %v5289_v11, %v5288_v25  ;;  %v5299_v34 = vsel %vm504_vm1, %v5298_v59, %v5297_v55  ;;  %v798_v23 = vadd.f32 %v797_v47, %v756_v46  ;;  %v5307_v39 = vrot.slane %v10368_v22, 5  ;;  %v12352_v47 = vpop.f32.mrf.mxu2  ;;  %v1121_v55 = vld [vmem:[%s12266_s6 + $0x40] sm:$0x1] }
 0x1cc   : > { %v5292_v9 = vsel %vm516_vm5, %v5291_v43, %v5290_v24  ;;  %v5301_v15 = vsel %vm507_vm2, %v5300_v60, %v5299_v34  ;;  %v801_v5 = vadd.f32 %v800_v63, %v759_v33  ;;  %v1127_v63 = vld [vmem:[%s12266_s6 + $0x50] sm:$0x1] }
 0x1cd   : > { %v5302_v56 = vsel %vm510_vm3, %v10365_v32, %v5301_v15  ;;  %v806_v20 = vpack.c.bf16 %v798_v23, %v798_v23  ;;  %v5294_v53 = vsel %vm519_vm6, %v5293_v14, %v5292_v9 }
 0x1ce   : > { %v5304_v44 = vsel %vm513_vm4, %v5303_v17, %v5302_v56  ;;  %v807_v1 = vpack.c.bf16 %v801_v5, %v801_v5  ;;  %v1124_v17 = vld [vmem:[%s12266_s6 + $0x48] sm:$0x1]  ;;  %v1130_v5 = vld [vmem:[%s12266_s6 + $0x58] sm:$0x1] }
 0x1cf   : > { %v5306_v12 = vsel %vm516_vm5, %v5305_v21, %v5304_v44  ;;  %v814_v46 = vrot.slane %v806_v20, 3  ;;  %v761_v9 = vpop.f32.mrf.mxu1 }
 0x1d0   : > { %v5308_v48 = vsel %vm519_vm6, %v5307_v39, %v5306_v12  ;;  %v815_v33 = vrot.slane %v807_v1, 3 }
 0x1d1   : > { %10243 = vmatmul.msk.bf16.gmra.mxu3 %vm537_vm7, %v12094_v2  ;;  %v5309_v38 = vpack.c.b16 %v5308_v48, %v5294_v53  ;;  %v833_v37 = vsel %vm817_vm8, %v806_v20, %v814_v46  ;;  %v835_v45 = vsel %vm501_vm0, %v806_v20, %v814_v46  ;;  %v838_v11 = vsel %vm504_vm1, %v806_v20, %v814_v46  ;;  %v1133_v53 = vld [vmem:[%s12266_s6 + $0x60] sm:$0x1]  ;;  %v802_v44 = vpop.f32.mrf.mxu3 }
 0x1d2   : > { %v837_v2 = vrot.slane %v835_v45, 1  ;;  %v841_v52 = vsel %vm507_vm2, %v806_v20, %v814_v46  ;;  %v879_v22 = vunpack.i.h.s16 %v833_v37  ;;  %v840_v26 = vrot.slane %v838_v11, 2  ;;  %v1139_v45 = vld [vmem:[%s12266_s6 + $0x70] sm:$0x1] }
 0x1d3   : > { %5318 = vmatpush.bf16.msrb.mxu3 %v5309_v38  ;;  %v843_v43 = vrot.slane %v841_v52, 3  ;;  %v10129_v16 = vpack.i.b16 %v833_v37, %v833_v37  ;;  %v1136_v37 = vld [vmem:[%s12266_s6 + $0x68] sm:$0x1] }
 0x1d4   : > { %v881_v32 = vunpack.i.h.s16 %v837_v2  ;;  %v911_v51 = vpack.i.b16 %v879_v22, %v879_v22  ;;  %v10130_v59 = vpack.i.b16 %v837_v2, %v837_v2  ;;  %v883_v60 = vunpack.i.h.s16 %v840_v26 }
 0x1d5   : > { %v885_v25 = vunpack.i.h.s16 %v843_v43  ;;  %v10131_v14 = vpack.i.b16 %v840_v26, %v840_v26  ;;  %v10132_v34 = vpack.i.b16 %v843_v43, %v843_v43  ;;  %v969_v21 = vperm.slane %v10129_v16, %v12259_v7  ;;  %v1142_v16 = vld [vmem:[%s12266_s6 + $0x78] sm:$0x1] }
 0x1d6   : > { %v913_v24 = vpack.i.b16 %v881_v32, %v881_v32  ;;  %v973_v23 = vperm.slane %v911_v51, %v12259_v7  ;;  %v915_v15 = vpack.i.b16 %v883_v60, %v883_v60  ;;  %v977_v56 = vperm.slane %v10130_v59, %v12259_v7  ;;  %v12387_v32 = vpop.f32.mrf.mxu2 }
 0x1d7   : > { %v917_v39 = vpack.i.b16 %v885_v25, %v885_v25  ;;  %v985_v20 = vperm.slane %v10131_v14, %v12259_v7  ;;  %v993_v46 = vperm.slane %v10132_v34, %v12259_v7  ;;  %v1122_v48 = vsel %vm12262_vm11, %v969_v21, %v1121_v55 }
 0x1d8   : > { %v981_v12 = vperm.slane %v913_v24, %v12259_v7  ;;  %v1125_v38 = vsel %vm12262_vm11, %v973_v23, %v1124_v17  ;;  %v989_v2 = vperm.slane %v915_v15, %v12259_v7  ;;  %1123 = vst [vmem:[%s12266_s6 + $0x40] sm:$0x1] %v1122_v48  ;;  %v1128_v52 = vsel %vm12262_vm11, %v977_v56, %v1127_v63  ;;  %v1145_v15 = vld [vmem:[%s12266_s6 + $0x80] sm:$0x1] }
 0x1d9   : > { %v997_v11 = vperm.slane %v917_v39, %v12259_v7  ;;  %v803_v22 = vadd.f32 %v802_v44, %v761_v9  ;;  %1126 = vst [vmem:[%s12266_s6 + $0x48] sm:$0x1] %v1125_v38  ;;  %v1134_v43 = vsel %vm12262_vm11, %v985_v20, %v1133_v53  ;;  %v846_v51 = vsel %vm817_vm8, %v807_v1, %v815_v33 }
 0x1da   : > { %v1131_v26 = vsel %vm12262_vm11, %v981_v12, %v1130_v5  ;;  %v848_v59 = vsel %vm501_vm0, %v807_v1, %v815_v33  ;;  %1129 = vst [vmem:[%s12266_s6 + $0x50] sm:$0x1] %v1128_v52  ;;  %v1137_v60 = vsel %vm12262_vm11, %v989_v2, %v1136_v37  ;;  %v1140_v25 = vsel %vm12262_vm11, %v993_v46, %v1139_v45  ;;  %v1148_v12 = vld [vmem:[%s12266_s6 + $0x88] sm:$0x1]  ;;  %v1151_v46 = vld [vmem:[%s12266_s6 + $0x90] sm:$0x1] }
 0x1db   : > { %v850_v14 = vrot.slane %v848_v59, 1  ;;  %1132 = vst [vmem:[%s12266_s6 + $0x58] sm:$0x1] %v1131_v26  ;;  %v851_v55 = vsel %vm504_vm1, %v807_v1, %v815_v33  ;;  %v854_v17 = vsel %vm507_vm2, %v807_v1, %v815_v33  ;;  %v887_v24 = vunpack.i.h.s16 %v846_v51  ;;  %v1154_v45 = vld [vmem:[%s12266_s6 + $0x98] sm:$0x1] }
 0x1dc   : > { %v10133_v34 = vpack.i.b16 %v846_v51, %v846_v51  ;;  %1135 = vst [vmem:[%s12266_s6 + $0x60] sm:$0x1] %v1134_v43  ;;  %v1143_v21 = vsel %vm12262_vm11, %v997_v11, %v1142_v16  ;;  %v853_v23 = vrot.slane %v851_v55, 2  ;;  %v856_v63 = vrot.slane %v854_v17, 3  ;;  %v1157_v2 = vld [vmem:[%s12266_s6 + $0xa0] sm:$0x1] }
 0x1dd   : > { %v889_v9 = vunpack.i.h.s16 %v850_v14  ;;  %1138 = vst [vmem:[%s12266_s6 + $0x68] sm:$0x1] %v1137_v60  ;;  %v919_v39 = vpack.i.b16 %v887_v24, %v887_v24  ;;  %v10134_v1 = vpack.i.b16 %v850_v14, %v850_v14  ;;  %v808_v56 = vpack.c.bf16 %v803_v22, %v803_v22  ;;  %v1160_v59 = vld [vmem:[%s12266_s6 + $0xa8] sm:$0x1]  ;;  %v1163_v60 = vld [vmem:[%s12266_s6 + $0xb0] sm:$0x1] }
 0x1de   : > { %v1001_v33 = vperm.slane %v10133_v34, %v12259_v7  ;;  %1141 = vst [vmem:[%s12266_s6 + $0x70] sm:$0x1] %v1140_v25  ;;  %v891_v20 = vunpack.i.h.s16 %v853_v23  ;;  %v893_v5 = vunpack.i.h.s16 %v856_v63  ;;  %v10135_v44 = vpack.i.b16 %v853_v23, %v853_v23  ;;  %v1166_v24 = vld [vmem:[%s12266_s6 + $0xb8] sm:$0x1]  ;;  %v12436_v34 = vpop.f32.mrf.mxu2 }
 0x1df   : > { %v921_v53 = vpack.i.b16 %v889_v9, %v889_v9  ;;  %1144 = vst [vmem:[%s12266_s6 + $0x78] sm:$0x1] %v1143_v21  ;;  %v1005_v48 = vperm.slane %v919_v39, %v12259_v7  ;;  %v1009_v38 = vperm.slane %v10134_v1, %v12259_v7  ;;  %v816_v21 = vrot.slane %v808_v56, 3 }
 0x1e0   : > { %v1146_v37 = vsel %vm12262_vm11, %v1001_v33, %v1145_v15  ;;  %v923_v11 = vpack.i.b16 %v891_v20, %v891_v20  ;;  %v925_v52 = vpack.i.b16 %v893_v5, %v893_v5  ;;  %v1017_v26 = vperm.slane %v10135_v44, %v12259_v7 }
 0x1e1   : > { %10244 = vmatmul.msk.bf16.gmra.mxu3 %vm537_vm7, %v12134_v4  ;;  %v10136_v4 = vpack.i.b16 %v856_v63, %v856_v63  ;;  %v1013_v22 = vperm.slane %v921_v53, %v12259_v7  ;;  %1147 = vst [vmem:[%s12266_s6 + $0x80] sm:$0x1] %v1146_v37  ;;  %v1149_v16 = vsel %vm12262_vm11, %v1005_v48, %v1148_v12 }
 0x1e2   : > { %v1152_v51 = vsel %vm12262_vm11, %v1009_v38, %v1151_v46  ;;  %v1021_v25 = vperm.slane %v923_v11, %v12259_v7  ;;  %v1029_v14 = vperm.slane %v925_v52, %v12259_v7  ;;  %1150 = vst [vmem:[%s12266_s6 + $0x88] sm:$0x1] %v1149_v16  ;;  %v1158_v17 = vsel %vm12262_vm11, %v1017_v26, %v1157_v2  ;;  %v1169_v52 = vld [vmem:[%s12266_s6 + $0xc0] sm:$0x1]  ;;  %v1175_v26 = vld [vmem:[%s12266_s6 + $0xd0] sm:$0x1] }
 0x1e3   : > { %v1025_v43 = vperm.slane %v10136_v4, %v12259_v7  ;;  %v1155_v55 = vsel %vm12262_vm11, %v1013_v22, %v1154_v45  ;;  %1153 = vst [vmem:[%s12266_s6 + $0x90] sm:$0x1] %v1152_v51  ;;  %v859_v15 = vsel %vm817_vm8, %v808_v56, %v816_v21  ;;  %v861_v39 = vsel %vm501_vm0, %v808_v56, %v816_v21  ;;  %v1172_v22 = vld [vmem:[%s12266_s6 + $0xc8] sm:$0x1] }
 0x1e4   : > { %1156 = vst [vmem:[%s12266_s6 + $0x98] sm:$0x1] %v1155_v55  ;;  %v1161_v23 = vsel %vm12262_vm11, %v1021_v25, %v1160_v59  ;;  %v1167_v9 = vsel %vm12262_vm11, %v1029_v14, %v1166_v24  ;;  %v864_v1 = vsel %vm504_vm1, %v808_v56, %v816_v21  ;;  %v863_v33 = vrot.slane %v861_v39, 1  ;;  %v8738_v25 = vld [vmem:[%s11506_s16] sm:$0x8] }
 0x1e5   : > { %v1164_v63 = vsel %vm12262_vm11, %v1025_v43, %v1163_v60  ;;  %1159 = vst [vmem:[%s12266_s6 + $0xa0] sm:$0x1] %v1158_v17  ;;  %v866_v20 = vrot.slane %v864_v1, 2  ;;  %v867_v5 = vsel %vm507_vm2, %v808_v56, %v816_v21  ;;  %v895_v53 = vunpack.i.h.s16 %v859_v15  ;;  %v1178_v60 = vld [vmem:[%s12266_s6 + $0xd8] sm:$0x1] }
 0x1e6   : > { %1162 = vst [vmem:[%s12266_s6 + $0xa8] sm:$0x1] %v1161_v23  ;;  %v869_v44 = vrot.slane %v867_v5, 3  ;;  %v10137_v12 = vpack.i.b16 %v859_v15, %v859_v15  ;;  %v897_v46 = vunpack.i.h.s16 %v863_v33  ;;  %v10138_v37 = vpack.i.b16 %v863_v33, %v863_v33  ;;  %v8739_v14 = vld [vmem:[%s11506_s16 + $0x4] sm:$0x8]  ;;  %v12479_v5 = vpop.f32.mrf.mxu2 }
 0x1e7   : > { %1165 = vst [vmem:[%s12266_s6 + $0xb0] sm:$0x1] %v1164_v63  ;;  %v899_v4 = vunpack.i.h.s16 %v866_v20  ;;  %v927_v48 = vpack.i.b16 %v895_v53, %v895_v53  ;;  %v10139_v45 = vpack.i.b16 %v866_v20, %v866_v20  ;;  %v8740_v55 = vld [vmem:[%s11506_s16 + $0x8] sm:$0x8]  ;;  %v1181_v23 = vld [vmem:[%s12266_s6 + $0xe0] sm:$0x1] }
 0x1e8   : > { %1168 = vst [vmem:[%s12266_s6 + $0xb8] sm:$0x1] %v1167_v9  ;;  %v901_v38 = vunpack.i.h.s16 %v869_v44  ;;  %v929_v2 = vpack.i.b16 %v897_v46, %v897_v46  ;;  %v10140_v56 = vpack.i.b16 %v869_v44, %v869_v44  ;;  %v1033_v16 = vperm.slane %v10137_v12, %v12259_v7  ;;  %v8741_v63 = vld [vmem:[%s11506_s16 + $0xc] sm:$0x8]  ;;  %v8742_v9 = vld [vmem:[%s11506_s16 + $0x10] sm:$0x8] }
 0x1e9   : > { %v931_v11 = vpack.i.b16 %v899_v4, %v899_v4  ;;  %v1037_v51 = vperm.slane %v927_v48, %v12259_v7  ;;  %v1041_v59 = vperm.slane %v10138_v37, %v12259_v7  ;;  %v1049_v24 = vperm.slane %v10139_v45, %v12259_v7  ;;  %v1184_v20 = vld [vmem:[%s12266_s6 + $0xe8] sm:$0x1]  ;;  %v8746_v53 = vld [vmem:[%s11506_s16 + $0x20] sm:$0x8]  ;;  %v1187_v46 = vld [vmem:[%s12266_s6 + $0xf0] sm:$0x1] }
 0x1ea   : > { %v933_v43 = vpack.i.b16 %v901_v38, %v901_v38  ;;  %v1045_v17 = vperm.slane %v929_v2, %v12259_v7  ;;  %v1057_v15 = vperm.slane %v10140_v56, %v12259_v7  ;;  %v1170_v39 = vsel %vm12262_vm11, %v1033_v16, %v1169_v52  ;;  %v8744_v4 = vld [vmem:[%s11506_s16 + $0x18] sm:$0x8]  ;;  %v8747_v48 = vld [vmem:[%s11506_s16 + $0x24] sm:$0x8]  ;;  %v1190_v37 = vld [vmem:[%s12266_s6 + $0xf8] sm:$0x1] }
 0x1eb   : > { %v1053_v21 = vperm.slane %v931_v11, %v12259_v7  ;;  %v1173_v1 = vsel %vm12262_vm11, %v1037_v51, %v1172_v22  ;;  %v1176_v33 = vsel %vm12262_vm11, %v1041_v59, %v1175_v26  ;;  %1171 = vst [vmem:[%s12266_s6 + $0xc0] sm:$0x1] %v1170_v39  ;;  %v1182_v38 = vsel %vm12262_vm11, %v1049_v24, %v1181_v23  ;;  %v8748_v45 = vld [vmem:[%s11506_s16 + $0x28] sm:$0x8]  ;;  %v8749_v11 = vld [vmem:[%s11506_s16 + $0x2c] sm:$0x8] }
 0x1ec   : > { %v1061_v44 = vperm.slane %v933_v43, %v12259_v7  ;;  %v1179_v12 = vsel %vm12262_vm11, %v1045_v17, %v1178_v60  ;;  %1174 = vst [vmem:[%s12266_s6 + $0xc8] sm:$0x1] %v1173_v1  ;;  %v8750_v56 = vld [vmem:[%s11506_s16 + $0x30] sm:$0x8]  ;;  %v8770_v52 = vunpack.c.l.b16 %v8738_v25  ;;  %v8771_v22 = vunpack.c.l.b16 %v8739_v14  ;;  %v8751_v16 = vld [vmem:[%s11506_s16 + $0x34] sm:$0x8] }
 0x1ed   : > { %1177 = vst [vmem:[%s12266_s6 + $0xd0] sm:$0x1] %v1176_v33  ;;  %v1185_v2 = vsel %vm12262_vm11, %v1053_v21, %v1184_v20  ;;  %v8772_v26 = vunpack.c.l.b16 %v8740_v55  ;;  %v1188_v43 = vsel %vm12262_vm11, %v1057_v15, %v1187_v46  ;;  %v8773_v51 = vunpack.c.l.b16 %v8741_v63  ;;  %v8752_v24 = vld [vmem:[%s11506_s16 + $0x38] sm:$0x8]  ;;  %v8745_v55 = vld [vmem:[%s11506_s16 + $0x1c] sm:$0x8] }
 0x1ee   : > { %1180 = vst [vmem:[%s12266_s6 + $0xd8] sm:$0x1] %v1179_v12  ;;  %v8774_v59 = vunpack.c.l.b16 %v8742_v9  ;;  %v1191_v17 = vsel %vm12262_vm11, %v1061_v44, %v1190_v37  ;;  %v8778_v25 = vunpack.c.l.b16 %v8746_v53  ;;  %v8779_v21 = vunpack.c.l.b16 %v8747_v48  ;;  %v8753_v1 = vld [vmem:[%s11506_s16 + $0x3c] sm:$0x8]  ;;  %v12513_v30 = vpop.f32.mrf.mxu2 }
 0x1ef   : > { %1183 = vst [vmem:[%s12266_s6 + $0xe0] sm:$0x1] %v1182_v38  ;;  %v8780_v14 = vunpack.c.l.b16 %v8748_v45  ;;  %v8776_v23 = vunpack.c.l.b16 %v8744_v4  ;;  %v8781_v39 = vunpack.c.l.b16 %v8749_v11  ;;  %v8782_v15 = vunpack.c.l.b16 %v8750_v56 }
 0x1f0   : > { %1186 = vst [vmem:[%s12266_s6 + $0xe8] sm:$0x1] %v1185_v2  ;;  %v8783_v33 = vunpack.c.l.b16 %v8751_v16  ;;  %v10545_v63 = vunpack.i.l.s16 %v8770_v52  ;;  %v10546_v9 = vunpack.i.l.s16 %v8771_v22  ;;  %v10547_v20 = vunpack.i.l.s16 %v8772_v26  ;;  %v1253_v2 = vpop.f32.mrf.mxu1 }
 0x1f1   : > { %10245 = vmatmul.msk.bf16.gmra.mxu3 %vm537_vm7, %v12190_v50  ;;  %v8743_v50 = vld [vmem:[%s11506_s16 + $0x14] sm:$0x8]  ;;  %1189 = vst [vmem:[%s12266_s6 + $0xf0] sm:$0x1] %v1188_v43  ;;  %v8784_v12 = vunpack.c.l.b16 %v8752_v24  ;;  %v10548_v44 = vunpack.i.l.s16 %v8773_v51  ;;  %v10549_v46 = vunpack.i.l.s16 %v8774_v59  ;;  %v8777_v53 = vunpack.c.l.b16 %v8745_v55 }
 0x1f2   : > { %v8775_v60 = vunpack.c.l.b16 %v8743_v50  ;;  %v1218_v50 = vpop.f32.mrf.mxu3  ;;  %1192 = vst [vmem:[%s12266_s6 + $0xf8] sm:$0x1] %v1191_v17  ;;  %v10553_v48 = vunpack.i.l.s16 %v8778_v25  ;;  %v10554_v37 = vunpack.i.l.s16 %v8779_v21  ;;  %v10555_v45 = vunpack.i.l.s16 %v8780_v14 }
 0x1f3   : > { %v8785_v4 = vunpack.c.l.b16 %v8753_v1  ;;  %v10551_v11 = vunpack.i.l.s16 %v8776_v23  ;;  %v10556_v56 = vunpack.i.l.s16 %v8781_v39  ;;  %v10557_v43 = vunpack.i.l.s16 %v8782_v15  ;;  %17083 = vst [vmem:[#allocation39_spill] sm:$0xff] %v12513_v30 }
 0x1f4   : > { %v10550_v38 = vunpack.i.l.s16 %v8775_v60  ;;  %v10558_v52 = vunpack.i.l.s16 %v8783_v33  ;;  %v8818_v22 = vrot.slane %v10545_v63, 7  ;;  %v8819_v26 = vrot.slane %v10546_v9, 6 }
 0x1f5   : > { %v8821_v16 = vrot.slane %v10547_v20, 5  ;;  %v10559_v17 = vunpack.i.l.s16 %v8784_v12  ;;  %v8823_v24 = vrot.slane %v10548_v44, 4  ;;  %v8825_v51 = vrot.slane %v10549_v46, 3 }
 0x1f6   : > { %v8827_v59 = vrot.slane %v10550_v38, 2  ;;  %v8820_v60 = vsel %vm501_vm0, %v8819_v26, %v8818_v22  ;;  %v8832_v25 = vrot.slane %v10553_v48, 7  ;;  %v8833_v21 = vrot.slane %v10554_v37, 6 }
 0x1f7   : > { %v8835_v14 = vrot.slane %v10555_v45, 5  ;;  %v8822_v55 = vsel %vm504_vm1, %v8821_v16, %v8820_v60  ;;  %v8829_v23 = vrot.slane %v10551_v11, 1  ;;  %v8837_v39 = vrot.slane %v10556_v56, 4 }
 0x1f8   : > { %v8839_v15 = vrot.slane %v10557_v43, 3  ;;  %v10552_v1 = vunpack.i.l.s16 %v8777_v53  ;;  %v8824_v33 = vsel %vm507_vm2, %v8823_v24, %v8822_v55  ;;  %v8834_v63 = vsel %vm501_vm0, %v8833_v21, %v8832_v25 }
 0x1f9   : > { %v8841_v9 = vrot.slane %v10558_v52, 2  ;;  %v8826_v20 = vsel %vm510_vm3, %v8825_v51, %v8824_v33  ;;  %v8836_v12 = vsel %vm504_vm1, %v8835_v14, %v8834_v63  ;;  %v8843_v44 = vrot.slane %v10559_v17, 1  ;;  %v1255_v52 = vpop.f32.mrf.mxu1 }
 0x1fa   : > { %v1254_v46 = vadd.f32 %v1253_v2, %v1218_v50  ;;  %v10560_v38 = vunpack.i.l.s16 %v8785_v4  ;;  %v8828_v48 = vsel %vm513_vm4, %v8827_v59, %v8826_v20  ;;  %v8838_v37 = vsel %vm507_vm2, %v8837_v39, %v8836_v12  ;;  %v1220_v53 = vpop.f32.mrf.mxu3  ;;  %v12530_v50 = vpop.f32.mrf.mxu2  ;;  %v12546_v12 = vld [vmem:[%s16935_s1] sm:$0xff] }
 0x1fb   : > { %v8830_v45 = vsel %vm516_vm5, %v8829_v23, %v8828_v48  ;;  %v8840_v11 = vsel %vm510_vm3, %v8839_v15, %v8838_v37  ;;  %v1256_v15 = vadd.f32 %v1255_v52, %v1220_v53  ;;  %v17084_v20 = vmov 0 }
 0x1fc   : > { %v1263_v56 = vpack.c.bf16 %v1254_v46, %v1254_v46  ;;  %v8831_v43 = vsel %vm519_vm6, %v10552_v1, %v8830_v45  ;;  %v17085_v20 = vsel %vm12539_vm13, 4294967295, %v17084_v20 }
 0x1fd   : > { %17086 = vst [vmem:[#allocation40_spill] sm:$0xff] %v17085_v20 }
 0x1fe   : > { %v1271_v26 = vrot.slane %v1263_v56, 3 }
 0x200   : > { %v1277_v16 = vsel %vm817_vm8, %v1263_v56, %v1271_v26  ;;  %v1279_v17 = vsel %vm501_vm0, %v1263_v56, %v1271_v26  ;;  %v1282_v51 = vsel %vm504_vm1, %v1263_v56, %v1271_v26  ;;  %v1285_v59 = vsel %vm507_vm2, %v1263_v56, %v1271_v26  ;;  %v1553_v56 = vld [vmem:[%s12266_s6] sm:$0x1] }
 0x201   : > { %10246 = vmatmul.msk.bf16.gmra.mxu3 %vm537_vm7, %v12230_v62  ;;  %v8842_v62 = vsel %vm513_vm4, %v8841_v9, %v8840_v11  ;;  %v1281_v24 = vrot.slane %v1279_v17, 1  ;;  %v1328_v60 = vunpack.i.h.s16 %v1277_v16  ;;  %v1284_v25 = vrot.slane %v1282_v51, 2  ;;  %v1562_v51 = vld [vmem:[%s12266_s6 + $0x18] sm:$0x1] }
 0x202   : > { %v8844_v22 = vsel %vm516_vm5, %v8843_v44, %v8842_v62  ;;  %v1287_v21 = vrot.slane %v1285_v59, 3  ;;  %v10145_v14 = vpack.i.b16 %v1277_v16, %v1277_v16  ;;  %v1223_v37 = vpop.f32.mrf.mxu3  ;;  %v1565_v59 = vld [vmem:[%s12266_s6 + $0x20] sm:$0x1] }
 0x203   : > { %v8845_v2 = vsel %vm519_vm6, %v10560_v38, %v8844_v22  ;;  %v1330_v55 = vunpack.i.h.s16 %v1281_v24  ;;  %v1360_v23 = vpack.i.b16 %v1328_v60, %v1328_v60  ;;  %v10146_v39 = vpack.i.b16 %v1281_v24, %v1281_v24  ;;  %v12570_v60 = vpop.f32.mrf.mxu2 }
 0x204   : > { %v8846_v4 = vpack.c.b16 %v8845_v2, %v8831_v43  ;;  %v1332_v1 = vunpack.i.h.s16 %v1284_v25  ;;  %v1334_v33 = vunpack.i.h.s16 %v1287_v21  ;;  %v10147_v63 = vpack.i.b16 %v1284_v25, %v1284_v25  ;;  %v1556_v43 = vld [vmem:[%s12266_s6 + $0x8] sm:$0x1]  ;;  %v1559_v2 = vld [vmem:[%s12266_s6 + $0x10] sm:$0x1]  ;;  %17087 = vst [vmem:[#allocation41_spill] sm:$0xff] %v12570_v60 }
 0x205   : > { %v10148_v9 = vpack.i.b16 %v1287_v21, %v1287_v21  ;;  %v1362_v44 = vpack.i.b16 %v1330_v55, %v1330_v55  ;;  %v1394_v46 = vperm.slane %v10145_v14, %v12259_v7  ;;  %v1398_v38 = vperm.slane %v1360_v23, %v12259_v7  ;;  %v1568_v14 = vld [vmem:[%s12266_s6 + $0x28] sm:$0x1] }
 0x206   : > { %8855 = vmatpush.bf16.msrb.mxu2 %v8846_v4  ;;  %v1402_v48 = vperm.slane %v10146_v39, %v12259_v7  ;;  %v1364_v53 = vpack.i.b16 %v1332_v1, %v1332_v1  ;;  %v1366_v45 = vpack.i.b16 %v1334_v33, %v1334_v33  ;;  %v1410_v11 = vperm.slane %v10147_v63, %v12259_v7  ;;  %v1258_v4 = vpop.f32.mrf.mxu1  ;;  %v1571_v39 = vld [vmem:[%s12266_s6 + $0x30] sm:$0x1]  ;;  %v1574_v33 = vld [vmem:[%s12266_s6 + $0x38] sm:$0x1] }
 0x207   : > { %v1406_v62 = vperm.slane %v1362_v44, %v12259_v7  ;;  %v1418_v52 = vperm.slane %v10148_v9, %v12259_v7  ;;  %v1554_v22 = vsel %vm12539_vm13, %v1394_v46, %v1553_v56  ;;  %v1557_v26 = vsel %vm12539_vm13, %v1398_v38, %v1556_v43 }
 0x208   : > { %v1414_v16 = vperm.slane %v1364_v53, %v12259_v7  ;;  %v1422_v17 = vperm.slane %v1366_v45, %v12259_v7  ;;  %1555 = vst [vmem:[%s12266_s6] sm:$0x1] %v1554_v22  ;;  %v1560_v24 = vsel %vm12539_vm13, %v1402_v48, %v1559_v2  ;;  %v1566_v21 = vsel %vm12539_vm13, %v1410_v11, %v1565_v59 }
 0x209   : > { %10561 = vmatmul.msk.bf16.vlgmr.msrb.gmra.mxu2 %vm537_vm7, %v12546_v12  ;;  %1558 = vst [vmem:[%s12266_s6 + $0x8] sm:$0x1] %v1557_v26  ;;  %v1563_v25 = vsel %vm12539_vm13, %v1406_v62, %v1562_v51  ;;  %v1264_v55 = vpack.c.bf16 %v1256_v15, %v1256_v15  ;;  %v1572_v1 = vsel %vm12539_vm13, %v1418_v52, %v1571_v39 }
 0x20a   : > { %1561 = vst [vmem:[%s12266_s6 + $0x10] sm:$0x1] %v1560_v24  ;;  %v1569_v23 = vsel %vm12539_vm13, %v1414_v16, %v1568_v14  ;;  %v1575_v15 = vsel %vm12539_vm13, %v1422_v17, %v1574_v33  ;;  %v1259_v56 = vadd.f32 %v1258_v4, %v1223_v37  ;;  %v1225_v43 = vpop.f32.mrf.mxu3  ;;  %v1580_v33 = vld [vmem:[%s12266_s6 + $0x48] sm:$0x1] }
 0x20b   : > { %1564 = vst [vmem:[%s12266_s6 + $0x18] sm:$0x1] %v1563_v25  ;;  %v1272_v63 = vrot.slane %v1264_v55, 3  ;;  %v12599_v14 = vpop.f32.mrf.mxu2 }
 0x20c   : > { %1567 = vst [vmem:[%s12266_s6 + $0x20] sm:$0x1] %v1566_v21 }
 0x20d   : > { %1570 = vst [vmem:[%s12266_s6 + $0x28] sm:$0x1] %v1569_v23  ;;  %v1290_v9 = vsel %vm817_vm8, %v1264_v55, %v1272_v63  ;;  %v1292_v44 = vsel %vm501_vm0, %v1264_v55, %v1272_v63  ;;  %v1295_v46 = vsel %vm504_vm1, %v1264_v55, %v1272_v63 }
 0x20e   : > { %1573 = vst [vmem:[%s12266_s6 + $0x30] sm:$0x1] %v1572_v1  ;;  %v1294_v38 = vrot.slane %v1292_v44, 1  ;;  %v1297_v48 = vrot.slane %v1295_v46, 2  ;;  %v1336_v45 = vunpack.i.h.s16 %v1290_v9  ;;  %v10149_v11 = vpack.i.b16 %v1290_v9, %v1290_v9  ;;  %v1260_v24 = vpop.f32.mrf.mxu1  ;;  %v1577_v1 = vld [vmem:[%s12266_s6 + $0x40] sm:$0x1] }
 0x20f   : > { %1576 = vst [vmem:[%s12266_s6 + $0x38] sm:$0x1] %v1575_v15 }
 0x210   : > { %v1338_v62 = vunpack.i.h.s16 %v1294_v38  ;;  %v1340_v52 = vunpack.i.h.s16 %v1297_v48  ;;  %v1368_v26 = vpack.i.b16 %v1336_v45, %v1336_v45  ;;  %v10150_v2 = vpack.i.b16 %v1294_v38, %v1294_v38  ;;  %17088 = vst [vmem:[#allocation42_spill] sm:$0xff] %v12599_v14  ;;  %v1586_v38 = vld [vmem:[%s12266_s6 + $0x58] sm:$0x1] }
 0x211   : > { %10247 = vmatmul.msk.bf16.gmra.mxu3 %vm537_vm7, %v12249_v35  ;;  %v1298_v35 = vsel %vm507_vm2, %v1264_v55, %v1272_v63  ;;  %v10151_v16 = vpack.i.b16 %v1297_v48, %v1297_v48  ;;  %v1426_v21 = vperm.slane %v10149_v11, %v12259_v7  ;;  %v1265_v63 = vpack.c.bf16 %v1259_v56, %v1259_v56  ;;  %v12619_v48 = vld [vmem:[%s16935_s1 + $0x8] sm:$0xff]  ;;  %v1589_v11 = vld [vmem:[%s12266_s6 + $0x60] sm:$0x1] }
 0x212   : > { %v1300_v53 = vrot.slane %v1298_v35, 3  ;;  %v1370_v51 = vpack.i.b16 %v1338_v62, %v1338_v62  ;;  %v1372_v59 = vpack.i.b16 %v1340_v52, %v1340_v52  ;;  %v1430_v37 = vperm.slane %v1368_v26, %v12259_v7  ;;  %v1583_v35 = vld [vmem:[%s12266_s6 + $0x50] sm:$0x1]  ;;  %v1592_v62 = vld [vmem:[%s12266_s6 + $0x68] sm:$0x1] }
 0x213   : > { %v1434_v4 = vperm.slane %v10150_v2, %v12259_v7  ;;  %v1442_v23 = vperm.slane %v10151_v16, %v12259_v7  ;;  %v1578_v44 = vsel %vm12539_vm13, %v1426_v21, %v1577_v1  ;;  %v1595_v52 = vld [vmem:[%s12266_s6 + $0x70] sm:$0x1]  ;;  %v1598_v26 = vld [vmem:[%s12266_s6 + $0x78] sm:$0x1]  ;;  %v1273_v2 = vrot.slane %v1265_v63, 3 }
 0x214   : > { %v1342_v22 = vunpack.i.h.s16 %v1300_v53  ;;  %v10152_v17 = vpack.i.b16 %v1300_v53, %v1300_v53  ;;  %v1438_v55 = vperm.slane %v1370_v51, %v12259_v7  ;;  %v1446_v39 = vperm.slane %v1372_v59, %v12259_v7  ;;  %1579 = vst [vmem:[%s12266_s6 + $0x40] sm:$0x1] %v1578_v44  ;;  %v1945_v59 = vpop.f32.mrf.mxu3 }
 0x215   : > { %v1581_v46 = vsel %vm12539_vm13, %v1430_v37, %v1580_v33  ;;  %v1584_v53 = vsel %vm12539_vm13, %v1434_v4, %v1583_v35  ;;  %v1590_v56 = vsel %vm12539_vm13, %v1442_v23, %v1589_v11  ;;  %v1261_v16 = vadd.f32 %v1260_v24, %v1225_v43 }
 0x216   : > { %v1374_v25 = vpack.i.b16 %v1342_v22, %v1342_v22  ;;  %v1450_v15 = vperm.slane %v10152_v17, %v12259_v7  ;;  %v1587_v45 = vsel %vm12539_vm13, %v1438_v55, %v1586_v38  ;;  %1582 = vst [vmem:[%s12266_s6 + $0x48] sm:$0x1] %v1581_v46  ;;  %v1593_v22 = vsel %vm12539_vm13, %v1446_v39, %v1592_v62  ;;  %v1980_v39 = vpop.f32.mrf.mxu1 }
 0x217   : > { %1585 = vst [vmem:[%s12266_s6 + $0x50] sm:$0x1] %v1584_v53  ;;  %v1305_v21 = vsel %vm501_vm0, %v1265_v63, %v1273_v2  ;;  %v1308_v37 = vsel %vm504_vm1, %v1265_v63, %v1273_v2  ;;  %v1311_v4 = vsel %vm507_vm2, %v1265_v63, %v1273_v2  ;;  %v1266_v33 = vpack.c.bf16 %v1261_v16, %v1261_v16  ;;  %v1601_v16 = vld [vmem:[%s12266_s6 + $0x80] sm:$0x1] }
 0x218   : > { %v1454_v9 = vperm.slane %v1374_v25, %v12259_v7  ;;  %1588 = vst [vmem:[%s12266_s6 + $0x58] sm:$0x1] %v1587_v45  ;;  %v1596_v17 = vsel %vm12539_vm13, %v1450_v15, %v1595_v52  ;;  %v1303_v25 = vsel %vm817_vm8, %v1265_v63, %v1273_v2  ;;  %v1307_v43 = vrot.slane %v1305_v21, 1  ;;  %v12652_v15 = vpop.f32.mrf.mxu2  ;;  %v1604_v21 = vld [vmem:[%s12266_s6 + $0x88] sm:$0x1] }
 0x219   : > { %10562 = vmatmul.msk.bf16.gmra.mxu2 %vm537_vm7, %v12619_v48  ;;  %1591 = vst [vmem:[%s12266_s6 + $0x60] sm:$0x1] %v1590_v56  ;;  %v1310_v24 = vrot.slane %v1308_v37, 2  ;;  %v1313_v55 = vrot.slane %v1311_v4, 3  ;;  %v1344_v23 = vunpack.i.h.s16 %v1303_v25  ;;  %v10153_v1 = vpack.i.b16 %v1303_v25, %v1303_v25  ;;  %v1607_v37 = vld [vmem:[%s12266_s6 + $0x90] sm:$0x1] }
 0x21a   : > { %v1599_v51 = vsel %vm12539_vm13, %v1454_v9, %v1598_v26  ;;  %1594 = vst [vmem:[%s12266_s6 + $0x68] sm:$0x1] %v1593_v22  ;;  %v1981_v9 = vadd.f32 %v1980_v39, %v1945_v59  ;;  %v1346_v44 = vunpack.i.h.s16 %v1307_v43  ;;  %v10154_v38 = vpack.i.b16 %v1307_v43, %v1307_v43 }
 0x21b   : > { %1597 = vst [vmem:[%s12266_s6 + $0x70] sm:$0x1] %v1596_v17  ;;  %v1348_v46 = vunpack.i.h.s16 %v1310_v24  ;;  %v1350_v63 = vunpack.i.h.s16 %v1313_v55  ;;  %v1376_v35 = vpack.i.b16 %v1344_v23, %v1344_v23  ;;  %v10155_v53 = vpack.i.b16 %v1310_v24, %v1310_v24  ;;  %v1613_v23 = vld [vmem:[%s12266_s6 + $0xa0] sm:$0x1] }
 0x21c   : > { %17089 = vst [vmem:[#allocation43_spill] sm:$0xff] %v12652_v15  ;;  %v10156_v45 = vpack.i.b16 %v1313_v55, %v1313_v55  ;;  %v1458_v11 = vperm.slane %v10153_v1, %v12259_v7  ;;  %v1466_v22 = vperm.slane %v10154_v38, %v12259_v7  ;;  %v1274_v17 = vrot.slane %v1266_v33, 3  ;;  %v1610_v55 = vld [vmem:[%s12266_s6 + $0x98] sm:$0x1] }
 0x21d   : > { %1600 = vst [vmem:[%s12266_s6 + $0x78] sm:$0x1] %v1599_v51  ;;  %v1380_v56 = vpack.i.b16 %v1348_v46, %v1348_v46  ;;  %v1382_v62 = vpack.i.b16 %v1350_v63, %v1350_v63  ;;  %v1462_v52 = vperm.slane %v1376_v35, %v12259_v7  ;;  %v1474_v26 = vperm.slane %v10155_v53, %v12259_v7  ;;  %v1619_v46 = vld [vmem:[%s12266_s6 + $0xb0] sm:$0x1]  ;;  %v12684_v35 = vpop.f32.mrf.mxu3 }
 0x21e   : > { %v1482_v2 = vperm.slane %v10156_v45, %v12259_v7  ;;  %v1602_v25 = vsel %vm12539_vm13, %v1458_v11, %v1601_v16  ;;  %v1608_v24 = vsel %vm12539_vm13, %v1466_v22, %v1607_v37  ;;  %v12682_v63 = vpack.c.bf16 %v1981_v9, %v1981_v9  ;;  %v12700_v22 = vld [vmem:[%s16935_s1 + $0x10] sm:$0xff] }
 0x21f   : > { %v1478_v59 = vperm.slane %v1380_v56, %v12259_v7  ;;  %v1486_v4 = vperm.slane %v1382_v62, %v12259_v7  ;;  %1603 = vst [vmem:[%s12266_s6 + $0x80] sm:$0x1] %v1602_v25  ;;  %v1605_v43 = vsel %vm12539_vm13, %v1462_v52, %v1604_v21  ;;  %v1614_v1 = vsel %vm12539_vm13, %v1474_v26, %v1613_v23 }
 0x220   : > { %1606 = vst [vmem:[%s12266_s6 + $0x88] sm:$0x1] %v1605_v43  ;;  %v1620_v53 = vsel %vm12539_vm13, %v1482_v2, %v1619_v46  ;;  %v1316_v45 = vsel %vm817_vm8, %v1266_v33, %v1274_v17  ;;  %v1318_v11 = vsel %vm501_vm0, %v1266_v33, %v1274_v17  ;;  %v1321_v9 = vsel %vm504_vm1, %v1266_v33, %v1274_v17 }
 0x221   : > { %10248 = vmatmul.msk.bf16.gmra.mxu3 %vm537_vm7, %v12330_v27  ;;  %v1378_v27 = vpack.i.b16 %v1346_v44, %v1346_v44  ;;  %v1616_v44 = vld [vmem:[%s12266_s6 + $0xa8] sm:$0x1]  ;;  %1609 = vst [vmem:[%s12266_s6 + $0x90] sm:$0x1] %v1608_v24  ;;  %v1320_v56 = vrot.slane %v1318_v11, 1  ;;  %v1324_v62 = vsel %vm507_vm2, %v1266_v33, %v1274_v17  ;;  %v1352_v52 = vunpack.i.h.s16 %v1316_v45 }
 0x222   : > { %v1617_v38 = vsel %vm12539_vm13, %v1478_v59, %v1616_v44  ;;  %1615 = vst [vmem:[%s12266_s6 + $0xa0] sm:$0x1] %v1614_v1  ;;  %v1323_v2 = vrot.slane %v1321_v9, 2  ;;  %v1326_v16 = vrot.slane %v1324_v62, 3  ;;  %v12707_v59 = vpop.f32.mrf.mxu2  ;;  %v1998_v21 = vrot.slane %v12682_v63, 3  ;;  %v12716_v44 = vpop.f32.mrf.mxu1 }
 0x223   : > { %v1470_v51 = vperm.slane %v1378_v27, %v12259_v7  ;;  %v1622_v27 = vld [vmem:[%s12266_s6 + $0xb8] sm:$0x1]  ;;  %17090 = vst [vmem:[#allocation44_spill] sm:$0xff] %v12707_v59  ;;  %v1354_v33 = vunpack.i.h.s16 %v1320_v56  ;;  %v1384_v17 = vpack.i.b16 %v1352_v52, %v1352_v52  ;;  %v10158_v25 = vpack.i.b16 %v1320_v56, %v1320_v56  ;;  %v1625_v11 = vld [vmem:[%s12266_s6 + $0xc0] sm:$0x1] }
 0x224   : > { %v1623_v26 = vsel %vm12539_vm13, %v1486_v4, %v1622_v27  ;;  %1618 = vst [vmem:[%s12266_s6 + $0xa8] sm:$0x1] %v1617_v38  ;;  %v1356_v37 = vunpack.i.h.s16 %v1323_v2  ;;  %v1358_v43 = vunpack.i.h.s16 %v1326_v16  ;;  %v10159_v24 = vpack.i.b16 %v1323_v2, %v1323_v2  ;;  %v1628_v27 = vld [vmem:[%s12266_s6 + $0xc8] sm:$0x1]  ;;  %v1631_v52 = vld [vmem:[%s12266_s6 + $0xd0] sm:$0x1] }
 0x225   : > { %v1611_v39 = vsel %vm12539_vm13, %v1470_v51, %v1610_v55  ;;  %v10157_v51 = vpack.i.b16 %v1316_v45, %v1316_v45  ;;  %1621 = vst [vmem:[%s12266_s6 + $0xb0] sm:$0x1] %v1620_v53  ;;  %v10160_v55 = vpack.i.b16 %v1326_v16, %v1326_v16  ;;  %v1386_v4 = vpack.i.b16 %v1354_v33, %v1354_v33  ;;  %v1637_v2 = vld [vmem:[%s12266_s6 + $0xe0] sm:$0x1] }
 0x226   : > { %1612 = vst [vmem:[%s12266_s6 + $0x98] sm:$0x1] %v1611_v39  ;;  %v1494_v39 = vperm.slane %v1384_v17, %v12259_v7  ;;  %v1498_v1 = vperm.slane %v10158_v25, %v12259_v7  ;;  %v1388_v46 = vpack.i.b16 %v1356_v37, %v1356_v37  ;;  %v1390_v38 = vpack.i.b16 %v1358_v43, %v1358_v43  ;;  %v1640_v17 = vld [vmem:[%s12266_s6 + $0xe8] sm:$0x1]  ;;  %v1643_v25 = vld [vmem:[%s12266_s6 + $0xf0] sm:$0x1] }
 0x227   : > { %1624 = vst [vmem:[%s12266_s6 + $0xb8] sm:$0x1] %v1623_v26  ;;  %v1490_v23 = vperm.slane %v10157_v51, %v12259_v7  ;;  %v1506_v53 = vperm.slane %v10159_v24, %v12259_v7  ;;  %v1514_v45 = vperm.slane %v10160_v55, %v12259_v7  ;;  %v1502_v56 = vperm.slane %v1386_v4, %v12259_v7  ;;  %v1634_v26 = vld [vmem:[%s12266_s6 + $0xd8] sm:$0x1]  ;;  %v12747_v55 = vpop.f32.mrf.mxu3 }
 0x228   : > { %v1629_v62 = vsel %vm12539_vm13, %v1494_v39, %v1628_v27  ;;  %v1510_v16 = vperm.slane %v1388_v46, %v12259_v7  ;;  %v1518_v51 = vperm.slane %v1390_v38, %v12259_v7  ;;  %v1632_v33 = vsel %vm12539_vm13, %v1498_v1, %v1631_v52 }
 0x229   : > { %10563 = vmatmul.msk.bf16.gmra.mxu2 %vm537_vm7, %v12700_v22  ;;  %v1626_v9 = vsel %vm12539_vm13, %v1490_v23, %v1625_v11  ;;  %1630 = vst [vmem:[%s12266_s6 + $0xc8] sm:$0x1] %v1629_v62  ;;  %v1635_v37 = vsel %vm12539_vm13, %v1502_v56, %v1634_v26  ;;  %v1638_v43 = vsel %vm12539_vm13, %v1506_v53, %v1637_v2 }
 0x22a   : > { %1627 = vst [vmem:[%s12266_s6 + $0xc0] sm:$0x1] %v1626_v9  ;;  %v2004_v24 = vsel %vm817_vm8, %v12682_v63, %v1998_v21  ;;  %v1641_v4 = vsel %vm12539_vm13, %v1510_v16, %v1640_v17  ;;  %v1644_v23 = vsel %vm12539_vm13, %v1514_v45, %v1643_v25  ;;  %v2006_v1 = vsel %vm501_vm0, %v12682_v63, %v1998_v21  ;;  %v6514_v9 = vpop.f32.mrf.mxu2 }
 0x22b   : > { %1633 = vst [vmem:[%s12266_s6 + $0xd0] sm:$0x1] %v1632_v33  ;;  %v2008_v46 = vrot.slane %v2006_v1, 1  ;;  %v2009_v38 = vsel %vm504_vm1, %v12682_v63, %v1998_v21  ;;  %v2012_v53 = vsel %vm507_vm2, %v12682_v63, %v1998_v21  ;;  %v2055_v11 = vunpack.i.h.s16 %v2004_v24  ;;  %v2281_v33 = vld [vmem:[%s12266_s6] sm:$0x2] }
 0x22c   : > { %1636 = vst [vmem:[%s12266_s6 + $0xd8] sm:$0x1] %v1635_v37  ;;  %v2011_v27 = vrot.slane %v2009_v38, 2  ;;  %v2014_v45 = vrot.slane %v2012_v53, 3  ;;  %v10189_v56 = vpack.i.b16 %v2004_v24, %v2004_v24  ;;  %v1985_v24 = vpop.f32.mrf.mxu1  ;;  %v2290_v38 = vld [vmem:[%s12266_s6 + $0x18] sm:$0x2] }
 0x22d   : > { %1639 = vst [vmem:[%s12266_s6 + $0xe0] sm:$0x1] %v1638_v43  ;;  %v2057_v62 = vunpack.i.h.s16 %v2008_v46  ;;  %v2087_v52 = vpack.i.b16 %v2055_v11, %v2055_v11  ;;  %v10190_v26 = vpack.i.b16 %v2008_v46, %v2008_v46  ;;  %v2287_v46 = vld [vmem:[%s12266_s6 + $0x10] sm:$0x2] }
 0x22e   : > { %1642 = vst [vmem:[%s12266_s6 + $0xe8] sm:$0x1] %v1641_v4  ;;  %v2059_v2 = vunpack.i.h.s16 %v2011_v27  ;;  %v2061_v16 = vunpack.i.h.s16 %v2014_v45  ;;  %v10191_v63 = vpack.i.b16 %v2011_v27, %v2011_v27  ;;  %v10192_v21 = vpack.i.b16 %v2014_v45, %v2014_v45  ;;  %v2296_v45 = vld [vmem:[%s12266_s6 + $0x28] sm:$0x2] }
 0x22f   : > { %1645 = vst [vmem:[%s12266_s6 + $0xf0] sm:$0x1] %v1644_v23  ;;  %v2089_v17 = vpack.i.b16 %v2057_v62, %v2057_v62  ;;  %v2121_v25 = vperm.slane %v10189_v56, %v12259_v7  ;;  %v2125_v37 = vperm.slane %v2087_v52, %v12259_v7  ;;  %v2129_v43 = vperm.slane %v10190_v26, %v12259_v7  ;;  %v12789_v56 = vld [vmem:[%s16935_s1 + $0x18] sm:$0xff] }
 0x230   : > { %v2091_v4 = vpack.i.b16 %v2059_v2, %v2059_v2  ;;  %v2093_v23 = vpack.i.b16 %v2061_v16, %v2061_v16  ;;  %v2137_v1 = vperm.slane %v10191_v63, %v12259_v7  ;;  %v2145_v11 = vperm.slane %v10192_v21, %v12259_v7  ;;  %v2299_v2 = vld [vmem:[%s12266_s6 + $0x30] sm:$0x2] }
 0x231   : > { %10369 = vmatmul.msk.bf16.vlgmr.msrb.gmra.mxu3 %vm537_vm7, %v12546_v12  ;;  %v1646_v12 = vld [vmem:[%s12266_s6 + $0xf8] sm:$0x1]  ;;  %v2133_v53 = vperm.slane %v2089_v17, %v12259_v7  ;;  %v2282_v27 = vsel %vm12767_vm9, %v2121_v25, %v2281_v33  ;;  %v2288_v16 = vsel %vm12767_vm9, %v2129_v43, %v2287_v46  ;;  %v2302_v33 = vld [vmem:[%s12266_s6 + $0x38] sm:$0x2]  ;;  %v1952_v17 = vpop.f32.mrf.mxu3  ;;  %v1983_v43 = vadd.f32 %v12716_v44, %v12684_v35 }
 0x232   : > { %v1647_v39 = vsel %vm12539_vm13, %v1518_v51, %v1646_v12  ;;  %v17091_v51 = vmov 0  ;;  %v2284_v12 = vld [vmem:[%s12266_s6 + $0x8] sm:$0x2]  ;;  %v2141_v62 = vperm.slane %v2091_v4, %v12259_v7  ;;  %v2149_v52 = vperm.slane %v2093_v23, %v12259_v7  ;;  %2283 = vst [vmem:[%s12266_s6] sm:$0x2] %v2282_v27 }
 0x233   : > { %v17092_v51 = vsel %vm12767_vm9, 4294967295, %v17091_v51  ;;  %1648 = vst [vmem:[%s12266_s6 + $0xf8] sm:$0x1] %v1647_v39  ;;  %v2293_v39 = vld [vmem:[%s12266_s6 + $0x20] sm:$0x2]  ;;  %v2285_v26 = vsel %vm12767_vm9, %v2125_v37, %v2284_v12  ;;  %v2291_v63 = vsel %vm12767_vm9, %v2133_v53, %v2290_v38  ;;  %v2300_v37 = vsel %vm12767_vm9, %v2145_v11, %v2299_v2 }
 0x234   : > { %17093 = vst [vmem:[#allocation45_spill] sm:$0xff] %v17092_v51  ;;  %v2294_v21 = vsel %vm12767_vm9, %v2137_v1, %v2293_v39  ;;  %v2297_v25 = vsel %vm12767_vm9, %v2141_v62, %v2296_v45  ;;  %v12816_v12 = vadd.f32 %v6514_v9, %v17065_v18  ;;  %v2303_v4 = vsel %vm12767_vm9, %v2149_v52, %v2302_v33  ;;  %v6516_v1 = vpop.f32.mrf.mxu2  ;;  %v1987_v9 = vpop.f32.mrf.mxu1 }
 0x235   : > { %2286 = vst [vmem:[%s12266_s6 + $0x8] sm:$0x2] %v2285_v26  ;;  %v1986_v23 = vadd.f32 %v1985_v24, %v12747_v55  ;;  %v1991_v46 = vpack.c.bf16 %v1983_v43, %v1983_v43  ;;  %v12829_v39 = vadd.f32 %v6516_v1, %v17067_v36  ;;  %v1988_v52 = vadd.f32 %v1987_v9, %v1952_v17  ;;  %v2311_v9 = vld [vmem:[%s12266_s6 + $0x50] sm:$0x2] }
 0x236   : > { %2289 = vst [vmem:[%s12266_s6 + $0x10] sm:$0x2] %v2288_v16  ;;  %v6545_v38 = vsub.f32 0.0, %v12816_v12 }
 0x237   : > { %2292 = vst [vmem:[%s12266_s6 + $0x18] sm:$0x2] %v2291_v63  ;;  %v1999_v35 = vrot.slane %v1991_v46, 3  ;;  %v12831_v53 = vpack.c.bf16 %v1986_v23, %v1986_v23 }
 0x238   : > { %2295 = vst [vmem:[%s12266_s6 + $0x20] sm:$0x2] %v2294_v21  ;;  %v6567_v44 = vmul.f32 1.442695, %v6545_v38 }
 0x239   : > { %10564 = vmatmul.msk.bf16.gmra.mxu2 %vm537_vm7, %v12789_v56  ;;  %2298 = vst [vmem:[%s12266_s6 + $0x28] sm:$0x2] %v2297_v25  ;;  %v2017_v55 = vsel %vm817_vm8, %v1991_v46, %v1999_v35  ;;  %v2019_v24 = vsel %vm501_vm0, %v1991_v46, %v1999_v35  ;;  %v2022_v11 = vsel %vm504_vm1, %v1991_v46, %v1999_v35  ;;  %v2402_v63 = vpop.f32.mrf.mxu3 }
 0x23a   : > { %2301 = vst [vmem:[%s12266_s6 + $0x30] sm:$0x2] %v2300_v37  ;;  %v2025_v27 = vsel %vm507_vm2, %v1991_v46, %v1999_v35  ;;  %v2021_v45 = vrot.slane %v2019_v24, 1  ;;  %v2063_v26 = vunpack.i.h.s16 %v2017_v55  ;;  %v10193_v2 = vpack.i.b16 %v2017_v55, %v2017_v55  ;;  %v2305_v35 = vld [vmem:[%s12266_s6 + $0x40] sm:$0x2] }
 0x23b   : > { %2304 = vst [vmem:[%s12266_s6 + $0x38] sm:$0x2] %v2303_v4  ;;  %v2027_v62 = vrot.slane %v2025_v27, 3  ;;  %10884 = vpow2.f32 %v6567_v44  ;;  %v2000_v37 = vrot.slane %v12831_v53, 3  ;;  %v2308_v44 = vld [vmem:[%s12266_s6 + $0x48] sm:$0x2]  ;;  %v12842_v55 = vpack.c.bf16 %v1988_v52, %v1988_v52 }
 0x23c   : > { %v2065_v21 = vunpack.i.h.s16 %v2021_v45  ;;  %v2095_v43 = vpack.i.b16 %v2063_v26, %v2063_v26  ;;  %v10194_v4 = vpack.i.b16 %v2021_v45, %v2021_v45  ;;  %v2153_v24 = vperm.slane %v10193_v2, %v12259_v7  ;;  %v12853_v26 = vld [vmem:[%s16935_s1 + $0x20] sm:$0xff] }
 0x23d   : > { %v2069_v25 = vunpack.i.h.s16 %v2027_v62  ;;  %v10196_v17 = vpack.i.b16 %v2027_v62, %v2027_v62  ;;  %v2317_v62 = vld [vmem:[%s12266_s6 + $0x60] sm:$0x2] }
 0x23e   : > { %v2097_v1 = vpack.i.b16 %v2065_v21, %v2065_v21  ;;  %v2161_v27 = vperm.slane %v10194_v4, %v12259_v7 }
 0x23f   : > { %v2101_v38 = vpack.i.b16 %v2069_v25, %v2069_v25  ;;  %v2177_v21 = vperm.slane %v10196_v17, %v12259_v7  ;;  %v2030_v25 = vsel %vm817_vm8, %v12831_v53, %v2000_v37  ;;  %v2437_v17 = vpop.f32.mrf.mxu1 }
 0x240   : > { %v2165_v52 = vperm.slane %v2097_v1, %v12259_v7  ;;  %v2312_v1 = vsel %vm12767_vm9, %v2161_v27, %v2311_v9  ;;  %v2035_v27 = vsel %vm504_vm1, %v12831_v53, %v2000_v37 }
 0x241   : > { %10370 = vmatmul.msk.bf16.gmra.mxu3 %vm537_vm7, %v12619_v48  ;;  %v2024_v48 = vrot.slane %v2022_v11, 2  ;;  %v2157_v11 = vperm.slane %v2095_v43, %v12259_v7  ;;  %v10885_v43 = vpop.eup %10884  ;;  %v2181_v4 = vperm.slane %v2101_v38, %v12259_v7  ;;  %2313 = vst [vmem:[%s12266_s6 + $0x50] sm:$0x2] %v2312_v1  ;;  %v2332_v1 = vld [vmem:[%s12266_s6 + $0x88] sm:$0x2] }
 0x242   : > { %v6593_v9 = vadd.f32 1.0, %v10885_v43  ;;  %v12895_v43 = vpop.f32.mrf.mxu3 }
 0x243   : > { %v2067_v33 = vunpack.i.h.s16 %v2024_v48  ;;  %v10195_v23 = vpack.i.b16 %v2024_v48, %v2024_v48  ;;  %v2314_v48 = vld [vmem:[%s12266_s6 + $0x58] sm:$0x2]  ;;  %v2309_v16 = vsel %vm12767_vm9, %v2157_v11, %v2308_v44  ;;  %v2032_v11 = vsel %vm501_vm0, %v12831_v53, %v2000_v37 }
 0x244   : > { %v2315_v20 = vsel %vm12767_vm9, %v2165_v52, %v2314_v48  ;;  %2310 = vst [vmem:[%s12266_s6 + $0x48] sm:$0x2] %v2309_v16  ;;  %v2034_v48 = vrot.slane %v2032_v11, 1  ;;  %v2327_v52 = vsel %vm12767_vm9, %v2181_v4, %v2326_v29  ;;  %10886 = vrcp.f32 %v6593_v9  ;;  %v2335_v11 = vld [vmem:[%s12266_s6 + $0x90] sm:$0x2] }
 0x245   : > { %v2099_v46 = vpack.i.b16 %v2067_v33, %v2067_v33  ;;  %v2169_v45 = vperm.slane %v10195_v23, %v12259_v7  ;;  %v2320_v33 = vld [vmem:[%s12266_s6 + $0x68] sm:$0x2]  ;;  %v2306_v23 = vsel %vm12767_vm9, %v2153_v24, %v2305_v35  ;;  %v12878_v35 = vrot.slane %v12842_v55, 3  ;;  %2316 = vst [vmem:[%s12266_s6 + $0x58] sm:$0x2] %v2315_v20 }
 0x246   : > { %2307 = vst [vmem:[%s12266_s6 + $0x40] sm:$0x2] %v2306_v23  ;;  %v2438_v24 = vadd.f32 %v2437_v17, %v2402_v63  ;;  %v2071_v63 = vunpack.i.h.s16 %v2030_v25 }
 0x247   : > { %v2173_v2 = vperm.slane %v2099_v46, %v12259_v7  ;;  %v2323_v46 = vld [vmem:[%s12266_s6 + $0x70] sm:$0x2]  ;;  %v2318_v38 = vsel %vm12767_vm9, %v2169_v45, %v2317_v62  ;;  %v2037_v45 = vrot.slane %v2035_v27, 2  ;;  %v2038_v62 = vsel %vm507_vm2, %v12831_v53, %v2000_v37  ;;  %v2341_v27 = vld [vmem:[%s12266_s6 + $0xa0] sm:$0x2] }
 0x248   : > { %v2324_v16 = vsel %vm12767_vm9, %v2177_v21, %v2323_v46  ;;  %2319 = vst [vmem:[%s12266_s6 + $0x60] sm:$0x2] %v2318_v38  ;;  %v2073_v53 = vunpack.i.h.s16 %v2034_v48  ;;  %v2103_v37 = vpack.i.b16 %v2071_v63, %v2071_v63  ;;  %v10198_v21 = vpack.i.b16 %v2034_v48, %v2034_v48 }
 0x249   : > { %10565 = vmatmul.msk.bf16.gmra.mxu2 %vm537_vm7, %v12853_v26  ;;  %v2321_v44 = vsel %vm12767_vm9, %v2173_v2, %v2320_v33  ;;  %v2040_v2 = vrot.slane %v2038_v62, 3  ;;  %v10197_v33 = vpack.i.b16 %v2030_v25, %v2030_v25  ;;  %v2075_v20 = vunpack.i.h.s16 %v2037_v45  ;;  %v2329_v25 = vld [vmem:[%s12266_s6 + $0x80] sm:$0x2]  ;;  %2325 = vst [vmem:[%s12266_s6 + $0x70] sm:$0x2] %v2324_v16 }
 0x24a   : > { %2322 = vst [vmem:[%s12266_s6 + $0x68] sm:$0x2] %v2321_v44  ;;  %v10199_v4 = vpack.i.b16 %v2037_v45, %v2037_v45  ;;  %v2105_v46 = vpack.i.b16 %v2073_v53, %v2073_v53  ;;  %v2189_v38 = vperm.slane %v2103_v37, %v12259_v7  ;;  %v2193_v9 = vperm.slane %v10198_v21, %v12259_v7  ;;  %v2338_v45 = vld [vmem:[%s12266_s6 + $0x98] sm:$0x2]  ;;  %v2344_v53 = vld [vmem:[%s12266_s6 + $0xa8] sm:$0x2] }
 0x24b   : > { %v2077_v29 = vunpack.i.h.s16 %v2040_v2  ;;  %v10200_v23 = vpack.i.b16 %v2040_v2, %v2040_v2  ;;  %v2185_v17 = vperm.slane %v10197_v33, %v12259_v7  ;;  %2328 = vst [vmem:[%s12266_s6 + $0x78] sm:$0x2] %v2327_v52  ;;  %v17094_v62 = vsub.f32 0.0, %v12829_v39 }
 0x24c   : > { %v2201_v48 = vperm.slane %v10199_v4, %v12259_v7  ;;  %v2197_v16 = vperm.slane %v2105_v46, %v12259_v7  ;;  %v2333_v21 = vsel %vm12767_vm9, %v2189_v38, %v2332_v1  ;;  %v2350_v4 = vld [vmem:[%s12266_s6 + $0xb8] sm:$0x2]  ;;  %v2043_v46 = vsel %vm817_vm8, %v12842_v55, %v12878_v35 }
 0x24d   : > { %v2109_v44 = vpack.i.b16 %v2077_v29, %v2077_v29  ;;  %v6569_v63 = vmul.f32 1.442695, %v17094_v62  ;;  %v2209_v33 = vperm.slane %v10200_v23, %v12259_v7  ;;  %v2330_v52 = vsel %vm12767_vm9, %v2185_v17, %v2329_v25  ;;  %2334 = vst [vmem:[%s12266_s6 + $0x88] sm:$0x2] %v2333_v21  ;;  %v10887_v17 = vpop.eup %10886 }
 0x24e   : > { %2331 = vst [vmem:[%s12266_s6 + $0x80] sm:$0x2] %v2330_v52  ;;  %v2336_v29 = vsel %vm12767_vm9, %v2193_v9, %v2335_v11  ;;  %v2339_v23 = vsel %vm12767_vm9, %v2197_v16, %v2338_v45  ;;  %v2342_v25 = vsel %vm12767_vm9, %v2201_v48, %v2341_v27  ;;  %v2048_v27 = vsel %vm504_vm1, %v12842_v55, %v12878_v35 }
 0x24f   : > { %v2213_v37 = vperm.slane %v2109_v44, %v12259_v7  ;;  %2337 = vst [vmem:[%s12266_s6 + $0x90] sm:$0x2] %v2336_v29  ;;  %10888 = vpow2.f32 %v6569_v63  ;;  %v2051_v44 = vsel %vm507_vm2, %v12842_v55, %v12878_v35  ;;  %v2050_v48 = vrot.slane %v2048_v27, 2  ;;  %v12959_v63 = vld [vmem:[%s16935_s1 + $0x28] sm:$0xff]  ;;  %v2362_v27 = vld [vmem:[%s12266_s6 + $0xd8] sm:$0x2] }
 0x250   : > { %2340 = vst [vmem:[%s12266_s6 + $0x98] sm:$0x2] %v2339_v23  ;;  %v2053_v45 = vrot.slane %v2051_v44, 3  ;;  %v2079_v62 = vunpack.i.h.s16 %v2043_v46  ;;  %v12964_v16 = vmul.f32 %v10887_v17, %v12816_v12 }
 0x251   : > { %10371 = vmatmul.msk.bf16.gmra.mxu3 %vm537_vm7, %v12700_v22  ;;  %v2107_v22 = vpack.i.b16 %v2075_v20, %v2075_v20  ;;  %v2347_v20 = vld [vmem:[%s12266_s6 + $0xb0] sm:$0x2]  ;;  %v2351_v11 = vsel %vm12767_vm9, %v2213_v37, %v2350_v4  ;;  %2343 = vst [vmem:[%s12266_s6 + $0xa0] sm:$0x2] %v2342_v25  ;;  %v10203_v21 = vpack.i.b16 %v2050_v48, %v2050_v48  ;;  %v2353_v4 = vld [vmem:[%s12266_s6 + $0xc0] sm:$0x2] }
 0x252   : > { %v2348_v38 = vsel %vm12767_vm9, %v2209_v33, %v2347_v20  ;;  %v2083_v33 = vunpack.i.h.s16 %v2050_v48  ;;  %v2085_v52 = vunpack.i.h.s16 %v2053_v45  ;;  %v12969_v20 = vpop.f32.mrf.mxu3  ;;  %2352 = vst [vmem:[%s12266_s6 + $0xb8] sm:$0x2] %v2351_v11  ;;  %v10204_v12 = vpack.i.b16 %v2053_v45, %v2053_v45  ;;  %v2365_v45 = vld [vmem:[%s12266_s6 + $0xe0] sm:$0x2] }
 0x253   : > { %v2205_v2 = vperm.slane %v2107_v22, %v12259_v7  ;;  %v12936_v22 = vpack.c.bf16 %v2438_v24, %v2438_v24  ;;  %v2045_v24 = vsel %vm501_vm0, %v12842_v55, %v12878_v35  ;;  %v10201_v55 = vpack.i.b16 %v2043_v46, %v2043_v46  ;;  %2349 = vst [vmem:[%s12266_s6 + $0xb0] sm:$0x2] %v2348_v38  ;;  %v2356_v38 = vld [vmem:[%s12266_s6 + $0xc8] sm:$0x2] }
 0x254   : > { %v2047_v9 = vrot.slane %v2045_v24, 1  ;;  %v2115_v46 = vpack.i.b16 %v2083_v33, %v2083_v33  ;;  %v2117_v17 = vpack.i.b16 %v2085_v52, %v2085_v52  ;;  %v2359_v24 = vld [vmem:[%s12266_s6 + $0xd0] sm:$0x2]  ;;  %v2241_v48 = vperm.slane %v10204_v12, %v12259_v7 }
 0x255   : > { %v2345_v1 = vsel %vm12767_vm9, %v2205_v2, %v2344_v53  ;;  %v2455_v35 = vrot.slane %v12936_v22, 3  ;;  %v2111_v53 = vpack.i.b16 %v2079_v62, %v2079_v62  ;;  %v2217_v29 = vperm.slane %v10201_v55, %v12259_v7  ;;  %v10889_v23 = vpop.eup %10888  ;;  %v2368_v62 = vld [vmem:[%s12266_s6 + $0xe8] sm:$0x2]  ;;  %v2371_v52 = vld [vmem:[%s12266_s6 + $0xf0] sm:$0x2] }
 0x256   : > { %2346 = vst [vmem:[%s12266_s6 + $0xa8] sm:$0x2] %v2345_v1  ;;  %v2081_v2 = vunpack.i.h.s16 %v2047_v9  ;;  %v10202_v37 = vpack.i.b16 %v2047_v9, %v2047_v9  ;;  %v6594_v11 = vadd.f32 1.0, %v10889_v23  ;;  %v2233_v9 = vperm.slane %v10203_v21, %v12259_v7 }
 0x257   : > { %v2221_v1 = vperm.slane %v2111_v53, %v12259_v7  ;;  %v2354_v33 = vsel %vm12767_vm9, %v2217_v29, %v2353_v4  ;;  %v2245_v53 = vperm.slane %v2117_v17, %v12259_v7  ;;  %v6641_v12 = vpack.c.bf16 %v12964_v16, %v12964_v16 }
 0x258   : > { %v2113_v25 = vpack.i.b16 %v2081_v2, %v2081_v2  ;;  %v2225_v44 = vperm.slane %v10202_v37, %v12259_v7  ;;  %v2237_v2 = vperm.slane %v2115_v46, %v12259_v7  ;;  %10890 = vrcp.f32 %v6594_v11  ;;  %2355 = vst [vmem:[%s12266_s6 + $0xc0] sm:$0x2] %v2354_v33 }
 0x259   : > { %10566 = vmatmul.msk.bf16.gmra.mxu2 %vm537_vm7, %v12959_v63  ;;  %v2357_v37 = vsel %vm12767_vm9, %v2221_v1, %v2356_v38  ;;  %v2366_v4 = vsel %vm12767_vm9, %v2233_v9, %v2365_v45  ;;  %v2372_v46 = vsel %vm12767_vm9, %v2241_v48, %v2371_v52  ;;  %v2461_v16 = vsel %vm817_vm8, %v12936_v22, %v2455_v35  ;;  %v2439_v38 = vpop.f32.mrf.mxu1 }
 0x25a   : > { %v2229_v55 = vperm.slane %v2113_v25, %v12259_v7  ;;  %v2360_v21 = vsel %vm12767_vm9, %v2225_v44, %v2359_v24  ;;  %2358 = vst [vmem:[%s12266_s6 + $0xc8] sm:$0x2] %v2357_v37  ;;  %v2369_v23 = vsel %vm12767_vm9, %v2237_v2, %v2368_v62  ;;  %v2374_v25 = vld [vmem:[%s12266_s6 + $0xf8] sm:$0x2]  ;;  %v2463_v17 = vsel %vm501_vm0, %v12936_v22, %v2455_v35  ;;  %v13020_v52 = vpop.f32.mrf.mxu3 }
 0x25b   : > { %2361 = vst [vmem:[%s12266_s6 + $0xd0] sm:$0x2] %v2360_v21  ;;  %v2466_v1 = vsel %vm504_vm1, %v12936_v22, %v2455_v35  ;;  %v2465_v24 = vrot.slane %v2463_v17, 1  ;;  %v2469_v11 = vsel %vm507_vm2, %v12936_v22, %v2455_v35  ;;  %v2512_v44 = vunpack.i.h.s16 %v2461_v16 }
 0x25c   : > { %v2363_v29 = vsel %vm12767_vm9, %v2229_v55, %v2362_v27  ;;  %v2468_v27 = vrot.slane %v2466_v1, 2  ;;  %2367 = vst [vmem:[%s12266_s6 + $0xe0] sm:$0x2] %v2366_v4  ;;  %v2375_v9 = vsel %vm12767_vm9, %v2245_v53, %v2374_v25  ;;  %v2471_v48 = vrot.slane %v2469_v11, 3  ;;  %v2740_v11 = vld [vmem:[%s12266_s6 + $0x8] sm:$0x2] }
 0x25d   : > { %2364 = vst [vmem:[%s12266_s6 + $0xd8] sm:$0x2] %v2363_v29  ;;  %v10209_v45 = vpack.i.b16 %v2461_v16, %v2461_v16  ;;  %v2514_v62 = vunpack.i.h.s16 %v2465_v24  ;;  %v2544_v2 = vpack.i.b16 %v2512_v44, %v2512_v44  ;;  %v10210_v33 = vpack.i.b16 %v2465_v24, %v2465_v24  ;;  %v2743_v44 = vld [vmem:[%s12266_s6 + $0x10] sm:$0x2] }
 0x25e   : > { %2370 = vst [vmem:[%s12266_s6 + $0xe8] sm:$0x2] %v2369_v23  ;;  %v2516_v55 = vunpack.i.h.s16 %v2468_v27  ;;  %v10891_v22 = vpop.eup %10890  ;;  %v2518_v35 = vunpack.i.h.s16 %v2471_v48  ;;  %v10211_v37 = vpack.i.b16 %v2468_v27, %v2468_v27  ;;  %v10212_v53 = vpack.i.b16 %v2471_v48, %v2471_v48  ;;  %v2737_v27 = vld [vmem:[%s12266_s6] sm:$0x2] }
 0x25f   : > { %2373 = vst [vmem:[%s12266_s6 + $0xf0] sm:$0x2] %v2372_v46  ;;  %v2578_v21 = vperm.slane %v10209_v45, %v12259_v7  ;;  %v6626_v29 = vmul.f32 %v10891_v22, %v12829_v39  ;;  %v2546_v4 = vpack.i.b16 %v2514_v62, %v2514_v62  ;;  %v2582_v25 = vperm.slane %v2544_v2, %v12259_v7  ;;  %v2746_v2 = vld [vmem:[%s12266_s6 + $0x18] sm:$0x2] }
 0x260   : > { %2376 = vst [vmem:[%s12266_s6 + $0xf8] sm:$0x2] %v2375_v9  ;;  %v2548_v23 = vpack.i.b16 %v2516_v55, %v2516_v55  ;;  %v2550_v46 = vpack.i.b16 %v2518_v35, %v2518_v35  ;;  %v2586_v16 = vperm.slane %v10210_v33, %v12259_v7  ;;  %v2594_v17 = vperm.slane %v10211_v37, %v12259_v7  ;;  %v13045_v9 = vld [vmem:[%s16935_s1 + $0x30] sm:$0xff] }
 0x261   : > { %10372 = vmatmul.msk.bf16.gmra.mxu3 %vm537_vm7, %v12789_v56  ;;  %v17095_v56 = vmov 0  ;;  %v6642_v1 = vpack.c.bf16 %v6626_v29, %v6626_v29  ;;  %v2590_v39 = vperm.slane %v2546_v4, %v12259_v7  ;;  %v2602_v48 = vperm.slane %v10212_v53, %v12259_v7  ;;  %v2749_v53 = vld [vmem:[%s12266_s6 + $0x20] sm:$0x2]  ;;  %v2752_v29 = vld [vmem:[%s12266_s6 + $0x28] sm:$0x2] }
 0x262   : > { %v17096_v56 = vsel %vm13031_vm12, 4294967295, %v17095_v56  ;;  %v2598_v24 = vperm.slane %v2548_v23, %v12259_v7  ;;  %v2738_v45 = vsel %vm13031_vm12, %v2578_v21, %v2737_v27  ;;  %v2741_v62 = vsel %vm13031_vm12, %v2582_v25, %v2740_v11  ;;  %v2755_v25 = vld [vmem:[%s12266_s6 + $0x30] sm:$0x2]  ;;  %v7561_v4 = vld [vmem:[%s11506_s16 + $0x8] sm:$0x8] }
 0x263   : > { %17097 = vst [vmem:[#allocation46_spill] sm:$0xff] %v17096_v56  ;;  %v2744_v55 = vsel %vm13031_vm12, %v2586_v16, %v2743_v44  ;;  %v13057_v33 = vunpack.c.l.b16 %v6641_v12  ;;  %v13059_v22 = vunpack.c.l.b16 %v6642_v1  ;;  %v2606_v35 = vperm.slane %v2550_v46, %v12259_v7  ;;  %v2442_v12 = vpop.f32.mrf.mxu1  ;;  %v2758_v1 = vld [vmem:[%s12266_s6 + $0x38] sm:$0x2] }
 0x264   : > { %2739 = vst [vmem:[%s12266_s6] sm:$0x2] %v2738_v45  ;;  %v2747_v37 = vsel %vm13031_vm12, %v2590_v39, %v2746_v2  ;;  %v2750_v21 = vsel %vm13031_vm12, %v2594_v17, %v2749_v53  ;;  %v2753_v23 = vsel %vm13031_vm12, %v2598_v24, %v2752_v29  ;;  %v2440_v46 = vadd.f32 %v2439_v38, %v12895_v43 }
 0x265   : > { %17098 = vst [vmem:[#allocation47_spill] sm:$0xff] %v13057_v33  ;;  %v2756_v16 = vsel %vm13031_vm12, %v2602_v48, %v2755_v25  ;;  %v2443_v17 = vadd.f32 %v2442_v12, %v12969_v20  ;;  %v2759_v39 = vsel %vm13031_vm12, %v2606_v35, %v2758_v1  ;;  %v13092_v35 = vpop.f32.mrf.mxu2 }
 0x266   : > { %17099 = vst [vmem:[#allocation48_spill] sm:$0xff] %v13059_v22  ;;  %v2448_v27 = vpack.c.bf16 %v2440_v46, %v2440_v46  ;;  %v7564_v22 = vld [vmem:[%s11506_s16 + $0x14] sm:$0x8] }
 0x267   : > { %2742 = vst [vmem:[%s12266_s6 + $0x8] sm:$0x2] %v2741_v62  ;;  %v2449_v24 = vpack.c.bf16 %v2443_v17, %v2443_v17 }
 0x268   : > { %2745 = vst [vmem:[%s12266_s6 + $0x10] sm:$0x2] %v2744_v55  ;;  %v2456_v11 = vrot.slane %v2448_v27, 3 }
 0x269   : > { %10567 = vmatmul.msk.bf16.gmra.mxu2 %vm537_vm7, %v13045_v9  ;;  %2748 = vst [vmem:[%s12266_s6 + $0x18] sm:$0x2] %v2747_v37  ;;  %v2457_v29 = vrot.slane %v2449_v24, 3 }
 0x26a   : > { %2751 = vst [vmem:[%s12266_s6 + $0x20] sm:$0x2] %v2750_v21  ;;  %v2474_v44 = vsel %vm817_vm8, %v2448_v27, %v2456_v11  ;;  %v2476_v43 = vsel %vm501_vm0, %v2448_v27, %v2456_v11  ;;  %v2479_v38 = vsel %vm504_vm1, %v2448_v27, %v2456_v11  ;;  %v2482_v48 = vsel %vm507_vm2, %v2448_v27, %v2456_v11 }
 0x26b   : > { %2754 = vst [vmem:[%s12266_s6 + $0x28] sm:$0x2] %v2753_v23  ;;  %v2478_v45 = vrot.slane %v2476_v43, 1  ;;  %v2481_v20 = vrot.slane %v2479_v38, 2  ;;  %v2484_v62 = vrot.slane %v2482_v48, 3  ;;  %v2520_v55 = vunpack.i.h.s16 %v2474_v44  ;;  %v2444_v12 = vpop.f32.mrf.mxu1  ;;  %v13101_v38 = vld [vmem:[%s16935_s1 + $0x38] sm:$0xff] }
 0x26c   : > { %2757 = vst [vmem:[%s12266_s6 + $0x30] sm:$0x2] %v2756_v16  ;;  %v10213_v2 = vpack.i.b16 %v2474_v44, %v2474_v44  ;;  %v2445_v16 = vadd.f32 %v2444_v12, %v13020_v52 }
 0x26d   : > { %2760 = vst [vmem:[%s12266_s6 + $0x38] sm:$0x2] %v2759_v39  ;;  %v2522_v37 = vunpack.i.h.s16 %v2478_v45  ;;  %v2524_v53 = vunpack.i.h.s16 %v2481_v20  ;;  %v2526_v21 = vunpack.i.h.s16 %v2484_v62  ;;  %v2552_v23 = vpack.i.b16 %v2520_v55, %v2520_v55  ;;  %v2767_v55 = vld [vmem:[%s12266_s6 + $0x50] sm:$0x2] }
 0x26e   : > { %17100 = vst [vmem:[#allocation49_spill] sm:$0xff] %v13092_v35  ;;  %v10214_v25 = vpack.i.b16 %v2478_v45, %v2478_v45  ;;  %v10215_v46 = vpack.i.b16 %v2481_v20, %v2481_v20  ;;  %v10216_v39 = vpack.i.b16 %v2484_v62, %v2484_v62  ;;  %v2610_v11 = vperm.slane %v10213_v2, %v12259_v7  ;;  %v2761_v20 = vld [vmem:[%s12266_s6 + $0x40] sm:$0x2]  ;;  %v2764_v62 = vld [vmem:[%s12266_s6 + $0x48] sm:$0x2] }
 0x26f   : > { %v2554_v1 = vpack.i.b16 %v2522_v37, %v2522_v37  ;;  %v2556_v17 = vpack.i.b16 %v2524_v53, %v2524_v53  ;;  %v2558_v27 = vpack.i.b16 %v2526_v21, %v2526_v21  ;;  %v2614_v44 = vperm.slane %v2552_v23, %v12259_v7  ;;  %v2770_v23 = vld [vmem:[%s12266_s6 + $0x58] sm:$0x2] }
 0x270   : > { %v2618_v43 = vperm.slane %v10214_v25, %v12259_v7  ;;  %v2626_v48 = vperm.slane %v10215_v46, %v12259_v7  ;;  %v2487_v2 = vsel %vm817_vm8, %v2449_v24, %v2457_v29  ;;  %v2634_v37 = vperm.slane %v10216_v39, %v12259_v7  ;;  %v13120_v25 = vpop.f32.mrf.mxu3  ;;  %v2776_v39 = vld [vmem:[%s12266_s6 + $0x68] sm:$0x2] }
 0x271   : > { %v2622_v52 = vperm.slane %v2554_v1, %v12259_v7  ;;  %v2630_v45 = vperm.slane %v2556_v17, %v12259_v7  ;;  %v2762_v53 = vsel %vm13031_vm12, %v2610_v11, %v2761_v20  ;;  %v2765_v21 = vsel %vm13031_vm12, %v2614_v44, %v2764_v62  ;;  %v2773_v17 = vld [vmem:[%s12266_s6 + $0x60] sm:$0x2]  ;;  %v2779_v62 = vld [vmem:[%s12266_s6 + $0x70] sm:$0x2] }
 0x272   : > { %v2768_v12 = vsel %vm13031_vm12, %v2618_v43, %v2767_v55  ;;  %v2638_v46 = vperm.slane %v2558_v27, %v12259_v7  ;;  %2763 = vst [vmem:[%s12266_s6 + $0x40] sm:$0x2] %v2762_v53  ;;  %v13128_v11 = vpack.c.bf16 %v2445_v16, %v2445_v16  ;;  %v2774_v44 = vsel %vm13031_vm12, %v2626_v48, %v2773_v17  ;;  %v13144_v17 = vpop.f32.mrf.mxu2 }
 0x273   : > { %v2771_v1 = vsel %vm13031_vm12, %v2622_v52, %v2770_v23  ;;  %2766 = vst [vmem:[%s12266_s6 + $0x48] sm:$0x2] %v2765_v21  ;;  %v2777_v43 = vsel %vm13031_vm12, %v2630_v45, %v2776_v39  ;;  %v2489_v27 = vsel %vm501_vm0, %v2449_v24, %v2457_v29  ;;  %v2492_v20 = vsel %vm504_vm1, %v2449_v24, %v2457_v29  ;;  %v2782_v21 = vld [vmem:[%s12266_s6 + $0x78] sm:$0x2] }
 0x274   : > { %2769 = vst [vmem:[%s12266_s6 + $0x50] sm:$0x2] %v2768_v12  ;;  %v2491_v52 = vrot.slane %v2489_v27, 1  ;;  %v2494_v55 = vrot.slane %v2492_v20, 2  ;;  %v2495_v16 = vsel %vm507_vm2, %v2449_v24, %v2457_v29  ;;  %v2528_v53 = vunpack.i.h.s16 %v2487_v2 }
 0x275   : > { %2772 = vst [vmem:[%s12266_s6 + $0x58] sm:$0x2] %v2771_v1  ;;  %v2780_v48 = vsel %vm13031_vm12, %v2634_v37, %v2779_v62  ;;  %v2497_v23 = vrot.slane %v2495_v16, 3  ;;  %v10217_v45 = vpack.i.b16 %v2487_v2, %v2487_v2  ;;  %v2783_v12 = vsel %vm13031_vm12, %v2638_v46, %v2782_v21 }
 0x276   : > { %17101 = vst [vmem:[#allocation50_spill] sm:$0xff] %v13144_v17  ;;  %v2530_v39 = vunpack.i.h.s16 %v2491_v52  ;;  %v2532_v27 = vunpack.i.h.s16 %v2494_v55  ;;  %v2560_v20 = vpack.i.b16 %v2528_v53, %v2528_v53  ;;  %v10218_v29 = vpack.i.b16 %v2491_v52, %v2491_v52 }
 0x277   : > { %2775 = vst [vmem:[%s12266_s6 + $0x60] sm:$0x2] %v2774_v44  ;;  %v2534_v24 = vunpack.i.h.s16 %v2497_v23  ;;  %v10219_v1 = vpack.i.b16 %v2494_v55, %v2494_v55  ;;  %v10220_v37 = vpack.i.b16 %v2497_v23, %v2497_v23  ;;  %v2642_v16 = vperm.slane %v10217_v45, %v12259_v7  ;;  %v2785_v23 = vld [vmem:[%s12266_s6 + $0x80] sm:$0x2]  ;;  %v2788_v45 = vld [vmem:[%s12266_s6 + $0x88] sm:$0x2] }
 0x278   : > { %2778 = vst [vmem:[%s12266_s6 + $0x68] sm:$0x2] %v2777_v43  ;;  %v2562_v2 = vpack.i.b16 %v2530_v39, %v2530_v39  ;;  %v2564_v62 = vpack.i.b16 %v2532_v27, %v2532_v27  ;;  %v2458_v44 = vrot.slane %v13128_v11, 3  ;;  %v2646_v53 = vperm.slane %v2560_v20, %v12259_v7 }
 0x279   : > { %10568 = vmatmul.msk.bf16.gmra.mxu2 %vm537_vm7, %v13101_v38  ;;  %2781 = vst [vmem:[%s12266_s6 + $0x70] sm:$0x2] %v2780_v48  ;;  %v2566_v46 = vpack.i.b16 %v2534_v24, %v2534_v24  ;;  %v2650_v43 = vperm.slane %v10218_v29, %v12259_v7  ;;  %v2658_v52 = vperm.slane %v10219_v1, %v12259_v7  ;;  %v2794_v24 = vld [vmem:[%s12266_s6 + $0x98] sm:$0x2]  ;;  %v13170_v29 = vpop.f32.mrf.mxu3 }
 0x27a   : > { %2784 = vst [vmem:[%s12266_s6 + $0x78] sm:$0x2] %v2783_v12  ;;  %v2654_v55 = vperm.slane %v2562_v2, %v12259_v7  ;;  %v2662_v48 = vperm.slane %v2564_v62, %v12259_v7  ;;  %v2666_v21 = vperm.slane %v10220_v37, %v12259_v7  ;;  %v2791_v12 = vld [vmem:[%s12266_s6 + $0x90] sm:$0x2]  ;;  %v2786_v39 = vsel %vm13031_vm12, %v2642_v16, %v2785_v23  ;;  %v2797_v2 = vld [vmem:[%s12266_s6 + $0xa0] sm:$0x2] }
 0x27b   : > { %v2789_v27 = vsel %vm13031_vm12, %v2646_v53, %v2788_v45  ;;  %v2792_v20 = vsel %vm13031_vm12, %v2650_v43, %v2791_v12  ;;  %10373 = vmatmul.msk.bf16.gmra.mxu3 %vm537_vm7, %v12853_v26  ;;  %v2670_v1 = vperm.slane %v2566_v46, %v12259_v7  ;;  %2787 = vst [vmem:[%s12266_s6 + $0x80] sm:$0x2] %v2786_v39  ;;  %v2800_v62 = vld [vmem:[%s12266_s6 + $0xa8] sm:$0x2]  ;;  %v2803_v43 = vld [vmem:[%s12266_s6 + $0xb0] sm:$0x2] }
 0x27c   : > { %v2795_v37 = vsel %vm13031_vm12, %v2654_v55, %v2794_v24  ;;  %v2500_v16 = vsel %vm817_vm8, %v13128_v11, %v2458_v44  ;;  %2790 = vst [vmem:[%s12266_s6 + $0x88] sm:$0x2] %v2789_v27  ;;  %v2798_v53 = vsel %vm13031_vm12, %v2658_v52, %v2797_v2  ;;  %v2801_v26 = vsel %vm13031_vm12, %v2662_v48, %v2800_v62  ;;  %v2806_v55 = vld [vmem:[%s12266_s6 + $0xb8] sm:$0x2] }
 0x27d   : > { %2793 = vst [vmem:[%s12266_s6 + $0x90] sm:$0x2] %v2792_v20  ;;  %v2804_v46 = vsel %vm13031_vm12, %v2666_v21, %v2803_v43  ;;  %v2502_v23 = vsel %vm501_vm0, %v13128_v11, %v2458_v44  ;;  %v2505_v45 = vsel %vm504_vm1, %v13128_v11, %v2458_v44  ;;  %v2508_v52 = vsel %vm507_vm2, %v13128_v11, %v2458_v44  ;;  %v13199_v20 = vpop.f32.mrf.mxu2 }
 0x27e   : > { %2796 = vst [vmem:[%s12266_s6 + $0x98] sm:$0x2] %v2795_v37  ;;  %v2504_v12 = vrot.slane %v2502_v23, 1  ;;  %v2507_v48 = vrot.slane %v2505_v45, 2  ;;  %v2510_v39 = vrot.slane %v2508_v52, 3  ;;  %v2536_v27 = vunpack.i.h.s16 %v2500_v16 }
 0x27f   : > { %17102 = vst [vmem:[#allocation51_spill] sm:$0xff] %v13199_v20  ;;  %v2807_v21 = vsel %vm13031_vm12, %v2670_v1, %v2806_v55  ;;  %v10221_v24 = vpack.i.b16 %v2500_v16, %v2500_v16  ;;  %v2809_v55 = vld [vmem:[%s12266_s6 + $0xc0] sm:$0x2]  ;;  %v2812_v52 = vld [vmem:[%s12266_s6 + $0xc8] sm:$0x2] }
 0x280   : > { %2799 = vst [vmem:[%s12266_s6 + $0xa0] sm:$0x2] %v2798_v53  ;;  %v2538_v2 = vunpack.i.h.s16 %v2504_v12  ;;  %v2540_v62 = vunpack.i.h.s16 %v2507_v48  ;;  %v2542_v43 = vunpack.i.h.s16 %v2510_v39  ;;  %v2568_v11 = vpack.i.b16 %v2536_v27, %v2536_v27  ;;  %v2818_v27 = vld [vmem:[%s12266_s6 + $0xd8] sm:$0x2] }
 0x281   : > { %2802 = vst [vmem:[%s12266_s6 + $0xa8] sm:$0x2] %v2801_v26  ;;  %v10222_v44 = vpack.i.b16 %v2504_v12, %v2504_v12  ;;  %v10223_v37 = vpack.i.b16 %v2507_v48, %v2507_v48  ;;  %v10224_v23 = vpack.i.b16 %v2510_v39, %v2510_v39  ;;  %v2674_v53 = vperm.slane %v10221_v24, %v12259_v7  ;;  %v2815_v39 = vld [vmem:[%s12266_s6 + $0xd0] sm:$0x2] }
 0x282   : > { %2805 = vst [vmem:[%s12266_s6 + $0xb0] sm:$0x2] %v2804_v46  ;;  %v2570_v45 = vpack.i.b16 %v2538_v2, %v2538_v2  ;;  %v2572_v1 = vpack.i.b16 %v2540_v62, %v2540_v62  ;;  %v2574_v16 = vpack.i.b16 %v2542_v43, %v2542_v43  ;;  %v2678_v26 = vperm.slane %v2568_v11, %v12259_v7  ;;  %v13211_v46 = vpop.f32.mrf.mxu3  ;;  %v2824_v11 = vld [vmem:[%s12266_s6 + $0xe8] sm:$0x2] }
 0x283   : > { %2808 = vst [vmem:[%s12266_s6 + $0xb8] sm:$0x2] %v2807_v21  ;;  %v2682_v12 = vperm.slane %v10222_v44, %v12259_v7  ;;  %v2690_v48 = vperm.slane %v10223_v37, %v12259_v7  ;;  %v2821_v21 = vld [vmem:[%s12266_s6 + $0xe0] sm:$0x2]  ;;  %v2698_v62 = vperm.slane %v10224_v23, %v12259_v7  ;;  %v2810_v43 = vsel %vm13031_vm12, %v2674_v53, %v2809_v55  ;;  %v7559_v44 = vld [vmem:[%s11506_s16] sm:$0x8] }
 0x284   : > { %v2686_v24 = vperm.slane %v2570_v45, %v12259_v7  ;;  %v2694_v2 = vperm.slane %v2572_v1, %v12259_v7  ;;  %v7560_v37 = vld [vmem:[%s11506_s16 + $0x4] sm:$0x8]  ;;  %v2702_v51 = vperm.slane %v2574_v16, %v12259_v7  ;;  %2811 = vst [vmem:[%s12266_s6 + $0xc0] sm:$0x2] %v2810_v43  ;;  %v2813_v45 = vsel %vm13031_vm12, %v2678_v26, %v2812_v52  ;;  %v2827_v53 = vld [vmem:[%s12266_s6 + $0xf0] sm:$0x2] }
 0x285   : > { %v2816_v23 = vsel %vm13031_vm12, %v2682_v12, %v2815_v39  ;;  %v7562_v1 = vld [vmem:[%s11506_s16 + $0xc] sm:$0x8]  ;;  %v7563_v55 = vld [vmem:[%s11506_s16 + $0x10] sm:$0x8]  ;;  %2814 = vst [vmem:[%s12266_s6 + $0xc8] sm:$0x2] %v2813_v45  ;;  %v2822_v16 = vsel %vm13031_vm12, %v2690_v48, %v2821_v21  ;;  %v7591_v45 = vunpack.c.l.b16 %v7559_v44  ;;  %v2828_v48 = vsel %vm13031_vm12, %v2698_v62, %v2827_v53  ;;  %v13254_v20 = vpop.f32.mrf.mxu2 }
 0x286   : > { %v2819_v33 = vsel %vm13031_vm12, %v2686_v24, %v2818_v27  ;;  %v2830_v43 = vld [vmem:[%s12266_s6 + $0xf8] sm:$0x2]  ;;  %v7567_v26 = vld [vmem:[%s11506_s16 + $0x20] sm:$0x8]  ;;  %2817 = vst [vmem:[%s12266_s6 + $0xd0] sm:$0x2] %v2816_v23  ;;  %v2825_v52 = vsel %vm13031_vm12, %v2694_v2, %v2824_v11  ;;  %v7592_v24 = vunpack.c.l.b16 %v7560_v37  ;;  %v7593_v7 = vunpack.c.l.b16 %v7561_v4 }
 0x287   : > { %v7568_v12 = vld [vmem:[%s11506_s16 + $0x24] sm:$0x8]  ;;  %v7569_v39 = vld [vmem:[%s11506_s16 + $0x28] sm:$0x8]  ;;  %2820 = vst [vmem:[%s12266_s6 + $0xd8] sm:$0x2] %v2819_v33  ;;  %v2831_v2 = vsel %vm13031_vm12, %v2702_v51, %v2830_v43  ;;  %v7594_v44 = vunpack.c.l.b16 %v7562_v1  ;;  %v7595_v17 = vunpack.c.l.b16 %v7563_v55  ;;  %v7596_v53 = vunpack.c.l.b16 %v7564_v22 }
 0x288   : > { %v7570_v27 = vld [vmem:[%s11506_s16 + $0x2c] sm:$0x8]  ;;  %v7571_v21 = vld [vmem:[%s11506_s16 + $0x30] sm:$0x8]  ;;  %17103 = vst [vmem:[#allocation52_spill] sm:$0xff] %v13254_v20  ;;  %v7599_v35 = vunpack.c.l.b16 %v7567_v26  ;;  %v7600_v37 = vunpack.c.l.b16 %v7568_v12  ;;  %v13266_v4 = vadd.f32 %v13120_v25, %v11720_v8  ;;  %v7601_v1 = vunpack.c.l.b16 %v7569_v39 }
 0x289   : > { %2823 = vst [vmem:[%s12266_s6 + $0xe0] sm:$0x2] %v2822_v16  ;;  %v7566_v11 = vld [vmem:[%s11506_s16 + $0x1c] sm:$0x8]  ;;  %v7572_v23 = vld [vmem:[%s11506_s16 + $0x34] sm:$0x8]  ;;  %v7602_v55 = vunpack.c.l.b16 %v7570_v27  ;;  %v7603_v43 = vunpack.c.l.b16 %v7571_v21  ;;  %v10482_v26 = vunpack.i.l.s16 %v7592_v24  ;;  %v10483_v12 = vunpack.i.l.s16 %v7593_v7 }
 0x28a   : > { %2826 = vst [vmem:[%s12266_s6 + $0xe8] sm:$0x2] %v2825_v52  ;;  %v7565_v33 = vld [vmem:[%s11506_s16 + $0x18] sm:$0x8]  ;;  %v7574_v62 = vld [vmem:[%s11506_s16 + $0x3c] sm:$0x8]  ;;  %v13268_v16 = vpop.f32.mrf.mxu3  ;;  %v10481_v52 = vunpack.i.l.s16 %v7591_v45  ;;  %v7598_v56 = vunpack.c.l.b16 %v7566_v11  ;;  %v7604_v22 = vunpack.c.l.b16 %v7572_v23  ;;  %v10484_v25 = vunpack.i.l.s16 %v7594_v44 }
 0x28b   : > { %10374 = vmatmul.msk.bf16.gmra.mxu3 %vm537_vm7, %v12959_v63  ;;  %2829 = vst [vmem:[%s12266_s6 + $0xf0] sm:$0x2] %v2828_v48  ;;  %v7573_v51 = vld [vmem:[%s11506_s16 + $0x38] sm:$0x8]  ;;  %v7597_v20 = vunpack.c.l.b16 %v7565_v33  ;;  %v7606_v49 = vunpack.c.l.b16 %v7574_v62  ;;  %v10485_v59 = vunpack.i.l.s16 %v7595_v17  ;;  %v10486_v60 = vunpack.i.l.s16 %v7596_v53  ;;  %s9918_s16 = scalar_lea.sflag [#allocation4], %s11502_s15 }
 0x28c   : > { %2832 = vst [vmem:[%s12266_s6 + $0xf8] sm:$0x2] %v2831_v2  ;;  %v7605_v15 = vunpack.c.l.b16 %v7573_v51  ;;  %v10489_v14 = vunpack.i.l.s16 %v7599_v35  ;;  %v10490_v30 = vunpack.i.l.s16 %v7600_v37  ;;  %v10491_v63 = vunpack.i.l.s16 %v7601_v1 }
 0x28d   : > { %v10492_v48 = vunpack.i.l.s16 %v7602_v55  ;;  %v10493_v8 = vunpack.i.l.s16 %v7603_v43  ;;  %v7639_v39 = vrot.slane %v10481_v52, 6  ;;  %v10488_v27 = vunpack.i.l.s16 %v7598_v56  ;;  %v13276_v35 = vpop.f32.mrf.mxu2 }
 0x28e   : > { %v10494_v21 = vunpack.i.l.s16 %v7604_v22  ;;  %v7640_v45 = vrot.slane %v10482_v26, 5  ;;  %v7642_v2 = vrot.slane %v10483_v12, 4  ;;  %v10487_v11 = vunpack.i.l.s16 %v7597_v20 }
 0x28f   : > { %v10496_v23 = vunpack.i.l.s16 %v7606_v49  ;;  %v7644_v24 = vrot.slane %v10484_v25, 3  ;;  %v7646_v7 = vrot.slane %v10485_v59, 2  ;;  %v7648_v44 = vrot.slane %v10486_v60, 1 }
 0x290   : > { %v7641_v33 = vsel %vm501_vm0, %v7640_v45, %v7639_v39  ;;  %v7653_v17 = vrot.slane %v10489_v14, 6  ;;  %v7654_v62 = vrot.slane %v10490_v30, 5  ;;  %v7656_v51 = vrot.slane %v10491_v63, 4 }
 0x291   : > { %v7643_v37 = vsel %vm504_vm1, %v7642_v2, %v7641_v33  ;;  %v7658_v1 = vrot.slane %v10492_v48, 3  ;;  %v7660_v56 = vrot.slane %v10493_v8, 2  ;;  %v7651_v43 = vrot.slane %v10488_v27, 7 }
 0x292   : > { %v2962_v53 = vpop.f32.mrf.mxu3  ;;  %v7645_v55 = vsel %vm507_vm2, %v7644_v24, %v7643_v37  ;;  %v7655_v49 = vsel %vm501_vm0, %v7654_v62, %v7653_v17  ;;  %v7662_v20 = vrot.slane %v10494_v21, 1  ;;  %v10495_v59 = vunpack.i.l.s16 %v7605_v15 }
 0x293   : > { %v7647_v52 = vsel %vm510_vm3, %v7646_v7, %v7645_v55  ;;  %v7657_v60 = vsel %vm504_vm1, %v7656_v51, %v7655_v49  ;;  %v2992_v30 = vsub.f32 0.0, %v13266_v4  ;;  %v7665_v26 = vrot.slane %v10496_v23, 7 }
 0x294   : > { %v7649_v14 = vsel %vm513_vm4, %v7648_v44, %v7647_v52  ;;  %v7659_v22 = vsel %vm507_vm2, %v7658_v1, %v7657_v60  ;;  %v2955_v8 = vadd.f32 %v13170_v29, %v11725_v13  ;;  %v2958_v2 = vadd.f32 %v13211_v46, %v11735_v19 }
 0x295   : > { %v7650_v12 = vsel %vm516_vm5, %v10487_v11, %v7649_v14  ;;  %v7661_v25 = vsel %vm510_vm3, %v7660_v56, %v7659_v22  ;;  %v3008_v63 = vmul.f32 1.442695, %v2992_v30  ;;  %v2960_v24 = vadd.f32 %v13268_v16, %v17053_v58  ;;  %v13300_v7 = vpop.f32.mrf.mxu2 }
 0x296   : > { %v7652_v15 = vsel %vm519_vm6, %v7651_v43, %v7650_v12  ;;  %v7663_v48 = vsel %vm513_vm4, %v7662_v20, %v7661_v25  ;;  %v2993_v39 = vsub.f32 0.0, %v2955_v8  ;;  %v2994_v23 = vsub.f32 0.0, %v2958_v2 }
 0x297   : > { %v7664_v27 = vsel %vm516_vm5, %v10495_v59, %v7663_v48  ;;  %10892 = vpow2.f32 %v3008_v63  ;;  %v2995_v44 = vsub.f32 0.0, %v2960_v24  ;;  %v13306_v16 = vadd.f32 %v2962_v53, %v17057_v57 }
 0x298   : > { %v7666_v21 = vsel %vm519_vm6, %v7665_v26, %v7664_v27  ;;  %v3010_v45 = vmul.f32 1.442695, %v2993_v39  ;;  %v3012_v33 = vmul.f32 1.442695, %v2994_v23  ;;  %v17104_v23 = vld [vmem:[#allocation22_spill] sm:$0xff]  ;;  %vm3462_vm3 = vcmask 256002  }
 0x299   : > { %v7667_v11 = vpack.c.b16 %v7666_v21, %v7652_v15  ;;  %v3014_v37 = vmul.f32 1.442695, %v2995_v44  ;;  %v2996_v52 = vsub.f32 0.0, %v13306_v16  ;;  %v13330_v44 = vld [vmem:[%s16937_s3] sm:$0xff]  ;;  %vm3463_vm4 = vsmask.f32 2304 }
 0x29a   : > { %v2964_v29 = vpop.f32.mrf.mxu3  ;;  %10894 = vpow2.f32 %v3010_v45  ;;  %vm13932_vm5 = vmand %vm3462_vm3, %vm3463_vm4  ;;  %vm3919_vm6 = vsmask.f32 7946  ;;  %vm5103_vm4 = vsmask.f32 7950 }
 0x29b   : > { %10375 = vmatmul.msk.bf16.gmra.mxu3 %vm537_vm7, %v13045_v9  ;;  %10896 = vpow2.f32 %v3012_v33  ;;  %v13303_v9 = vadd.f32 %v2964_v29, %v17060_v40  ;;  %v3016_v25 = vmul.f32 1.442695, %v2996_v52  ;;  %vm14222_vm14 = vmand %vm3462_vm3, %vm3919_vm6 }
 0x29c   : > { %7676 = vmatpush.bf16.msra.mxu3 %v7667_v11  ;;  %vm14511_vm3 = vmand %vm4646_vm15, %vm4647_vm10 }
 0x29d   : > { %v10893_v17 = vpop.eup %10892  ;;  %v13308_v55 = vpop.f32.mrf.mxu2  ;;  %v2997_v43 = vsub.f32 0.0, %v13303_v9  ;;  %vm14805_vm6 = vmand %vm4646_vm15, %vm5103_vm4 }
 0x29e   : > { %v3040_v62 = vadd.f32 1.0, %v10893_v17 }
 0x29f   : > { %v3018_v53 = vmul.f32 1.442695, %v2997_v43 }
 0x2a0   : > { %10898 = vrcp.f32 %v3040_v62  ;;  %v10895_v51 = vpop.eup %10894 }
 0x2a1   : > { %10900 = vpow2.f32 %v3014_v37  ;;  %v3041_v1 = vadd.f32 1.0, %v10895_v51  ;;  %v10897_v56 = vpop.eup %10896 }
 0x2a2   : > { %v2967_v46 = vpop.f32.mrf.mxu3  ;;  %v3042_v60 = vadd.f32 1.0, %v10897_v56 }
 0x2a3   : > { %10902 = vrcp.f32 %v3041_v1  ;;  %v13321_v29 = vadd.f32 %v2967_v46, %v17065_v18 }
 0x2a5   : > { %v2998_v51 = vsub.f32 0.0, %v13321_v29 }
 0x2a6   : > { %v10899_v49 = vpop.eup %10898 }
 0x2a7   : > { %v10901_v20 = vpop.eup %10900  ;;  %v3072_v59 = vmul.f32 %v10899_v49, %v13266_v4  ;;  %v13315_v4 = vpop.f32.mrf.mxu2 }
 0x2a8   : > { %v3043_v30 = vadd.f32 1.0, %v10901_v20  ;;  %v11254_v20 = vld [vmem:[%s16935_s1] sm:$0xff] }
 0x2a9   : > { %v10903_v22 = vpop.eup %10902  ;;  %v3088_v26 = vpack.c.bf16 %v3072_v59, %v3072_v59 }
 0x2aa   : > { %v2969_v14 = vpop.f32.mrf.mxu3  ;;  %10904 = vrcp.f32 %v3043_v30  ;;  %v3073_v12 = vmul.f32 %v10903_v22, %v2955_v8 }
 0x2ab   : > { %10376 = vmatmul.msk.bf16.gmra.mxu3 %vm537_vm7, %v13101_v38  ;;  %10906 = vrcp.f32 %v3042_v60  ;;  %v3143_v15 = vunpack.c.l.b16 %v3088_v26  ;;  %v13318_v45 = vadd.f32 %v2969_v14, %v17067_v36  ;;  %v17105_v60 = vld [vmem:[#allocation21_spill] sm:$0xff]  ;;  %v3020_v14 = vmul.f32 1.442695, %v2998_v51  ;;  %v17114_v36 = vld [vmem:[#allocation26_spill] sm:$0xff] }
 0x2ac   : > { %v3089_v63 = vpack.c.bf16 %v3073_v12, %v3073_v12  ;;  %10908 = vpow2.f32 %v3018_v53 }
 0x2ad   : > { %10910 = vpow2.f32 %v3016_v25  ;;  %v2999_v37 = vsub.f32 0.0, %v13318_v45 }
 0x2ae   : > { %v3144_v48 = vunpack.c.l.b16 %v3089_v63 }
 0x2af   : > { %v13340_v52 = vpop.f32.mrf.mxu2 }
 0x2b0   : > { %v10905_v39 = vpop.eup %10904  ;;  %v3147_v21 = vpack.c.b16 %v3144_v48, %v3143_v15 }
 0x2b1   : > { %v10907_v38 = vpop.eup %10906  ;;  %v3075_v11 = vmul.f32 %v10905_v39, %v2960_v24 }
 0x2b2   : > { %v2972_v27 = vpop.f32.mrf.mxu3  ;;  %v10909_v8 = vpop.eup %10908  ;;  %10251 = vmatmul.msk.bf16.vlgmr.msra.gmra.mxu1 %vm537_vm7, %v3147_v21  ;;  %v3074_v62 = vmul.f32 %v10907_v38, %v2958_v2  ;;  %v3022_v2 = vmul.f32 1.442695, %v2999_v37  ;;  %v13348_v21 = vadd.f32 %v12241_v6, %v17104_v23 }
 0x2b3   : > { %v13325_v33 = vadd.f32 %v2972_v27, %v17104_v23  ;;  %4346 = vmatpush.bf16.msra.mxu1 %v13330_v44  ;;  %v10911_v17 = vpop.eup %10910  ;;  %v3045_v46 = vadd.f32 1.0, %v10909_v8  ;;  %v3091_v1 = vpack.c.bf16 %v3075_v11, %v3075_v11 }
 0x2b4   : > { %v3044_v56 = vadd.f32 1.0, %v10911_v17  ;;  %v3090_v59 = vpack.c.bf16 %v3074_v62, %v3074_v62 }
 0x2b5   : > { %v3000_v24 = vsub.f32 0.0, %v13325_v33  ;;  %10912 = vrcp.f32 %v3045_v46  ;;  %v3146_v53 = vunpack.c.l.b16 %v3091_v1  ;;  %v4184_v1 = vsub.f32 0.0, %v13348_v21 }
 0x2b6   : > { %v3145_v26 = vunpack.c.l.b16 %v3090_v59  ;;  %v11255_v59 = vld [vmem:[%s16935_s1 + $0x8] sm:$0xff] }
 0x2b7   : > { %v3024_v43 = vmul.f32 1.442695, %v3000_v24  ;;  %v13350_v11 = vpop.f32.mrf.mxu2 }
 0x2b8   : > { %v3148_v25 = vpack.c.b16 %v3146_v53, %v3145_v26  ;;  %v4208_v53 = vmul.f32 1.442695, %v4184_v1 }
 0x2b9   : > { %10914 = vpow2.f32 %v3024_v43 }
 0x2ba   : > { %v2974_v49 = vpop.f32.mrf.mxu3  ;;  %10916 = vrcp.f32 %v3044_v56 }
 0x2bb   : > { %10497 = vmatmul.msk.bf16.vlgmr.msra.gmra.mxu3 %vm537_vm7, %v11254_v20  ;;  %v2975_v30 = vadd.f32 %v2974_v49, %v17105_v60  ;;  %10918 = vpow2.f32 %v3022_v2  ;;  %v10913_v63 = vpop.eup %10912  ;;  %v13359_v49 = vadd.f32 %v12257_v3, %v17105_v60 }
 0x2bc   : > { %10920 = vpow2.f32 %v3020_v14  ;;  %v3077_v17 = vmul.f32 %v10913_v63, %v13303_v9 }
 0x2bd   : > { %v3001_v22 = vsub.f32 0.0, %v2975_v30 }
 0x2be   : > { %v3093_v43 = vpack.c.bf16 %v3077_v17, %v3077_v17 }
 0x2bf   : > { %v3026_v12 = vmul.f32 1.442695, %v3001_v22  ;;  %v10915_v48 = vpop.eup %10914 }
 0x2c0   : > { %v10917_v27 = vpop.eup %10916  ;;  %v3048_v38 = vadd.f32 1.0, %v10915_v48  ;;  %v3601_v22 = vunpack.c.l.b16 %v3093_v43 }
 0x2c1   : > { %10922 = vpow2.f32 %v3026_v12  ;;  %v10919_v8 = vpop.eup %10918  ;;  %v3076_v51 = vmul.f32 %v10917_v27, %v13306_v16  ;;  %v4185_v12 = vsub.f32 0.0, %v13359_v49 }
 0x2c2   : > { %v2977_v15 = vpop.f32.mrf.mxu3  ;;  %10252 = vmatmul.msk.bf16.gmra.mxu1 %vm537_vm7, %v3148_v25  ;;  %v10921_v37 = vpop.eup %10920  ;;  %10924 = vrcp.f32 %v3048_v38  ;;  %v3047_v6 = vadd.f32 1.0, %v10919_v8 }
 0x2c3   : > { %v13344_v39 = vadd.f32 %v2977_v15, %v11775_v28  ;;  %v3046_v9 = vadd.f32 1.0, %v10921_v37  ;;  %v3092_v16 = vpack.c.bf16 %v3076_v51, %v3076_v51  ;;  %v13371_v15 = vpop.f32.mrf.mxu2 }
 0x2c5   : > { %v3002_v62 = vsub.f32 0.0, %v13344_v39  ;;  %v3600_v63 = vunpack.c.l.b16 %v3092_v16 }
 0x2c7   : > { %v10923_v46 = vpop.eup %10922  ;;  %v3028_v24 = vmul.f32 1.442695, %v3002_v62  ;;  %v3604_v8 = vpack.c.b16 %v3601_v22, %v3600_v63  ;;  %v13392_v22 = vadd.f32 %v12352_v47, %v11743_v31  ;;  %v13405_v47 = vld [vmem:[%s16938_s4] sm:$0xff] }
 0x2c8   : > { %v3049_v56 = vadd.f32 1.0, %v10923_v46  ;;  %v10925_v14 = vpop.eup %10924  ;;  %v4210_v46 = vmul.f32 1.442695, %v4185_v12 }
 0x2c9   : > { %10926 = vpow2.f32 %v3028_v24  ;;  %v3080_v3 = vmul.f32 %v10925_v14, %v13325_v33 }
 0x2ca   : > { %10928 = vrcp.f32 %v3049_v56  ;;  %v2979_v20 = vpop.f32.mrf.mxu3 }
 0x2cb   : > { %10498 = vmatmul.msk.bf16.gmra.mxu3 %vm537_vm7, %v11255_v59  ;;  %v13366_v2 = vadd.f32 %v2979_v20, %v11791_v54  ;;  %10930 = vrcp.f32 %v3047_v6  ;;  %v3096_v17 = vpack.c.bf16 %v3080_v3, %v3080_v3  ;;  %v13378_v6 = vadd.f32 %v12335_v10, %v11791_v54 }
 0x2cc   : > { %10932 = vrcp.f32 %v3046_v9  ;;  %v13385_v59 = vadd.f32 %v12304_v41, %v11775_v28 }
 0x2cd   : > { %v3003_v26 = vsub.f32 0.0, %v13366_v2  ;;  %10934 = vpow2.f32 %v4208_v53  ;;  %v3108_v43 = vunpack.c.l.b16 %v3096_v17 }
 0x2ce   : > { %v4186_v63 = vsub.f32 0.0, %v13385_v59 }
 0x2cf   : > { %v10927_v25 = vpop.eup %10926  ;;  %v3030_v48 = vmul.f32 1.442695, %v3003_v26  ;;  %v13394_v26 = vpop.f32.mrf.mxu2 }
 0x2d0   : > { %v10929_v27 = vpop.eup %10928  ;;  %v3050_v38 = vadd.f32 1.0, %v10927_v25 }
 0x2d1   : > { %v3081_v62 = vmul.f32 %v10929_v27, %v2975_v30  ;;  %10936 = vpow2.f32 %v3030_v48  ;;  %v10931_v37 = vpop.eup %10930  ;;  %v11257_v27 = vld [vmem:[%s16935_s1 + $0x10] sm:$0xff] }
 0x2d2   : > { %v2982_v33 = vpop.f32.mrf.mxu3  ;;  %v10933_v1 = vpop.eup %10932  ;;  %10938 = vrcp.f32 %v3050_v38  ;;  %v3079_v56 = vmul.f32 %v10931_v37, %v13318_v45  ;;  %10271 = vmatmul.msk.bf16.vlgmr.msrb.gmra.mxu1 %vm537_vm7, %v3604_v8  ;;  %v4187_v45 = vsub.f32 0.0, %v13378_v6  ;;  %v13418_v37 = vadd.f32 %v12436_v34, %v11751_v42 }
 0x2d3   : > { %v3097_v51 = vpack.c.bf16 %v3081_v62, %v3081_v62  ;;  %v13374_v24 = vadd.f32 %v2982_v33, %v11743_v31  ;;  %v10935_v20 = vpop.eup %10934  ;;  %10940 = vpow2.f32 %v4210_v46  ;;  %4803 = vmatpush.bf16.msrb.mxu1 %v13330_v44  ;;  %v3078_v10 = vmul.f32 %v10933_v1, %v13321_v29 }
 0x2d4   : > { %v3095_v12 = vpack.c.bf16 %v3079_v56, %v3079_v56  ;;  %v4232_v25 = vadd.f32 1.0, %v10935_v20  ;;  %v13400_v29 = vadd.f32 %v12387_v32, %v11761_v61  ;;  %v4214_v17 = vmul.f32 1.442695, %v4187_v45 }
 0x2d5   : > { %v3109_v30 = vunpack.c.l.b16 %v3097_v51  ;;  %v3004_v9 = vsub.f32 0.0, %v13374_v24  ;;  %v3094_v38 = vpack.c.bf16 %v3078_v10, %v3078_v10  ;;  %v4188_v62 = vsub.f32 0.0, %v13392_v22 }
 0x2d6   : > { %v3603_v46 = vunpack.c.l.b16 %v3095_v12  ;;  %v4212_v1 = vmul.f32 1.442695, %v4186_v63  ;;  %v4189_v56 = vsub.f32 0.0, %v13400_v29 }
 0x2d7   : > { %v10937_v16 = vpop.eup %10936  ;;  %v3112_v14 = vpack.c.b16 %v3109_v30, %v3108_v43  ;;  %v3032_v53 = vmul.f32 1.442695, %v3004_v9  ;;  %v13425_v9 = vadd.f32 %v12479_v5, %v11764_v0  ;;  %v3602_v20 = vunpack.c.l.b16 %v3094_v38 }
 0x2d8   : > { %v3051_v3 = vadd.f32 1.0, %v10937_v16  ;;  %v10939_v41 = vpop.eup %10938  ;;  %v4216_v34 = vmul.f32 1.442695, %v4188_v62  ;;  %v4218_v12 = vmul.f32 1.442695, %v4189_v56  ;;  %v17107_v56 = vld [vmem:[#allocation39_spill] sm:$0xff] }
 0x2d9   : > { %10942 = vpow2.f32 %v3032_v53  ;;  %10249 = vmatmul.msk.bf16.vlgmr.msrb.gmra.mxu0 %vm537_vm7, %v3112_v14  ;;  %v10941_v32 = vpop.eup %10940  ;;  %v3082_v33 = vmul.f32 %v10939_v41, %v13344_v39  ;;  %v4190_v14 = vsub.f32 0.0, %v13418_v37  ;;  %v3605_v45 = vpack.c.b16 %v3603_v46, %v3602_v20 }
 0x2da   : > { %10944 = vrcp.f32 %v3051_v3  ;;  %v2984_v48 = vpop.f32.mrf.mxu3  ;;  %4311 = vmatpush.bf16.msrb.mxu0 %v13405_v47  ;;  %v4233_v30 = vadd.f32 1.0, %v10941_v32  ;;  %v4191_v5 = vsub.f32 0.0, %v13425_v9  ;;  %v13439_v32 = vadd.f32 %v12530_v50, %v11725_v13 }
 0x2db   : > { %10499 = vmatmul.msk.bf16.gmra.mxu3 %vm537_vm7, %v11257_v27  ;;  %v13413_v8 = vadd.f32 %v2984_v48, %v11761_v61  ;;  %10946 = vrcp.f32 %v4232_v25  ;;  %v3098_v53 = vpack.c.bf16 %v3082_v33, %v3082_v33  ;;  %v13430_v25 = vpop.f32.mrf.mxu2  ;;  %v4220_v38 = vmul.f32 1.442695, %v4190_v14 }
 0x2dc   : > { %10948 = vpow2.f32 %v4214_v17 }
 0x2dd   : > { %v3005_v51 = vsub.f32 0.0, %v13413_v8 }
 0x2df   : > { %v10943_v43 = vpop.eup %10942  ;;  %v3034_v16 = vmul.f32 1.442695, %v3005_v51  ;;  %v4222_v51 = vmul.f32 1.442695, %v4191_v5 }
 0x2e0   : > { %v10945_v10 = vpop.eup %10944  ;;  %v3052_v39 = vadd.f32 1.0, %v10943_v43 }
 0x2e1   : > { %v3083_v3 = vmul.f32 %v10945_v10, %v13366_v2  ;;  %10950 = vpow2.f32 %v3034_v16  ;;  %v13435_v27 = vpop.eup %10946  ;;  %v3110_v2 = vunpack.c.l.b16 %v3098_v53  ;;  %v6540_v16 = vsub.f32 0.0, %v13439_v32 }
 0x2e2   : > { %10952 = vpow2.f32 %v4212_v1  ;;  %v2987_v41 = vpop.f32.mrf.mxu3  ;;  %10272 = vmatmul.msk.bf16.gmra.mxu1 %vm537_vm7, %v3605_v45  ;;  %v10949_v46 = vpop.eup %10948  ;;  %v17106_v1 = vld [vmem:[#allocation15_spill] sm:$0xff]  ;;  %v11258_v45 = vld [vmem:[%s16935_s1 + $0x18] sm:$0xff] }
 0x2e3   : > { %10954 = vrcp.f32 %v4233_v30  ;;  %v3099_v63 = vpack.c.bf16 %v3083_v3, %v3083_v3  ;;  %v13433_v48 = vadd.f32 %v2987_v41, %v11751_v42  ;;  %v13445_v43 = vadd.f32 %v17107_v56, %v17106_v1 }
 0x2e4   : > { %10956 = vrcp.f32 %v3052_v39  ;;  %v4235_v14 = vadd.f32 1.0, %v10949_v46 }
 0x2e5   : > { %10958 = vpow2.f32 %v4216_v34  ;;  %v3111_v17 = vunpack.c.l.b16 %v3099_v63  ;;  %v3006_v62 = vsub.f32 0.0, %v13433_v48  ;;  %v6539_v41 = vsub.f32 0.0, %v13445_v43 }
 0x2e6   : > { %10960 = vpow2.f32 %v4218_v12 }
 0x2e7   : > { %v10951_v33 = vpop.eup %10950  ;;  %v3036_v30 = vmul.f32 1.442695, %v3006_v62  ;;  %v3113_v20 = vpack.c.b16 %v3111_v17, %v3110_v2  ;;  %10962 = vpow2.f32 %v4220_v38  ;;  %v6557_v38 = vmul.f32 1.442695, %v6540_v16  ;;  %v13457_v2 = vpop.f32.mrf.mxu2 }
 0x2e8   : > { %v10953_v50 = vpop.eup %10952  ;;  %v3053_v10 = vadd.f32 1.0, %v10951_v33  ;;  %17108 = vst [vmem:[#allocation22_spill] sm:$0xff] %v13457_v2 }
 0x2e9   : > { %v10955_v34 = vpop.eup %10954  ;;  %10964 = vpow2.f32 %v3036_v30  ;;  %10250 = vmatmul.msk.bf16.gmra.mxu0 %vm537_vm7, %v3113_v20  ;;  %v4234_v12 = vadd.f32 1.0, %v10953_v50  ;;  %v6555_v30 = vmul.f32 1.442695, %v6539_v41 }
 0x2ea   : > { %v10957_v39 = vpop.eup %10956  ;;  %10966 = vrcp.f32 %v3053_v10  ;;  %v2989_v53 = vpop.f32.mrf.mxu3 }
 0x2eb   : > { %10500 = vmatmul.msk.bf16.gmra.mxu3 %vm537_vm7, %v11258_v45  ;;  %v10959_v3 = vpop.eup %10958  ;;  %10968 = vpow2.f32 %v4222_v51  ;;  %v13455_v5 = vadd.f32 %v2989_v53, %v11764_v0  ;;  %v3084_v17 = vmul.f32 %v10957_v39, %v13374_v24  ;;  %v17109_v51 = vld [vmem:[#allocation42_spill] sm:$0xff]  ;;  %v17110_v53 = vld [vmem:[#allocation41_spill] sm:$0xff] }
 0x2ec   : > { %v10961_v63 = vpop.eup %10960  ;;  %10970 = vrcp.f32 %v4235_v14  ;;  %v4236_v33 = vadd.f32 1.0, %v10959_v3  ;;  %v13463_v20 = vadd.f32 %v17109_v51, %v17053_v58  ;;  %v13467_v45 = vadd.f32 %v17110_v53, %v11735_v19 }
 0x2ed   : > { %v3007_v62 = vsub.f32 0.0, %v13455_v5  ;;  %v10963_v46 = vpop.eup %10962  ;;  %10972 = vrcp.f32 %v4234_v12  ;;  %v3100_v24 = vpack.c.bf16 %v3084_v17, %v3084_v17  ;;  %v4265_v3 = vmul.f32 %v10955_v34, %v13359_v49 }
 0x2ee   : > { %10974 = vpow2.f32 %v6557_v38  ;;  %v4237_v12 = vadd.f32 1.0, %v10961_v63  ;;  %v6542_v38 = vsub.f32 0.0, %v13463_v20  ;;  %v4264_v17 = vmul.f32 %v13435_v27, %v13348_v21  ;;  %v17112_v63 = vld [vmem:[#allocation44_spill] sm:$0xff] }
 0x2ef   : > { %v10965_v56 = vpop.eup %10964  ;;  %v3038_v50 = vmul.f32 1.442695, %v3007_v62  ;;  %v17111_v62 = vld [vmem:[#allocation43_spill] sm:$0xff]  ;;  %v6541_v34 = vsub.f32 0.0, %v13467_v45  ;;  %v4281_v2 = vpack.c.bf16 %v4265_v3, %v4265_v3 }
 0x2f0   : > { %v10967_v10 = vpop.eup %10966  ;;  %v3054_v16 = vadd.f32 1.0, %v10965_v56  ;;  %v13476_v56 = vadd.f32 %v17111_v62, %v17057_v57 }
 0x2f1   : > { %v10969_v14 = vpop.eup %10968  ;;  %v3085_v39 = vmul.f32 %v10967_v10, %v13413_v8  ;;  %10976 = vpow2.f32 %v3038_v50  ;;  %v4238_v8 = vadd.f32 1.0, %v10963_v46  ;;  %v17113_v10 = vld [vmem:[#allocation25_spill] sm:$0xff]  ;;  %v6561_v46 = vmul.f32 1.442695, %v6542_v38 }
 0x2f2   : > { %10978 = vrcp.f32 %v4236_v33  ;;  %v13471_v41 = vpop.f32.mrf.mxu3  ;;  %v10971_v51 = vpop.eup %10970  ;;  %v4239_v50 = vadd.f32 1.0, %v10969_v14  ;;  %v13483_v33 = vadd.f32 %v17112_v63, %v17060_v40  ;;  %v17115_v18 = vpack.c.b16 %v17113_v10, %v17114_v36 }
 0x2f3   : > { %10980 = vpow2.f32 %v6555_v30  ;;  %v3101_v53 = vpack.c.bf16 %v3085_v39, %v3085_v39  ;;  %v10973_v49 = vpop.eup %10972  ;;  %v3565_v30 = vunpack.c.l.b16 %v3100_v24  ;;  %v4267_v21 = vmul.f32 %v10971_v51, %v13378_v6  ;;  %v13492_v14 = vpop.f32.mrf.mxu2 }
 0x2f4   : > { %10982 = vrcp.f32 %v3054_v16  ;;  %10315 = vmatmul.msk.bf16.vlgmr.msra.gmra.mxu1 %vm537_vm7, %v17115_v18  ;;  %v10975_v62 = vpop.eup %10974  ;;  %v6543_v16 = vsub.f32 0.0, %v13476_v56  ;;  %17116 = vst [vmem:[#allocation39_spill] sm:$0xff] %v13492_v14  ;;  %v4266_v36 = vmul.f32 %v10973_v49, %v13385_v59  ;;  %v17117_v18 = vld [vmem:[#allocation49_spill] sm:$0xff]  ;;  %v4280_v51 = vpack.c.bf16 %v4264_v17, %v4264_v17  ;;  %v11259_v17 = vld [vmem:[%s16935_s1 + $0x20] sm:$0xff] }
 0x2f5   : > { %v3566_v39 = vunpack.c.l.b16 %v3101_v53  ;;  %5530 = vmatpush.bf16.msra.mxu1 %v13330_v44  ;;  %10984 = vrcp.f32 %v4237_v12  ;;  %v13497_v53 = vadd.f32 %v17117_v18, %v17104_v23  ;;  %v6559_v10 = vmul.f32 1.442695, %v6541_v34  ;;  %v17119_v49 = vld [vmem:[#allocation51_spill] sm:$0xff] }
 0x2f6   : > { %10986 = vrcp.f32 %v4238_v8  ;;  %v6544_v12 = vsub.f32 0.0, %v13483_v33  ;;  %v4283_v14 = vpack.c.bf16 %v4267_v21, %v4267_v21  ;;  %v13512_v34 = vadd.f32 %v17119_v49, %v11775_v28 }
 0x2f7   : > { %v10977_v27 = vpop.eup %10976  ;;  %v3569_v24 = vpack.c.b16 %v3566_v39, %v3565_v30  ;;  %10988 = vrcp.f32 %v4239_v50  ;;  %v6588_v30 = vadd.f32 1.0, %v10975_v62  ;;  %v17118_v39 = vld [vmem:[#allocation50_spill] sm:$0xff]  ;;  %v6563_v50 = vmul.f32 1.442695, %v6543_v16 }
 0x2f8   : > { %v10979_v63 = vpop.eup %10978  ;;  %v3055_v3 = vadd.f32 1.0, %v10977_v27  ;;  %v13503_v59 = vadd.f32 %v17118_v39, %v17105_v60  ;;  %v13514_v62 = vunpack.c.l.b16 %v4281_v2  ;;  %v4282_v21 = vpack.c.bf16 %v4266_v36, %v4266_v36 }
 0x2f9   : > { %v10981_v6 = vpop.eup %10980  ;;  %10269 = vmatmul.msk.bf16.vlgmr.msra.gmra.mxu0 %vm537_vm7, %v3569_v24  ;;  %v6547_v24 = vsub.f32 0.0, %v13497_v53  ;;  %v6565_v39 = vmul.f32 1.442695, %v6544_v12  ;;  %v4268_v16 = vmul.f32 %v10979_v63, %v13392_v22  ;;  %v6549_v36 = vsub.f32 0.0, %v13512_v34 }
 0x2fa   : > { %v10983_v38 = vpop.eup %10982  ;;  %10990 = vrcp.f32 %v3055_v3  ;;  %v5322_v8 = vpop.f32.mrf.mxu3  ;;  %4768 = vmatpush.bf16.msra.mxu0 %v13405_v47  ;;  %v6587_v27 = vadd.f32 1.0, %v10981_v6  ;;  %v13517_v3 = vunpack.c.l.b16 %v4280_v51  ;;  %v6548_v2 = vsub.f32 0.0, %v13503_v59  ;;  %v17120_v6 = vld [vmem:[#allocation52_spill] sm:$0xff] }
 0x2fb   : > { %10501 = vmatmul.msk.bf16.gmra.mxu3 %vm537_vm7, %v11259_v17  ;;  %10992 = vpow2.f32 %v6561_v46  ;;  %v10985_v18 = vpop.eup %10984  ;;  %v3086_v60 = vmul.f32 %v10983_v38, %v13433_v48  ;;  %v13520_v46 = vunpack.c.l.b16 %v4283_v14  ;;  %v13527_v51 = vadd.f32 %v17120_v6, %v11791_v54  ;;  %v13537_v38 = vpop.f32.mrf.mxu2 }
 0x2fc   : > { %10994 = vpow2.f32 %v6559_v10  ;;  %v10987_v17 = vpop.eup %10986  ;;  %v13531_v12 = vunpack.c.l.b16 %v4282_v21  ;;  %v6571_v14 = vmul.f32 1.442695, %v6547_v24  ;;  %v13535_v63 = vadd.f32 %v13276_v35, %v11743_v31 }
 0x2fd   : > { %10996 = vrcp.f32 %v6588_v30  ;;  %v10989_v49 = vpop.eup %10988  ;;  %17121 = vst [vmem:[#allocation42_spill] sm:$0xff] %v13527_v51  ;;  %v3102_v30 = vpack.c.bf16 %v3086_v60, %v3086_v60  ;;  %v4284_v54 = vpack.c.bf16 %v4268_v16, %v4268_v16  ;;  %v4269_v21 = vmul.f32 %v10985_v18, %v13400_v29 }
 0x2fe   : > { %10998 = vpow2.f32 %v6563_v50  ;;  %17122 = vst [vmem:[#allocation41_spill] sm:$0xff] %v13531_v12  ;;  %v6573_v48 = vmul.f32 1.442695, %v6548_v2  ;;  %v6550_v28 = vsub.f32 0.0, %v13527_v51  ;;  %v13547_v31 = vadd.f32 %v5322_v8, %v11725_v13  ;;  %v17123_v2 = vld [vmem:[#allocation30_spill] sm:$0xff]  ;;  %v17124_v12 = vld [vmem:[#allocation31_spill] sm:$0xff] }
 0x2ff   : > { %11000 = vrcp.f32 %v6587_v27  ;;  %v6551_v29 = vsub.f32 0.0, %v13535_v63  ;;  %v3567_v18 = vunpack.c.l.b16 %v3102_v30  ;;  %v13558_v8 = vadd.f32 %v13471_v41, %v17106_v1 }
 0x300   : > { %v10991_v10 = vpop.eup %10990  ;;  %11002 = vpow2.f32 %v6565_v39  ;;  %v6575_v39 = vmul.f32 1.442695, %v6549_v36  ;;  %v17125_v36 = vpack.c.b16 %v17123_v2, %v17124_v12 }
 0x301   : > { %v10993_v22 = vpop.eup %10992  ;;  %v3087_v50 = vmul.f32 %v10991_v10, %v13455_v5  ;;  %v4270_v5 = vmul.f32 %v10987_v17, %v13418_v37  ;;  %v4271_v10 = vmul.f32 %v10989_v49, %v13425_v9  ;;  %11004 = vpow2.f32 %v6571_v14 }
 0x302   : > { %v13543_v27 = vpop.f32.mrf.mxu3  ;;  %v10995_v24 = vpop.eup %10994  ;;  %v6590_v6 = vadd.f32 1.0, %v10993_v22  ;;  %v13560_v37 = vunpack.c.l.b16 %v4284_v54  ;;  %v4285_v9 = vpack.c.bf16 %v4269_v21, %v4269_v21  ;;  %11006 = vpow2.f32 %v6573_v48 }
 0x303   : > { %v3103_v35 = vpack.c.bf16 %v3087_v50, %v3087_v50  ;;  %v10997_v60 = vpop.eup %10996  ;;  %v6589_v17 = vadd.f32 1.0, %v10995_v24  ;;  %11008 = vpow2.f32 %v6575_v39  ;;  %v6577_v14 = vmul.f32 1.442695, %v6550_v28 }
 0x304   : > { %v10999_v16 = vpop.eup %10998  ;;  %10316 = vmatmul.msk.bf16.gmra.mxu1 %vm537_vm7, %v17125_v36  ;;  %v5361_v22 = vsub.f32 0.0, %v13547_v31  ;;  %v4286_v12 = vpack.c.bf16 %v4270_v5, %v4270_v5  ;;  %v4287_v2 = vpack.c.bf16 %v4271_v10, %v4271_v10  ;;  %11010 = vrcp.f32 %v6590_v6  ;;  %v11260_v6 = vld [vmem:[%s16935_s1 + $0x28] sm:$0xff] }
 0x305   : > { %v3568_v50 = vunpack.c.l.b16 %v3103_v35  ;;  %v11001_v51 = vpop.eup %11000  ;;  %v6620_v35 = vmul.f32 %v10997_v60, %v13439_v32  ;;  %v6591_v36 = vadd.f32 1.0, %v10999_v16  ;;  %v6579_v41 = vmul.f32 1.442695, %v6551_v29 }
 0x306   : > { %v11003_v49 = vpop.eup %11002  ;;  %v13566_v54 = vadd.f32 %v13300_v7, %v11761_v61  ;;  %v5360_v21 = vsub.f32 0.0, %v13558_v8  ;;  %v6619_v28 = vmul.f32 %v11001_v51, %v13445_v43  ;;  %11012 = vrcp.f32 %v6589_v17  ;;  %v13585_v43 = vpop.f32.mrf.mxu2 }
 0x307   : > { %v3570_v30 = vpack.c.b16 %v3568_v50, %v3567_v18  ;;  %v11005_v48 = vpop.eup %11004  ;;  %v6592_v24 = vadd.f32 1.0, %v11003_v49  ;;  %v13573_v39 = vadd.f32 %v13308_v55, %v11751_v42  ;;  %v13579_v7 = vunpack.c.l.b16 %v4285_v9 }
 0x308   : > { %11014 = vpow2.f32 %v6577_v14  ;;  %v13583_v60 = vadd.f32 %v13315_v4, %v11764_v0  ;;  %v5378_v51 = vmul.f32 1.442695, %v5361_v22  ;;  %v11007_v5 = vpop.eup %11006  ;;  %v13587_v55 = vunpack.c.l.b16 %v4286_v12 }
 0x309   : > { %10270 = vmatmul.msk.bf16.gmra.mxu0 %vm537_vm7, %v3570_v30  ;;  %v13589_v10 = vunpack.c.l.b16 %v4287_v2  ;;  %v6636_v16 = vpack.c.bf16 %v6620_v35, %v6620_v35  ;;  %11016 = vrcp.f32 %v6591_v36  ;;  %v11009_v29 = vpop.eup %11008  ;;  %v6552_v18 = vsub.f32 0.0, %v13566_v54 }
 0x30a   : > { %v5327_v32 = vpop.f32.mrf.mxu3  ;;  %11018 = vpow2.f32 %v6579_v41  ;;  %v13594_v50 = vadd.f32 %v13340_v52, %v17106_v1  ;;  %v5376_v4 = vmul.f32 1.442695, %v5360_v21  ;;  %v6635_v9 = vpack.c.bf16 %v6619_v28, %v6619_v28  ;;  %v11011_v14 = vpop.eup %11010 }
 0x30b   : > { %10502 = vmatmul.msk.bf16.gmra.mxu3 %vm537_vm7, %v11260_v6  ;;  %11020 = vrcp.f32 %v6592_v24  ;;  %v6595_v17 = vadd.f32 1.0, %v11005_v48  ;;  %v6553_v49 = vsub.f32 0.0, %v13573_v39  ;;  %v6596_v22 = vadd.f32 1.0, %v11007_v5 }
 0x30c   : > { %v6554_v30 = vsub.f32 0.0, %v13583_v60  ;;  %v13600_v12 = vadd.f32 %v13350_v11, %v11725_v13  ;;  %11022 = vpow2.f32 %v5378_v51  ;;  %v11013_v2 = vpop.eup %11012  ;;  %v13606_v36 = vunpack.c.l.b16 %v6636_v16 }
 0x30d   : > { %v6597_v41 = vadd.f32 1.0, %v11009_v29  ;;  %v6581_v48 = vmul.f32 1.442695, %v6552_v18  ;;  %v8897_v28 = vsub.f32 0.0, %v13594_v50  ;;  %v13611_v24 = vadd.f32 %v13371_v15, %v11735_v19 }
 0x30e   : > { %17126 = vst [vmem:[#allocation43_spill] sm:$0xff] %v13606_v36  ;;  %v11015_v21 = vpop.eup %11014  ;;  %11024 = vpow2.f32 %v5376_v4  ;;  %v13613_v6 = vunpack.c.l.b16 %v6635_v9  ;;  %v6622_v51 = vmul.f32 %v11011_v14, %v13463_v20  ;;  %v6583_v5 = vmul.f32 1.442695, %v6553_v49 }
 0x30f   : > { %v11017_v11 = vpop.eup %11016  ;;  %11026 = vrcp.f32 %v6595_v17  ;;  %v6585_v29 = vmul.f32 1.442695, %v6554_v30  ;;  %v8898_v18 = vsub.f32 0.0, %v13600_v12  ;;  %v13620_v52 = vadd.f32 %v5327_v32, %v17053_v58  ;;  %v17128_v30 = vld [vmem:[#allocation33_spill] sm:$0xff]  ;;  %v17129_v32 = vld [vmem:[#allocation34_spill] sm:$0xff] }
 0x310   : > { %17127 = vst [vmem:[#allocation44_spill] sm:$0xff] %v13613_v6  ;;  %v11019_v16 = vpop.eup %11018  ;;  %11028 = vrcp.f32 %v6596_v22  ;;  %v6598_v9 = vadd.f32 1.0, %v11015_v21  ;;  %v13626_v20 = vadd.f32 %v13394_v26, %v17053_v58  ;;  %v8913_v49 = vmul.f32 1.442695, %v8897_v28  ;;  %v13629_v22 = vpop.f32.mrf.mxu2 }
 0x311   : > { %v11021_v15 = vpop.eup %11020  ;;  %11030 = vrcp.f32 %v6597_v41  ;;  %v8899_v14 = vsub.f32 0.0, %v13611_v24  ;;  %v17130_v13 = vpack.c.b16 %v17128_v30, %v17129_v32  ;;  %v13637_v41 = vadd.f32 %v13543_v27, %v11735_v19 }
 0x312   : > { %v13616_v35 = vpop.f32.mrf.mxu3  ;;  %v11023_v17 = vpop.eup %11022  ;;  %11032 = vpow2.f32 %v6581_v48  ;;  %v6621_v21 = vmul.f32 %v11013_v2, %v13467_v45  ;;  %v6638_v26 = vpack.c.bf16 %v6622_v51, %v6622_v51  ;;  %v6599_v4 = vadd.f32 1.0, %v11019_v16 }
 0x313   : > { %11034 = vpow2.f32 %v6583_v5  ;;  %v6624_v28 = vmul.f32 %v11021_v15, %v13483_v33  ;;  %v8915_v58 = vmul.f32 1.442695, %v8898_v18  ;;  %v5363_v30 = vsub.f32 0.0, %v13620_v52 }
 0x314   : > { %10335 = vmatmul.msk.bf16.vlgmr.msrb.gmra.mxu1 %vm537_vm7, %v17130_v13  ;;  %v11025_v48 = vpop.eup %11024  ;;  %11036 = vpow2.f32 %v6585_v29  ;;  %v6623_v13 = vmul.f32 %v11017_v11, %v13476_v56  ;;  %v8900_v27 = vsub.f32 0.0, %v13626_v20  ;;  %v5409_v19 = vadd.f32 1.0, %v11023_v17 }
 0x315   : > { %5984 = vmatpush.bf16.msrb.mxu1 %v13330_v44  ;;  %v11027_v32 = vpop.eup %11026  ;;  %11038 = vrcp.f32 %v6598_v9  ;;  %v8917_v2 = vmul.f32 1.442695, %v8899_v14  ;;  %v13647_v44 = vadd.f32 %v13430_v25, %v17057_v57  ;;  %v5362_v33 = vsub.f32 0.0, %v13637_v41  ;;  %v11261_v25 = vld [vmem:[%s16935_s1 + $0x30] sm:$0xff] }
 0x316   : > { %v11029_v45 = vpop.eup %11028  ;;  %11040 = vpow2.f32 %v8913_v49  ;;  %v17131_v51 = vpack.c.b16 %v13514_v62, %v13517_v3  ;;  %v6637_v56 = vpack.c.bf16 %v6621_v21, %v6621_v21  ;;  %v13654_v11 = vunpack.c.l.b16 %v6638_v26  ;;  %v17133_v62 = vld [vmem:[#allocation22_spill] sm:$0xff] }
 0x317   : > { %v11031_v5 = vpop.eup %11030  ;;  %11042 = vrcp.f32 %v6599_v4  ;;  %v5408_v16 = vadd.f32 1.0, %v11025_v48  ;;  %v6640_v15 = vpack.c.bf16 %v6624_v28, %v6624_v28  ;;  %v13663_v3 = vadd.f32 %v17133_v62, %v17060_v40  ;;  %v17135_v62 = vld [vmem:[#allocation29_spill] sm:$0xff] }
 0x318   : > { %17132 = vst [vmem:[#allocation25_spill] sm:$0xff] %v13654_v11  ;;  %v11033_v18 = vpop.eup %11032  ;;  %11044 = vpow2.f32 %v8915_v58  ;;  %v5382_v9 = vmul.f32 1.442695, %v5363_v30  ;;  %v6639_v4 = vpack.c.bf16 %v6623_v13, %v6623_v13  ;;  %v6628_v49 = vmul.f32 %v11029_v45, %v13503_v59  ;;  %v17136_v30 = vld [vmem:[#allocation39_spill] sm:$0xff] }
 0x319   : > { %10313 = vmatmul.msk.bf16.vlgmr.msrb.gmra.mxu0 %vm537_vm7, %v17131_v51  ;;  %v11035_v17 = vpop.eup %11034  ;;  %v8919_v14 = vmul.f32 1.442695, %v8900_v27  ;;  %11046 = vrcp.f32 %v5409_v19  ;;  %v6627_v26 = vmul.f32 %v11027_v32, %v13497_v53  ;;  %v8901_v48 = vsub.f32 0.0, %v13647_v44  ;;  %v8882_v32 = vpop.f32.mrf.mxu2 }
 0x31a   : > { %v5332_v29 = vpop.f32.mrf.mxu3  ;;  %5495 = vmatpush.bf16.msrb.mxu0 %v13405_v47  ;;  %v11037_v21 = vpop.eup %11036  ;;  %11048 = vpow2.f32 %v8917_v2  ;;  %v5380_v51 = vmul.f32 1.442695, %v5362_v33  ;;  %v13670_v58 = vunpack.c.l.b16 %v6637_v56  ;;  %v13674_v1 = vadd.f32 %v17136_v30, %v17135_v62 }
 0x31b   : > { %10503 = vmatmul.msk.bf16.gmra.mxu3 %vm537_vm7, %v11261_v25  ;;  %v13668_v28 = vpop.eup %11038  ;;  %v6600_v25 = vadd.f32 1.0, %v11033_v18  ;;  %11050 = vrcp.f32 %v5408_v16  ;;  %v13676_v13 = vunpack.c.l.b16 %v6640_v15  ;;  %v6601_v19 = vadd.f32 1.0, %v11035_v17 }
 0x31c   : > { %17134 = vst [vmem:[#allocation26_spill] sm:$0xff] %v13670_v58  ;;  %v11041_v59 = vpop.eup %11040  ;;  %v8902_v53 = vsub.f32 0.0, %v13663_v3  ;;  %11052 = vpow2.f32 %v5382_v9  ;;  %v6644_v2 = vpack.c.bf16 %v6628_v49, %v6628_v49  ;;  %v6602_v33 = vadd.f32 1.0, %v11037_v21 }
 0x31d   : > { %17137 = vst [vmem:[#allocation49_spill] sm:$0xff] %v13676_v13  ;;  %v13679_v27 = vpop.eup %11042  ;;  %11054 = vpow2.f32 %v8919_v14  ;;  %v13683_v18 = vunpack.c.l.b16 %v6639_v4  ;;  %v6643_v16 = vpack.c.bf16 %v6627_v26, %v6627_v26  ;;  %v8921_v30 = vmul.f32 1.442695, %v8901_v48 }
 0x31e   : > { %v11045_v56 = vpop.eup %11044  ;;  %11056 = vpow2.f32 %v5380_v51  ;;  %v6629_v17 = vmul.f32 %v11031_v5, %v13512_v34  ;;  %v8945_v6 = vadd.f32 1.0, %v11041_v59  ;;  %v8903_v9 = vsub.f32 0.0, %v13674_v1  ;;  %v17140_v5 = vld [vmem:[#allocation32_spill] sm:$0xff] }
 0x31f   : > { %17138 = vst [vmem:[#allocation50_spill] sm:$0xff] %v13683_v18  ;;  %v11047_v15 = vpop.eup %11046  ;;  %11058 = vrcp.f32 %v6600_v25  ;;  %v8923_v14 = vmul.f32 1.442695, %v8902_v53  ;;  %v13692_v4 = vadd.f32 %v5332_v29, %v17060_v40  ;;  %v13694_v26 = vunpack.c.l.b16 %v6644_v2  ;;  %v17143_v53 = vld [vmem:[#allocation35_spill] sm:$0xff] }
 0x320   : > { %v11049_v0 = vpop.eup %11048  ;;  %11060 = vrcp.f32 %v6601_v19  ;;  %v8946_v34 = vadd.f32 1.0, %v11045_v56  ;;  %v13698_v48 = vadd.f32 %v13537_v38, %v17140_v5  ;;  %v13700_v25 = vunpack.c.l.b16 %v6643_v16  ;;  %v17142_v19 = vld [vmem:[#allocation36_spill] sm:$0xff] }
 0x321   : > { %v11051_v21 = vpop.eup %11050  ;;  %17139 = vst [vmem:[#allocation51_spill] sm:$0xff] %v13694_v26  ;;  %11062 = vrcp.f32 %v6602_v33  ;;  %v5441_v59 = vmul.f32 %v11047_v15, %v13547_v31  ;;  %v17144_v49 = vpack.c.b16 %v17142_v19, %v17143_v53  ;;  %v13709_v29 = vadd.f32 %v13616_v35, %v17057_v57 }
 0x322   : > { %v13687_v36 = vpop.f32.mrf.mxu3  ;;  %v11053_v51 = vpop.eup %11052  ;;  %17141 = vst [vmem:[#allocation52_spill] sm:$0xff] %v13700_v25  ;;  %11064 = vpow2.f32 %v8921_v30  ;;  %v6645_v33 = vpack.c.bf16 %v6629_v17, %v6629_v17  ;;  %v8947_v38 = vadd.f32 1.0, %v11049_v0  ;;  %v8925_v56 = vmul.f32 1.442695, %v8903_v9 }
 0x323   : > { %v11055_v2 = vpop.eup %11054  ;;  %11066 = vrcp.f32 %v8945_v6  ;;  %v13713_v16 = vadd.f32 %v13585_v43, %v17104_v23  ;;  %v5440_v31 = vmul.f32 %v11051_v21, %v13558_v8  ;;  %v5365_v30 = vsub.f32 0.0, %v13692_v4  ;;  %v8884_v43 = vpop.f32.mrf.mxu2  ;;  %v17146_v21 = vld [vmem:[#allocation41_spill] sm:$0xff] }
 0x324   : > { %10336 = vmatmul.msk.bf16.gmra.mxu1 %vm537_vm7, %v17144_v49  ;;  %v11057_v45 = vpop.eup %11056  ;;  %11068 = vpow2.f32 %v8923_v14  ;;  %v8904_v17 = vsub.f32 0.0, %v13698_v48  ;;  %v5411_v6 = vadd.f32 1.0, %v11053_v51  ;;  %v8948_v9 = vadd.f32 1.0, %v11055_v2  ;;  %v17145_v49 = vld [vmem:[#allocation21_spill] sm:$0xff]  ;;  %v17148_v51 = vld [vmem:[#allocation23_spill] sm:$0xff] }
 0x325   : > { %v11059_v15 = vpop.eup %11058  ;;  %11070 = vrcp.f32 %v8946_v34  ;;  %v13724_v14 = vadd.f32 %v13629_v22, %v17145_v49  ;;  %v5457_v19 = vpack.c.bf16 %v5441_v59, %v5441_v59  ;;  %v5364_v8 = vsub.f32 0.0, %v13709_v29  ;;  %v11262_v22 = vld [vmem:[%s16935_s1 + $0x38] sm:$0xff] }
 0x326   : > { %v13720_v0 = vpop.eup %11060  ;;  %v17147_v53 = vpack.c.b16 %v13520_v46, %v17146_v21  ;;  %v13731_v35 = vunpack.c.l.b16 %v6645_v33  ;;  %11072 = vpow2.f32 %v8925_v56  ;;  %v13734_v40 = vadd.f32 %v8882_v32, %v17148_v51  ;;  %v17149_v56 = vld [vmem:[#allocation42_spill] sm:$0xff] }
 0x327   : > { %v11063_v34 = vpop.eup %11062  ;;  %v5410_v2 = vadd.f32 1.0, %v11057_v45  ;;  %11074 = vrcp.f32 %v8947_v38  ;;  %v8905_v46 = vsub.f32 0.0, %v13713_v16  ;;  %v5456_v21 = vpack.c.bf16 %v5440_v31, %v5440_v31  ;;  %v17150_v45 = vld [vmem:[#allocation27_spill] sm:$0xff] }
 0x328   : > { %v11065_v59 = vpop.eup %11064  ;;  %v6630_v32 = vmul.f32 %v13668_v28, %v17149_v56  ;;  %v8927_v26 = vmul.f32 1.442695, %v8904_v17  ;;  %v13746_v57 = vadd.f32 %v8884_v43, %v17150_v45  ;;  %11076 = vrcp.f32 %v5411_v6 }
 0x329   : > { %10314 = vmatmul.msk.bf16.gmra.mxu0 %vm537_vm7, %v17147_v53  ;;  %v5386_v53 = vmul.f32 1.442695, %v5365_v30  ;;  %v13741_v33 = vpop.eup %11066  ;;  %11078 = vrcp.f32 %v8948_v9  ;;  %v5512_v13 = vunpack.c.l.b16 %v5457_v19  ;;  %v5384_v38 = vmul.f32 1.442695, %v5364_v8 }
 0x32a   : > { %v5337_v25 = vpop.f32.mrf.mxu3  ;;  %v11069_v18 = vpop.eup %11068  ;;  %v8949_v31 = vadd.f32 1.0, %v11065_v59  ;;  %v8907_v30 = vsub.f32 0.0, %v13734_v40  ;;  %11080 = vrcp.f32 %v5410_v2  ;;  %v8929_v28 = vmul.f32 1.442695, %v8905_v46 }
 0x32b   : > { %10504 = vmatmul.msk.bf16.gmra.mxu3 %vm537_vm7, %v11262_v22  ;;  %v8906_v22 = vsub.f32 0.0, %v13724_v14  ;;  %v13749_v58 = vpop.eup %11070  ;;  %v13753_v11 = vadd.f32 %v5337_v25, %v17140_v5  ;;  %v5511_v17 = vunpack.c.l.b16 %v5456_v21  ;;  %11082 = vpow2.f32 %v5386_v53 }
 0x32c   : > { %v13757_v6 = vadd.f32 %v13687_v36, %v17135_v62  ;;  %v11073_v9 = vpop.eup %11072  ;;  %v6646_v43 = vpack.c.bf16 %v6630_v32, %v6630_v32  ;;  %v8950_v19 = vadd.f32 1.0, %v11069_v18  ;;  %11084 = vpow2.f32 %v8927_v26 }
 0x32d   : > { %v8908_v8 = vsub.f32 0.0, %v13746_v57  ;;  %v13760_v59 = vpop.eup %11074  ;;  %v6631_v2 = vmul.f32 %v13679_v27, %v13535_v63  ;;  %v8931_v25 = vmul.f32 1.442695, %v8906_v22  ;;  %v5515_v56 = vpack.c.b16 %v5512_v13, %v5511_v17 }
 0x32e   : > { %11086 = vpow2.f32 %v5384_v38  ;;  %v11077_v46 = vpop.eup %11076  ;;  %v6632_v21 = vmul.f32 %v11059_v15, %v13566_v54  ;;  %v8933_v36 = vmul.f32 1.442695, %v8907_v30  ;;  %v5367_v53 = vsub.f32 0.0, %v13753_v11  ;;  %v8887_v38 = vpop.f32.mrf.mxu2 }
 0x32f   : > { %11088 = vrcp.f32 %v8949_v31  ;;  %v13766_v18 = vpop.eup %11078  ;;  %v8951_v26 = vadd.f32 1.0, %v11073_v9  ;;  %v5366_v5 = vsub.f32 0.0, %v13757_v6  ;;  %v13772_v13 = vunpack.c.l.b16 %v6646_v43 }
 0x330   : > { %11090 = vpow2.f32 %v8929_v28  ;;  %v11081_v63 = vpop.eup %11080  ;;  %v6634_v27 = vmul.f32 %v11063_v34, %v13583_v60  ;;  %v8935_v54 = vmul.f32 1.442695, %v8908_v8  ;;  %v6647_v22 = vpack.c.bf16 %v6631_v2, %v6631_v2  ;;  %v13783_v60 = vld [vmem:[%s16937_s3] sm:$0xff] }
 0x331   : > { %11092 = vrcp.f32 %v8950_v19  ;;  %v11083_v15 = vpop.eup %11082  ;;  %v5443_v31 = vmul.f32 %v11077_v46, %v13620_v52  ;;  %v6648_v17 = vpack.c.bf16 %v6632_v21, %v6632_v21  ;;  %v6633_v9 = vmul.f32 %v13720_v0, %v13573_v39  ;;  %v17151_v21 = vld [vmem:[#allocation18_spill] sm:$0xff] }
 0x332   : > { %v5340_v32 = vpop.f32.mrf.mxu3  ;;  %11094 = vpow2.f32 %v8931_v25  ;;  %v11085_v28 = vpop.eup %11084  ;;  %v5390_v43 = vmul.f32 1.442695, %v5367_v53  ;;  %v5442_v52 = vmul.f32 %v11081_v63, %v13637_v41  ;;  %v5388_v19 = vmul.f32 1.442695, %v5366_v5 }
 0x333   : > { %v13770_v62 = vadd.f32 %v5340_v32, %v17104_v23  ;;  %11096 = vpow2.f32 %v8933_v36  ;;  %v6650_v25 = vpack.c.bf16 %v6634_v27, %v6634_v27  ;;  %v8977_v39 = vmul.f32 %v13741_v33, %v13594_v50 }
 0x334   : > { %10379 = vmatmul.msk.bf16.vlgmr.msra.gmra.mxu1 %vm537_vm7, %v5515_v56  ;;  %v11087_v34 = vpop.eup %11086  ;;  %11098 = vrcp.f32 %v8951_v26  ;;  %v5413_v0 = vadd.f32 1.0, %v11083_v15  ;;  %v8952_v46 = vadd.f32 1.0, %v11085_v28  ;;  %v13792_v36 = vadd.f32 %v8887_v38, %v17151_v21 }
 0x335   : > { %v5368_v30 = vsub.f32 0.0, %v13770_v62  ;;  %6709 = vmatpush.bf16.msra.mxu1 %v13783_v60  ;;  %v13787_v2 = vpop.eup %11088  ;;  %11100 = vpow2.f32 %v8935_v54  ;;  %v5459_v53 = vpack.c.bf16 %v5443_v31, %v5443_v31  ;;  %v17152_v41 = vpack.c.b16 %v13579_v7, %v13560_v37 }
 0x336   : > { %v11091_v56 = vpop.eup %11090  ;;  %v13798_v32 = vunpack.c.l.b16 %v6647_v22  ;;  %v6649_v26 = vpack.c.bf16 %v6633_v9, %v6633_v9  ;;  %v5412_v63 = vadd.f32 1.0, %v11087_v34  ;;  %v13801_v27 = vunpack.c.l.b16 %v6648_v17 }
 0x337   : > { %v5392_v8 = vmul.f32 1.442695, %v5368_v30  ;;  %v11093_v5 = vpop.eup %11092  ;;  %v5458_v54 = vpack.c.bf16 %v5442_v52, %v5442_v52  ;;  %v13806_v7 = vunpack.c.l.b16 %v6650_v25  ;;  %v8993_v38 = vpack.c.bf16 %v8977_v39, %v8977_v39  ;;  %v8889_v25 = vpop.f32.mrf.mxu2 }
 0x338   : > { %v11095_v33 = vpop.eup %11094  ;;  %v8953_v22 = vadd.f32 1.0, %v11091_v56  ;;  %v8909_v30 = vsub.f32 0.0, %v13792_v36  ;;  %v5514_v28 = vunpack.c.l.b16 %v5459_v53  ;;  %v13810_v9 = vunpack.c.l.b16 %v6649_v26 }
 0x339   : > { %11102 = vpow2.f32 %v5392_v8  ;;  %10333 = vmatmul.msk.bf16.vlgmr.msra.gmra.mxu0 %vm537_vm7, %v17152_v41  ;;  %v11097_v37 = vpop.eup %11096  ;;  %v8954_v34 = vadd.f32 1.0, %v11095_v33  ;;  %v5513_v39 = vunpack.c.l.b16 %v5458_v54  ;;  %v8979_v53 = vmul.f32 %v13760_v59, %v13611_v24 }
 0x33a   : > { %11104 = vpow2.f32 %v5390_v43  ;;  %v5342_v50 = vpop.f32.mrf.mxu3  ;;  %5949 = vmatpush.bf16.msra.mxu0 %v13405_v47  ;;  %v11099_v31 = vpop.eup %11098  ;;  %v8978_v43 = vmul.f32 %v13749_v58, %v13600_v12  ;;  %v8955_v8 = vadd.f32 1.0, %v11097_v37  ;;  %v13820_v58 = vunpack.c.l.b16 %v8993_v38 }
 0x33b   : > { %11106 = vpow2.f32 %v5388_v19  ;;  %v13804_v15 = vadd.f32 %v5342_v50, %v17145_v49  ;;  %v11101_v17 = vpop.eup %11100  ;;  %v8937_v26 = vmul.f32 1.442695, %v8909_v30  ;;  %v13823_v37 = vadd.f32 %v8889_v25, %v11761_v61 }
 0x33c   : > { %11108 = vrcp.f32 %v5413_v0  ;;  %v8994_v33 = vpack.c.bf16 %v8978_v43, %v8978_v43  ;;  %v8956_v54 = vadd.f32 1.0, %v11101_v17  ;;  %v8981_v17 = vmul.f32 %v13787_v2, %v13647_v44 }
 0x33d   : > { %11110 = vrcp.f32 %v8952_v46  ;;  %v5369_v47 = vsub.f32 0.0, %v13804_v15 }
 0x33e   : > { %11112 = vrcp.f32 %v5412_v63  ;;  %v5516_v63 = vpack.c.b16 %v5514_v28, %v5513_v39  ;;  %v8980_v28 = vmul.f32 %v13766_v18, %v13626_v20  ;;  %v8910_v20 = vsub.f32 0.0, %v13823_v37 }
 0x33f   : > { %v11103_v52 = vpop.eup %11102  ;;  %v5394_v0 = vmul.f32 1.442695, %v5369_v47  ;;  %11114 = vrcp.f32 %v8953_v22  ;;  %v13841_v18 = vunpack.c.l.b16 %v8994_v33 }
 0x340   : > { %v11105_v56 = vpop.eup %11104  ;;  %v5416_v41 = vadd.f32 1.0, %v11103_v52  ;;  %v8996_v39 = vpack.c.bf16 %v8980_v28, %v8980_v28 }
 0x341   : > { %v11107_v12 = vpop.eup %11106  ;;  %11116 = vpow2.f32 %v5394_v0  ;;  %v5415_v22 = vadd.f32 1.0, %v11105_v56 }
 0x342   : > { %v11109_v50 = vpop.eup %11108  ;;  %11118 = vrcp.f32 %v8954_v34  ;;  %v5345_v47 = vpop.f32.mrf.mxu3  ;;  %v5414_v43 = vadd.f32 1.0, %v11107_v12  ;;  %v8982_v34 = vmul.f32 %v11093_v5, %v13663_v3  ;;  %v8995_v5 = vpack.c.bf16 %v8979_v53, %v8979_v53 }
 0x343   : > { %v11111_v46 = vpop.eup %11110  ;;  %11120 = vrcp.f32 %v8955_v8  ;;  %v13828_v38 = vadd.f32 %v5345_v47, %v17148_v51  ;;  %v5445_v52 = vmul.f32 %v11109_v50, %v13692_v4  ;;  %v8983_v8 = vmul.f32 %v11099_v31, %v13674_v1  ;;  %v8892_v31 = vpop.f32.mrf.mxu2 }
 0x344   : > { %v11113_v30 = vpop.eup %11112  ;;  %11122 = vrcp.f32 %v5416_v41  ;;  %10380 = vmatmul.msk.bf16.gmra.mxu1 %vm537_vm7, %v5516_v63  ;;  %v8984_v25 = vmul.f32 %v11111_v46, %v13698_v48  ;;  %v8997_v41 = vpack.c.bf16 %v8981_v17, %v8981_v17  ;;  %v8998_v1 = vpack.c.bf16 %v8982_v34, %v8982_v34 }
 0x345   : > { %11124 = vpow2.f32 %v8937_v26  ;;  %v5370_v24 = vsub.f32 0.0, %v13828_v38  ;;  %v11115_v59 = vpop.eup %11114  ;;  %v5444_v3 = vmul.f32 %v11113_v30, %v13709_v29  ;;  %v5461_v48 = vpack.c.bf16 %v5445_v52, %v5445_v52 }
 0x346   : > { %11126 = vrcp.f32 %v8956_v54  ;;  %v17153_v46 = vpack.c.b16 %v13589_v10, %v13587_v55  ;;  %v8999_v29 = vpack.c.bf16 %v8983_v8, %v8983_v8  ;;  %v9000_v26 = vpack.c.bf16 %v8984_v25, %v8984_v25 }
 0x347   : > { %v11117_v44 = vpop.eup %11116  ;;  %11128 = vrcp.f32 %v5415_v22  ;;  %v5396_v2 = vmul.f32 1.442695, %v5370_v24  ;;  %v8939_v63 = vmul.f32 1.442695, %v8910_v20  ;;  %v8985_v33 = vmul.f32 %v11115_v59, %v13713_v16 }
 0x348   : > { %v11119_v4 = vpop.eup %11118  ;;  %11130 = vrcp.f32 %v5414_v43  ;;  %v5417_v0 = vadd.f32 1.0, %v11117_v44  ;;  %v5460_v47 = vpack.c.bf16 %v5444_v3, %v5444_v3  ;;  %v13855_v10 = vunpack.c.l.b16 %v8995_v5 }
 0x349   : > { %v11121_v56 = vpop.eup %11120  ;;  %11132 = vpow2.f32 %v5396_v2  ;;  %10334 = vmatmul.msk.bf16.gmra.mxu0 %vm537_vm7, %v17153_v46  ;;  %v8986_v54 = vmul.f32 %v11119_v4, %v13724_v14  ;;  %v13857_v28 = vunpack.c.l.b16 %v8996_v39  ;;  %v13860_v17 = vadd.f32 %v8892_v31, %v11751_v42 }
 0x34a   : > { %v11123_v12 = vpop.eup %11122  ;;  %11134 = vrcp.f32 %v5417_v0  ;;  %v5347_v53 = vpop.f32.mrf.mxu3  ;;  %v13862_v34 = vunpack.c.l.b16 %v8997_v41  ;;  %v5966_v16 = vunpack.c.l.b16 %v5461_v48  ;;  %v13866_v59 = vunpack.c.l.b16 %v8998_v1 }
 0x34b   : > { %v11125_v50 = vpop.eup %11124  ;;  %v13851_v22 = vadd.f32 %v5347_v53, %v17150_v45  ;;  %v5448_v14 = vmul.f32 %v11123_v12, %v13770_v62  ;;  %v13868_v8 = vunpack.c.l.b16 %v8999_v29  ;;  %v13870_v25 = vunpack.c.l.b16 %v9000_v26  ;;  %v3164_v0 = vpop.f32.mrf.mxu1 }
 0x34c   : > { %v11127_v30 = vpop.eup %11126  ;;  %11136 = vpow2.f32 %v8939_v63  ;;  %v9001_v44 = vpack.c.bf16 %v8985_v33, %v8985_v33  ;;  %v9002_v3 = vpack.c.bf16 %v8986_v54, %v8986_v54  ;;  %v5965_v2 = vunpack.c.l.b16 %v5460_v47  ;;  %v8894_v47 = vpop.f32.mrf.mxu2 }
 0x34d   : > { %v11129_v43 = vpop.eup %11128  ;;  %v5371_v52 = vsub.f32 0.0, %v13851_v22  ;;  %17154 = vst [vmem:[#allocation30_spill] sm:$0xff] %v13868_v8  ;;  %v8987_v39 = vmul.f32 %v11121_v56, %v13734_v40  ;;  %v8911_v62 = vsub.f32 0.0, %v13860_v17  ;;  %v5464_v48 = vpack.c.bf16 %v5448_v14, %v5448_v14 }
 0x34e   : > { %v11131_v24 = vpop.eup %11130  ;;  %17155 = vst [vmem:[#allocation31_spill] sm:$0xff] %v13870_v25  ;;  %v5447_v41 = vmul.f32 %v11129_v43, %v13753_v11  ;;  %v5969_v31 = vpack.c.b16 %v5966_v16, %v5965_v2  ;;  %v8988_v12 = vmul.f32 %v11127_v30, %v13746_v57  ;;  %v8957_v29 = vadd.f32 1.0, %v11125_v50 }
 0x34f   : > { %v11133_v20 = vpop.eup %11132  ;;  %v5398_v4 = vmul.f32 1.442695, %v5371_v52  ;;  %v5446_v26 = vmul.f32 %v11131_v24, %v13757_v6  ;;  %v13887_v57 = vunpack.c.l.b16 %v9001_v44  ;;  %v8941_v50 = vmul.f32 1.442695, %v8911_v62 }
 0x350   : > { %v11135_v5 = vpop.eup %11134  ;;  %v5418_v1 = vadd.f32 1.0, %v11133_v20  ;;  %v5463_v6 = vpack.c.bf16 %v5447_v41, %v5447_v41  ;;  %v13889_v54 = vunpack.c.l.b16 %v9002_v3  ;;  %v5476_v30 = vunpack.c.l.b16 %v5464_v48  ;;  %v17158_v41 = vld [vmem:[#allocation20_spill] sm:$0xff] }
 0x351   : > { %v5449_v46 = vmul.f32 %v11135_v5, %v13804_v15  ;;  %11138 = vpow2.f32 %v5398_v4  ;;  %17156 = vst [vmem:[#allocation33_spill] sm:$0xff] %v13887_v57  ;;  %v9003_v14 = vpack.c.bf16 %v8987_v39, %v8987_v39  ;;  %v9004_v52 = vpack.c.bf16 %v8988_v12, %v8988_v12 }
 0x352   : > { %11140 = vrcp.f32 %v5418_v1  ;;  %v5350_v63 = vpop.f32.mrf.mxu3  ;;  %v11137_v33 = vpop.eup %11136  ;;  %17157 = vst [vmem:[#allocation34_spill] sm:$0xff] %v13889_v54  ;;  %v5462_v24 = vpack.c.bf16 %v5446_v26, %v5446_v26  ;;  %v13895_v1 = vadd.f32 %v8894_v47, %v17158_v41  ;;  %v3480_v54 = vld [vmem:[%s12266_s6 + $0x28] sm:$0x4] }
 0x353   : > { %v5465_v11 = vpack.c.bf16 %v5449_v46, %v5449_v46  ;;  %v13883_v53 = vadd.f32 %v5350_v63, %v17151_v21  ;;  %11142 = vrcp.f32 %v8957_v29  ;;  %v8958_v2 = vadd.f32 1.0, %v11137_v33  ;;  %v3166_v26 = vpop.f32.mrf.mxu1  ;;  %v13910_v33 = vld [vmem:[%s16938_s4] sm:$0xff] }
 0x354   : > { %10399 = vmatmul.msk.bf16.vlgmr.msrb.gmra.mxu1 %vm537_vm7, %v5969_v31  ;;  %11144 = vpow2.f32 %v8941_v50  ;;  %v13897_v31 = vunpack.c.l.b16 %v5463_v6  ;;  %v13903_v29 = vunpack.c.l.b16 %v9003_v14  ;;  %v5967_v63 = vunpack.c.l.b16 %v5462_v24 }
 0x355   : > { %v5477_v43 = vunpack.c.l.b16 %v5465_v11  ;;  %v5372_v16 = vsub.f32 0.0, %v13883_v53  ;;  %7163 = vmatpush.bf16.msrb.mxu1 %v13783_v60 }
 0x356   : > { %v3129_v20 = vpop.f32.mrf.mxu0  ;;  %17159 = vst [vmem:[#allocation22_spill] sm:$0xff] %v13903_v29  ;;  %v3498_v29 = vld [vmem:[%s12266_s6 + $0x58] sm:$0x4] }
 0x357   : > { %v11139_v44 = vpop.eup %11138  ;;  %v5480_v4 = vpack.c.b16 %v5477_v43, %v5476_v30  ;;  %v5400_v5 = vmul.f32 1.442695, %v5372_v16  ;;  %v3165_v3 = vadd.f32 %v3164_v0, %v3129_v20  ;;  %v13905_v0 = vunpack.c.l.b16 %v9004_v52 }
 0x358   : > { %v11141_v62 = vpop.eup %11140  ;;  %v5419_v48 = vadd.f32 1.0, %v11139_v44  ;;  %v5970_v43 = vpack.c.b16 %v13897_v31, %v5967_v63 }
 0x359   : > { %v5450_v46 = vmul.f32 %v11141_v62, %v13828_v38  ;;  %11146 = vpow2.f32 %v5400_v5  ;;  %v3174_v12 = vpack.c.bf16 %v3165_v3, %v3165_v3  ;;  %10377 = vmatmul.msk.bf16.vlgmr.msrb.gmra.mxu0 %vm537_vm7, %v5480_v4  ;;  %17160 = vst [vmem:[#allocation39_spill] sm:$0xff] %v13905_v0  ;;  %v13916_v47 = vpop.eup %11142  ;;  %v3507_v0 = vld [vmem:[%s12266_s6 + $0x70] sm:$0x4] }
 0x35a   : > { %11148 = vrcp.f32 %v5419_v48  ;;  %v5352_v11 = vpop.f32.mrf.mxu3  ;;  %6674 = vmatpush.bf16.msrb.mxu0 %v13910_v33  ;;  %v13925_v20 = vpop.eup %11144 }
 0x35b   : > { %11150 = vrcp.f32 %v8958_v2  ;;  %v5466_v38 = vpack.c.bf16 %v5450_v46, %v5450_v46  ;;  %v3182_v50 = vrot.slane %v3174_v12, 3  ;;  %v13914_v6 = vadd.f32 %v5352_v11, %v11761_v61 }
 0x35d   : > { %v13920_v16 = vunpack.c.l.b16 %v5466_v38  ;;  %v3188_v14 = vsel %vm817_vm8, %v3174_v12, %v3182_v50  ;;  %v3190_v52 = vsel %vm501_vm0, %v3174_v12, %v3182_v50  ;;  %v3193_v24 = vsel %vm504_vm1, %v3174_v12, %v3182_v50 }
 0x35e   : > { %v3192_v44 = vrot.slane %v3190_v52, 1  ;;  %v3195_v2 = vrot.slane %v3193_v24, 2  ;;  %v3196_v4 = vsel %vm507_vm2, %v3174_v12, %v3182_v50  ;;  %v3239_v5 = vunpack.i.h.s16 %v3188_v14  ;;  %v3131_v3 = vpop.f32.mrf.mxu0 }
 0x35f   : > { %v11147_v62 = vpop.eup %11146  ;;  %v3198_v31 = vrot.slane %v3196_v4, 3  ;;  %v10253_v48 = vpack.i.b16 %v3188_v14, %v3188_v14  ;;  %v5373_v46 = vsub.f32 0.0, %v13914_v6  ;;  %v3167_v63 = vadd.f32 %v3166_v26, %v3131_v3 }
 0x360   : > { %v11149_v11 = vpop.eup %11148  ;;  %v5420_v38 = vadd.f32 1.0, %v11147_v62  ;;  %v3241_v39 = vunpack.i.h.s16 %v3192_v44  ;;  %v3243_v15 = vunpack.i.h.s16 %v3195_v2  ;;  %v3271_v56 = vpack.i.b16 %v3239_v5, %v3239_v5  ;;  %v3465_v5 = vld [vmem:[%s12266_s6] sm:$0x4] }
 0x361   : > { %v11151_v40 = vpop.eup %11150  ;;  %v5451_v52 = vmul.f32 %v11149_v11, %v13851_v22  ;;  %v3245_v12 = vunpack.i.h.s16 %v3198_v31  ;;  %v10254_v50 = vpack.i.b16 %v3192_v44, %v3192_v44  ;;  %v10255_v24 = vpack.i.b16 %v3195_v2, %v3195_v2  ;;  %v17163_v11 = vld [vmem:[#allocation37_spill] sm:$0xff]  ;;  %v3468_v2 = vld [vmem:[%s12266_s6 + $0x8] sm:$0x4] }
 0x362   : > { %11152 = vrcp.f32 %v5420_v38  ;;  %v3273_v14 = vpack.i.b16 %v3241_v39, %v3241_v39  ;;  %v3275_v4 = vpack.i.b16 %v3243_v15, %v3243_v15  ;;  %v10256_v55 = vpack.i.b16 %v3198_v31, %v3198_v31  ;;  %v5355_v3 = vpop.f32.mrf.mxu3  ;;  %v3471_v15 = vld [vmem:[%s12266_s6 + $0x10] sm:$0x4]  ;;  %v3474_v39 = vld [vmem:[%s12266_s6 + $0x18] sm:$0x4]  ;;  %v3169_v31 = vpop.f32.mrf.mxu1 }
 0x363   : > { %v5467_v22 = vpack.c.bf16 %v5451_v52, %v5451_v52  ;;  %v3277_v62 = vpack.i.b16 %v3245_v12, %v3245_v12  ;;  %v3305_v19 = vperm.slane %v10253_v48, %v17163_v11  ;;  %v3309_v44 = vperm.slane %v3271_v56, %v17163_v11  ;;  %v3477_v12 = vld [vmem:[%s12266_s6 + $0x20] sm:$0x4] }
 0x364   : > { %v3313_v38 = vperm.slane %v10254_v50, %v17163_v11  ;;  %v3317_v30 = vperm.slane %v3273_v14, %v17163_v11  ;;  %v3321_v57 = vperm.slane %v10255_v24, %v17163_v11  ;;  %v3325_v52 = vperm.slane %v3275_v4, %v17163_v11  ;;  %10400 = vmatmul.msk.bf16.gmra.mxu1 %vm537_vm7, %v5970_v43  ;;  %v3501_v14 = vld [vmem:[%s12266_s6 + $0x60] sm:$0x4] }
 0x365   : > { %v5479_v56 = vunpack.c.l.b16 %v5467_v22  ;;  %v3329_v48 = vperm.slane %v10256_v55, %v17163_v11  ;;  %v3333_v8 = vperm.slane %v3277_v62, %v17163_v11  ;;  %v3466_v50 = vsel %vm13932_vm5, %v3305_v19, %v3465_v5  ;;  %v3483_v55 = vld [vmem:[%s12266_s6 + $0x30] sm:$0x4]  ;;  %v3486_v22 = vld [vmem:[%s12266_s6 + $0x38] sm:$0x4] }
 0x366   : > { %3467 = vst [vmem:[%s12266_s6] sm:$0x4] %v3466_v50  ;;  %v3469_v24 = vsel %vm13932_vm5, %v3309_v44, %v3468_v2  ;;  %v3472_v4 = vsel %vm13932_vm5, %v3313_v38, %v3471_v15  ;;  %v3475_v43 = vsel %vm13932_vm5, %v3317_v30, %v3474_v39  ;;  %v3134_v62 = vpop.f32.mrf.mxu0  ;;  %v13966_v19 = vmul.f32 %v13916_v47, %v13792_v36 }
 0x367   : > { %v5481_v5 = vpack.c.b16 %v5479_v56, %v13920_v16  ;;  %3470 = vst [vmem:[%s12266_s6 + $0x8] sm:$0x4] %v3469_v24  ;;  %v3478_v44 = vsel %vm13932_vm5, %v3321_v57, %v3477_v12  ;;  %v3481_v2 = vsel %vm13932_vm5, %v3325_v52, %v3480_v54  ;;  %v5402_v30 = vmul.f32 1.442695, %v5373_v46 }
 0x368   : > { %v11153_v15 = vpop.eup %11152  ;;  %3473 = vst [vmem:[%s12266_s6 + $0x10] sm:$0x4] %v3472_v4  ;;  %v3175_v39 = vpack.c.bf16 %v3167_v63, %v3167_v63  ;;  %v13976_v38 = vadd.f32 %v5355_v3, %v11751_v42  ;;  %v3170_v50 = vadd.f32 %v3169_v31, %v3134_v62  ;;  %v17164_v36 = vsub.f32 0.0, %v13895_v1 }
 0x369   : > { %v5452_v16 = vmul.f32 %v11153_v15, %v13883_v53  ;;  %3476 = vst [vmem:[%s12266_s6 + $0x18] sm:$0x4] %v3475_v43  ;;  %v3484_v57 = vsel %vm13932_vm5, %v3329_v48, %v3483_v55  ;;  %v3487_v54 = vsel %vm13932_vm5, %v3333_v8, %v3486_v22  ;;  %10378 = vmatmul.msk.bf16.gmra.mxu0 %vm537_vm7, %v5481_v5  ;;  %11154 = vpow2.f32 %v5402_v30 }
 0x36a   : > { %v13980_v47 = vmul.f32 1.442695, %v17164_v36  ;;  %3479 = vst [vmem:[%s12266_s6 + $0x20] sm:$0x4] %v3478_v44  ;;  %v3183_v46 = vrot.slane %v3175_v39, 3  ;;  %v5374_v63 = vsub.f32 0.0, %v13976_v38  ;;  %v13991_v3 = vpack.c.bf16 %v3170_v50, %v3170_v50  ;;  %v5357_v31 = vpop.f32.mrf.mxu3  ;;  %v14011_v55 = vpop.f32.mrf.mxu1 }
 0x36b   : > { %v13994_v53 = vmul.f32 %v11151_v40, %v13823_v37  ;;  %v13997_v52 = vadd.f32 1.0, %v13925_v20  ;;  %v5468_v12 = vpack.c.bf16 %v5452_v16, %v5452_v16  ;;  %3482 = vst [vmem:[%s12266_s6 + $0x28] sm:$0x4] %v3481_v2  ;;  %v14001_v8 = vadd.f32 %v5357_v31, %v17158_v41  ;;  %v3489_v31 = vld [vmem:[%s12266_s6 + $0x40] sm:$0x4] }
 0x36c   : > { %3485 = vst [vmem:[%s12266_s6 + $0x30] sm:$0x4] %v3484_v57  ;;  %v3201_v56 = vsel %vm817_vm8, %v3175_v39, %v3183_v46  ;;  %v3203_v48 = vsel %vm501_vm0, %v3175_v39, %v3183_v46  ;;  %v3206_v24 = vsel %vm504_vm1, %v3175_v39, %v3183_v46  ;;  %v3209_v4 = vsel %vm507_vm2, %v3175_v39, %v3183_v46 }
 0x36d   : > { %v14008_v43 = vunpack.c.l.b16 %v5468_v12  ;;  %3488 = vst [vmem:[%s12266_s6 + $0x38] sm:$0x4] %v3487_v54  ;;  %v3205_v37 = vrot.slane %v3203_v48, 1  ;;  %v3208_v40 = vrot.slane %v3206_v24, 2  ;;  %v3211_v20 = vrot.slane %v3209_v4, 3 }
 0x36e   : > { %v3247_v22 = vunpack.i.h.s16 %v3201_v56  ;;  %v10257_v62 = vpack.i.b16 %v3201_v56, %v3201_v56  ;;  %v5404_v5 = vmul.f32 1.442695, %v5374_v63  ;;  %v3184_v44 = vrot.slane %v13991_v3, 3  ;;  %v3136_v2 = vpop.f32.mrf.mxu0  ;;  %v3492_v63 = vld [vmem:[%s12266_s6 + $0x48] sm:$0x4] }
 0x36f   : > { %v3249_v15 = vunpack.i.h.s16 %v3205_v37  ;;  %v3251_v30 = vunpack.i.h.s16 %v3208_v40  ;;  %v3253_v39 = vunpack.i.h.s16 %v3211_v20  ;;  %v10258_v50 = vpack.i.b16 %v3205_v37, %v3205_v37  ;;  %v11155_v36 = vpop.eup %11154  ;;  %v3495_v4 = vld [vmem:[%s12266_s6 + $0x50] sm:$0x4] }
 0x370   : > { %v3279_v16 = vpack.i.b16 %v3247_v22, %v3247_v22  ;;  %v10259_v57 = vpack.i.b16 %v3208_v40, %v3208_v40  ;;  %v10260_v54 = vpack.i.b16 %v3211_v20, %v3211_v20  ;;  %v3337_v46 = vperm.slane %v10257_v62, %v17163_v11  ;;  %v3504_v62 = vld [vmem:[%s12266_s6 + $0x68] sm:$0x4] }
 0x371   : > { %v5421_v12 = vadd.f32 1.0, %v11155_v36  ;;  %v3281_v56 = vpack.i.b16 %v3249_v15, %v3249_v15  ;;  %v3283_v48 = vpack.i.b16 %v3251_v30, %v3251_v30  ;;  %v3285_v24 = vpack.i.b16 %v3253_v39, %v3253_v39  ;;  %v3510_v36 = vld [vmem:[%s12266_s6 + $0x78] sm:$0x4] }
 0x372   : > { %v3341_v37 = vperm.slane %v3279_v16, %v17163_v11  ;;  %v3345_v22 = vperm.slane %v10258_v50, %v17163_v11  ;;  %v3353_v40 = vperm.slane %v10259_v57, %v17163_v11  ;;  %v3361_v20 = vperm.slane %v10260_v54, %v17163_v11 }
 0x373   : > { %11156 = vrcp.f32 %v5421_v12  ;;  %v3349_v15 = vperm.slane %v3281_v56, %v17163_v11  ;;  %v3357_v30 = vperm.slane %v3283_v48, %v17163_v11  ;;  %v3365_v39 = vperm.slane %v3285_v24, %v17163_v11  ;;  %v17165_v12 = vld [vmem:[#allocation43_spill] sm:$0xff]  ;;  %v17166_v56 = vld [vmem:[#allocation44_spill] sm:$0xff] }
 0x374   : > { %v3490_v50 = vsel %vm13932_vm5, %v3337_v46, %v3489_v31  ;;  %v3493_v16 = vsel %vm13932_vm5, %v3341_v37, %v3492_v63  ;;  %v3496_v57 = vsel %vm13932_vm5, %v3345_v22, %v3495_v4  ;;  %v3502_v54 = vsel %vm13932_vm5, %v3353_v40, %v3501_v14  ;;  %v14049_v63 = vpop.f32.mrf.mxu3  ;;  %v3621_v40 = vpop.f32.mrf.mxu1 }
 0x375   : > { %v17167_v25 = vpack.c.b16 %v17165_v12, %v17166_v56  ;;  %3491 = vst [vmem:[%s12266_s6 + $0x40] sm:$0x4] %v3490_v50  ;;  %v3499_v48 = vsel %vm13932_vm5, %v3349_v15, %v3498_v29  ;;  %v3505_v46 = vsel %vm13932_vm5, %v3357_v30, %v3504_v62  ;;  %v3508_v31 = vsel %vm13932_vm5, %v3361_v20, %v3507_v0  ;;  %v3513_v56 = vld [vmem:[%s12266_s6 + $0x80] sm:$0x4] }
 0x376   : > { %11158 = vpow2.f32 %v5404_v5  ;;  %3494 = vst [vmem:[%s12266_s6 + $0x48] sm:$0x4] %v3493_v16  ;;  %v3511_v14 = vsel %vm13932_vm5, %v3365_v39, %v3510_v36  ;;  %v3216_v29 = vsel %vm501_vm0, %v13991_v3, %v3184_v44  ;;  %v3219_v24 = vsel %vm504_vm1, %v13991_v3, %v3184_v44  ;;  %v14060_v4 = vpop.f32.mrf.mxu0 }
 0x377   : > { %10443 = vmatmul.msk.bf16.vlgmr.msra.gmra.mxu1 %vm537_vm7, %v17167_v25  ;;  %v3214_v25 = vsel %vm817_vm8, %v13991_v3, %v3184_v44  ;;  %3497 = vst [vmem:[%s12266_s6 + $0x50] sm:$0x4] %v3496_v57  ;;  %v3218_v0 = vrot.slane %v3216_v29, 1  ;;  %v3221_v5 = vrot.slane %v3219_v24, 2  ;;  %v3222_v37 = vsel %vm507_vm2, %v13991_v3, %v3184_v44  ;;  %v3516_v29 = vld [vmem:[%s12266_s6 + $0x88] sm:$0x4] }
 0x378   : > { %v3255_v22 = vunpack.i.h.s16 %v3214_v25  ;;  %7888 = vmatpush.bf16.msra.mxu1 %v13783_v60  ;;  %3500 = vst [vmem:[%s12266_s6 + $0x58] sm:$0x4] %v3499_v48  ;;  %v3224_v20 = vrot.slane %v3222_v37, 3  ;;  %v10261_v62 = vpack.i.b16 %v3214_v25, %v3214_v25  ;;  %v5375_v15 = vsub.f32 0.0, %v14001_v8  ;;  %v3519_v24 = vld [vmem:[%s12266_s6 + $0x90] sm:$0x4] }
 0x379   : > { %v3172_v30 = vadd.f32 %v14011_v55, %v3136_v2  ;;  %v11157_v39 = vpop.eup %11156  ;;  %3503 = vst [vmem:[%s12266_s6 + $0x60] sm:$0x4] %v3502_v54  ;;  %v3257_v36 = vunpack.i.h.s16 %v3218_v0  ;;  %v3259_v50 = vunpack.i.h.s16 %v3221_v5  ;;  %v10262_v44 = vpack.i.b16 %v3218_v0, %v3218_v0  ;;  %v3522_v37 = vld [vmem:[%s12266_s6 + $0x98] sm:$0x4] }
 0x37a   : > { %v3287_v3 = vpack.i.b16 %v3255_v22, %v3255_v22  ;;  %v5453_v60 = vmul.f32 %v11157_v39, %v13914_v6  ;;  %3506 = vst [vmem:[%s12266_s6 + $0x68] sm:$0x4] %v3505_v46  ;;  %v3261_v16 = vunpack.i.h.s16 %v3224_v20  ;;  %v10263_v57 = vpack.i.b16 %v3221_v5, %v3221_v5  ;;  %v3525_v39 = vld [vmem:[%s12266_s6 + $0xa0] sm:$0x4] }
 0x37b   : > { %v10264_v12 = vpack.i.b16 %v3224_v20, %v3224_v20  ;;  %3509 = vst [vmem:[%s12266_s6 + $0x70] sm:$0x4] %v3508_v31  ;;  %v3289_v55 = vpack.i.b16 %v3257_v36, %v3257_v36  ;;  %v3291_v2 = vpack.i.b16 %v3259_v50, %v3259_v50  ;;  %v3369_v54 = vperm.slane %v10261_v62, %v17163_v11  ;;  %v3528_v36 = vld [vmem:[%s12266_s6 + $0xa8] sm:$0x4] }
 0x37c   : > { %v11159_v48 = vpop.eup %11158  ;;  %v3373_v25 = vperm.slane %v3287_v3, %v17163_v11  ;;  %v5469_v0 = vpack.c.bf16 %v5453_v60, %v5453_v60  ;;  %3512 = vst [vmem:[%s12266_s6 + $0x78] sm:$0x4] %v3511_v14  ;;  %v3293_v46 = vpack.i.b16 %v3261_v16, %v3261_v16  ;;  %v3377_v5 = vperm.slane %v10262_v44, %v17163_v11 }
 0x37d   : > { %v5422_v6 = vadd.f32 1.0, %v11159_v48  ;;  %v3381_v31 = vperm.slane %v3289_v55, %v17163_v11  ;;  %v3385_v22 = vperm.slane %v10263_v57, %v17163_v11  ;;  %v3389_v20 = vperm.slane %v3291_v2, %v17163_v11  ;;  %v3534_v48 = vld [vmem:[%s12266_s6 + $0xb8] sm:$0x4]  ;;  %v7680_v55 = vpop.f32.mrf.mxu3 }
 0x37e   : > { %v3393_v62 = vperm.slane %v10264_v12, %v17163_v11  ;;  %v5931_v14 = vunpack.c.l.b16 %v5469_v0  ;;  %v3397_v50 = vperm.slane %v3293_v46, %v17163_v11  ;;  %v3514_v3 = vsel %vm13932_vm5, %v3369_v54, %v3513_v56  ;;  %v3531_v12 = vld [vmem:[%s12266_s6 + $0xb0] sm:$0x4] }
 0x37f   : > { %11160 = vrcp.f32 %v5422_v6  ;;  %3515 = vst [vmem:[%s12266_s6 + $0x80] sm:$0x4] %v3514_v3  ;;  %v3517_v60 = vsel %vm13932_vm5, %v3373_v25, %v3516_v29  ;;  %v3520_v16 = vsel %vm13932_vm5, %v3377_v5, %v3519_v24  ;;  %v3523_v57 = vsel %vm13932_vm5, %v3381_v31, %v3522_v37  ;;  %v3588_v29 = vpop.f32.mrf.mxu0  ;;  %v17168_v6 = vld [vmem:[#allocation15_spill] sm:$0xff] }
 0x380   : > { %v9006_v56 = vpack.c.bf16 %v13994_v53, %v13994_v53  ;;  %v5934_v2 = vpack.c.b16 %v5931_v14, %v14008_v43  ;;  %3518 = vst [vmem:[%s12266_s6 + $0x88] sm:$0x4] %v3517_v60  ;;  %v3526_v54 = vsel %vm13932_vm5, %v3385_v22, %v3525_v39  ;;  %v3529_v25 = vsel %vm13932_vm5, %v3389_v20, %v3528_v36  ;;  %v3623_v43 = vpop.f32.mrf.mxu1  ;;  %v17170_v39 = vld [vmem:[#allocation25_spill] sm:$0xff]  ;;  %v17171_v36 = vld [vmem:[#allocation26_spill] sm:$0xff] }
 0x381   : > { %3521 = vst [vmem:[%s12266_s6 + $0x90] sm:$0x4] %v3520_v16  ;;  %v5406_v24 = vmul.f32 1.442695, %v5375_v15  ;;  %v3177_v0 = vpack.c.bf16 %v3172_v30, %v3172_v30  ;;  %v14112_v46 = vadd.f32 %v14049_v63, %v17168_v6  ;;  %v3622_v53 = vadd.f32 %v3621_v40, %v14060_v4  ;;  %v17169_v15 = vld [vmem:[#allocation16_spill] sm:$0xff] }
 0x382   : > { %11162 = vpow2.f32 %v13980_v47  ;;  %3524 = vst [vmem:[%s12266_s6 + $0x98] sm:$0x4] %v3523_v57  ;;  %v3532_v5 = vsel %vm13932_vm5, %v3393_v62, %v3531_v12  ;;  %v3535_v37 = vsel %vm13932_vm5, %v3397_v50, %v3534_v48  ;;  %10397 = vmatmul.msk.bf16.vlgmr.msra.gmra.mxu0 %vm537_vm7, %v5934_v2  ;;  %v14123_v30 = vadd.f32 %v7680_v55, %v17169_v15 }
 0x383   : > { %3527 = vst [vmem:[%s12266_s6 + $0xa0] sm:$0x4] %v3526_v54  ;;  %11164 = vpow2.f32 %v5406_v24  ;;  %v3185_v63 = vrot.slane %v3177_v0, 3  ;;  %v7718_v47 = vsub.f32 0.0, %v14112_v46  ;;  %v3624_v4 = vadd.f32 %v3623_v43, %v3588_v29  ;;  %7128 = vmatpush.bf16.msra.mxu0 %v13910_v33 }
 0x384   : > { %v14128_v31 = vunpack.c.l.b16 %v9006_v56  ;;  %11166 = vrcp.f32 %v13997_v52  ;;  %3530 = vst [vmem:[%s12266_s6 + $0xa8] sm:$0x4] %v3529_v25  ;;  %v14132_v22 = vpack.c.bf16 %v3622_v53, %v3622_v53  ;;  %v7719_v20 = vsub.f32 0.0, %v14123_v30 }
 0x385   : > { %v11161_v40 = vpop.eup %11160  ;;  %3533 = vst [vmem:[%s12266_s6 + $0xb0] sm:$0x4] %v3532_v5  ;;  %v17172_v14 = vpack.c.b16 %v17170_v39, %v17171_v36  ;;  %v3227_v50 = vsel %vm817_vm8, %v3177_v0, %v3185_v63  ;;  %v3229_v3 = vsel %vm501_vm0, %v3177_v0, %v3185_v63  ;;  %v7734_v60 = vmul.f32 1.442695, %v7718_v47 }
 0x386   : > { %v5454_v62 = vmul.f32 %v11161_v40, %v13976_v38  ;;  %3536 = vst [vmem:[%s12266_s6 + $0xb8] sm:$0x4] %v3535_v37  ;;  %v3231_v52 = vrot.slane %v3229_v3, 1  ;;  %v3232_v16 = vsel %vm504_vm1, %v3177_v0, %v3185_v63  ;;  %v3235_v57 = vsel %vm507_vm2, %v3177_v0, %v3185_v63  ;;  %v3540_v40 = vld [vmem:[%s12266_s6 + $0xc8] sm:$0x4] }
 0x387   : > { %10444 = vmatmul.msk.bf16.gmra.mxu1 %vm537_vm7, %v17172_v14  ;;  %v3263_v12 = vunpack.i.h.s16 %v3227_v50  ;;  %v3234_v48 = vrot.slane %v3232_v16, 2  ;;  %v3237_v38 = vrot.slane %v3235_v57, 3  ;;  %v10265_v55 = vpack.i.b16 %v3227_v50, %v3227_v50  ;;  %v3543_v50 = vld [vmem:[%s12266_s6 + $0xd0] sm:$0x4]  ;;  %v3546_v3 = vld [vmem:[%s12266_s6 + $0xd8] sm:$0x4] }
 0x388   : > { %v14146_v56 = vpack.c.bf16 %v3624_v4, %v3624_v4  ;;  %v14148_v2 = vpop.eup %11162  ;;  %v3265_v54 = vunpack.i.h.s16 %v3231_v52  ;;  %v10266_v29 = vpack.i.b16 %v3231_v52, %v3231_v52  ;;  %11168 = vpow2.f32 %v7734_v60  ;;  %v3537_v4 = vld [vmem:[%s12266_s6 + $0xc0] sm:$0x4]  ;;  %v7683_v60 = vpop.f32.mrf.mxu3 }
 0x389   : > { %v3295_v25 = vpack.i.b16 %v3263_v12, %v3263_v12  ;;  %v11165_v24 = vpop.eup %11164  ;;  %v5470_v6 = vpack.c.bf16 %v5454_v62, %v5454_v62  ;;  %v3267_v53 = vunpack.i.h.s16 %v3234_v48  ;;  %v3269_v0 = vunpack.i.h.s16 %v3237_v38  ;;  %v3549_v12 = vld [vmem:[%s12266_s6 + $0xe0] sm:$0x4] }
 0x38a   : > { %v10267_v43 = vpack.i.b16 %v3234_v48, %v3234_v48  ;;  %v14150_v5 = vpop.eup %11166  ;;  %v5423_v37 = vadd.f32 1.0, %v11165_v24  ;;  %v3297_v15 = vpack.i.b16 %v3265_v54, %v3265_v54  ;;  %v10268_v63 = vpack.i.b16 %v3237_v38, %v3237_v38  ;;  %v3555_v48 = vld [vmem:[%s12266_s6 + $0xf0] sm:$0x4]  ;;  %v3558_v24 = vld [vmem:[%s12266_s6 + $0xf8] sm:$0x4] }
 0x38b   : > { %v3401_v47 = vperm.slane %v10265_v55, %v17163_v11  ;;  %v3299_v39 = vpack.i.b16 %v3267_v53, %v3267_v53  ;;  %v3301_v36 = vpack.i.b16 %v3269_v0, %v3269_v0  ;;  %v3405_v14 = vperm.slane %v3295_v25, %v17163_v11 }
 0x38c   : > { %v3409_v62 = vperm.slane %v10266_v29, %v17163_v11  ;;  %11170 = vrcp.f32 %v5423_v37  ;;  %v3413_v52 = vperm.slane %v3297_v15, %v17163_v11  ;;  %v3417_v16 = vperm.slane %v10267_v43, %v17163_v11  ;;  %v3552_v29 = vld [vmem:[%s12266_s6 + $0xe8] sm:$0x4]  ;;  %v17173_v15 = vld [vmem:[#allocation17_spill] sm:$0xff] }
 0x38d   : > { %v3425_v57 = vperm.slane %v10268_v63, %v17163_v11  ;;  %v3421_v38 = vperm.slane %v3299_v39, %v17163_v11  ;;  %v3429_v55 = vperm.slane %v3301_v36, %v17163_v11  ;;  %v3538_v54 = vsel %vm13932_vm5, %v3401_v47, %v3537_v4 }
 0x38e   : > { %v3541_v25 = vsel %vm13932_vm5, %v3405_v14, %v3540_v40  ;;  %v11169_v53 = vpop.eup %11168  ;;  %v14172_v0 = vunpack.c.l.b16 %v5470_v6  ;;  %3539 = vst [vmem:[%s12266_s6 + $0xc0] sm:$0x4] %v3538_v54  ;;  %v3544_v43 = vsel %vm13932_vm5, %v3409_v62, %v3543_v50  ;;  %v3547_v37 = vsel %vm13932_vm5, %v3413_v52, %v3546_v3  ;;  %v3626_v50 = vpop.f32.mrf.mxu1 }
 0x38f   : > { %v14180_v63 = vadd.f32 %v7683_v60, %v17173_v15  ;;  %3542 = vst [vmem:[%s12266_s6 + $0xc8] sm:$0x4] %v3541_v25  ;;  %v3550_v47 = vsel %vm13932_vm5, %v3417_v16, %v3549_v12  ;;  %v3556_v4 = vsel %vm13932_vm5, %v3425_v57, %v3555_v48  ;;  %v7766_v6 = vadd.f32 1.0, %v11169_v53  ;;  %v3591_v16 = vpop.f32.mrf.mxu0 }
 0x390   : > { %v3639_v40 = vrot.slane %v14132_v22, 3  ;;  %3545 = vst [vmem:[%s12266_s6 + $0xd0] sm:$0x4] %v3544_v43  ;;  %v3553_v39 = vsel %vm13932_vm5, %v3421_v38, %v3552_v29  ;;  %v3559_v36 = vsel %vm13932_vm5, %v3429_v55, %v3558_v24  ;;  %v7736_v14 = vmul.f32 1.442695, %v7719_v20 }
 0x391   : > { %v14196_v62 = vrot.slane %v14146_v56, 3  ;;  %3548 = vst [vmem:[%s12266_s6 + $0xd8] sm:$0x4] %v3547_v37  ;;  %11172 = vrcp.f32 %v7766_v6 }
 0x392   : > { %v3645_v3 = vsel %vm817_vm8, %v14132_v22, %v3639_v40  ;;  %v3647_v60 = vsel %vm501_vm0, %v14132_v22, %v3639_v40  ;;  %v3650_v52 = vsel %vm504_vm1, %v14132_v22, %v3639_v40  ;;  %v11171_v57 = vpop.eup %11170  ;;  %3551 = vst [vmem:[%s12266_s6 + $0xe0] sm:$0x4] %v3550_v47  ;;  %v3653_v48 = vsel %vm507_vm2, %v14132_v22, %v3639_v40 }
 0x393   : > { %v3649_v20 = vrot.slane %v3647_v60, 1  ;;  %v3652_v12 = vrot.slane %v3650_v52, 2  ;;  %v3696_v38 = vunpack.i.h.s16 %v3645_v3  ;;  %v5455_v55 = vmul.f32 %v11171_v57, %v14001_v8  ;;  %3554 = vst [vmem:[%s12266_s6 + $0xe8] sm:$0x4] %v3553_v39  ;;  %v17174_v60 = vld [vmem:[#allocation49_spill] sm:$0xff]  ;;  %v17175_v52 = vld [vmem:[#allocation50_spill] sm:$0xff]  ;;  %v14216_v8 = vpop.f32.mrf.mxu3 }
 0x394   : > { %v3655_v54 = vrot.slane %v3653_v48, 3  ;;  %v10273_v25 = vpack.i.b16 %v3645_v3, %v3645_v3  ;;  %11174 = vpow2.f32 %v7736_v14  ;;  %3557 = vst [vmem:[%s12266_s6 + $0xf0] sm:$0x4] %v3556_v4  ;;  %v17176_v22 = vpack.c.b16 %v17174_v60, %v17175_v52  ;;  %v14229_v3 = vld [vmem:[%s16937_s3] sm:$0xff]  ;;  %v3930_v52 = vld [vmem:[%s12266_s6 + $0x18] sm:$0x4] }
 0x395   : > { %v3698_v29 = vunpack.i.h.s16 %v3649_v20  ;;  %v3700_v24 = vunpack.i.h.s16 %v3652_v12  ;;  %v3728_v53 = vpack.i.b16 %v3696_v38, %v3696_v38  ;;  %v10274_v43 = vpack.i.b16 %v3649_v20, %v3649_v20  ;;  %3560 = vst [vmem:[%s12266_s6 + $0xf8] sm:$0x4] %v3559_v36 }
 0x396   : > { %v5471_v37 = vpack.c.bf16 %v5455_v55, %v5455_v55  ;;  %v3702_v15 = vunpack.i.h.s16 %v3655_v54  ;;  %v10275_v47 = vpack.i.b16 %v3652_v12, %v3652_v12  ;;  %v10276_v6 = vpack.i.b16 %v3655_v54, %v3655_v54 }
 0x397   : > { %10463 = vmatmul.msk.bf16.vlgmr.msrb.gmra.mxu1 %vm537_vm7, %v17176_v22  ;;  %v3730_v40 = vpack.i.b16 %v3698_v29, %v3698_v29  ;;  %v3732_v4 = vpack.i.b16 %v3700_v24, %v3700_v24  ;;  %v3762_v39 = vperm.slane %v10273_v25, %v17163_v11  ;;  %v3766_v14 = vperm.slane %v3728_v53, %v17163_v11  ;;  %v11173_v57 = vpop.eup %11172  ;;  %v3921_v29 = vld [vmem:[%s12266_s6] sm:$0x4]  ;;  %v3924_v24 = vld [vmem:[%s12266_s6 + $0x8] sm:$0x4] }
 0x398   : > { %v17177_v36 = vmov 0  ;;  %8342 = vmatpush.bf16.msrb.mxu1 %v14229_v3  ;;  %v5933_v20 = vunpack.c.l.b16 %v5471_v37  ;;  %v3734_v12 = vpack.i.b16 %v3702_v15, %v3702_v15  ;;  %v3770_v48 = vperm.slane %v10274_v43, %v17163_v11  ;;  %v3933_v22 = vld [vmem:[%s12266_s6 + $0x20] sm:$0x4] }
 0x399   : > { %v17178_v36 = vsel %vm14222_vm14, 4294967295, %v17177_v36  ;;  %v3778_v38 = vperm.slane %v10275_v47, %v17163_v11  ;;  %v3774_v55 = vperm.slane %v3730_v40, %v17163_v11  ;;  %v3782_v54 = vperm.slane %v3732_v4, %v17163_v11 }
 0x39a   : > { %17179 = vst [vmem:[#allocation36_spill] sm:$0xff] %v17178_v36  ;;  %v3786_v25 = vperm.slane %v10276_v6, %v17163_v11  ;;  %v7720_v53 = vsub.f32 0.0, %v14180_v63  ;;  %v11175_v37 = vpop.eup %11174  ;;  %v5935_v15 = vpack.c.b16 %v5933_v20, %v14172_v0  ;;  %v3790_v43 = vperm.slane %v3734_v12, %v17163_v11  ;;  %v3927_v6 = vld [vmem:[%s12266_s6 + $0x10] sm:$0x4]  ;;  %v3936_v20 = vld [vmem:[%s12266_s6 + $0x28] sm:$0x4] }
 0x39b   : > { %v3922_v47 = vsel %vm14222_vm14, %v3762_v39, %v3921_v29  ;;  %v3925_v60 = vsel %vm14222_vm14, %v3766_v14, %v3924_v24  ;;  %v14250_v40 = vmul.f32 %v11173_v57, %v14112_v46  ;;  %v3928_v0 = vsel %vm14222_vm14, %v3770_v48, %v3927_v6  ;;  %v3939_v39 = vld [vmem:[%s12266_s6 + $0x30] sm:$0x4]  ;;  %v14261_v14 = vpop.f32.mrf.mxu1  ;;  %v3942_v29 = vld [vmem:[%s12266_s6 + $0x38] sm:$0x4]  ;;  %v14272_v24 = vpop.f32.mrf.mxu0 }
 0x39c   : > { %3923 = vst [vmem:[%s12266_s6] sm:$0x4] %v3922_v47  ;;  %v3931_v4 = vsel %vm14222_vm14, %v3774_v55, %v3930_v52  ;;  %v14259_v12 = vadd.f32 %v3626_v50, %v3591_v16  ;;  %v3934_v46 = vsel %vm14222_vm14, %v3778_v38, %v3933_v22  ;;  %v3937_v57 = vsel %vm14222_vm14, %v3782_v54, %v3936_v20  ;;  %v7688_v20 = vpop.f32.mrf.mxu3 }
 0x39d   : > { %3926 = vst [vmem:[%s12266_s6 + $0x8] sm:$0x4] %v3925_v60  ;;  %v3940_v48 = vsel %vm14222_vm14, %v3786_v25, %v3939_v39  ;;  %v7767_v55 = vadd.f32 1.0, %v11175_v37  ;;  %10398 = vmatmul.msk.bf16.gmra.mxu0 %vm537_vm7, %v5935_v15  ;;  %v3943_v50 = vsel %vm14222_vm14, %v3790_v43, %v3942_v29  ;;  %v3658_v16 = vsel %vm817_vm8, %v14146_v56, %v14196_v62 }
 0x39e   : > { %3929 = vst [vmem:[%s12266_s6 + $0x10] sm:$0x4] %v3928_v0  ;;  %v3660_v38 = vsel %vm501_vm0, %v14146_v56, %v14196_v62  ;;  %v3663_v54 = vsel %vm504_vm1, %v14146_v56, %v14196_v62  ;;  %v3666_v15 = vsel %vm507_vm2, %v14146_v56, %v14196_v62  ;;  %v3704_v47 = vunpack.i.h.s16 %v3658_v16 }
 0x39f   : > { %3932 = vst [vmem:[%s12266_s6 + $0x18] sm:$0x4] %v3931_v4  ;;  %11176 = vrcp.f32 %v7767_v55  ;;  %v3662_v25 = vrot.slane %v3660_v38, 1  ;;  %v3665_v37 = vrot.slane %v3663_v54, 2  ;;  %v3668_v43 = vrot.slane %v3666_v15, 3 }
 0x3a0   : > { %3935 = vst [vmem:[%s12266_s6 + $0x20] sm:$0x4] %v3934_v46  ;;  %v10277_v60 = vpack.i.b16 %v3658_v16, %v3658_v16  ;;  %v7738_v6 = vmul.f32 1.442695, %v7720_v53  ;;  %v3736_v29 = vpack.i.b16 %v3704_v47, %v3704_v47  ;;  %v3945_v16 = vld [vmem:[%s12266_s6 + $0x40] sm:$0x4]  ;;  %v7814_v15 = vpack.c.bf16 %v14250_v40, %v14250_v40 }
 0x3a1   : > { %3938 = vst [vmem:[%s12266_s6 + $0x28] sm:$0x4] %v3937_v57  ;;  %v3706_v52 = vunpack.i.h.s16 %v3662_v25  ;;  %v3708_v22 = vunpack.i.h.s16 %v3665_v37  ;;  %v10278_v0 = vpack.i.b16 %v3662_v25, %v3662_v25  ;;  %v10279_v4 = vpack.i.b16 %v3665_v37, %v3665_v37  ;;  %v3954_v40 = vld [vmem:[%s12266_s6 + $0x58] sm:$0x4] }
 0x3a2   : > { %3941 = vst [vmem:[%s12266_s6 + $0x30] sm:$0x4] %v3940_v48  ;;  %v3710_v39 = vunpack.i.h.s16 %v3668_v43  ;;  %v10280_v55 = vpack.i.b16 %v3668_v43, %v3668_v43  ;;  %v3794_v56 = vperm.slane %v10277_v60, %v17163_v11  ;;  %v3798_v48 = vperm.slane %v3736_v29, %v17163_v11  ;;  %v3948_v60 = vld [vmem:[%s12266_s6 + $0x48] sm:$0x4] }
 0x3a3   : > { %3944 = vst [vmem:[%s12266_s6 + $0x38] sm:$0x4] %v3943_v50  ;;  %v3738_v62 = vpack.i.b16 %v3706_v52, %v3706_v52  ;;  %v3740_v46 = vpack.i.b16 %v3708_v22, %v3708_v22  ;;  %v3802_v53 = vperm.slane %v10278_v0, %v17163_v11  ;;  %v3810_v57 = vperm.slane %v10279_v4, %v17163_v11  ;;  %v3951_v50 = vld [vmem:[%s12266_s6 + $0x50] sm:$0x4]  ;;  %v3957_v22 = vld [vmem:[%s12266_s6 + $0x60] sm:$0x4] }
 0x3a4   : > { %v3742_v38 = vpack.i.b16 %v3710_v39, %v3710_v39  ;;  %v3818_v54 = vperm.slane %v10280_v55, %v17163_v11  ;;  %v3946_v25 = vsel %vm14222_vm14, %v3794_v56, %v3945_v16  ;;  %v3949_v39 = vsel %vm14222_vm14, %v3798_v48, %v3948_v60  ;;  %v3960_v55 = vld [vmem:[%s12266_s6 + $0x68] sm:$0x4]  ;;  %v4348_v56 = vpop.f32.mrf.mxu1 }
 0x3a5   : > { %v11177_v37 = vpop.eup %11176  ;;  %v3806_v43 = vperm.slane %v3738_v62, %v17163_v11  ;;  %v3814_v47 = vperm.slane %v3740_v46, %v17163_v11  ;;  %3947 = vst [vmem:[%s12266_s6 + $0x40] sm:$0x4] %v3946_v25  ;;  %v3952_v52 = vsel %vm14222_vm14, %v3802_v53, %v3951_v50  ;;  %v3958_v29 = vsel %vm14222_vm14, %v3810_v57, %v3957_v22  ;;  %v3963_v46 = vld [vmem:[%s12266_s6 + $0x70] sm:$0x4]  ;;  %v17180_v16 = vld [vmem:[#allocation48_spill] sm:$0xff]  ;;  %v4313_v57 = vpop.f32.mrf.mxu0 }
 0x3a6   : > { %v7799_v0 = vmul.f32 %v11177_v37, %v14123_v30  ;;  %v3822_v4 = vperm.slane %v3742_v38, %v17163_v11  ;;  %3953 = vst [vmem:[%s12266_s6 + $0x50] sm:$0x4] %v3952_v52  ;;  %11178 = vpow2.f32 %v7738_v6  ;;  %v3633_v53 = vpack.c.bf16 %v14259_v12, %v14259_v12  ;;  %v17181_v38 = vld [vmem:[#allocation47_spill] sm:$0xff]  ;;  %v3966_v37 = vld [vmem:[%s12266_s6 + $0x78] sm:$0x4] }
 0x3a7   : > { %3950 = vst [vmem:[%s12266_s6 + $0x48] sm:$0x4] %v3949_v39  ;;  %v3955_v62 = vsel %vm14222_vm14, %v3806_v43, %v3954_v40  ;;  %v3961_v30 = vsel %vm14222_vm14, %v3814_v47, %v3960_v55  ;;  %v17182_v48 = vpack.c.b16 %v17180_v16, %v17181_v38  ;;  %v3964_v50 = vsel %vm14222_vm14, %v3818_v54, %v3963_v46  ;;  %v17183_v43 = vld [vmem:[#allocation19_spill] sm:$0xff]  ;;  %v14365_v40 = vpop.f32.mrf.mxu3 }
 0x3a8   : > { %v7815_v25 = vpack.c.bf16 %v7799_v0, %v7799_v0  ;;  %3956 = vst [vmem:[%s12266_s6 + $0x58] sm:$0x4] %v3955_v62  ;;  %v14339_v47 = vadd.f32 %v14216_v8, %v17183_v43  ;;  %v3629_v12 = vadd.f32 %v14261_v14, %v14272_v24  ;;  %v14344_v6 = vadd.f32 1.0, %v14148_v2  ;;  %v17184_v8 = vld [vmem:[#allocation24_spill] sm:$0xff] }
 0x3a9   : > { %10464 = vmatmul.msk.bf16.gmra.mxu1 %vm537_vm7, %v17182_v48  ;;  %v14346_v60 = vunpack.c.l.b16 %v7814_v15  ;;  %3959 = vst [vmem:[%s12266_s6 + $0x60] sm:$0x4] %v3958_v29  ;;  %v3967_v52 = vsel %vm14222_vm14, %v3822_v4, %v3966_v37  ;;  %v3641_v22 = vrot.slane %v3633_v53, 3  ;;  %v14356_v39 = vadd.f32 %v7688_v20, %v17184_v8  ;;  %v17185_v48 = vld [vmem:[#allocation51_spill] sm:$0xff] }
 0x3aa   : > { %3962 = vst [vmem:[%s12266_s6 + $0x68] sm:$0x4] %v3961_v30  ;;  %v7721_v54 = vsub.f32 0.0, %v14339_v47  ;;  %v14353_v0 = vpack.c.bf16 %v3629_v12, %v3629_v12  ;;  %v14358_v14 = vadd.f32 %v4348_v56, %v4313_v57  ;;  %v14367_v29 = vunpack.c.l.b16 %v7815_v25  ;;  %v17186_v57 = vld [vmem:[#allocation52_spill] sm:$0xff] }
 0x3ab   : > { %3965 = vst [vmem:[%s12266_s6 + $0x70] sm:$0x4] %v3964_v50  ;;  %v3671_v2 = vsel %vm817_vm8, %v3633_v53, %v3641_v22  ;;  %v3673_v24 = vsel %vm501_vm0, %v3633_v53, %v3641_v22  ;;  %v3676_v15 = vsel %vm504_vm1, %v3633_v53, %v3641_v22  ;;  %v3679_v4 = vsel %vm507_vm2, %v3633_v53, %v3641_v22 }
 0x3ac   : > { %3968 = vst [vmem:[%s12266_s6 + $0x78] sm:$0x4] %v3967_v52  ;;  %v3675_v55 = vrot.slane %v3673_v24, 1  ;;  %v3678_v62 = vrot.slane %v3676_v15, 2  ;;  %v3681_v20 = vrot.slane %v3679_v4, 3  ;;  %v11179_v30 = vpop.eup %11178  ;;  %v3712_v56 = vunpack.i.h.s16 %v3671_v2  ;;  %v14376_v15 = vpop.f32.mrf.mxu1 }
 0x3ad   : > { %v10281_v46 = vpack.i.b16 %v3671_v2, %v3671_v2  ;;  %v7740_v16 = vmul.f32 1.442695, %v7721_v54  ;;  %v3642_v38 = vrot.slane %v14353_v0, 3  ;;  %v17187_v50 = vpack.c.b16 %v17185_v48, %v17186_v57  ;;  %v3972_v57 = vld [vmem:[%s12266_s6 + $0x88] sm:$0x4] }
 0x3ae   : > { %v7768_v53 = vadd.f32 1.0, %v11179_v30  ;;  %v3714_v37 = vunpack.i.h.s16 %v3675_v55  ;;  %v3716_v43 = vunpack.i.h.s16 %v3678_v62  ;;  %v3718_v25 = vunpack.i.h.s16 %v3681_v20 }
 0x3af   : > { %10441 = vmatmul.msk.bf16.vlgmr.msrb.gmra.mxu0 %vm537_vm7, %v17187_v50  ;;  %v3744_v12 = vpack.i.b16 %v3712_v56, %v3712_v56  ;;  %v10282_v52 = vpack.i.b16 %v3675_v55, %v3675_v55  ;;  %v10283_v22 = vpack.i.b16 %v3678_v62, %v3678_v62  ;;  %v10284_v8 = vpack.i.b16 %v3681_v20, %v3681_v20  ;;  %v3969_v62 = vld [vmem:[%s12266_s6 + $0x80] sm:$0x4]  ;;  %v3975_v50 = vld [vmem:[%s12266_s6 + $0x90] sm:$0x4] }
 0x3b0   : > { %7853 = vmatpush.bf16.msrb.mxu0 %v13910_v33  ;;  %11180 = vrcp.f32 %v7768_v53  ;;  %v3746_v54 = vpack.i.b16 %v3714_v37, %v3714_v37  ;;  %v3748_v2 = vpack.i.b16 %v3716_v43, %v3716_v43  ;;  %v3750_v24 = vpack.i.b16 %v3718_v25, %v3718_v25  ;;  %v3978_v53 = vld [vmem:[%s12266_s6 + $0x98] sm:$0x4] }
 0x3b1   : > { %v3826_v4 = vperm.slane %v10281_v46, %v17163_v11  ;;  %v3830_v30 = vperm.slane %v3744_v12, %v17163_v11  ;;  %v3834_v33 = vperm.slane %v10282_v52, %v17163_v11  ;;  %v3842_v55 = vperm.slane %v10283_v22, %v17163_v11  ;;  %v3984_v12 = vld [vmem:[%s12266_s6 + $0xa8] sm:$0x4]  ;;  %v3987_v52 = vld [vmem:[%s12266_s6 + $0xb0] sm:$0x4] }
 0x3b2   : > { %v7873_v20 = vpack.c.b16 %v14367_v29, %v14346_v60  ;;  %v3838_v56 = vperm.slane %v3746_v54, %v17163_v11  ;;  %v3846_v48 = vperm.slane %v3748_v2, %v17163_v11  ;;  %v3850_v46 = vperm.slane %v10284_v8, %v17163_v11  ;;  %v3981_v29 = vld [vmem:[%s12266_s6 + $0xa0] sm:$0x4] }
 0x3b3   : > { %v3854_v37 = vperm.slane %v3750_v24, %v17163_v11  ;;  %v3970_v43 = vsel %vm14222_vm14, %v3826_v4, %v3969_v62  ;;  %v3973_v25 = vsel %vm14222_vm14, %v3830_v30, %v3972_v57  ;;  %v3976_v60 = vsel %vm14222_vm14, %v3834_v33, %v3975_v50  ;;  %v14410_v24 = vpop.f32.mrf.mxu0 }
 0x3b4   : > { %3971 = vst [vmem:[%s12266_s6 + $0x80] sm:$0x4] %v3970_v43  ;;  %v3979_v22 = vsel %vm14222_vm14, %v3838_v56, %v3978_v53  ;;  %v3982_v8 = vsel %vm14222_vm14, %v3842_v55, %v3981_v29  ;;  %v3985_v54 = vsel %vm14222_vm14, %v3846_v48, %v3984_v12  ;;  %v3988_v2 = vsel %vm14222_vm14, %v3850_v46, %v3987_v52  ;;  %v14419_v55 = vpop.f32.mrf.mxu3  ;;  %v3990_v56 = vld [vmem:[%s12266_s6 + $0xb8] sm:$0x4] }
 0x3b5   : > { %3974 = vst [vmem:[%s12266_s6 + $0x88] sm:$0x4] %v3973_v25  ;;  %11182 = vpow2.f32 %v7740_v16  ;;  %v3684_v4 = vsel %vm817_vm8, %v14353_v0, %v3642_v38  ;;  %v3686_v30 = vsel %vm501_vm0, %v14353_v0, %v3642_v38  ;;  %v3689_v33 = vsel %vm504_vm1, %v14353_v0, %v3642_v38 }
 0x3b6   : > { %v11181_v62 = vpop.eup %11180  ;;  %3977 = vst [vmem:[%s12266_s6 + $0x90] sm:$0x4] %v3976_v60  ;;  %v3688_v48 = vrot.slane %v3686_v30, 1  ;;  %v3691_v46 = vrot.slane %v3689_v33, 2  ;;  %v3692_v16 = vsel %vm507_vm2, %v14353_v0, %v3642_v38  ;;  %v3720_v57 = vunpack.i.h.s16 %v3684_v4  ;;  %v4353_v33 = vpop.f32.mrf.mxu1 }
 0x3b7   : > { %v7800_v50 = vmul.f32 %v11181_v62, %v14180_v63  ;;  %3980 = vst [vmem:[%s12266_s6 + $0x98] sm:$0x4] %v3979_v22  ;;  %v3991_v53 = vsel %vm14222_vm14, %v3854_v37, %v3990_v56  ;;  %v3694_v43 = vrot.slane %v3692_v16, 3  ;;  %v10285_v25 = vpack.i.b16 %v3684_v4, %v3684_v4 }
 0x3b8   : > { %3983 = vst [vmem:[%s12266_s6 + $0xa0] sm:$0x4] %v3982_v8  ;;  %v3722_v60 = vunpack.i.h.s16 %v3688_v48  ;;  %v3724_v29 = vunpack.i.h.s16 %v3691_v46  ;;  %v3752_v12 = vpack.i.b16 %v3720_v57, %v3720_v57  ;;  %v10286_v52 = vpack.i.b16 %v3688_v48, %v3688_v48  ;;  %v3993_v48 = vld [vmem:[%s12266_s6 + $0xc0] sm:$0x4] }
 0x3b9   : > { %10507 = vmatmul.msk.bf16.vlgmr.msra.gmra.mxu1 %vm537_vm7, %v7873_v20  ;;  %v7816_v0 = vpack.c.bf16 %v7800_v50, %v7800_v50  ;;  %3986 = vst [vmem:[%s12266_s6 + $0xa8] sm:$0x4] %v3985_v54  ;;  %v3726_v63 = vunpack.i.h.s16 %v3694_v43  ;;  %v10287_v38 = vpack.i.b16 %v3691_v46, %v3691_v46  ;;  %v10288_v22 = vpack.i.b16 %v3694_v43, %v3694_v43  ;;  %v3999_v43 = vld [vmem:[%s12266_s6 + $0xd0] sm:$0x4] }
 0x3ba   : > { %9067 = vmatpush.bf16.msra.mxu1 %v14229_v3  ;;  %3989 = vst [vmem:[%s12266_s6 + $0xb0] sm:$0x4] %v3988_v2  ;;  %v3754_v37 = vpack.i.b16 %v3722_v60, %v3722_v60  ;;  %v3756_v4 = vpack.i.b16 %v3724_v29, %v3724_v29  ;;  %v3858_v20 = vperm.slane %v10285_v25, %v17163_v11  ;;  %v7722_v2 = vsub.f32 0.0, %v14356_v39 }
 0x3bb   : > { %v3862_v8 = vperm.slane %v3752_v12, %v17163_v11  ;;  %v11183_v30 = vpop.eup %11182  ;;  %3992 = vst [vmem:[%s12266_s6 + $0xb8] sm:$0x4] %v3991_v53  ;;  %v3758_v62 = vpack.i.b16 %v3726_v63, %v3726_v63  ;;  %v3866_v54 = vperm.slane %v10286_v52, %v17163_v11  ;;  %v3874_v56 = vperm.slane %v10287_v38, %v17163_v11  ;;  %v3996_v53 = vld [vmem:[%s12266_s6 + $0xc8] sm:$0x4]  ;;  %v4002_v52 = vld [vmem:[%s12266_s6 + $0xd8] sm:$0x4] }
 0x3bc   : > { %v7769_v46 = vadd.f32 1.0, %v11183_v30  ;;  %v3870_v16 = vperm.slane %v3754_v37, %v17163_v11  ;;  %v3878_v57 = vperm.slane %v3756_v4, %v17163_v11  ;;  %v3882_v50 = vperm.slane %v10288_v22, %v17163_v11  ;;  %v4005_v63 = vld [vmem:[%s12266_s6 + $0xe0] sm:$0x4]  ;;  %v4008_v4 = vld [vmem:[%s12266_s6 + $0xe8] sm:$0x4] }
 0x3bd   : > { %v3886_v25 = vperm.slane %v3758_v62, %v17163_v11  ;;  %v3994_v60 = vsel %vm14222_vm14, %v3858_v20, %v3993_v48  ;;  %v3997_v29 = vsel %vm14222_vm14, %v3862_v8, %v3996_v53  ;;  %v4000_v12 = vsel %vm14222_vm14, %v3866_v54, %v3999_v43  ;;  %v4318_v20 = vpop.f32.mrf.mxu0  ;;  %v7695_v62 = vpop.f32.mrf.mxu3  ;;  %v4014_v48 = vld [vmem:[%s12266_s6 + $0xf8] sm:$0x4] }
 0x3be   : > { %v17188_v38 = vpack.c.b16 %v13772_v13, %v13731_v35  ;;  %v14459_v22 = vunpack.c.l.b16 %v7816_v0  ;;  %11184 = vrcp.f32 %v7769_v46  ;;  %3995 = vst [vmem:[%s12266_s6 + $0xc0] sm:$0x4] %v3994_v60  ;;  %v4003_v37 = vsel %vm14222_vm14, %v3870_v16, %v4002_v52  ;;  %v4011_v13 = vld [vmem:[%s12266_s6 + $0xf0] sm:$0x4]  ;;  %v17189_v46 = vld [vmem:[#allocation28_spill] sm:$0xff] }
 0x3bf   : > { %3998 = vst [vmem:[%s12266_s6 + $0xc8] sm:$0x4] %v3997_v29  ;;  %v4006_v8 = vsel %vm14222_vm14, %v3874_v56, %v4005_v63  ;;  %v4009_v35 = vsel %vm14222_vm14, %v3878_v57, %v4008_v4  ;;  %v7742_v0 = vmul.f32 1.442695, %v7722_v2  ;;  %v4358_v30 = vpack.c.bf16 %v14358_v14, %v14358_v14  ;;  %v17190_v57 = vld [vmem:[#allocation29_spill] sm:$0xff]  ;;  %v14504_v4 = vpop.f32.mrf.mxu1 }
 0x3c0   : > { %10442 = vmatmul.msk.bf16.gmra.mxu0 %vm537_vm7, %v17188_v38  ;;  %4001 = vst [vmem:[%s12266_s6 + $0xd0] sm:$0x4] %v4000_v12  ;;  %v4012_v54 = vsel %vm14222_vm14, %v3882_v50, %v4011_v13  ;;  %v14479_v16 = vadd.f32 %v14365_v40, %v17189_v46  ;;  %v4351_v56 = vadd.f32 %v14376_v15, %v14410_v24  ;;  %v17191_v24 = vld [vmem:[#allocation32_spill] sm:$0xff] }
 0x3c1   : > { %v14485_v2 = vadd.f32 %v14419_v55, %v17190_v57  ;;  %4004 = vst [vmem:[%s12266_s6 + $0xd8] sm:$0x4] %v4003_v37  ;;  %v4015_v14 = vsel %vm14222_vm14, %v3886_v25, %v4014_v48  ;;  %11186 = vpow2.f32 %v7742_v0  ;;  %v4366_v53 = vrot.slane %v4358_v30, 3 }
 0x3c2   : > { %v4354_v50 = vadd.f32 %v4353_v33, %v4318_v20  ;;  %4007 = vst [vmem:[%s12266_s6 + $0xe0] sm:$0x4] %v4006_v8  ;;  %v7723_v43 = vsub.f32 0.0, %v14479_v16  ;;  %v14492_v40 = vpack.c.bf16 %v4351_v56, %v4351_v56  ;;  %v14496_v60 = vadd.f32 %v7695_v62, %v17191_v24 }
 0x3c3   : > { %v7724_v15 = vsub.f32 0.0, %v14485_v2  ;;  %4010 = vst [vmem:[%s12266_s6 + $0xe8] sm:$0x4] %v4009_v35  ;;  %v4372_v55 = vsel %vm817_vm8, %v4358_v30, %v4366_v53  ;;  %v4374_v29 = vsel %vm501_vm0, %v4358_v30, %v4366_v53  ;;  %v4377_v25 = vsel %vm504_vm1, %v4358_v30, %v4366_v53 }
 0x3c4   : > { %v4380_v33 = vsel %vm507_vm2, %v4358_v30, %v4366_v53  ;;  %v11185_v12 = vpop.eup %11184  ;;  %4013 = vst [vmem:[%s12266_s6 + $0xf0] sm:$0x4] %v4012_v54  ;;  %v4376_v52 = vrot.slane %v4374_v29, 1  ;;  %v4379_v63 = vrot.slane %v4377_v25, 2  ;;  %v4423_v37 = vunpack.i.h.s16 %v4372_v55  ;;  %v4649_v29 = vld [vmem:[%s12266_s6] sm:$0x8] }
 0x3c5   : > { %v4382_v38 = vrot.slane %v4380_v33, 3  ;;  %v7801_v20 = vmul.f32 %v11185_v12, %v14339_v47  ;;  %4016 = vst [vmem:[%s12266_s6 + $0xf8] sm:$0x4] %v4015_v14  ;;  %v10317_v8 = vpack.i.b16 %v4372_v55, %v4372_v55  ;;  %v7744_v35 = vmul.f32 1.442695, %v7723_v43  ;;  %v14516_v25 = vpop.f32.mrf.mxu0 }
 0x3c6   : > { %v4367_v13 = vrot.slane %v14492_v40, 3  ;;  %v4425_v0 = vunpack.i.h.s16 %v4376_v52  ;;  %v4427_v62 = vunpack.i.h.s16 %v4379_v63  ;;  %v4455_v30 = vpack.i.b16 %v4423_v37, %v4423_v37  ;;  %v4655_v37 = vld [vmem:[%s12266_s6 + $0x10] sm:$0x8] }
 0x3c7   : > { %v4429_v48 = vunpack.i.h.s16 %v4382_v38  ;;  %v11187_v46 = vpop.eup %11186  ;;  %v7817_v54 = vpack.c.bf16 %v7801_v20, %v7801_v20  ;;  %v10318_v56 = vpack.i.b16 %v4376_v52, %v4376_v52  ;;  %v10319_v57 = vpack.i.b16 %v4379_v63, %v4379_v63  ;;  %v4658_v20 = vld [vmem:[%s12266_s6 + $0x18] sm:$0x8] }
 0x3c8   : > { %v10320_v53 = vpack.i.b16 %v4382_v38, %v4382_v38  ;;  %v7770_v24 = vadd.f32 1.0, %v11187_v46  ;;  %v4457_v47 = vpack.i.b16 %v4425_v0, %v4425_v0  ;;  %v4459_v14 = vpack.i.b16 %v4427_v62, %v4427_v62  ;;  %v4652_v38 = vld [vmem:[%s12266_s6 + $0x8] sm:$0x8]  ;;  %v4661_v46 = vld [vmem:[%s12266_s6 + $0x20] sm:$0x8] }
 0x3c9   : > { %v4461_v43 = vpack.i.b16 %v4429_v48, %v4429_v48  ;;  %v7872_v33 = vunpack.c.l.b16 %v7817_v54  ;;  %v4489_v12 = vperm.slane %v10317_v8, %v17163_v11  ;;  %v4493_v52 = vperm.slane %v4455_v30, %v17163_v11  ;;  %v4664_v54 = vld [vmem:[%s12266_s6 + $0x28] sm:$0x8]  ;;  %v4667_v8 = vld [vmem:[%s12266_s6 + $0x30] sm:$0x8] }
 0x3ca   : > { %v4497_v63 = vperm.slane %v10318_v56, %v17163_v11  ;;  %11188 = vrcp.f32 %v7770_v24  ;;  %v4501_v0 = vperm.slane %v4457_v47, %v17163_v11  ;;  %v4505_v62 = vperm.slane %v10319_v57, %v17163_v11 }
 0x3cb   : > { %v4509_v48 = vperm.slane %v4459_v14, %v17163_v11  ;;  %v7874_v30 = vpack.c.b16 %v7872_v33, %v14459_v22  ;;  %v4513_v56 = vperm.slane %v10320_v53, %v17163_v11  ;;  %v4650_v44 = vsel %vm14511_vm3, %v4489_v12, %v4649_v29 }
 0x3cc   : > { %v14534_v24 = vpack.c.bf16 %v4354_v50, %v4354_v50  ;;  %v4517_v47 = vperm.slane %v4461_v43, %v17163_v11  ;;  %4651 = vst [vmem:[%s12266_s6] sm:$0x8] %v4650_v44  ;;  %v4653_v57 = vsel %vm14511_vm3, %v4493_v52, %v4652_v38  ;;  %v4656_v14 = vsel %vm14511_vm3, %v4497_v63, %v4655_v37  ;;  %v4670_v43 = vld [vmem:[%s12266_s6 + $0x38] sm:$0x8]  ;;  %v14562_v63 = vpop.f32.mrf.mxu3  ;;  %v14564_v38 = vpop.f32.mrf.mxu1 }
 0x3cd   : > { %v4659_v22 = vsel %vm14511_vm3, %v4501_v0, %v4658_v20  ;;  %4654 = vst [vmem:[%s12266_s6 + $0x8] sm:$0x8] %v4653_v57  ;;  %v4662_v53 = vsel %vm14511_vm3, %v4505_v62, %v4661_v46  ;;  %v4665_v50 = vsel %vm14511_vm3, %v4509_v48, %v4664_v54  ;;  %v4668_v44 = vsel %vm14511_vm3, %v4513_v56, %v4667_v8  ;;  %v14580_v8 = vld [vmem:[%s16938_s4] sm:$0xff] }
 0x3ce   : > { %11190 = vpow2.f32 %v7744_v35  ;;  %10508 = vmatmul.msk.bf16.gmra.mxu1 %vm537_vm7, %v7874_v30  ;;  %4657 = vst [vmem:[%s12266_s6 + $0x10] sm:$0x8] %v4656_v14  ;;  %v4385_v29 = vsel %vm817_vm8, %v14492_v40, %v4367_v13  ;;  %v4387_v33 = vsel %vm501_vm0, %v14492_v40, %v4367_v13  ;;  %v4390_v12 = vsel %vm504_vm1, %v14492_v40, %v4367_v13 }
 0x3cf   : > { %v4393_v52 = vsel %vm507_vm2, %v14492_v40, %v4367_v13  ;;  %4660 = vst [vmem:[%s12266_s6 + $0x18] sm:$0x8] %v4659_v22  ;;  %v4389_v35 = vrot.slane %v4387_v33, 1  ;;  %v4392_v37 = vrot.slane %v4390_v12, 2  ;;  %v4431_v0 = vunpack.i.h.s16 %v4385_v29  ;;  %v4673_v22 = vld [vmem:[%s12266_s6 + $0x40] sm:$0x8] }
 0x3d0   : > { %v4395_v20 = vrot.slane %v4393_v52, 3  ;;  %v17194_v62 = vpack.c.b16 %v13801_v27, %v13798_v32  ;;  %v11189_v48 = vpop.eup %11188  ;;  %4663 = vst [vmem:[%s12266_s6 + $0x20] sm:$0x8] %v4662_v53  ;;  %v4671_v40 = vsel %vm14511_vm3, %v4517_v47, %v4670_v43  ;;  %v10321_v13 = vpack.i.b16 %v4385_v29, %v4385_v29  ;;  %v4676_v53 = vld [vmem:[%s12266_s6 + $0x48] sm:$0x8]  ;;  %v14590_v43 = vpop.f32.mrf.mxu0 }
 0x3d1   : > { %v7746_v46 = vmul.f32 1.442695, %v7724_v15  ;;  %v4368_v54 = vrot.slane %v14534_v24, 3  ;;  %v14584_v32 = vmul.f32 %v11189_v48, %v14356_v39  ;;  %4666 = vst [vmem:[%s12266_s6 + $0x28] sm:$0x8] %v4665_v50  ;;  %v4433_v27 = vunpack.i.h.s16 %v4389_v35 }
 0x3d2   : > { %10461 = vmatmul.msk.bf16.vlgmr.msra.gmra.mxu0 %vm537_vm7, %v17194_v62  ;;  %v4435_v30 = vunpack.i.h.s16 %v4392_v37  ;;  %v4437_v56 = vunpack.i.h.s16 %v4395_v20  ;;  %4669 = vst [vmem:[%s12266_s6 + $0x30] sm:$0x8] %v4668_v44  ;;  %v4463_v15 = vpack.i.b16 %v4431_v0, %v4431_v0  ;;  %v10322_v47 = vpack.i.b16 %v4389_v35, %v4389_v35  ;;  %v4679_v12 = vld [vmem:[%s12266_s6 + $0x50] sm:$0x8]  ;;  %v4682_v0 = vld [vmem:[%s12266_s6 + $0x58] sm:$0x8] }
 0x3d3   : > { %8307 = vmatpush.bf16.msra.mxu0 %v14580_v8  ;;  %v10323_v57 = vpack.i.b16 %v4392_v37, %v4392_v37  ;;  %v10324_v14 = vpack.i.b16 %v4395_v20, %v4395_v20  ;;  %4672 = vst [vmem:[%s12266_s6 + $0x38] sm:$0x8] %v4671_v40  ;;  %v4465_v39 = vpack.i.b16 %v4433_v27, %v4433_v27  ;;  %v7725_v44 = vsub.f32 0.0, %v14496_v60  ;;  %v4685_v62 = vld [vmem:[%s12266_s6 + $0x60] sm:$0x8] }
 0x3d4   : > { %v11191_v29 = vpop.eup %11190  ;;  %v4467_v50 = vpack.i.b16 %v4435_v30, %v4435_v30  ;;  %v4469_v33 = vpack.i.b16 %v4437_v56, %v4437_v56  ;;  %v4521_v35 = vperm.slane %v10321_v13, %v17163_v11  ;;  %v4525_v37 = vperm.slane %v4463_v15, %v17163_v11  ;;  %v4688_v56 = vld [vmem:[%s12266_s6 + $0x68] sm:$0x8]  ;;  %v4694_v13 = vld [vmem:[%s12266_s6 + $0x78] sm:$0x8] }
 0x3d5   : > { %v7771_v52 = vadd.f32 1.0, %v11191_v29  ;;  %v4529_v20 = vperm.slane %v10322_v47, %v17163_v11  ;;  %v7818_v48 = vpack.c.bf16 %v14584_v32, %v14584_v32  ;;  %v4533_v40 = vperm.slane %v4465_v39, %v17163_v11  ;;  %v4691_v29 = vld [vmem:[%s12266_s6 + $0x70] sm:$0x8] }
 0x3d6   : > { %v4537_v27 = vperm.slane %v10323_v57, %v17163_v11  ;;  %v4541_v30 = vperm.slane %v4467_v50, %v17163_v11  ;;  %v4545_v15 = vperm.slane %v10324_v14, %v17163_v11  ;;  %v4549_v47 = vperm.slane %v4469_v33, %v17163_v11  ;;  %v14630_v33 = vpop.f32.mrf.mxu1 }
 0x3d7   : > { %11192 = vrcp.f32 %v7771_v52  ;;  %v4674_v36 = vsel %vm14511_vm3, %v4521_v35, %v4673_v22  ;;  %v4677_v39 = vsel %vm14511_vm3, %v4525_v37, %v4676_v53  ;;  %v4680_v57 = vsel %vm14511_vm3, %v4529_v20, %v4679_v12  ;;  %v14628_v53 = vpop.f32.mrf.mxu3 }
 0x3d8   : > { %4675 = vst [vmem:[%s12266_s6 + $0x40] sm:$0x8] %v4674_v36  ;;  %v4683_v50 = vsel %vm14511_vm3, %v4533_v40, %v4682_v0  ;;  %v4686_v52 = vsel %vm14511_vm3, %v4537_v27, %v4685_v62  ;;  %v4689_v14 = vsel %vm14511_vm3, %v4541_v30, %v4688_v56  ;;  %v4692_v36 = vsel %vm14511_vm3, %v4545_v15, %v4691_v29 }
 0x3d9   : > { %4678 = vst [vmem:[%s12266_s6 + $0x48] sm:$0x8] %v4677_v39  ;;  %v4695_v22 = vsel %vm14511_vm3, %v4549_v47, %v4694_v13  ;;  %11194 = vpow2.f32 %v7746_v46  ;;  %v4398_v12 = vsel %vm817_vm8, %v14534_v24, %v4368_v54  ;;  %v4400_v35 = vsel %vm501_vm0, %v14534_v24, %v4368_v54  ;;  %v4772_v39 = vpop.f32.mrf.mxu0 }
 0x3da   : > { %4681 = vst [vmem:[%s12266_s6 + $0x50] sm:$0x8] %v4680_v57  ;;  %v4403_v37 = vsel %vm504_vm1, %v14534_v24, %v4368_v54  ;;  %v4406_v20 = vsel %vm507_vm2, %v14534_v24, %v4368_v54  ;;  %v4402_v46 = vrot.slane %v4400_v35, 1  ;;  %v4439_v40 = vunpack.i.h.s16 %v4398_v12  ;;  %v4700_v35 = vld [vmem:[%s12266_s6 + $0x88] sm:$0x8] }
 0x3db   : > { %4684 = vst [vmem:[%s12266_s6 + $0x58] sm:$0x8] %v4683_v50  ;;  %v4405_v0 = vrot.slane %v4403_v37, 2  ;;  %v4408_v62 = vrot.slane %v4406_v20, 3  ;;  %v10325_v27 = vpack.i.b16 %v4398_v12, %v4398_v12  ;;  %v7748_v30 = vmul.f32 1.442695, %v7725_v44 }
 0x3dc   : > { %4687 = vst [vmem:[%s12266_s6 + $0x60] sm:$0x8] %v4686_v52  ;;  %v4356_v56 = vadd.f32 %v14504_v4, %v14516_v25  ;;  %v14647_v29 = vadd.f32 %v14562_v63, %v17104_v23  ;;  %v4441_v24 = vunpack.i.h.s16 %v4402_v46  ;;  %v4471_v47 = vpack.i.b16 %v4439_v40, %v4439_v40  ;;  %v4697_v12 = vld [vmem:[%s12266_s6 + $0x80] sm:$0x8] }
 0x3dd   : > { %v11193_v13 = vpop.eup %11192  ;;  %4690 = vst [vmem:[%s12266_s6 + $0x68] sm:$0x8] %v4689_v14  ;;  %v4443_v54 = vunpack.i.h.s16 %v4405_v0  ;;  %v4445_v15 = vunpack.i.h.s16 %v4408_v62  ;;  %v10326_v44 = vpack.i.b16 %v4402_v46, %v4402_v46  ;;  %v10327_v4 = vpack.i.b16 %v4405_v0, %v4405_v0  ;;  %v4703_v46 = vld [vmem:[%s12266_s6 + $0x90] sm:$0x8]  ;;  %v4706_v0 = vld [vmem:[%s12266_s6 + $0x98] sm:$0x8] }
 0x3de   : > { %v7803_v57 = vmul.f32 %v11193_v13, %v14479_v16  ;;  %4693 = vst [vmem:[%s12266_s6 + $0x70] sm:$0x8] %v4692_v36  ;;  %v10328_v25 = vpack.i.b16 %v4408_v62, %v4408_v62  ;;  %v4473_v23 = vpack.i.b16 %v4441_v24, %v4441_v24  ;;  %v4553_v14 = vperm.slane %v10325_v27, %v17163_v11  ;;  %v4709_v24 = vld [vmem:[%s12266_s6 + $0xa0] sm:$0x8] }
 0x3df   : > { %v11195_v50 = vpop.eup %11194  ;;  %4696 = vst [vmem:[%s12266_s6 + $0x78] sm:$0x8] %v4695_v22  ;;  %v4475_v63 = vpack.i.b16 %v4443_v54, %v4443_v54  ;;  %v4477_v52 = vpack.i.b16 %v4445_v15, %v4445_v15  ;;  %v4557_v36 = vperm.slane %v4471_v47, %v17163_v11  ;;  %v4561_v20 = vperm.slane %v10326_v44, %v17163_v11  ;;  %v4712_v54 = vld [vmem:[%s12266_s6 + $0xa8] sm:$0x8]  ;;  %v4715_v15 = vld [vmem:[%s12266_s6 + $0xb0] sm:$0x8] }
 0x3e0   : > { %v7819_v37 = vpack.c.bf16 %v7803_v57, %v7803_v57  ;;  %v7772_v16 = vadd.f32 1.0, %v11195_v50  ;;  %v17195_v22 = vpack.c.b16 %v13806_v7, %v13810_v9  ;;  %v4565_v62 = vperm.slane %v4473_v23, %v17163_v11 }
 0x3e1   : > { %v4569_v40 = vperm.slane %v10327_v4, %v17163_v11  ;;  %v4573_v27 = vperm.slane %v4475_v63, %v17163_v11  ;;  %v4577_v13 = vperm.slane %v10328_v25, %v17163_v11  ;;  %v8323_v47 = vunpack.c.l.b16 %v7818_v48  ;;  %v7703_v48 = vpop.f32.mrf.mxu3  ;;  %v4810_v25 = vpop.f32.mrf.mxu1 }
 0x3e2   : > { %10462 = vmatmul.msk.bf16.gmra.mxu0 %vm537_vm7, %v17195_v22  ;;  %v8324_v7 = vunpack.c.l.b16 %v7819_v37  ;;  %11196 = vrcp.f32 %v7772_v16  ;;  %v4698_v9 = vsel %vm14511_vm3, %v4553_v14, %v4697_v12  ;;  %v4581_v57 = vperm.slane %v4477_v52, %v17163_v11  ;;  %v4718_v14 = vld [vmem:[%s12266_s6 + $0xb8] sm:$0x8] }
 0x3e3   : > { %4699 = vst [vmem:[%s12266_s6 + $0x80] sm:$0x8] %v4698_v9  ;;  %v4701_v44 = vsel %vm14511_vm3, %v4557_v36, %v4700_v35  ;;  %v4704_v4 = vsel %vm14511_vm3, %v4561_v20, %v4703_v46  ;;  %v4707_v32 = vsel %vm14511_vm3, %v4565_v62, %v4706_v0  ;;  %v4710_v23 = vsel %vm14511_vm3, %v4569_v40, %v4709_v24 }
 0x3e4   : > { %v8327_v50 = vpack.c.b16 %v8324_v7, %v8323_v47  ;;  %4702 = vst [vmem:[%s12266_s6 + $0x88] sm:$0x8] %v4701_v44  ;;  %v4713_v63 = vsel %vm14511_vm3, %v4573_v27, %v4712_v54  ;;  %v4716_v52 = vsel %vm14511_vm3, %v4577_v13, %v4715_v15  ;;  %11198 = vpow2.f32 %v7748_v30 }
 0x3e5   : > { %4705 = vst [vmem:[%s12266_s6 + $0x90] sm:$0x8] %v4704_v4  ;;  %v4361_v12 = vpack.c.bf16 %v4356_v56, %v4356_v56  ;;  %v7726_v35 = vsub.f32 0.0, %v14647_v29  ;;  %v4806_v37 = vadd.f32 %v14564_v38, %v14590_v43  ;;  %11200 = vrcp.f32 %v14344_v6  ;;  %v4775_v56 = vpop.f32.mrf.mxu0 }
 0x3e6   : > { %4708 = vst [vmem:[%s12266_s6 + $0x98] sm:$0x8] %v4707_v32  ;;  %10527 = vmatmul.msk.bf16.vlgmr.msrb.gmra.mxu1 %vm537_vm7, %v8327_v50  ;;  %v14701_v16 = vadd.f32 %v14628_v53, %v17145_v49  ;;  %v4808_v36 = vadd.f32 %v14630_v33, %v4772_v39  ;;  %v14705_v30 = vadd.f32 %v7703_v48, %v17148_v51  ;;  %v4721_v50 = vld [vmem:[%s12266_s6 + $0xc0] sm:$0x8] }
 0x3e7   : > { %4711 = vst [vmem:[%s12266_s6 + $0xa0] sm:$0x8] %v4710_v23  ;;  %v4719_v38 = vsel %vm14511_vm3, %v4581_v57, %v4718_v14  ;;  %v4369_v6 = vrot.slane %v4361_v12, 3  ;;  %v7750_v43 = vmul.f32 1.442695, %v7726_v35  ;;  %v14710_v20 = vpack.c.bf16 %v4806_v37, %v4806_v37  ;;  %9521 = vmatpush.bf16.msrb.mxu1 %v14229_v3 }
 0x3e8   : > { %v11197_v49 = vpop.eup %11196  ;;  %4714 = vst [vmem:[%s12266_s6 + $0xa8] sm:$0x8] %v4713_v63  ;;  %v7727_v53 = vsub.f32 0.0, %v14701_v16  ;;  %v14715_v33 = vpack.c.bf16 %v4808_v36, %v4808_v36  ;;  %v7728_v51 = vsub.f32 0.0, %v14705_v30  ;;  %v14718_v39 = vadd.f32 %v4810_v25, %v4775_v56  ;;  %v4727_v35 = vld [vmem:[%s12266_s6 + $0xd0] sm:$0x8] }
 0x3e9   : > { %v7804_v46 = vmul.f32 %v11197_v49, %v14485_v2  ;;  %4717 = vst [vmem:[%s12266_s6 + $0xb0] sm:$0x8] %v4716_v52  ;;  %v4411_v0 = vsel %vm817_vm8, %v4361_v12, %v4369_v6  ;;  %v4413_v22 = vsel %vm501_vm0, %v4361_v12, %v4369_v6  ;;  %v4416_v62 = vsel %vm504_vm1, %v4361_v12, %v4369_v6  ;;  %v14732_v23 = vpop.f32.mrf.mxu1  ;;  %v4733_v37 = vld [vmem:[%s12266_s6 + $0xe0] sm:$0x8]  ;;  %v4736_v49 = vld [vmem:[%s12266_s6 + $0xe8] sm:$0x8] }
 0x3ea   : > { %4720 = vst [vmem:[%s12266_s6 + $0xb8] sm:$0x8] %v4719_v38  ;;  %v4415_v3 = vrot.slane %v4413_v22, 1  ;;  %v4418_v40 = vrot.slane %v4416_v62, 2  ;;  %v4419_v27 = vsel %vm507_vm2, %v4361_v12, %v4369_v6  ;;  %v4447_v13 = vunpack.i.h.s16 %v4411_v0  ;;  %v11199_v24 = vpop.eup %11198  ;;  %v4724_v12 = vld [vmem:[%s12266_s6 + $0xc8] sm:$0x8] }
 0x3eb   : > { %v7820_v54 = vpack.c.bf16 %v7804_v46, %v7804_v46  ;;  %v4421_v15 = vrot.slane %v4419_v27, 3  ;;  %v10329_v47 = vpack.i.b16 %v4411_v0, %v4411_v0  ;;  %11202 = vpow2.f32 %v7750_v43  ;;  %v14727_v2 = vpop.eup %11200  ;;  %v4730_v43 = vld [vmem:[%s12266_s6 + $0xd8] sm:$0x8]  ;;  %v4739_v46 = vld [vmem:[%s12266_s6 + $0xf0] sm:$0x8] }
 0x3ec   : > { %v7773_v7 = vadd.f32 1.0, %v11199_v24  ;;  %v4449_v9 = vunpack.i.h.s16 %v4415_v3  ;;  %v4451_v57 = vunpack.i.h.s16 %v4418_v40  ;;  %v4479_v44 = vpack.i.b16 %v4447_v13, %v4447_v13 }
 0x3ed   : > { %v14729_v4 = vunpack.c.l.b16 %v7820_v54  ;;  %v4453_v32 = vunpack.i.h.s16 %v4421_v15  ;;  %v10330_v48 = vpack.i.b16 %v4415_v3, %v4415_v3  ;;  %v10331_v25 = vpack.i.b16 %v4418_v40, %v4418_v40  ;;  %v4742_v40 = vld [vmem:[%s12266_s6 + $0xf8] sm:$0x8] }
 0x3ee   : > { %11204 = vrcp.f32 %v7773_v7  ;;  %v4481_v63 = vpack.i.b16 %v4449_v9, %v4449_v9  ;;  %v4483_v52 = vpack.i.b16 %v4451_v57, %v4451_v57  ;;  %v10332_v14 = vpack.i.b16 %v4421_v15, %v4421_v15 }
 0x3ef   : > { %v4485_v36 = vpack.i.b16 %v4453_v32, %v4453_v32  ;;  %v4585_v56 = vperm.slane %v10329_v47, %v17163_v11  ;;  %v4589_v38 = vperm.slane %v4479_v44, %v17163_v11  ;;  %v4593_v6 = vperm.slane %v10330_v48, %v17163_v11  ;;  %v7705_v47 = vpop.f32.mrf.mxu3 }
 0x3f0   : > { %v4597_v0 = vperm.slane %v4481_v63, %v17163_v11  ;;  %v4601_v22 = vperm.slane %v10331_v25, %v17163_v11  ;;  %v4605_v62 = vperm.slane %v4483_v52, %v17163_v11  ;;  %v4609_v3 = vperm.slane %v10332_v14, %v17163_v11 }
 0x3f1   : > { %v11203_v27 = vpop.eup %11202  ;;  %v4613_v13 = vperm.slane %v4485_v36, %v17163_v11  ;;  %v4722_v24 = vsel %vm14511_vm3, %v4585_v56, %v4721_v50  ;;  %v4725_v54 = vsel %vm14511_vm3, %v4589_v38, %v4724_v12  ;;  %v4728_v15 = vsel %vm14511_vm3, %v4593_v6, %v4727_v35 }
 0x3f2   : > { %4723 = vst [vmem:[%s12266_s6 + $0xc0] sm:$0x8] %v4722_v24  ;;  %v4731_v7 = vsel %vm14511_vm3, %v4597_v0, %v4730_v43  ;;  %v4734_v9 = vsel %vm14511_vm3, %v4601_v22, %v4733_v37  ;;  %v4737_v57 = vsel %vm14511_vm3, %v4605_v62, %v4736_v49  ;;  %v4740_v44 = vsel %vm14511_vm3, %v4609_v3, %v4739_v46  ;;  %v14797_v49 = vpop.f32.mrf.mxu1 }
 0x3f3   : > { %4726 = vst [vmem:[%s12266_s6 + $0xc8] sm:$0x8] %v4725_v54  ;;  %v4743_v32 = vsel %vm14511_vm3, %v4613_v13, %v4742_v40  ;;  %v7774_v48 = vadd.f32 1.0, %v11203_v27  ;;  %v4823_v25 = vrot.slane %v14710_v20, 3  ;;  %v7752_v50 = vmul.f32 1.442695, %v7727_v53 }
 0x3f4   : > { %v11205_v63 = vpop.eup %11204  ;;  %4729 = vst [vmem:[%s12266_s6 + $0xd0] sm:$0x8] %v4728_v15  ;;  %v14772_v52 = vrot.slane %v14715_v33, 3  ;;  %v14776_v14 = vmul.f32 1.442695, %v7728_v51  ;;  %v14780_v12 = vpack.c.bf16 %v14718_v39, %v14718_v39  ;;  %v14783_v35 = vadd.f32 %v7705_v47, %v17150_v45 }
 0x3f5   : > { %v7805_v37 = vmul.f32 %v11205_v63, %v14496_v60  ;;  %4732 = vst [vmem:[%s12266_s6 + $0xd8] sm:$0x8] %v4731_v7  ;;  %11206 = vrcp.f32 %v7774_v48  ;;  %v4829_v53 = vsel %vm817_vm8, %v14710_v20, %v4823_v25  ;;  %v4831_v36 = vsel %vm501_vm0, %v14710_v20, %v4823_v25  ;;  %v5105_v63 = vld [vmem:[%s12266_s6] sm:$0x8] }
 0x3f6   : > { %4735 = vst [vmem:[%s12266_s6 + $0xe0] sm:$0x8] %v4734_v9  ;;  %v4833_v51 = vrot.slane %v4831_v36, 1  ;;  %v4834_v39 = vsel %vm504_vm1, %v14710_v20, %v4823_v25  ;;  %v4837_v45 = vsel %vm507_vm2, %v14710_v20, %v4823_v25  ;;  %v4880_v56 = vunpack.i.h.s16 %v4829_v53 }
 0x3f7   : > { %v7821_v60 = vpack.c.bf16 %v7805_v37, %v7805_v37  ;;  %4738 = vst [vmem:[%s12266_s6 + $0xe8] sm:$0x8] %v4737_v57  ;;  %v4836_v38 = vrot.slane %v4834_v39, 2  ;;  %v4839_v6 = vrot.slane %v4837_v45, 3  ;;  %v10337_v43 = vpack.i.b16 %v4829_v53, %v4829_v53  ;;  %v5108_v37 = vld [vmem:[%s12266_s6 + $0x8] sm:$0x8] }
 0x3f8   : > { %4741 = vst [vmem:[%s12266_s6 + $0xf0] sm:$0x8] %v4740_v44  ;;  %v4882_v46 = vunpack.i.h.s16 %v4833_v51  ;;  %v4912_v0 = vpack.i.b16 %v4880_v56, %v4880_v56  ;;  %v10338_v22 = vpack.i.b16 %v4833_v51, %v4833_v51  ;;  %11208 = vpow2.f32 %v7752_v50  ;;  %v5111_v53 = vld [vmem:[%s12266_s6 + $0x10] sm:$0x8]  ;;  %v5114_v39 = vld [vmem:[%s12266_s6 + $0x18] sm:$0x8] }
 0x3f9   : > { %v8326_v62 = vunpack.c.l.b16 %v7821_v60  ;;  %4744 = vst [vmem:[%s12266_s6 + $0xf8] sm:$0x8] %v4743_v32  ;;  %v4884_v3 = vunpack.i.h.s16 %v4836_v38  ;;  %v4886_v40 = vunpack.i.h.s16 %v4839_v6  ;;  %v10339_v27 = vpack.i.b16 %v4836_v38, %v4836_v38  ;;  %v5117_v45 = vld [vmem:[%s12266_s6 + $0x20] sm:$0x8]  ;;  %v5120_v56 = vld [vmem:[%s12266_s6 + $0x28] sm:$0x8]  ;;  %v14828_v60 = vpop.f32.mrf.mxu0 }
 0x3fa   : > { %v4914_v20 = vpack.i.b16 %v4882_v46, %v4882_v46  ;;  %v10340_v13 = vpack.i.b16 %v4839_v6, %v4839_v6  ;;  %v4946_v24 = vperm.slane %v10337_v43, %v17163_v11  ;;  %v4950_v54 = vperm.slane %v4912_v0, %v17163_v11 }
 0x3fb   : > { %v11207_v47 = vpop.eup %11206  ;;  %v8328_v7 = vpack.c.b16 %v8326_v62, %v14729_v4  ;;  %v4916_v9 = vpack.i.b16 %v4884_v3, %v4884_v3  ;;  %v4918_v57 = vpack.i.b16 %v4886_v40, %v4886_v40  ;;  %v4954_v44 = vperm.slane %v10338_v22, %v17163_v11  ;;  %v5123_v22 = vld [vmem:[%s12266_s6 + $0x30] sm:$0x8]  ;;  %v5126_v62 = vld [vmem:[%s12266_s6 + $0x38] sm:$0x8] }
 0x3fc   : > { %v7806_v32 = vmul.f32 %v11207_v47, %v14647_v29  ;;  %v4958_v48 = vperm.slane %v4914_v20, %v17163_v11  ;;  %v4962_v25 = vperm.slane %v10339_v27, %v17163_v11  ;;  %v4970_v50 = vperm.slane %v10340_v13, %v17163_v11 }
 0x3fd   : > { %v4966_v4 = vperm.slane %v4916_v9, %v17163_v11  ;;  %v4974_v36 = vperm.slane %v4918_v57, %v17163_v11  ;;  %v5106_v29 = vsel %vm14805_vm6, %v4946_v24, %v5105_v63  ;;  %v5109_v51 = vsel %vm14805_vm6, %v4950_v54, %v5108_v37  ;;  %10528 = vmatmul.msk.bf16.gmra.mxu1 %vm537_vm7, %v8328_v7 }
 0x3fe   : > { %v11209_v38 = vpop.eup %11208  ;;  %v7822_v6 = vpack.c.bf16 %v7806_v32, %v7806_v32  ;;  %5107 = vst [vmem:[%s12266_s6] sm:$0x8] %v5106_v29  ;;  %v5112_v43 = vsel %vm14805_vm6, %v4954_v44, %v5111_v53  ;;  %v5115_v46 = vsel %vm14805_vm6, %v4958_v48, %v5114_v39  ;;  %v5118_v0 = vsel %vm14805_vm6, %v4962_v25, %v5117_v45  ;;  %v14862_v44 = vpop.f32.mrf.mxu3 }
 0x3ff   : > { %5110 = vst [vmem:[%s12266_s6 + $0x8] sm:$0x8] %v5109_v51  ;;  %v5121_v3 = vsel %vm14805_vm6, %v4966_v4, %v5120_v56  ;;  %v5124_v40 = vsel %vm14805_vm6, %v4970_v50, %v5123_v22  ;;  %v5127_v27 = vsel %vm14805_vm6, %v4974_v36, %v5126_v62  ;;  %v7775_v20 = vadd.f32 1.0, %v11209_v38  ;;  %v14864_v32 = vpop.f32.mrf.mxu1  ;;  %v5129_v56 = vld [vmem:[%s12266_s6 + $0x40] sm:$0x8] }
 0x400   : > { %v14846_v13 = vunpack.c.l.b16 %v7822_v6  ;;  %5113 = vst [vmem:[%s12266_s6 + $0x10] sm:$0x8] %v5112_v43  ;;  %v4842_v24 = vsel %vm817_vm8, %v14715_v33, %v14772_v52  ;;  %v4844_v54 = vsel %vm501_vm0, %v14715_v33, %v14772_v52  ;;  %v4847_v47 = vsel %vm504_vm1, %v14715_v33, %v14772_v52  ;;  %v5141_v22 = vld [vmem:[%s12266_s6 + $0x60] sm:$0x8] }
 0x401   : > { %5116 = vst [vmem:[%s12266_s6 + $0x18] sm:$0x8] %v5115_v46  ;;  %11210 = vrcp.f32 %v7775_v20  ;;  %v4846_v7 = vrot.slane %v4844_v54, 1  ;;  %v4849_v9 = vrot.slane %v4847_v47, 2  ;;  %v4850_v57 = vsel %vm507_vm2, %v14715_v33, %v14772_v52  ;;  %v5147_v54 = vld [vmem:[%s12266_s6 + $0x70] sm:$0x8]  ;;  %v14890_v47 = vpop.f32.mrf.mxu0 }
 0x402   : > { %5119 = vst [vmem:[%s12266_s6 + $0x20] sm:$0x8] %v5118_v0  ;;  %v4852_v48 = vrot.slane %v4850_v57, 3  ;;  %v4888_v25 = vunpack.i.h.s16 %v4842_v24  ;;  %v10341_v50 = vpack.i.b16 %v4842_v24, %v4842_v24  ;;  %11212 = vpow2.f32 %v14776_v14  ;;  %v5135_v0 = vld [vmem:[%s12266_s6 + $0x50] sm:$0x8] }
 0x403   : > { %5122 = vst [vmem:[%s12266_s6 + $0x28] sm:$0x8] %v5121_v3  ;;  %v4890_v63 = vunpack.i.h.s16 %v4846_v7  ;;  %v4892_v37 = vunpack.i.h.s16 %v4849_v9  ;;  %v10342_v53 = vpack.i.b16 %v4846_v7, %v4846_v7  ;;  %v10343_v4 = vpack.i.b16 %v4849_v9, %v4849_v9 }
 0x404   : > { %5125 = vst [vmem:[%s12266_s6 + $0x30] sm:$0x8] %v5124_v40  ;;  %v4894_v33 = vunpack.i.h.s16 %v4852_v48  ;;  %v4920_v52 = vpack.i.b16 %v4888_v25, %v4888_v25  ;;  %v10344_v36 = vpack.i.b16 %v4852_v48, %v4852_v48  ;;  %v4978_v29 = vperm.slane %v10341_v50, %v17163_v11  ;;  %v5138_v25 = vld [vmem:[%s12266_s6 + $0x58] sm:$0x8]  ;;  %v5144_v50 = vld [vmem:[%s12266_s6 + $0x68] sm:$0x8] }
 0x405   : > { %5128 = vst [vmem:[%s12266_s6 + $0x38] sm:$0x8] %v5127_v27  ;;  %v4922_v51 = vpack.i.b16 %v4890_v63, %v4890_v63  ;;  %v4924_v39 = vpack.i.b16 %v4892_v37, %v4892_v37  ;;  %v4986_v14 = vperm.slane %v10342_v53, %v17163_v11  ;;  %v4994_v45 = vperm.slane %v10343_v4, %v17163_v11  ;;  %v5132_v27 = vld [vmem:[%s12266_s6 + $0x48] sm:$0x8] }
 0x406   : > { %v4926_v38 = vpack.i.b16 %v4894_v33, %v4894_v33  ;;  %v4982_v6 = vperm.slane %v4920_v52, %v17163_v11  ;;  %v5002_v43 = vperm.slane %v10344_v36, %v17163_v11  ;;  %v5130_v46 = vsel %vm14805_vm6, %v4978_v29, %v5129_v56  ;;  %v14923_v56 = vpop.f32.mrf.mxu3 }
 0x407   : > { %v11211_v62 = vpop.eup %11210  ;;  %v4990_v3 = vperm.slane %v4922_v51, %v17163_v11  ;;  %v4998_v40 = vperm.slane %v4924_v39, %v17163_v11  ;;  %5131 = vst [vmem:[%s12266_s6 + $0x40] sm:$0x8] %v5130_v46  ;;  %v5136_v20 = vsel %vm14805_vm6, %v4986_v14, %v5135_v0  ;;  %v5142_v24 = vsel %vm14805_vm6, %v4994_v45, %v5141_v22 }
 0x408   : > { %v11213_v7 = vpop.eup %11212  ;;  %v7807_v9 = vmul.f32 %v11211_v62, %v14701_v16  ;;  %v5006_v57 = vperm.slane %v4926_v38, %v17163_v11  ;;  %v5133_v48 = vsel %vm14805_vm6, %v4982_v6, %v5132_v27  ;;  %5137 = vst [vmem:[%s12266_s6 + $0x50] sm:$0x8] %v5136_v20  ;;  %v5148_v63 = vsel %vm14805_vm6, %v5002_v43, %v5147_v54  ;;  %v5150_v16 = vld [vmem:[%s12266_s6 + $0x78] sm:$0x8]  ;;  %v14925_v38 = vpop.f32.mrf.mxu1 }
 0x409   : > { %5134 = vst [vmem:[%s12266_s6 + $0x48] sm:$0x8] %v5133_v48  ;;  %v5139_v37 = vsel %vm14805_vm6, %v4990_v3, %v5138_v25  ;;  %v5145_v53 = vsel %vm14805_vm6, %v4998_v40, %v5144_v50  ;;  %v7776_v4 = vadd.f32 1.0, %v11213_v7  ;;  %v4825_v33 = vrot.slane %v14780_v12, 3 }
 0x40a   : > { %v7823_v52 = vpack.c.bf16 %v7807_v9, %v7807_v9  ;;  %5140 = vst [vmem:[%s12266_s6 + $0x58] sm:$0x8] %v5139_v37  ;;  %v5151_v36 = vsel %vm14805_vm6, %v5006_v57, %v5150_v16  ;;  %v7729_v29 = vsub.f32 0.0, %v14783_v35  ;;  %v14914_v51 = vadd.f32 %v14732_v23, %v14828_v60  ;;  %v5499_v16 = vpop.f32.mrf.mxu0 }
 0x40b   : > { %5143 = vst [vmem:[%s12266_s6 + $0x60] sm:$0x8] %v5142_v24  ;;  %11214 = vrcp.f32 %v7776_v4  ;;  %v4855_v39 = vsel %vm817_vm8, %v14780_v12, %v4825_v33  ;;  %v4857_v14 = vsel %vm501_vm0, %v14780_v12, %v4825_v33  ;;  %v4860_v45 = vsel %vm504_vm1, %v14780_v12, %v4825_v33 }
 0x40c   : > { %v7835_v6 = vunpack.c.l.b16 %v7823_v52  ;;  %5146 = vst [vmem:[%s12266_s6 + $0x68] sm:$0x8] %v5145_v53  ;;  %v4859_v23 = vrot.slane %v4857_v14, 1  ;;  %v4862_v60 = vrot.slane %v4860_v45, 2  ;;  %v4863_v43 = vsel %vm507_vm2, %v14780_v12, %v4825_v33  ;;  %v5153_v53 = vld [vmem:[%s12266_s6 + $0x80] sm:$0x8] }
 0x40d   : > { %5149 = vst [vmem:[%s12266_s6 + $0x70] sm:$0x8] %v5148_v63  ;;  %v4865_v46 = vrot.slane %v4863_v43, 3  ;;  %v4896_v0 = vunpack.i.h.s16 %v4855_v39  ;;  %v10345_v22 = vpack.i.b16 %v4855_v39, %v4855_v39  ;;  %v7756_v62 = vmul.f32 1.442695, %v7729_v29 }
 0x40e   : > { %v17198_v3 = vpack.c.b16 %v13841_v18, %v13820_v58  ;;  %v7838_v40 = vpack.c.b16 %v7835_v6, %v14846_v13  ;;  %5152 = vst [vmem:[%s12266_s6 + $0x78] sm:$0x8] %v5151_v36  ;;  %v4898_v27 = vunpack.i.h.s16 %v4859_v23  ;;  %v4900_v20 = vunpack.i.h.s16 %v4862_v60  ;;  %v5156_v29 = vld [vmem:[%s12266_s6 + $0x88] sm:$0x8]  ;;  %v5159_v39 = vld [vmem:[%s12266_s6 + $0x90] sm:$0x8] }
 0x40f   : > { %v10346_v24 = vpack.i.b16 %v4859_v23, %v4859_v23  ;;  %v4902_v54 = vunpack.i.h.s16 %v4865_v46  ;;  %v4928_v7 = vpack.i.b16 %v4896_v0, %v4896_v0  ;;  %v10347_v12 = vpack.i.b16 %v4862_v60, %v4862_v60  ;;  %v5162_v6 = vld [vmem:[%s12266_s6 + $0x98] sm:$0x8]  ;;  %v5165_v23 = vld [vmem:[%s12266_s6 + $0xa0] sm:$0x8] }
 0x410   : > { %10571 = vmatmul.msk.bf16.vlgmr.msra.gmra.mxu1 %vm537_vm7, %v17198_v3  ;;  %v10348_v9 = vpack.i.b16 %v4865_v46, %v4865_v46  ;;  %v4930_v57 = vpack.i.b16 %v4898_v27, %v4898_v27  ;;  %v4932_v48 = vpack.i.b16 %v4900_v20, %v4900_v20  ;;  %v5010_v25 = vperm.slane %v10345_v22, %v17163_v11  ;;  %v5168_v46 = vld [vmem:[%s12266_s6 + $0xa8] sm:$0x8]  ;;  %v5171_v22 = vld [vmem:[%s12266_s6 + $0xb0] sm:$0x8]  ;;  %v7713_v3 = vpop.f32.mrf.mxu3  ;;  %v5174_v20 = vld [vmem:[%s12266_s6 + $0xb8] sm:$0x8] }
 0x411   : > { %v5018_v58 = vperm.slane %v10346_v24, %v17163_v11  ;;  %10505 = vmatmul.msk.bf16.vlgmr.msrb.gmra.mxu0 %vm537_vm7, %v7838_v40  ;;  %v11215_v18 = vpop.eup %11214  ;;  %v4934_v13 = vpack.i.b16 %v4902_v54, %v4902_v54  ;;  %v5014_v50 = vperm.slane %v4928_v7, %v17163_v11  ;;  %v5026_v63 = vperm.slane %v10347_v12, %v17163_v11  ;;  %v14984_v40 = vpop.f32.mrf.mxu1 }
 0x412   : > { %v5034_v37 = vperm.slane %v10348_v9, %v17163_v11  ;;  %9032 = vmatpush.bf16.msrb.mxu0 %v14580_v8  ;;  %v7808_v4 = vmul.f32 %v11215_v18, %v14705_v30  ;;  %v5022_v33 = vperm.slane %v4930_v57, %v17163_v11  ;;  %v5030_v52 = vperm.slane %v4932_v48, %v17163_v11 }
 0x413   : > { %v5154_v36 = vsel %vm14805_vm6, %v5010_v25, %v5153_v53  ;;  %v14954_v14 = vmul.f32 %v14150_v5, %v13860_v17  ;;  %v5038_v8 = vperm.slane %v4934_v13, %v17163_v11  ;;  %v5157_v30 = vsel %vm14805_vm6, %v5014_v50, %v5156_v29  ;;  %v15019_v53 = vpop.f32.mrf.mxu0 }
 0x414   : > { %5155 = vst [vmem:[%s12266_s6 + $0x80] sm:$0x8] %v5154_v36  ;;  %v5160_v45 = vsel %vm14805_vm6, %v5018_v58, %v5159_v39  ;;  %v14966_v60 = vmul.f32 %v14727_v2, %v13895_v1  ;;  %v7824_v43 = vpack.c.bf16 %v7808_v4, %v7808_v4  ;;  %v5163_v17 = vsel %vm14805_vm6, %v5022_v33, %v5162_v6 }
 0x415   : > { %5158 = vst [vmem:[%s12266_s6 + $0x88] sm:$0x8] %v5157_v30  ;;  %v5166_v5 = vsel %vm14805_vm6, %v5026_v63, %v5165_v23  ;;  %v5169_v0 = vsel %vm14805_vm6, %v5030_v52, %v5168_v46  ;;  %11216 = vpow2.f32 %v7756_v62  ;;  %v4818_v1 = vpack.c.bf16 %v14914_v51, %v14914_v51 }
 0x416   : > { %5161 = vst [vmem:[%s12266_s6 + $0x90] sm:$0x8] %v5160_v45  ;;  %v14982_v2 = vadd.f32 %v14862_v44, %v17151_v21  ;;  %v5172_v27 = vsel %vm14805_vm6, %v5034_v37, %v5171_v22  ;;  %v5533_v62 = vadd.f32 %v14797_v49, %v14890_v47  ;;  %v14994_v24 = vadd.f32 %v14923_v56, %v11761_v61 }
 0x417   : > { %5164 = vst [vmem:[%s12266_s6 + $0x98] sm:$0x8] %v5163_v17  ;;  %v5535_v51 = vadd.f32 %v14864_v32, %v5499_v16  ;;  %v14997_v21 = vunpack.c.l.b16 %v7824_v43  ;;  %v5175_v44 = vsel %vm14805_vm6, %v5038_v8, %v5174_v20  ;;  %v4826_v54 = vrot.slane %v4818_v1, 3  ;;  %v5183_v20 = vld [vmem:[%s12266_s6 + $0xd0] sm:$0x8] }
 0x418   : > { %5167 = vst [vmem:[%s12266_s6 + $0xa0] sm:$0x8] %v5166_v5  ;;  %v7730_v7 = vsub.f32 0.0, %v14982_v2  ;;  %v15004_v12 = vpack.c.bf16 %v5533_v62, %v5533_v62  ;;  %v7731_v49 = vsub.f32 0.0, %v14994_v24  ;;  %v15010_v61 = vadd.f32 %v7713_v3, %v11751_v42  ;;  %v5186_v62 = vld [vmem:[%s12266_s6 + $0xd8] sm:$0x8] }
 0x419   : > { %5170 = vst [vmem:[%s12266_s6 + $0xa8] sm:$0x8] %v5169_v0  ;;  %v15007_v47 = vpack.c.bf16 %v5535_v51, %v5535_v51  ;;  %v4868_v32 = vsel %vm817_vm8, %v4818_v1, %v4826_v54  ;;  %v4870_v56 = vsel %vm501_vm0, %v4818_v1, %v4826_v54  ;;  %v4873_v9 = vsel %vm504_vm1, %v4818_v1, %v4826_v54  ;;  %v15031_v0 = vpop.f32.mrf.mxu1  ;;  %v5189_v51 = vld [vmem:[%s12266_s6 + $0xe0] sm:$0x8] }
 0x41a   : > { %5173 = vst [vmem:[%s12266_s6 + $0xb0] sm:$0x8] %v5172_v27  ;;  %v4876_v57 = vsel %vm507_vm2, %v4818_v1, %v4826_v54  ;;  %v4872_v48 = vrot.slane %v4870_v56, 1  ;;  %v4875_v25 = vrot.slane %v4873_v9, 2  ;;  %v4904_v18 = vunpack.i.h.s16 %v4868_v32  ;;  %v5195_v56 = vld [vmem:[%s12266_s6 + $0xf0] sm:$0x8] }
 0x41b   : > { %5176 = vst [vmem:[%s12266_s6 + $0xb8] sm:$0x8] %v5175_v44  ;;  %v4878_v58 = vrot.slane %v4876_v57, 3  ;;  %v11217_v13 = vpop.eup %11216  ;;  %v10349_v50 = vpack.i.b16 %v4868_v32, %v4868_v32  ;;  %v7758_v63 = vmul.f32 1.442695, %v7730_v7  ;;  %v5550_v42 = vrot.slane %v15004_v12, 3 }
 0x41c   : > { %v7760_v37 = vmul.f32 1.442695, %v7731_v49  ;;  %v7777_v16 = vadd.f32 1.0, %v11217_v13  ;;  %v4906_v4 = vunpack.i.h.s16 %v4872_v48  ;;  %v4908_v33 = vunpack.i.h.s16 %v4875_v25  ;;  %v5192_v32 = vld [vmem:[%s12266_s6 + $0xe8] sm:$0x8] }
 0x41d   : > { %v4910_v52 = vunpack.i.h.s16 %v4878_v58  ;;  %v4936_v36 = vpack.i.b16 %v4904_v18, %v4904_v18  ;;  %v10350_v29 = vpack.i.b16 %v4872_v48, %v4872_v48  ;;  %v10351_v39 = vpack.i.b16 %v4875_v25, %v4875_v25  ;;  %v5198_v9 = vld [vmem:[%s12266_s6 + $0xf8] sm:$0x8] }
 0x41e   : > { %v10352_v8 = vpack.i.b16 %v4878_v58, %v4878_v58  ;;  %v17199_v30 = vpack.c.b16 %v13857_v28, %v13855_v10  ;;  %11218 = vrcp.f32 %v7777_v16  ;;  %v4938_v45 = vpack.i.b16 %v4906_v4, %v4906_v4  ;;  %v5177_v10 = vld [vmem:[%s12266_s6 + $0xc0] sm:$0x8]  ;;  %v5180_v28 = vld [vmem:[%s12266_s6 + $0xc8] sm:$0x8] }
 0x41f   : > { %v4940_v6 = vpack.i.b16 %v4908_v33, %v4908_v33  ;;  %v4942_v23 = vpack.i.b16 %v4910_v52, %v4910_v52  ;;  %v5042_v43 = vperm.slane %v10349_v50, %v17163_v11  ;;  %v5046_v17 = vperm.slane %v4936_v36, %v17163_v11 }
 0x420   : > { %10572 = vmatmul.msk.bf16.gmra.mxu1 %vm537_vm7, %v17199_v30  ;;  %v5050_v5 = vperm.slane %v10350_v29, %v17163_v11  ;;  %v5058_v46 = vperm.slane %v10351_v39, %v17163_v11  ;;  %v5054_v22 = vperm.slane %v4938_v45, %v17163_v11  ;;  %v5066_v3 = vperm.slane %v10352_v8, %v17163_v11  ;;  %v15072_v8 = vpop.f32.mrf.mxu0 }
 0x421   : > { %v5062_v1 = vperm.slane %v4940_v6, %v17163_v11  ;;  %v5070_v27 = vperm.slane %v4942_v23, %v17163_v11  ;;  %v5178_v44 = vsel %vm14805_vm6, %v5042_v43, %v5177_v10  ;;  %v5181_v54 = vsel %vm14805_vm6, %v5046_v17, %v5180_v28  ;;  %v5830_v10 = vld [vmem:[%s12266_s6 + $0x4] sm:$0x1]  ;;  %v5833_v28 = vld [vmem:[%s12266_s6 + $0xc] sm:$0x1] }
 0x422   : > { %v5184_v7 = vsel %vm14805_vm6, %v5050_v5, %v5183_v20  ;;  %v5190_v49 = vsel %vm14805_vm6, %v5058_v46, %v5189_v51  ;;  %5179 = vst [vmem:[%s12266_s6 + $0xc0] sm:$0x8] %v5178_v44  ;;  %v5187_v57 = vsel %vm14805_vm6, %v5054_v22, %v5186_v62  ;;  %v5196_v25 = vsel %vm14805_vm6, %v5066_v3, %v5195_v56  ;;  %v5836_v62 = vld [vmem:[%s12266_s6 + $0x14] sm:$0x1]  ;;  %v5839_v51 = vld [vmem:[%s12266_s6 + $0x1c] sm:$0x1]  ;;  %v15086_v44 = vpop.f32.mrf.mxu1 }
 0x423   : > { %v5193_v48 = vsel %vm14805_vm6, %v5062_v1, %v5192_v32  ;;  %v5199_v58 = vsel %vm14805_vm6, %v5070_v27, %v5198_v9  ;;  %5182 = vst [vmem:[%s12266_s6 + $0xc8] sm:$0x8] %v5181_v54  ;;  %11220 = vpow2.f32 %v7758_v63  ;;  %v5556_v18 = vsel %vm817_vm8, %v15004_v12, %v5550_v42  ;;  %v5842_v56 = vld [vmem:[%s12266_s6 + $0x24] sm:$0x1]  ;;  %v5845_v9 = vld [vmem:[%s12266_s6 + $0x2c] sm:$0x1] }
 0x424   : > { %v5558_v13 = vsel %vm501_vm0, %v15004_v12, %v5550_v42  ;;  %v5561_v50 = vsel %vm504_vm1, %v15004_v12, %v5550_v42  ;;  %v11219_v16 = vpop.eup %11218  ;;  %5185 = vst [vmem:[%s12266_s6 + $0xd0] sm:$0x8] %v5184_v7  ;;  %v5564_v52 = vsel %vm507_vm2, %v15004_v12, %v5550_v42  ;;  %v5607_v36 = vunpack.i.h.s16 %v5556_v18 }
 0x425   : > { %v5560_v4 = vrot.slane %v5558_v13, 1  ;;  %v5563_v33 = vrot.slane %v5561_v50, 2  ;;  %v7809_v63 = vmul.f32 %v11219_v16, %v14783_v35  ;;  %5188 = vst [vmem:[%s12266_s6 + $0xd8] sm:$0x8] %v5187_v57  ;;  %v5566_v29 = vrot.slane %v5564_v52, 3  ;;  %v7715_v52 = vpop.f32.mrf.mxu3 }
 0x426   : > { %v10381_v39 = vpack.i.b16 %v5556_v18, %v5556_v18  ;;  %11222 = vpow2.f32 %v7760_v37  ;;  %5191 = vst [vmem:[%s12266_s6 + $0xe0] sm:$0x8] %v5190_v49  ;;  %v5639_v6 = vpack.i.b16 %v5607_v36, %v5607_v36  ;;  %v5848_v50 = vld [vmem:[%s12266_s6 + $0x34] sm:$0x1]  ;;  %v9007_v16 = vpack.c.bf16 %v14954_v14, %v14954_v14 }
 0x427   : > { %v5609_v30 = vunpack.i.h.s16 %v5560_v4  ;;  %v5611_v45 = vunpack.i.h.s16 %v5563_v33  ;;  %v10382_v23 = vpack.i.b16 %v5560_v4, %v5560_v4  ;;  %v7825_v43 = vpack.c.bf16 %v7809_v63, %v7809_v63  ;;  %5194 = vst [vmem:[%s12266_s6 + $0xe8] sm:$0x8] %v5193_v48 }
 0x428   : > { %v5613_v12 = vunpack.i.h.s16 %v5566_v29  ;;  %v10383_v35 = vpack.i.b16 %v5563_v33, %v5563_v33  ;;  %v10384_v42 = vpack.i.b16 %v5566_v29, %v5566_v29  ;;  %5197 = vst [vmem:[%s12266_s6 + $0xf0] sm:$0x8] %v5196_v25  ;;  %v5673_v5 = vperm.slane %v10381_v39, %v17163_v11  ;;  %v5851_v33 = vld [vmem:[%s12266_s6 + $0x3c] sm:$0x1] }
 0x429   : > { %v5641_v17 = vpack.i.b16 %v5609_v30, %v5609_v30  ;;  %v5643_v37 = vpack.i.b16 %v5611_v45, %v5611_v45  ;;  %v5677_v46 = vperm.slane %v5639_v6, %v17163_v11  ;;  %v11221_v22 = vpop.eup %11220  ;;  %v7837_v1 = vunpack.c.l.b16 %v7825_v43  ;;  %5200 = vst [vmem:[%s12266_s6 + $0xf8] sm:$0x8] %v5199_v58  ;;  %v5951_v43 = vpop.f32.mrf.mxu0 }
 0x42a   : > { %v5645_v3 = vpack.i.b16 %v5613_v12, %v5613_v12  ;;  %v5681_v27 = vperm.slane %v10382_v23, %v17163_v11  ;;  %v5689_v20 = vperm.slane %v10383_v35, %v17163_v11  ;;  %v7778_v54 = vadd.f32 1.0, %v11221_v22 }
 0x42b   : > { %v5685_v7 = vperm.slane %v5641_v17, %v17163_v11  ;;  %v5693_v49 = vperm.slane %v5643_v37, %v17163_v11  ;;  %v5697_v32 = vperm.slane %v10384_v42, %v17163_v11  ;;  %v7839_v48 = vpack.c.b16 %v7837_v1, %v14997_v21 }
 0x42c   : > { %v11223_v57 = vpop.eup %11222  ;;  %v5701_v25 = vperm.slane %v5645_v3, %v17163_v11  ;;  %v5831_v18 = vsel %vm12262_vm11, %v5673_v5, %v5830_v10  ;;  %v5834_v13 = vsel %vm12262_vm11, %v5677_v46, %v5833_v28  ;;  %11224 = vrcp.f32 %v7778_v54 }
 0x42d   : > { %5832 = vst [vmem:[%s12266_s6 + $0x4] sm:$0x1] %v5831_v18  ;;  %v5837_v4 = vsel %vm12262_vm11, %v5681_v27, %v5836_v62  ;;  %v5840_v21 = vsel %vm12262_vm11, %v5685_v7, %v5839_v51  ;;  %v9008_v36 = vpack.c.bf16 %v14966_v60, %v14966_v60  ;;  %v5843_v63 = vsel %vm12262_vm11, %v5689_v20, %v5842_v56  ;;  %v15153_v20 = vpop.f32.mrf.mxu1 }
 0x42e   : > { %5835 = vst [vmem:[%s12266_s6 + $0xc] sm:$0x1] %v5834_v13  ;;  %v5846_v29 = vsel %vm12262_vm11, %v5693_v49, %v5845_v9  ;;  %v7779_v39 = vadd.f32 1.0, %v11223_v57  ;;  %10506 = vmatmul.msk.bf16.gmra.mxu0 %vm537_vm7, %v7839_v48  ;;  %v5849_v30 = vsel %vm12262_vm11, %v5697_v32, %v5848_v50  ;;  %v5551_v45 = vrot.slane %v15007_v47, 3  ;;  %v5854_v9 = vld [vmem:[%s12266_s6 + $0x44] sm:$0x1] }
 0x42f   : > { %5838 = vst [vmem:[%s12266_s6 + $0x14] sm:$0x1] %v5837_v4  ;;  %v7732_v6 = vsub.f32 0.0, %v15010_v61  ;;  %v5538_v23 = vadd.f32 %v14925_v38, %v15019_v53  ;;  %v17201_v12 = vpack.c.b16 %v13866_v59, %v13862_v34  ;;  %v5852_v35 = vsel %vm12262_vm11, %v5701_v25, %v5851_v33  ;;  %v5857_v57 = vld [vmem:[%s12266_s6 + $0x4c] sm:$0x1] }
 0x430   : > { %5841 = vst [vmem:[%s12266_s6 + $0x1c] sm:$0x1] %v5840_v21  ;;  %11226 = vrcp.f32 %v7779_v39  ;;  %v15131_v42 = vadd.f32 %v7715_v52, %v17158_v41  ;;  %v15135_v17 = vadd.f32 %v14984_v40, %v15072_v8  ;;  %v5569_v38 = vsel %vm817_vm8, %v15007_v47, %v5551_v45  ;;  %v5860_v50 = vld [vmem:[%s12266_s6 + $0x54] sm:$0x1]  ;;  %v5863_v4 = vld [vmem:[%s12266_s6 + $0x5c] sm:$0x1] }
 0x431   : > { %10591 = vmatmul.msk.bf16.vlgmr.msrb.gmra.mxu1 %vm537_vm7, %v17201_v12  ;;  %5844 = vst [vmem:[%s12266_s6 + $0x24] sm:$0x1] %v5843_v63  ;;  %v5571_v34 = vsel %vm501_vm0, %v15007_v47, %v5551_v45  ;;  %v5574_v59 = vsel %vm504_vm1, %v15007_v47, %v5551_v45  ;;  %v5577_v53 = vsel %vm507_vm2, %v15007_v47, %v5551_v45  ;;  %v5615_v40 = vunpack.i.h.s16 %v5569_v38  ;;  %v5866_v21 = vld [vmem:[%s12266_s6 + $0x64] sm:$0x1] }
 0x432   : > { %5847 = vst [vmem:[%s12266_s6 + $0x2c] sm:$0x1] %v5846_v29  ;;  %v5573_v41 = vrot.slane %v5571_v34, 1  ;;  %v5576_v37 = vrot.slane %v5574_v59, 2  ;;  %v5579_v5 = vrot.slane %v5577_v53, 3  ;;  %v11225_v8 = vpop.eup %11224  ;;  %v10385_v46 = vpack.i.b16 %v5569_v38, %v5569_v38 }
 0x433   : > { %5850 = vst [vmem:[%s12266_s6 + $0x34] sm:$0x1] %v5849_v30  ;;  %v7762_v10 = vmul.f32 1.442695, %v7732_v6  ;;  %v15148_v28 = vpack.c.bf16 %v5538_v23, %v5538_v23  ;;  %v5987_v22 = vadd.f32 %v15031_v0, %v5951_v43  ;;  %v7810_v1 = vmul.f32 %v11225_v8, %v14982_v2  ;;  %v5869_v29 = vld [vmem:[%s12266_s6 + $0x6c] sm:$0x1]  ;;  %v5953_v43 = vpop.f32.mrf.mxu0 }
 0x434   : > { %5853 = vst [vmem:[%s12266_s6 + $0x3c] sm:$0x1] %v5852_v35  ;;  %v5617_v3 = vunpack.i.h.s16 %v5573_v41  ;;  %v5619_v47 = vunpack.i.h.s16 %v5576_v37  ;;  %v5621_v27 = vunpack.i.h.s16 %v5579_v5  ;;  %v5647_v62 = vpack.i.b16 %v5615_v40, %v5615_v40  ;;  %v5875_v59 = vld [vmem:[%s12266_s6 + $0x7c] sm:$0x1] }
 0x435   : > { %v10386_v51 = vpack.i.b16 %v5573_v41, %v5573_v41  ;;  %v10387_v54 = vpack.i.b16 %v5576_v37, %v5576_v37  ;;  %v10388_v7 = vpack.i.b16 %v5579_v5, %v5579_v5  ;;  %v7826_v32 = vpack.c.bf16 %v7810_v1, %v7810_v1 }
 0x436   : > { %v11227_v49 = vpop.eup %11226  ;;  %v5649_v0 = vpack.i.b16 %v5617_v3, %v5617_v3  ;;  %v5651_v2 = vpack.i.b16 %v5619_v47, %v5619_v47  ;;  %v5653_v56 = vpack.i.b16 %v5621_v27, %v5621_v27  ;;  %v5705_v25 = vperm.slane %v10385_v46, %v17163_v11 }
 0x437   : > { %v7811_v48 = vmul.f32 %v11227_v49, %v14994_v24  ;;  %v5709_v18 = vperm.slane %v5647_v62, %v17163_v11  ;;  %v5713_v13 = vperm.slane %v10386_v51, %v17163_v11  ;;  %v5721_v52 = vperm.slane %v10387_v54, %v17163_v11  ;;  %v5872_v24 = vld [vmem:[%s12266_s6 + $0x74] sm:$0x1]  ;;  %v15212_v54 = vpop.f32.mrf.mxu1 }
 0x438   : > { %v5717_v33 = vperm.slane %v5649_v0, %v17163_v11  ;;  %v5725_v63 = vperm.slane %v5651_v2, %v17163_v11  ;;  %v7733_v39 = vsub.f32 0.0, %v15131_v42  ;;  %v5729_v45 = vperm.slane %v10388_v7, %v17163_v11  ;;  %v17203_v0 = vld [vmem:[#allocation30_spill] sm:$0xff] }
 0x439   : > { %v7827_v30 = vpack.c.bf16 %v7811_v48, %v7811_v48  ;;  %v5733_v6 = vperm.slane %v5653_v56, %v17163_v11  ;;  %v5855_v23 = vsel %vm12262_vm11, %v5705_v25, %v5854_v9  ;;  %v8288_v12 = vunpack.c.l.b16 %v7826_v32  ;;  %v17202_v32 = vld [vmem:[#allocation31_spill] sm:$0xff] }
 0x43a   : > { %5856 = vst [vmem:[%s12266_s6 + $0x44] sm:$0x1] %v5855_v23  ;;  %v5858_v35 = vsel %vm12262_vm11, %v5709_v18, %v5857_v57  ;;  %v5861_v38 = vsel %vm12262_vm11, %v5713_v13, %v5860_v50  ;;  %v5864_v34 = vsel %vm12262_vm11, %v5717_v33, %v5863_v4  ;;  %v5867_v41 = vsel %vm12262_vm11, %v5721_v52, %v5866_v21  ;;  %v11267_v57 = vld [vmem:[%s16938_s4] sm:$0xff]  ;;  %v5887_v23 = vld [vmem:[%s12266_s6 + $0x9c] sm:$0x1] }
 0x43b   : > { %v8289_v53 = vunpack.c.l.b16 %v7827_v30  ;;  %5859 = vst [vmem:[%s12266_s6 + $0x4c] sm:$0x1] %v5858_v35  ;;  %v5870_v37 = vsel %vm12262_vm11, %v5725_v63, %v5869_v29  ;;  %v5873_v5 = vsel %vm12262_vm11, %v5729_v45, %v5872_v24  ;;  %11228 = vpow2.f32 %v7762_v10  ;;  %v5878_v63 = vld [vmem:[%s12266_s6 + $0x84] sm:$0x1]  ;;  %v5881_v29 = vld [vmem:[%s12266_s6 + $0x8c] sm:$0x1] }
 0x43c   : > { %5862 = vst [vmem:[%s12266_s6 + $0x54] sm:$0x1] %v5861_v38  ;;  %v5552_v40 = vrot.slane %v15148_v28, 3  ;;  %v7764_v8 = vmul.f32 1.442695, %v7733_v39  ;;  %v15193_v46 = vpack.c.bf16 %v15135_v17, %v15135_v17  ;;  %v5876_v3 = vsel %vm12262_vm11, %v5733_v6, %v5875_v59 }
 0x43d   : > { %v8292_v1 = vpack.c.b16 %v8289_v53, %v8288_v12  ;;  %5865 = vst [vmem:[%s12266_s6 + $0x5c] sm:$0x1] %v5864_v34  ;;  %v15198_v47 = vpack.c.bf16 %v5987_v22, %v5987_v22  ;;  %v15201_v27 = vadd.f32 %v15086_v44, %v5953_v43  ;;  %v17204_v2 = vpack.c.b16 %v17202_v32, %v17203_v0  ;;  %v5884_v24 = vld [vmem:[%s12266_s6 + $0x94] sm:$0x1]  ;;  %v5890_v43 = vld [vmem:[%s12266_s6 + $0xa4] sm:$0x1]  ;;  %v15235_v12 = vpop.f32.mrf.mxu0 }
 0x43e   : > { %5868 = vst [vmem:[%s12266_s6 + $0x64] sm:$0x1] %v5867_v41  ;;  %v5582_v10 = vsel %vm817_vm8, %v15148_v28, %v5552_v40  ;;  %v5584_v62 = vsel %vm501_vm0, %v15148_v28, %v5552_v40  ;;  %v5587_v17 = vsel %vm504_vm1, %v15148_v28, %v5552_v40  ;;  %v5590_v51 = vsel %vm507_vm2, %v15148_v28, %v5552_v40  ;;  %v5893_v53 = vld [vmem:[%s12266_s6 + $0xac] sm:$0x1]  ;;  %v5896_v41 = vld [vmem:[%s12266_s6 + $0xb4] sm:$0x1] }
 0x43f   : > { %5871 = vst [vmem:[%s12266_s6 + $0x6c] sm:$0x1] %v5870_v37  ;;  %v5586_v22 = vrot.slane %v5584_v62, 1  ;;  %v5589_v44 = vrot.slane %v5587_v17, 2  ;;  %v5592_v7 = vrot.slane %v5590_v51, 3  ;;  %v5623_v49 = vunpack.i.h.s16 %v5582_v10  ;;  %10525 = vmatmul.msk.bf16.vlgmr.msra.gmra.mxu0 %vm537_vm7, %v8292_v1  ;;  %v6711_v58 = vpop.f32.mrf.mxu1 }
 0x440   : > { %5874 = vst [vmem:[%s12266_s6 + $0x74] sm:$0x1] %v5873_v5  ;;  %v10389_v56 = vpack.i.b16 %v5582_v10, %v5582_v10  ;;  %11230 = vpow2.f32 %v7764_v8  ;;  %v5553_v28 = vrot.slane %v15193_v46, 3  ;;  %v15223_v9 = vrot.slane %v15198_v47, 3  ;;  %9486 = vmatpush.bf16.msra.mxu0 %v11267_v57  ;;  %v5899_v37 = vld [vmem:[%s12266_s6 + $0xbc] sm:$0x1] }
 0x441   : > { %10592 = vmatmul.msk.bf16.gmra.mxu1 %vm537_vm7, %v17204_v2  ;;  %5877 = vst [vmem:[%s12266_s6 + $0x7c] sm:$0x1] %v5876_v3  ;;  %v5625_v48 = vunpack.i.h.s16 %v5586_v22  ;;  %v5627_v25 = vunpack.i.h.s16 %v5589_v44  ;;  %v5629_v18 = vunpack.i.h.s16 %v5592_v7  ;;  %v5655_v13 = vpack.i.b16 %v5623_v49, %v5623_v49  ;;  %v11229_v50 = vpop.eup %11228 }
 0x442   : > { %v10390_v4 = vpack.i.b16 %v5586_v22, %v5586_v22  ;;  %v10391_v21 = vpack.i.b16 %v5589_v44, %v5589_v44  ;;  %v10392_v33 = vpack.i.b16 %v5592_v7, %v5592_v7  ;;  %v5737_v52 = vperm.slane %v10389_v56, %v17163_v11 }
 0x443   : > { %v7780_v39 = vadd.f32 1.0, %v11229_v50  ;;  %v5657_v30 = vpack.i.b16 %v5625_v48, %v5625_v48  ;;  %v5659_v45 = vpack.i.b16 %v5627_v25, %v5627_v25  ;;  %v5661_v6 = vpack.i.b16 %v5629_v18, %v5629_v18 }
 0x444   : > { %v5741_v35 = vperm.slane %v5655_v13, %v17163_v11  ;;  %v5745_v38 = vperm.slane %v10390_v4, %v17163_v11  ;;  %v5753_v34 = vperm.slane %v10391_v21, %v17163_v11  ;;  %v5761_v59 = vperm.slane %v10392_v33, %v17163_v11 }
 0x445   : > { %11232 = vrcp.f32 %v7780_v39  ;;  %v5749_v5 = vperm.slane %v5657_v30, %v17163_v11  ;;  %v5757_v40 = vperm.slane %v5659_v45, %v17163_v11  ;;  %v5765_v8 = vperm.slane %v5661_v6, %v17163_v11  ;;  %v5902_v39 = vld [vmem:[%s12266_s6 + $0xc4] sm:$0x1]  ;;  %v5905_v30 = vld [vmem:[%s12266_s6 + $0xcc] sm:$0x1] }
 0x446   : > { %v11231_v1 = vpop.eup %11230  ;;  %v5879_v3 = vsel %vm12262_vm11, %v5737_v52, %v5878_v63  ;;  %v5882_v10 = vsel %vm12262_vm11, %v5741_v35, %v5881_v29  ;;  %v5885_v62 = vsel %vm12262_vm11, %v5745_v38, %v5884_v24  ;;  %v5891_v17 = vsel %vm12262_vm11, %v5753_v34, %v5890_v43  ;;  %v5908_v35 = vld [vmem:[%s12266_s6 + $0xd4] sm:$0x1]  ;;  %v15290_v38 = vpop.f32.mrf.mxu0 }
 0x447   : > { %5880 = vst [vmem:[%s12266_s6 + $0x84] sm:$0x1] %v5879_v3  ;;  %v5888_v51 = vsel %vm12262_vm11, %v5749_v5, %v5887_v23  ;;  %v5894_v22 = vsel %vm12262_vm11, %v5757_v40, %v5893_v53  ;;  %v5897_v44 = vsel %vm12262_vm11, %v5761_v59, %v5896_v41  ;;  %v5900_v7 = vsel %vm12262_vm11, %v5765_v8, %v5899_v37  ;;  %v5914_v37 = vld [vmem:[%s12266_s6 + $0xe4] sm:$0x1]  ;;  %v5917_v5 = vld [vmem:[%s12266_s6 + $0xec] sm:$0x1] }
 0x448   : > { %5883 = vst [vmem:[%s12266_s6 + $0x8c] sm:$0x1] %v5882_v10  ;;  %v7781_v49 = vadd.f32 1.0, %v11231_v1  ;;  %v5595_v32 = vsel %vm817_vm8, %v15193_v46, %v5553_v28  ;;  %v5597_v0 = vsel %vm501_vm0, %v15193_v46, %v5553_v28  ;;  %v5600_v2 = vsel %vm504_vm1, %v15193_v46, %v5553_v28  ;;  %v5920_v10 = vld [vmem:[%s12266_s6 + $0xf4] sm:$0x1] }
 0x449   : > { %5886 = vst [vmem:[%s12266_s6 + $0x94] sm:$0x1] %v5885_v62  ;;  %v5599_v56 = vrot.slane %v5597_v0, 1  ;;  %v5602_v57 = vrot.slane %v5600_v2, 2  ;;  %v5603_v48 = vsel %vm507_vm2, %v15193_v46, %v5553_v28  ;;  %v5631_v25 = vunpack.i.h.s16 %v5595_v32  ;;  %v5923_v62 = vld [vmem:[%s12266_s6 + $0xfc] sm:$0x1] }
 0x44a   : > { %5889 = vst [vmem:[%s12266_s6 + $0x9c] sm:$0x1] %v5888_v51  ;;  %11234 = vrcp.f32 %v7781_v49  ;;  %v5605_v18 = vrot.slane %v5603_v48, 3  ;;  %v10393_v13 = vpack.i.b16 %v5595_v32, %v5595_v32  ;;  %v15278_v50 = vsel %vm817_vm8, %v15198_v47, %v15223_v9 }
 0x44b   : > { %v11233_v4 = vpop.eup %11232  ;;  %5892 = vst [vmem:[%s12266_s6 + $0xa4] sm:$0x1] %v5891_v17  ;;  %v5633_v21 = vunpack.i.h.s16 %v5599_v56  ;;  %v5635_v33 = vunpack.i.h.s16 %v5602_v57  ;;  %v5663_v46 = vpack.i.b16 %v5631_v25, %v5631_v25  ;;  %v10394_v28 = vpack.i.b16 %v5599_v56, %v5599_v56 }
 0x44c   : > { %v7812_v52 = vmul.f32 %v11233_v4, %v15010_v61  ;;  %5895 = vst [vmem:[%s12266_s6 + $0xac] sm:$0x1] %v5894_v22  ;;  %v5637_v63 = vunpack.i.h.s16 %v5605_v18  ;;  %v10395_v29 = vpack.i.b16 %v5602_v57, %v5602_v57  ;;  %v10396_v24 = vpack.i.b16 %v5605_v18, %v5605_v18  ;;  %v5911_v61 = vld [vmem:[%s12266_s6 + $0xdc] sm:$0x1] }
 0x44d   : > { %5898 = vst [vmem:[%s12266_s6 + $0xb4] sm:$0x1] %v5897_v44  ;;  %v5665_v45 = vpack.i.b16 %v5633_v21, %v5633_v21  ;;  %v5667_v6 = vpack.i.b16 %v5635_v33, %v5635_v33  ;;  %v5769_v23 = vperm.slane %v10393_v13, %v17163_v11  ;;  %v5773_v43 = vperm.slane %v5663_v46, %v17163_v11 }
 0x44e   : > { %v7828_v34 = vpack.c.bf16 %v7812_v52, %v7812_v52  ;;  %5901 = vst [vmem:[%s12266_s6 + $0xbc] sm:$0x1] %v5900_v7  ;;  %v5669_v59 = vpack.i.b16 %v5637_v63, %v5637_v63  ;;  %v5777_v53 = vperm.slane %v10394_v28, %v17163_v11  ;;  %v5785_v41 = vperm.slane %v10395_v29, %v17163_v11 }
 0x44f   : > { %v5781_v40 = vperm.slane %v5665_v45, %v17163_v11  ;;  %v5789_v8 = vperm.slane %v5667_v6, %v17163_v11  ;;  %v5793_v1 = vperm.slane %v10396_v24, %v17163_v11  ;;  %v5903_v3 = vsel %vm12262_vm11, %v5769_v23, %v5902_v39  ;;  %v6676_v23 = vpop.f32.mrf.mxu0 }
 0x450   : > { %v11235_v17 = vpop.eup %11234  ;;  %v8290_v51 = vunpack.c.l.b16 %v7828_v34  ;;  %v5797_v22 = vperm.slane %v5669_v59, %v17163_v11  ;;  %5904 = vst [vmem:[%s12266_s6 + $0xc4] sm:$0x1] %v5903_v3  ;;  %v5906_v44 = vsel %vm12262_vm11, %v5773_v43, %v5905_v30  ;;  %v5909_v7 = vsel %vm12262_vm11, %v5777_v53, %v5908_v35  ;;  %v6284_v59 = vld [vmem:[%s12266_s6 + $0x4] sm:$0x1]  ;;  %v6287_v53 = vld [vmem:[%s12266_s6 + $0xc] sm:$0x1] }
 0x451   : > { %v7813_v49 = vmul.f32 %v11235_v17, %v15131_v42  ;;  %5907 = vst [vmem:[%s12266_s6 + $0xcc] sm:$0x1] %v5906_v44  ;;  %v5912_v32 = vsel %vm12262_vm11, %v5781_v40, %v5911_v61  ;;  %v5915_v0 = vsel %vm12262_vm11, %v5785_v41, %v5914_v37  ;;  %v5918_v2 = vsel %vm12262_vm11, %v5789_v8, %v5917_v5  ;;  %v6293_v3 = vld [vmem:[%s12266_s6 + $0x1c] sm:$0x1]  ;;  %v6299_v44 = vld [vmem:[%s12266_s6 + $0x2c] sm:$0x1] }
 0x452   : > { %5910 = vst [vmem:[%s12266_s6 + $0xd4] sm:$0x1] %v5909_v7  ;;  %v5921_v56 = vsel %vm12262_vm11, %v5793_v1, %v5920_v10  ;;  %v5924_v57 = vsel %vm12262_vm11, %v5797_v22, %v5923_v62  ;;  %v6012_v42 = vsel %vm501_vm0, %v15198_v47, %v15223_v9  ;;  %v6015_v48 = vsel %vm504_vm1, %v15198_v47, %v15223_v9  ;;  %v6290_v1 = vld [vmem:[%s12266_s6 + $0x14] sm:$0x1]  ;;  %v6296_v10 = vld [vmem:[%s12266_s6 + $0x24] sm:$0x1] }
 0x453   : > { %v7829_v25 = vpack.c.bf16 %v7813_v49, %v7813_v49  ;;  %5913 = vst [vmem:[%s12266_s6 + $0xdc] sm:$0x1] %v5912_v32  ;;  %v6014_v18 = vrot.slane %v6012_v42, 1  ;;  %v6017_v13 = vrot.slane %v6015_v48, 2  ;;  %v6018_v4 = vsel %vm507_vm2, %v15198_v47, %v15223_v9  ;;  %v6302_v7 = vld [vmem:[%s12266_s6 + $0x34] sm:$0x1] }
 0x454   : > { %5916 = vst [vmem:[%s12266_s6 + $0xe4] sm:$0x1] %v5915_v0  ;;  %v6020_v21 = vrot.slane %v6018_v4, 3  ;;  %v6061_v33 = vunpack.i.h.s16 %v15278_v50  ;;  %v10401_v46 = vpack.i.b16 %v15278_v50, %v15278_v50  ;;  %v5997_v28 = vpack.c.bf16 %v15201_v27, %v15201_v27 }
 0x455   : > { %v8291_v52 = vunpack.c.l.b16 %v7829_v25  ;;  %5919 = vst [vmem:[%s12266_s6 + $0xec] sm:$0x1] %v5918_v2  ;;  %v6063_v63 = vunpack.i.h.s16 %v6014_v18  ;;  %v6065_v29 = vunpack.i.h.s16 %v6017_v13  ;;  %v10402_v24 = vpack.i.b16 %v6014_v18, %v6014_v18  ;;  %v6305_v2 = vld [vmem:[%s12266_s6 + $0x3c] sm:$0x1] }
 0x456   : > { %5922 = vst [vmem:[%s12266_s6 + $0xf4] sm:$0x1] %v5921_v56  ;;  %v6067_v47 = vunpack.i.h.s16 %v6020_v21  ;;  %v6093_v9 = vpack.i.b16 %v6061_v33, %v6061_v33  ;;  %v10403_v39 = vpack.i.b16 %v6017_v13, %v6017_v13  ;;  %v10404_v30 = vpack.i.b16 %v6020_v21, %v6020_v21  ;;  %v15387_v33 = vpop.f32.mrf.mxu1 }
 0x457   : > { %v8293_v45 = vpack.c.b16 %v8291_v52, %v8290_v51  ;;  %5925 = vst [vmem:[%s12266_s6 + $0xfc] sm:$0x1] %v5924_v57  ;;  %v6095_v50 = vpack.i.b16 %v6063_v63, %v6063_v63  ;;  %v6097_v6 = vpack.i.b16 %v6065_v29, %v6065_v29  ;;  %v6127_v27 = vperm.slane %v10401_v46, %v17163_v11 }
 0x458   : > { %v6099_v43 = vpack.i.b16 %v6067_v47, %v6067_v47  ;;  %v6131_v35 = vperm.slane %v6093_v9, %v17163_v11  ;;  %v6135_v61 = vperm.slane %v10402_v24, %v17163_v11  ;;  %v6143_v34 = vperm.slane %v10403_v39, %v17163_v11 }
 0x459   : > { %v6139_v41 = vperm.slane %v6095_v50, %v17163_v11  ;;  %v6147_v37 = vperm.slane %v6097_v6, %v17163_v11  ;;  %v6151_v5 = vperm.slane %v10404_v30, %v17163_v11  ;;  %v6285_v8 = vsel %vm12539_vm13, %v6127_v27, %v6284_v59  ;;  %10526 = vmatmul.msk.bf16.gmra.mxu0 %vm537_vm7, %v8293_v45  ;;  %v15398_v50 = vpop.f32.mrf.mxu0 }
 0x45a   : > { %v6155_v62 = vperm.slane %v6099_v43, %v17163_v11  ;;  %6286 = vst [vmem:[%s12266_s6 + $0x4] sm:$0x1] %v6285_v8  ;;  %v6288_v17 = vsel %vm12539_vm13, %v6131_v35, %v6287_v53  ;;  %v6291_v51 = vsel %vm12539_vm13, %v6135_v61, %v6290_v1  ;;  %v6297_v22 = vsel %vm12539_vm13, %v6143_v34, %v6296_v10  ;;  %v6308_v35 = vld [vmem:[%s12266_s6 + $0x44] sm:$0x1]  ;;  %v6311_v61 = vld [vmem:[%s12266_s6 + $0x4c] sm:$0x1] }
 0x45b   : > { %6289 = vst [vmem:[%s12266_s6 + $0xc] sm:$0x1] %v6288_v17  ;;  %v6294_v49 = vsel %vm12539_vm13, %v6139_v41, %v6293_v3  ;;  %v6300_v32 = vsel %vm12539_vm13, %v6147_v37, %v6299_v44  ;;  %v6303_v0 = vsel %vm12539_vm13, %v6151_v5, %v6302_v7  ;;  %v6005_v56 = vrot.slane %v5997_v28, 3  ;;  %v6314_v37 = vld [vmem:[%s12266_s6 + $0x54] sm:$0x1] }
 0x45c   : > { %6292 = vst [vmem:[%s12266_s6 + $0x14] sm:$0x1] %v6291_v51  ;;  %v6306_v57 = vsel %vm12539_vm13, %v6155_v62, %v6305_v2  ;;  %v5992_v42 = vadd.f32 %v15153_v20, %v15235_v12  ;;  %v5994_v48 = vadd.f32 %v15212_v54, %v15290_v38  ;;  %v6712_v25 = vadd.f32 %v6711_v58, %v6676_v23  ;;  %v6317_v5 = vld [vmem:[%s12266_s6 + $0x5c] sm:$0x1]  ;;  %v6320_v8 = vld [vmem:[%s12266_s6 + $0x64] sm:$0x1] }
 0x45d   : > { %6295 = vst [vmem:[%s12266_s6 + $0x1c] sm:$0x1] %v6294_v49  ;;  %v6023_v18 = vsel %vm817_vm8, %v5997_v28, %v6005_v56  ;;  %v6025_v13 = vsel %vm501_vm0, %v5997_v28, %v6005_v56  ;;  %v6028_v4 = vsel %vm504_vm1, %v5997_v28, %v6005_v56  ;;  %v6031_v21 = vsel %vm507_vm2, %v5997_v28, %v6005_v56  ;;  %v6323_v17 = vld [vmem:[%s12266_s6 + $0x6c] sm:$0x1]  ;;  %v6326_v51 = vld [vmem:[%s12266_s6 + $0x74] sm:$0x1] }
 0x45e   : > { %6298 = vst [vmem:[%s12266_s6 + $0x24] sm:$0x1] %v6297_v22  ;;  %v6027_v46 = vrot.slane %v6025_v13, 1  ;;  %v6030_v20 = vrot.slane %v6028_v4, 2  ;;  %v6033_v12 = vrot.slane %v6031_v21, 3  ;;  %v6069_v52 = vunpack.i.h.s16 %v6023_v18  ;;  %v15440_v13 = vpop.f32.mrf.mxu1 }
 0x45f   : > { %6301 = vst [vmem:[%s12266_s6 + $0x2c] sm:$0x1] %v6300_v32  ;;  %v10405_v54 = vpack.i.b16 %v6023_v18, %v6023_v18  ;;  %v5998_v38 = vpack.c.bf16 %v5992_v42, %v5992_v42  ;;  %v15391_v58 = vpack.c.bf16 %v5994_v48, %v5994_v48  ;;  %v15393_v63 = vpack.c.bf16 %v6712_v25, %v6712_v25  ;;  %v6329_v49 = vld [vmem:[%s12266_s6 + $0x7c] sm:$0x1] }
 0x460   : > { %6304 = vst [vmem:[%s12266_s6 + $0x34] sm:$0x1] %v6303_v0  ;;  %v6071_v29 = vunpack.i.h.s16 %v6027_v46  ;;  %v6073_v28 = vunpack.i.h.s16 %v6030_v20  ;;  %v6075_v24 = vunpack.i.h.s16 %v6033_v12  ;;  %v6101_v47 = vpack.i.b16 %v6069_v52, %v6069_v52 }
 0x461   : > { %6307 = vst [vmem:[%s12266_s6 + $0x3c] sm:$0x1] %v6306_v57  ;;  %v10406_v9 = vpack.i.b16 %v6027_v46, %v6027_v46  ;;  %v10407_v39 = vpack.i.b16 %v6030_v20, %v6030_v20  ;;  %v10408_v30 = vpack.i.b16 %v6033_v12, %v6033_v12  ;;  %v6159_v45 = vperm.slane %v10405_v54, %v17163_v11 }
 0x462   : > { %v6103_v6 = vpack.i.b16 %v6071_v29, %v6071_v29  ;;  %v6105_v27 = vpack.i.b16 %v6073_v28, %v6073_v28  ;;  %v6107_v23 = vpack.i.b16 %v6075_v24, %v6075_v24  ;;  %v6163_v43 = vperm.slane %v6101_v47, %v17163_v11 }
 0x463   : > { %v6167_v34 = vperm.slane %v10406_v9, %v17163_v11  ;;  %v6175_v59 = vperm.slane %v10407_v39, %v17163_v11  ;;  %v6183_v53 = vperm.slane %v10408_v30, %v17163_v11  ;;  %v6309_v41 = vsel %vm12539_vm13, %v6159_v45, %v6308_v35  ;;  %v17206_v9 = vld [vmem:[#allocation34_spill] sm:$0xff]  ;;  %v17207_v39 = vld [vmem:[#allocation33_spill] sm:$0xff] }
 0x464   : > { %v6171_v1 = vperm.slane %v6103_v6, %v17163_v11  ;;  %v6179_v3 = vperm.slane %v6105_v27, %v17163_v11  ;;  %v6187_v10 = vperm.slane %v6107_v23, %v17163_v11  ;;  %6310 = vst [vmem:[%s12266_s6 + $0x44] sm:$0x1] %v6309_v41  ;;  %v6312_v62 = vsel %vm12539_vm13, %v6163_v43, %v6311_v61  ;;  %v15457_v43 = vpop.f32.mrf.mxu0  ;;  %v6335_v41 = vld [vmem:[%s12266_s6 + $0x8c] sm:$0x1] }
 0x465   : > { %6313 = vst [vmem:[%s12266_s6 + $0x4c] sm:$0x1] %v6312_v62  ;;  %v6315_v22 = vsel %vm12539_vm13, %v6167_v34, %v6314_v37  ;;  %v6321_v44 = vsel %vm12539_vm13, %v6175_v59, %v6320_v8  ;;  %v6327_v7 = vsel %vm12539_vm13, %v6183_v53, %v6326_v51  ;;  %v6006_v32 = vrot.slane %v5998_v38, 3  ;;  %v6332_v53 = vld [vmem:[%s12266_s6 + $0x84] sm:$0x1] }
 0x466   : > { %6316 = vst [vmem:[%s12266_s6 + $0x54] sm:$0x1] %v6315_v22  ;;  %v6318_v0 = vsel %vm12539_vm13, %v6171_v1, %v6317_v5  ;;  %v6324_v2 = vsel %vm12539_vm13, %v6179_v3, %v6323_v17  ;;  %v6330_v56 = vsel %vm12539_vm13, %v6187_v10, %v6329_v49  ;;  %v6007_v57 = vrot.slane %v15391_v58, 3  ;;  %v6338_v3 = vld [vmem:[%s12266_s6 + $0x94] sm:$0x1] }
 0x467   : > { %6319 = vst [vmem:[%s12266_s6 + $0x5c] sm:$0x1] %v6318_v0  ;;  %v6036_v42 = vsel %vm817_vm8, %v5998_v38, %v6006_v32  ;;  %v6038_v48 = vsel %vm501_vm0, %v5998_v38, %v6006_v32  ;;  %v6041_v25 = vsel %vm504_vm1, %v5998_v38, %v6006_v32  ;;  %v6044_v18 = vsel %vm507_vm2, %v5998_v38, %v6006_v32  ;;  %v6341_v10 = vld [vmem:[%s12266_s6 + $0x9c] sm:$0x1]  ;;  %v6344_v62 = vld [vmem:[%s12266_s6 + $0xa4] sm:$0x1] }
 0x468   : > { %6322 = vst [vmem:[%s12266_s6 + $0x64] sm:$0x1] %v6321_v44  ;;  %v6040_v4 = vrot.slane %v6038_v48, 1  ;;  %v6043_v21 = vrot.slane %v6041_v25, 2  ;;  %v6046_v46 = vrot.slane %v6044_v18, 3  ;;  %v6077_v20 = vunpack.i.h.s16 %v6036_v42 }
 0x469   : > { %6325 = vst [vmem:[%s12266_s6 + $0x6c] sm:$0x1] %v6324_v2  ;;  %v10409_v12 = vpack.i.b16 %v6036_v42, %v6036_v42  ;;  %v6049_v52 = vsel %vm817_vm8, %v15391_v58, %v6007_v57  ;;  %v6051_v54 = vsel %vm501_vm0, %v15391_v58, %v6007_v57  ;;  %v6054_v29 = vsel %vm504_vm1, %v15391_v58, %v6007_v57  ;;  %v6350_v49 = vld [vmem:[%s12266_s6 + $0xb4] sm:$0x1] }
 0x46a   : > { %6328 = vst [vmem:[%s12266_s6 + $0x74] sm:$0x1] %v6327_v7  ;;  %v6079_v38 = vunpack.i.h.s16 %v6040_v4  ;;  %v6081_v28 = vunpack.i.h.s16 %v6043_v21  ;;  %v6083_v24 = vunpack.i.h.s16 %v6046_v46  ;;  %v6109_v47 = vpack.i.b16 %v6077_v20, %v6077_v20  ;;  %v6347_v7 = vld [vmem:[%s12266_s6 + $0xac] sm:$0x1] }
 0x46b   : > { %v17208_v30 = vpack.c.b16 %v17206_v9, %v17207_v39  ;;  %6331 = vst [vmem:[%s12266_s6 + $0x7c] sm:$0x1] %v6330_v56  ;;  %v10410_v45 = vpack.i.b16 %v6040_v4, %v6040_v4  ;;  %v10411_v6 = vpack.i.b16 %v6043_v21, %v6043_v21  ;;  %v10412_v27 = vpack.i.b16 %v6046_v46, %v6046_v46  ;;  %v6353_v56 = vld [vmem:[%s12266_s6 + $0xbc] sm:$0x1] }
 0x46c   : > { %v6191_v23 = vperm.slane %v10409_v12, %v17163_v11  ;;  %v6111_v35 = vpack.i.b16 %v6079_v38, %v6079_v38  ;;  %v6113_v61 = vpack.i.b16 %v6081_v28, %v6081_v28  ;;  %v6115_v34 = vpack.i.b16 %v6083_v24, %v6083_v24 }
 0x46d   : > { %10569 = vmatmul.msk.bf16.vlgmr.msrb.gmra.mxu0 %vm537_vm7, %v17208_v30  ;;  %v6195_v59 = vperm.slane %v6109_v47, %v17163_v11  ;;  %v6199_v37 = vperm.slane %v10410_v45, %v17163_v11  ;;  %v6207_v5 = vperm.slane %v10411_v6, %v17163_v11  ;;  %v6215_v8 = vperm.slane %v10412_v27, %v17163_v11  ;;  %v6356_v6 = vld [vmem:[%s12266_s6 + $0xc4] sm:$0x1] }
 0x46e   : > { %v6333_v1 = vsel %vm12539_vm13, %v6191_v23, %v6332_v53  ;;  %v6203_v17 = vperm.slane %v6111_v35, %v17163_v11  ;;  %v6211_v51 = vperm.slane %v6113_v61, %v17163_v11  ;;  %v6219_v22 = vperm.slane %v6115_v34, %v17163_v11  ;;  %v6359_v34 = vld [vmem:[%s12266_s6 + $0xcc] sm:$0x1]  ;;  %v15513_v53 = vpop.f32.mrf.mxu0 }
 0x46f   : > { %6334 = vst [vmem:[%s12266_s6 + $0x84] sm:$0x1] %v6333_v1  ;;  %v6336_v44 = vsel %vm12539_vm13, %v6195_v59, %v6335_v41  ;;  %v6339_v32 = vsel %vm12539_vm13, %v6199_v37, %v6338_v3  ;;  %v6345_v0 = vsel %vm12539_vm13, %v6207_v5, %v6344_v62  ;;  %v6351_v2 = vsel %vm12539_vm13, %v6215_v8, %v6350_v49  ;;  %v6362_v59 = vld [vmem:[%s12266_s6 + $0xd4] sm:$0x1]  ;;  %v6365_v1 = vld [vmem:[%s12266_s6 + $0xdc] sm:$0x1] }
 0x470   : > { %6337 = vst [vmem:[%s12266_s6 + $0x8c] sm:$0x1] %v6336_v44  ;;  %v6053_v42 = vrot.slane %v6051_v54, 1  ;;  %v6342_v48 = vsel %vm12539_vm13, %v6203_v17, %v6341_v10  ;;  %v6348_v25 = vsel %vm12539_vm13, %v6211_v51, %v6347_v7  ;;  %v6354_v18 = vsel %vm12539_vm13, %v6219_v22, %v6353_v56  ;;  %v15496_v54 = vpop.f32.mrf.mxu1  ;;  %v6368_v3 = vld [vmem:[%s12266_s6 + $0xe4] sm:$0x1] }
 0x471   : > { %6340 = vst [vmem:[%s12266_s6 + $0x94] sm:$0x1] %v6339_v32  ;;  %v6056_v4 = vrot.slane %v6054_v29, 2  ;;  %v6057_v21 = vsel %vm507_vm2, %v15391_v58, %v6007_v57  ;;  %v6085_v46 = vunpack.i.h.s16 %v6049_v52  ;;  %v10413_v12 = vpack.i.b16 %v6049_v52, %v6049_v52  ;;  %v6371_v51 = vld [vmem:[%s12266_s6 + $0xec] sm:$0x1] }
 0x472   : > { %6343 = vst [vmem:[%s12266_s6 + $0x9c] sm:$0x1] %v6342_v48  ;;  %v6087_v20 = vunpack.i.h.s16 %v6053_v42  ;;  %v6059_v38 = vrot.slane %v6057_v21, 3  ;;  %v10414_v24 = vpack.i.b16 %v6053_v42, %v6053_v42  ;;  %v6729_v58 = vrot.slane %v15393_v63, 3  ;;  %v6374_v22 = vld [vmem:[%s12266_s6 + $0xf4] sm:$0x1] }
 0x473   : > { %6346 = vst [vmem:[%s12266_s6 + $0xa4] sm:$0x1] %v6345_v0  ;;  %v6089_v28 = vunpack.i.h.s16 %v6056_v4  ;;  %v10415_v47 = vpack.i.b16 %v6056_v4, %v6056_v4  ;;  %v6117_v29 = vpack.i.b16 %v6085_v46, %v6085_v46  ;;  %v6223_v39 = vperm.slane %v10413_v12, %v17163_v11  ;;  %v17210_v12 = vld [vmem:[#allocation22_spill] sm:$0xff] }
 0x474   : > { %6349 = vst [vmem:[%s12266_s6 + $0xac] sm:$0x1] %v6348_v25  ;;  %v6119_v9 = vpack.i.b16 %v6087_v20, %v6087_v20  ;;  %v6091_v57 = vunpack.i.h.s16 %v6059_v38  ;;  %v10416_v30 = vpack.i.b16 %v6059_v38, %v6059_v38  ;;  %v6231_v45 = vperm.slane %v10414_v24, %v17163_v11  ;;  %v17209_v20 = vld [vmem:[#allocation39_spill] sm:$0xff] }
 0x475   : > { %6352 = vst [vmem:[%s12266_s6 + $0xb4] sm:$0x1] %v6351_v2  ;;  %v6121_v52 = vpack.i.b16 %v6089_v28, %v6089_v28  ;;  %v6227_v27 = vperm.slane %v6117_v29, %v17163_v11  ;;  %v6239_v35 = vperm.slane %v10415_v47, %v17163_v11  ;;  %v6357_v61 = vsel %vm12539_vm13, %v6223_v39, %v6356_v6  ;;  %v6377_v2 = vld [vmem:[%s12266_s6 + $0xfc] sm:$0x1]  ;;  %v7009_v47 = vld [vmem:[%s12266_s6 + $0x4] sm:$0x2] }
 0x476   : > { %6355 = vst [vmem:[%s12266_s6 + $0xbc] sm:$0x1] %v6354_v18  ;;  %v6235_v23 = vperm.slane %v6119_v9, %v17163_v11  ;;  %v6123_v41 = vpack.i.b16 %v6091_v57, %v6091_v57  ;;  %v6247_v5 = vperm.slane %v10416_v30, %v17163_v11  ;;  %v6363_v8 = vsel %vm12539_vm13, %v6231_v45, %v6362_v59  ;;  %v7015_v30 = vld [vmem:[%s12266_s6 + $0x14] sm:$0x2] }
 0x477   : > { %v6243_v37 = vperm.slane %v6121_v52, %v17163_v11  ;;  %6358 = vst [vmem:[%s12266_s6 + $0xc4] sm:$0x1] %v6357_v61  ;;  %v6360_v10 = vsel %vm12539_vm13, %v6227_v27, %v6359_v34  ;;  %v6369_v17 = vsel %vm12539_vm13, %v6239_v35, %v6368_v3  ;;  %v6735_v44 = vsel %vm817_vm8, %v15393_v63, %v6729_v58  ;;  %v7012_v52 = vld [vmem:[%s12266_s6 + $0xc] sm:$0x2] }
 0x478   : > { %6364 = vst [vmem:[%s12266_s6 + $0xd4] sm:$0x1] %v6363_v8  ;;  %v6366_v62 = vsel %vm12539_vm13, %v6235_v23, %v6365_v1  ;;  %v6251_v7 = vperm.slane %v6123_v41, %v17163_v11  ;;  %v6375_v32 = vsel %vm12539_vm13, %v6247_v5, %v6374_v22  ;;  %v6737_v0 = vsel %vm501_vm0, %v15393_v63, %v6729_v58  ;;  %v7165_v29 = vpop.f32.mrf.mxu1  ;;  %v7018_v41 = vld [vmem:[%s12266_s6 + $0x1c] sm:$0x2] }
 0x479   : > { %6361 = vst [vmem:[%s12266_s6 + $0xcc] sm:$0x1] %v6360_v10  ;;  %v6372_v49 = vsel %vm12539_vm13, %v6243_v37, %v6371_v51  ;;  %v6739_v56 = vrot.slane %v6737_v0, 1  ;;  %v6740_v42 = vsel %vm504_vm1, %v15393_v63, %v6729_v58  ;;  %v6743_v48 = vsel %vm507_vm2, %v15393_v63, %v6729_v58  ;;  %v7024_v10 = vld [vmem:[%s12266_s6 + $0x2c] sm:$0x2] }
 0x47a   : > { %6367 = vst [vmem:[%s12266_s6 + $0xdc] sm:$0x1] %v6366_v62  ;;  %v6786_v25 = vunpack.i.h.s16 %v6735_v44  ;;  %v6378_v18 = vsel %vm12539_vm13, %v6251_v7, %v6377_v2  ;;  %v6742_v4 = vrot.slane %v6740_v42, 2  ;;  %v6745_v21 = vrot.slane %v6743_v48, 3 }
 0x47b   : > { %6370 = vst [vmem:[%s12266_s6 + $0xe4] sm:$0x1] %v6369_v17  ;;  %v10445_v46 = vpack.i.b16 %v6735_v44, %v6735_v44  ;;  %v17211_v38 = vpack.c.b16 %v17209_v20, %v17210_v12  ;;  %v6788_v28 = vunpack.i.h.s16 %v6739_v56  ;;  %v10446_v63 = vpack.i.b16 %v6739_v56, %v6739_v56  ;;  %v7027_v44 = vld [vmem:[%s12266_s6 + $0x34] sm:$0x2] }
 0x47c   : > { %6373 = vst [vmem:[%s12266_s6 + $0xec] sm:$0x1] %v6372_v49  ;;  %v6818_v24 = vpack.i.b16 %v6786_v25, %v6786_v25  ;;  %v6714_v40 = vadd.f32 %v15387_v33, %v15398_v50  ;;  %v6790_v9 = vunpack.i.h.s16 %v6742_v4  ;;  %v6792_v39 = vunpack.i.h.s16 %v6745_v21  ;;  %v7021_v33 = vld [vmem:[%s12266_s6 + $0x24] sm:$0x2]  ;;  %v7130_v50 = vpop.f32.mrf.mxu0  ;;  %v7030_v49 = vld [vmem:[%s12266_s6 + $0x3c] sm:$0x2] }
 0x47d   : > { %10570 = vmatmul.msk.bf16.gmra.mxu0 %vm537_vm7, %v17211_v38  ;;  %6376 = vst [vmem:[%s12266_s6 + $0xf4] sm:$0x1] %v6375_v32  ;;  %v10447_v58 = vpack.i.b16 %v6742_v4, %v6742_v4  ;;  %v10448_v57 = vpack.i.b16 %v6745_v21, %v6745_v21  ;;  %v6820_v45 = vpack.i.b16 %v6788_v28, %v6788_v28  ;;  %v15580_v62 = vunpack.c.l.b16 %v9008_v36 }
 0x47e   : > { %6379 = vst [vmem:[%s12266_s6 + $0xfc] sm:$0x1] %v6378_v18  ;;  %v6852_v6 = vperm.slane %v10445_v46, %v17163_v11  ;;  %v6856_v27 = vperm.slane %v6818_v24, %v17163_v11  ;;  %v6860_v23 = vperm.slane %v10446_v63, %v17163_v11  ;;  %v6822_v35 = vpack.i.b16 %v6790_v9, %v6790_v9 }
 0x47f   : > { %v6824_v61 = vpack.i.b16 %v6792_v39, %v6792_v39  ;;  %v6868_v34 = vperm.slane %v10447_v58, %v17163_v11  ;;  %v6876_v59 = vperm.slane %v10448_v57, %v17163_v11  ;;  %v6864_v37 = vperm.slane %v6820_v45, %v17163_v11 }
 0x480   : > { %v7010_v8 = vsel %vm12767_vm9, %v6852_v6, %v7009_v47  ;;  %v7013_v1 = vsel %vm12767_vm9, %v6856_v27, %v7012_v52  ;;  %v7016_v3 = vsel %vm12767_vm9, %v6860_v23, %v7015_v30  ;;  %v6872_v17 = vperm.slane %v6822_v35, %v17163_v11  ;;  %v7033_v52 = vld [vmem:[%s12266_s6 + $0x44] sm:$0x2]  ;;  %v7036_v23 = vld [vmem:[%s12266_s6 + $0x4c] sm:$0x2] }
 0x481   : > { %v6880_v51 = vperm.slane %v6824_v61, %v17163_v11  ;;  %7011 = vst [vmem:[%s12266_s6 + $0x4] sm:$0x2] %v7010_v8  ;;  %v7022_v22 = vsel %vm12767_vm9, %v6868_v34, %v7021_v33  ;;  %v7019_v7 = vsel %vm12767_vm9, %v6864_v37, %v7018_v41  ;;  %v6722_v32 = vpack.c.bf16 %v6714_v40, %v6714_v40  ;;  %v7039_v34 = vld [vmem:[%s12266_s6 + $0x54] sm:$0x2] }
 0x482   : > { %7014 = vst [vmem:[%s12266_s6 + $0xc] sm:$0x2] %v7013_v1  ;;  %v6717_v60 = vadd.f32 %v15440_v13, %v15457_v43  ;;  %v6719_v36 = vadd.f32 %v15496_v54, %v15513_v53  ;;  %v17213_v0 = vpack.c.bf16 %v13966_v19, %v13966_v19  ;;  %v15602_v56 = vunpack.c.l.b16 %v9007_v16  ;;  %v7051_v41 = vld [vmem:[%s12266_s6 + $0x74] sm:$0x2] }
 0x483   : > { %7017 = vst [vmem:[%s12266_s6 + $0x14] sm:$0x2] %v7016_v3  ;;  %v7025_v42 = vsel %vm12767_vm9, %v6872_v17, %v7024_v10  ;;  %v7166_v48 = vadd.f32 %v7165_v29, %v7130_v50  ;;  %v7028_v13 = vsel %vm12767_vm9, %v6876_v59, %v7027_v44  ;;  %v6730_v43 = vrot.slane %v6722_v32, 3  ;;  %v7045_v59 = vld [vmem:[%s12266_s6 + $0x64] sm:$0x2] }
 0x484   : > { %v9467_v2 = vunpack.c.l.b16 %v17213_v0  ;;  %7020 = vst [vmem:[%s12266_s6 + $0x1c] sm:$0x2] %v7019_v7  ;;  %v15610_v54 = vpack.c.bf16 %v6717_v60, %v6717_v60  ;;  %v15612_v19 = vpack.c.bf16 %v6719_v36, %v6719_v36  ;;  %v9472_v14 = vpack.c.b16 %v15580_v62, %v15602_v56  ;;  %v15638_v29 = vpop.f32.mrf.mxu0  ;;  %v7042_v10 = vld [vmem:[%s12266_s6 + $0x5c] sm:$0x2]  ;;  %v7048_v17 = vld [vmem:[%s12266_s6 + $0x6c] sm:$0x2] }
 0x485   : > { %7023 = vst [vmem:[%s12266_s6 + $0x24] sm:$0x2] %v7022_v22  ;;  %v7031_v16 = vsel %vm12767_vm9, %v6880_v51, %v7030_v49  ;;  %v15620_v25 = vpack.c.bf16 %v7166_v48, %v7166_v48  ;;  %v6748_v18 = vsel %vm817_vm8, %v6722_v32, %v6730_v43  ;;  %v6750_v4 = vsel %vm501_vm0, %v6722_v32, %v6730_v43  ;;  %v7054_v51 = vld [vmem:[%s12266_s6 + $0x7c] sm:$0x2] }
 0x486   : > { %v9471_v53 = vpack.c.b16 %v14128_v31, %v9467_v2  ;;  %7026 = vst [vmem:[%s12266_s6 + $0x2c] sm:$0x2] %v7025_v42  ;;  %v6753_v21 = vsel %vm504_vm1, %v6722_v32, %v6730_v43  ;;  %v6756_v46 = vsel %vm507_vm2, %v6722_v32, %v6730_v43  ;;  %v15627_v31 = vpop.f32.mrf.mxu1  ;;  %v6752_v20 = vrot.slane %v6750_v4, 1 }
 0x487   : > { %7029 = vst [vmem:[%s12266_s6 + $0x34] sm:$0x2] %v7028_v13  ;;  %v6755_v12 = vrot.slane %v6753_v21, 2  ;;  %v6758_v38 = vrot.slane %v6756_v46, 3  ;;  %v6794_v28 = vunpack.i.h.s16 %v6748_v18  ;;  %v10449_v24 = vpack.i.b16 %v6748_v18, %v6748_v18 }
 0x488   : > { %7032 = vst [vmem:[%s12266_s6 + $0x3c] sm:$0x2] %v7031_v16  ;;  %v6731_v63 = vrot.slane %v15610_v54, 3  ;;  %v15633_v47 = vrot.slane %v15612_v19, 3  ;;  %v15636_v40 = vrot.slane %v15620_v25, 3  ;;  %v6796_v9 = vunpack.i.h.s16 %v6752_v20 }
 0x489   : > { %v6798_v39 = vunpack.i.h.s16 %v6755_v12  ;;  %v6800_v58 = vunpack.i.h.s16 %v6758_v38  ;;  %v6826_v57 = vpack.i.b16 %v6794_v28, %v6794_v28  ;;  %v10450_v30 = vpack.i.b16 %v6752_v20, %v6752_v20 }
 0x48a   : > { %v10451_v45 = vpack.i.b16 %v6755_v12, %v6755_v12  ;;  %v10452_v6 = vpack.i.b16 %v6758_v38, %v6758_v38  ;;  %v6884_v27 = vperm.slane %v10449_v24, %v17163_v11  ;;  %v6828_v33 = vpack.i.b16 %v6796_v9, %v6796_v9 }
 0x48b   : > { %v6830_v50 = vpack.i.b16 %v6798_v39, %v6798_v39  ;;  %v6832_v35 = vpack.i.b16 %v6800_v58, %v6800_v58  ;;  %v6888_v61 = vperm.slane %v6826_v57, %v17163_v11  ;;  %v6892_v37 = vperm.slane %v10450_v30, %v17163_v11  ;;  %v7060_v30 = vld [vmem:[%s12266_s6 + $0x8c] sm:$0x2] }
 0x48c   : > { %v6900_v8 = vperm.slane %v10451_v45, %v17163_v11  ;;  %v6908_v1 = vperm.slane %v10452_v6, %v17163_v11  ;;  %v7034_v3 = vsel %vm12767_vm9, %v6884_v27, %v7033_v52  ;;  %v6896_v22 = vperm.slane %v6828_v33, %v17163_v11  ;;  %v15698_v9 = vpop.f32.mrf.mxu0  ;;  %v7063_v45 = vld [vmem:[%s12266_s6 + $0x94] sm:$0x2] }
 0x48d   : > { %10589 = vmatmul.msk.bf16.vlgmr.msra.gmra.mxu0 %vm537_vm7, %v9471_v53  ;;  %v6904_v44 = vperm.slane %v6830_v50, %v17163_v11  ;;  %v6912_v7 = vperm.slane %v6832_v35, %v17163_v11  ;;  %7035 = vst [vmem:[%s12266_s6 + $0x44] sm:$0x2] %v7034_v3  ;;  %v7037_v49 = vsel %vm12767_vm9, %v6888_v61, %v7036_v23  ;;  %v7069_v50 = vld [vmem:[%s12266_s6 + $0xa4] sm:$0x2]  ;;  %v7075_v35 = vld [vmem:[%s12266_s6 + $0xb4] sm:$0x2] }
 0x48e   : > { %7038 = vst [vmem:[%s12266_s6 + $0x4c] sm:$0x2] %v7037_v49  ;;  %v7040_v32 = vsel %vm12767_vm9, %v6892_v37, %v7039_v34  ;;  %v7046_v60 = vsel %vm12767_vm9, %v6900_v8, %v7045_v59  ;;  %v7052_v36 = vsel %vm12767_vm9, %v6908_v1, %v7051_v41  ;;  %v6761_v0 = vsel %vm817_vm8, %v15610_v54, %v6731_v63  ;;  %v15685_v4 = vpop.f32.mrf.mxu1  ;;  %v7066_v37 = vld [vmem:[%s12266_s6 + $0x9c] sm:$0x2] }
 0x48f   : > { %7041 = vst [vmem:[%s12266_s6 + $0x54] sm:$0x2] %v7040_v32  ;;  %v7043_v2 = vsel %vm12767_vm9, %v6896_v22, %v7042_v10  ;;  %v7049_v42 = vsel %vm12767_vm9, %v6904_v44, %v7048_v17  ;;  %v7055_v48 = vsel %vm12767_vm9, %v6912_v7, %v7054_v51  ;;  %v6763_v13 = vsel %vm501_vm0, %v15610_v54, %v6731_v63  ;;  %v7072_v17 = vld [vmem:[%s12266_s6 + $0xac] sm:$0x2]  ;;  %v7078_v51 = vld [vmem:[%s12266_s6 + $0xbc] sm:$0x2] }
 0x490   : > { %7044 = vst [vmem:[%s12266_s6 + $0x5c] sm:$0x2] %v7043_v2  ;;  %v6765_v43 = vrot.slane %v6763_v13, 1  ;;  %v6766_v53 = vsel %vm504_vm1, %v15610_v54, %v6731_v63  ;;  %v6769_v16 = vsel %vm507_vm2, %v15610_v54, %v6731_v63  ;;  %v6802_v18 = vunpack.i.h.s16 %v6761_v0  ;;  %v7057_v54 = vld [vmem:[%s12266_s6 + $0x84] sm:$0x2] }
 0x491   : > { %7047 = vst [vmem:[%s12266_s6 + $0x64] sm:$0x2] %v7046_v60  ;;  %v6768_v21 = vrot.slane %v6766_v53, 2  ;;  %v6771_v46 = vrot.slane %v6769_v16, 3  ;;  %v10453_v20 = vpack.i.b16 %v6761_v0, %v6761_v0  ;;  %v15691_v12 = vsel %vm817_vm8, %v15612_v19, %v15633_v47 }
 0x492   : > { %7050 = vst [vmem:[%s12266_s6 + $0x6c] sm:$0x2] %v7049_v42  ;;  %v6804_v38 = vunpack.i.h.s16 %v6765_v43  ;;  %v6834_v28 = vpack.i.b16 %v6802_v18, %v6802_v18  ;;  %v10454_v24 = vpack.i.b16 %v6765_v43, %v6765_v43  ;;  %v6776_v63 = vsel %vm501_vm0, %v15612_v19, %v15633_v47 }
 0x493   : > { %7053 = vst [vmem:[%s12266_s6 + $0x74] sm:$0x2] %v7052_v36  ;;  %v6806_v39 = vunpack.i.h.s16 %v6768_v21  ;;  %v6808_v58 = vunpack.i.h.s16 %v6771_v46  ;;  %v10455_v57 = vpack.i.b16 %v6768_v21, %v6768_v21  ;;  %v10456_v52 = vpack.i.b16 %v6771_v46, %v6771_v46 }
 0x494   : > { %7056 = vst [vmem:[%s12266_s6 + $0x7c] sm:$0x2] %v7055_v48  ;;  %v6836_v6 = vpack.i.b16 %v6804_v38, %v6804_v38  ;;  %v6916_v27 = vperm.slane %v10453_v20, %v17163_v11  ;;  %v6920_v23 = vperm.slane %v6834_v28, %v17163_v11  ;;  %v6924_v33 = vperm.slane %v10454_v24, %v17163_v11  ;;  %v7081_v38 = vld [vmem:[%s12266_s6 + $0xc4] sm:$0x2]  ;;  %v7087_v28 = vld [vmem:[%s12266_s6 + $0xd4] sm:$0x2] }
 0x495   : > { %v6838_v61 = vpack.i.b16 %v6806_v39, %v6806_v39  ;;  %v6840_v34 = vpack.i.b16 %v6808_v58, %v6808_v58  ;;  %v6932_v59 = vperm.slane %v10455_v57, %v17163_v11  ;;  %v6940_v41 = vperm.slane %v10456_v52, %v17163_v11  ;;  %v7093_v39 = vld [vmem:[%s12266_s6 + $0xe4] sm:$0x2]  ;;  %v7099_v58 = vld [vmem:[%s12266_s6 + $0xf4] sm:$0x2]  ;;  %v15760_v57 = vpop.f32.mrf.mxu0 }
 0x496   : > { %v6928_v8 = vperm.slane %v6836_v6, %v17163_v11  ;;  %v7058_v1 = vsel %vm12767_vm9, %v6916_v27, %v7057_v54  ;;  %v7061_v3 = vsel %vm12767_vm9, %v6920_v23, %v7060_v30  ;;  %v7064_v10 = vsel %vm12767_vm9, %v6924_v33, %v7063_v45  ;;  %v7084_v30 = vld [vmem:[%s12266_s6 + $0xcc] sm:$0x2]  ;;  %v7090_v45 = vld [vmem:[%s12266_s6 + $0xdc] sm:$0x2] }
 0x497   : > { %v6936_v22 = vperm.slane %v6838_v61, %v17163_v11  ;;  %v6944_v44 = vperm.slane %v6840_v34, %v17163_v11  ;;  %7059 = vst [vmem:[%s12266_s6 + $0x84] sm:$0x2] %v7058_v1  ;;  %v7070_v7 = vsel %vm12767_vm9, %v6932_v59, %v7069_v50  ;;  %v7076_v49 = vsel %vm12767_vm9, %v6940_v41, %v7075_v35  ;;  %v7096_v50 = vld [vmem:[%s12266_s6 + $0xec] sm:$0x2]  ;;  %v7102_v35 = vld [vmem:[%s12266_s6 + $0xfc] sm:$0x2] }
 0x498   : > { %7062 = vst [vmem:[%s12266_s6 + $0x8c] sm:$0x2] %v7061_v3  ;;  %v7067_v32 = vsel %vm12767_vm9, %v6928_v8, %v7066_v37  ;;  %v6778_v60 = vrot.slane %v6776_v63, 1  ;;  %v6779_v36 = vsel %vm504_vm1, %v15612_v19, %v15633_v47  ;;  %v6782_v0 = vsel %vm507_vm2, %v15612_v19, %v15633_v47  ;;  %v15746_v47 = vpop.f32.mrf.mxu1 }
 0x499   : > { %7065 = vst [vmem:[%s12266_s6 + $0x94] sm:$0x2] %v7064_v10  ;;  %v7073_v2 = vsel %vm12767_vm9, %v6936_v22, %v7072_v17  ;;  %v7079_v42 = vsel %vm12767_vm9, %v6944_v44, %v7078_v51  ;;  %v6781_v48 = vrot.slane %v6779_v36, 2  ;;  %v6784_v13 = vrot.slane %v6782_v0, 3 }
 0x49a   : > { %7068 = vst [vmem:[%s12266_s6 + $0x9c] sm:$0x2] %v7067_v32  ;;  %v6810_v43 = vunpack.i.h.s16 %v15691_v12  ;;  %v6812_v53 = vunpack.i.h.s16 %v6778_v60  ;;  %v10457_v16 = vpack.i.b16 %v15691_v12, %v15691_v12  ;;  %v10458_v19 = vpack.i.b16 %v6778_v60, %v6778_v60 }
 0x49b   : > { %7071 = vst [vmem:[%s12266_s6 + $0xa4] sm:$0x2] %v7070_v7  ;;  %v6814_v18 = vunpack.i.h.s16 %v6781_v48  ;;  %v6816_v21 = vunpack.i.h.s16 %v6784_v13  ;;  %v10459_v46 = vpack.i.b16 %v6781_v48, %v6781_v48  ;;  %v10460_v20 = vpack.i.b16 %v6784_v13, %v6784_v13 }
 0x49c   : > { %7074 = vst [vmem:[%s12266_s6 + $0xac] sm:$0x2] %v7073_v2  ;;  %v6842_v12 = vpack.i.b16 %v6810_v43, %v6810_v43  ;;  %v6844_v24 = vpack.i.b16 %v6812_v53, %v6812_v53  ;;  %v6948_v54 = vperm.slane %v10457_v16, %v17163_v11  ;;  %v6956_v63 = vperm.slane %v10458_v19, %v17163_v11  ;;  %v7463_v19 = vld [vmem:[%s12266_s6 + $0x4] sm:$0x2] }
 0x49d   : > { %10590 = vmatmul.msk.bf16.gmra.mxu0 %vm537_vm7, %v9472_v14  ;;  %7077 = vst [vmem:[%s12266_s6 + $0xb4] sm:$0x2] %v7076_v49  ;;  %v6846_v62 = vpack.i.b16 %v6814_v18, %v6814_v18  ;;  %v6848_v56 = vpack.i.b16 %v6816_v21, %v6816_v21  ;;  %v6964_v14 = vperm.slane %v10459_v46, %v17163_v11 }
 0x49e   : > { %v6972_v52 = vperm.slane %v10460_v20, %v17163_v11  ;;  %7080 = vst [vmem:[%s12266_s6 + $0xbc] sm:$0x2] %v7079_v42  ;;  %v6952_v6 = vperm.slane %v6842_v12, %v17163_v11  ;;  %v6960_v27 = vperm.slane %v6844_v24, %v17163_v11  ;;  %v7082_v23 = vsel %vm12767_vm9, %v6948_v54, %v7081_v38  ;;  %v7469_v20 = vld [vmem:[%s12266_s6 + $0x14] sm:$0x2]  ;;  %v7855_v38 = vpop.f32.mrf.mxu0  ;;  %v7466_v54 = vld [vmem:[%s12266_s6 + $0xc] sm:$0x2] }
 0x49f   : > { %v7088_v33 = vsel %vm12767_vm9, %v6956_v63, %v7087_v28  ;;  %v6968_v61 = vperm.slane %v6846_v62, %v17163_v11  ;;  %v6976_v34 = vperm.slane %v6848_v56, %v17163_v11  ;;  %7083 = vst [vmem:[%s12266_s6 + $0xc4] sm:$0x2] %v7082_v23  ;;  %v7094_v59 = vsel %vm12767_vm9, %v6964_v14, %v7093_v39  ;;  %v7475_v39 = vld [vmem:[%s12266_s6 + $0x24] sm:$0x2]  ;;  %v7472_v56 = vld [vmem:[%s12266_s6 + $0x1c] sm:$0x2] }
 0x4a0   : > { %v7100_v41 = vsel %vm12767_vm9, %v6972_v52, %v7099_v58  ;;  %v7085_v37 = vsel %vm12767_vm9, %v6952_v6, %v7084_v30  ;;  %7089 = vst [vmem:[%s12266_s6 + $0xd4] sm:$0x2] %v7088_v33  ;;  %v7091_v8 = vsel %vm12767_vm9, %v6960_v27, %v7090_v45  ;;  %v7189_v1 = vsel %vm817_vm8, %v15620_v25, %v15636_v40  ;;  %v7890_v43 = vpop.f32.mrf.mxu1  ;;  %v7481_v52 = vld [vmem:[%s12266_s6 + $0x34] sm:$0x2]  ;;  %v7478_v27 = vld [vmem:[%s12266_s6 + $0x2c] sm:$0x2] }
 0x4a1   : > { %v7191_v3 = vsel %vm501_vm0, %v15620_v25, %v15636_v40  ;;  %7086 = vst [vmem:[%s12266_s6 + $0xcc] sm:$0x2] %v7085_v37  ;;  %v7097_v10 = vsel %vm12767_vm9, %v6968_v61, %v7096_v50  ;;  %v7103_v17 = vsel %vm12767_vm9, %v6976_v34, %v7102_v35  ;;  %v7194_v22 = vsel %vm504_vm1, %v15620_v25, %v15636_v40  ;;  %v7484_v35 = vld [vmem:[%s12266_s6 + $0x3c] sm:$0x2] }
 0x4a2   : > { %v7193_v51 = vrot.slane %v7191_v3, 1  ;;  %7092 = vst [vmem:[%s12266_s6 + $0xdc] sm:$0x2] %v7091_v8  ;;  %v7196_v44 = vrot.slane %v7194_v22, 2  ;;  %v7197_v7 = vsel %vm507_vm2, %v15620_v25, %v15636_v40  ;;  %v7240_v49 = vunpack.i.h.s16 %v7189_v1 }
 0x4a3   : > { %v10465_v32 = vpack.i.b16 %v7189_v1, %v7189_v1  ;;  %7095 = vst [vmem:[%s12266_s6 + $0xe4] sm:$0x2] %v7094_v59  ;;  %v7199_v60 = vrot.slane %v7197_v7, 3  ;;  %v7168_v0 = vadd.f32 %v15627_v31, %v15638_v29  ;;  %v7171_v33 = vadd.f32 %v15685_v4, %v15698_v9 }
 0x4a4   : > { %v7242_v5 = vunpack.i.h.s16 %v7193_v51  ;;  %v10466_v36 = vpack.i.b16 %v7193_v51, %v7193_v51  ;;  %7098 = vst [vmem:[%s12266_s6 + $0xec] sm:$0x2] %v7097_v10  ;;  %v7244_v2 = vunpack.i.h.s16 %v7196_v44  ;;  %v7272_v42 = vpack.i.b16 %v7240_v49, %v7240_v49 }
 0x4a5   : > { %v10467_v48 = vpack.i.b16 %v7196_v44, %v7196_v44  ;;  %v7306_v13 = vperm.slane %v10465_v32, %v17163_v11  ;;  %7101 = vst [vmem:[%s12266_s6 + $0xf4] sm:$0x2] %v7100_v41  ;;  %v7246_v25 = vunpack.i.h.s16 %v7199_v60  ;;  %v10468_v53 = vpack.i.b16 %v7199_v60, %v7199_v60 }
 0x4a6   : > { %v7274_v40 = vpack.i.b16 %v7242_v5, %v7242_v5  ;;  %v7314_v16 = vperm.slane %v10466_v36, %v17163_v11  ;;  %7104 = vst [vmem:[%s12266_s6 + $0xfc] sm:$0x2] %v7103_v17  ;;  %v7276_v31 = vpack.i.b16 %v7244_v2, %v7244_v2  ;;  %v7310_v29 = vperm.slane %v7272_v42, %v17163_v11 }
 0x4a7   : > { %v7322_v18 = vperm.slane %v10467_v48, %v17163_v11  ;;  %v7464_v46 = vsel %vm13031_vm12, %v7306_v13, %v7463_v19  ;;  %v7278_v28 = vpack.i.b16 %v7246_v25, %v7246_v25  ;;  %v7330_v24 = vperm.slane %v10468_v53, %v17163_v11  ;;  %v15867_v48 = vpop.f32.mrf.mxu0  ;;  %v7487_v53 = vld [vmem:[%s12266_s6 + $0x44] sm:$0x2] }
 0x4a8   : > { %v7318_v12 = vperm.slane %v7274_v40, %v17163_v11  ;;  %7465 = vst [vmem:[%s12266_s6 + $0x4] sm:$0x2] %v7464_v46  ;;  %v7470_v63 = vsel %vm13031_vm12, %v7314_v16, %v7469_v20  ;;  %v7326_v58 = vperm.slane %v7276_v31, %v17163_v11  ;;  %v7467_v62 = vsel %vm13031_vm12, %v7310_v29, %v7466_v54  ;;  %v15864_v7 = vpop.f32.mrf.mxu1  ;;  %v7493_v46 = vld [vmem:[%s12266_s6 + $0x54] sm:$0x2]  ;;  %v7496_v20 = vld [vmem:[%s12266_s6 + $0x5c] sm:$0x2] }
 0x4a9   : > { %7471 = vst [vmem:[%s12266_s6 + $0x14] sm:$0x2] %v7470_v63  ;;  %v7476_v14 = vsel %vm13031_vm12, %v7322_v18, %v7475_v39  ;;  %v7176_v30 = vpack.c.bf16 %v7168_v0, %v7168_v0  ;;  %v7334_v45 = vperm.slane %v7278_v28, %v17163_v11  ;;  %v7482_v23 = vsel %vm13031_vm12, %v7330_v24, %v7481_v52  ;;  %v7490_v18 = vld [vmem:[%s12266_s6 + $0x4c] sm:$0x2]  ;;  %v7499_v54 = vld [vmem:[%s12266_s6 + $0x64] sm:$0x2] }
 0x4aa   : > { %7468 = vst [vmem:[%s12266_s6 + $0xc] sm:$0x2] %v7467_v62  ;;  %v7473_v6 = vsel %vm13031_vm12, %v7318_v12, %v7472_v56  ;;  %v7479_v50 = vsel %vm13031_vm12, %v7326_v58, %v7478_v27  ;;  %v7173_v34 = vadd.f32 %v15746_v47, %v15760_v57  ;;  %v7891_v59 = vadd.f32 %v7890_v43, %v7855_v38  ;;  %v7505_v63 = vld [vmem:[%s12266_s6 + $0x74] sm:$0x2]  ;;  %v7502_v62 = vld [vmem:[%s12266_s6 + $0x6c] sm:$0x2] }
 0x4ab   : > { %7474 = vst [vmem:[%s12266_s6 + $0x1c] sm:$0x2] %v7473_v6  ;;  %v7184_v61 = vrot.slane %v7176_v30, 3  ;;  %v7485_v41 = vsel %vm13031_vm12, %v7334_v45, %v7484_v35  ;;  %v7177_v37 = vpack.c.bf16 %v7171_v33, %v7171_v33 }
 0x4ac   : > { %7477 = vst [vmem:[%s12266_s6 + $0x24] sm:$0x2] %v7476_v14  ;;  %v15860_v22 = vpack.c.bf16 %v7173_v34, %v7173_v34  ;;  %v15862_v44 = vpack.c.bf16 %v7891_v59, %v7891_v59  ;;  %v7508_v14 = vld [vmem:[%s12266_s6 + $0x7c] sm:$0x2] }
 0x4ad   : > { %7480 = vst [vmem:[%s12266_s6 + $0x2c] sm:$0x2] %v7479_v50  ;;  %v7202_v8 = vsel %vm817_vm8, %v7176_v30, %v7184_v61  ;;  %v7204_v4 = vsel %vm501_vm0, %v7176_v30, %v7184_v61  ;;  %v7207_v9 = vsel %vm504_vm1, %v7176_v30, %v7184_v61  ;;  %v7210_v1 = vsel %vm507_vm2, %v7176_v30, %v7184_v61 }
 0x4ae   : > { %7483 = vst [vmem:[%s12266_s6 + $0x34] sm:$0x2] %v7482_v23  ;;  %v7206_v3 = vrot.slane %v7204_v4, 1  ;;  %v7209_v10 = vrot.slane %v7207_v9, 2  ;;  %v7212_v17 = vrot.slane %v7210_v1, 3  ;;  %v7248_v47 = vunpack.i.h.s16 %v7202_v8 }
 0x4af   : > { %7486 = vst [vmem:[%s12266_s6 + $0x3c] sm:$0x2] %v7485_v41  ;;  %v10469_v57 = vpack.i.b16 %v7202_v8, %v7202_v8  ;;  %v7185_v51 = vrot.slane %v7177_v37, 3  ;;  %v7186_v41 = vrot.slane %v15860_v22, 3  ;;  %v15912_v1 = vrot.slane %v15862_v44, 3 }
 0x4b0   : > { %v7250_v49 = vunpack.i.h.s16 %v7206_v3  ;;  %v7252_v32 = vunpack.i.h.s16 %v7209_v10  ;;  %v7254_v60 = vunpack.i.h.s16 %v7212_v17  ;;  %v7280_v5 = vpack.i.b16 %v7248_v47, %v7248_v47 }
 0x4b1   : > { %v10470_v36 = vpack.i.b16 %v7206_v3, %v7206_v3  ;;  %v10471_v0 = vpack.i.b16 %v7209_v10, %v7209_v10  ;;  %v10472_v2 = vpack.i.b16 %v7212_v17, %v7212_v17  ;;  %v7338_v42 = vperm.slane %v10469_v57, %v17163_v11  ;;  %v15914_v3 = vpop.f32.mrf.mxu1 }
 0x4b2   : > { %v7282_v13 = vpack.i.b16 %v7250_v49, %v7250_v49  ;;  %v7284_v43 = vpack.i.b16 %v7252_v32, %v7252_v32  ;;  %v7286_v25 = vpack.i.b16 %v7254_v60, %v7254_v60  ;;  %v7342_v40 = vperm.slane %v7280_v5, %v17163_v11  ;;  %v15921_v60 = vpop.f32.mrf.mxu0 }
 0x4b3   : > { %v7346_v16 = vperm.slane %v10470_v36, %v17163_v11  ;;  %v7354_v19 = vperm.slane %v10471_v0, %v17163_v11  ;;  %v7362_v31 = vperm.slane %v10472_v2, %v17163_v11  ;;  %v7488_v29 = vsel %vm13031_vm12, %v7338_v42, %v7487_v53  ;;  %v7511_v42 = vld [vmem:[%s12266_s6 + $0x84] sm:$0x2] }
 0x4b4   : > { %v7350_v38 = vperm.slane %v7282_v13, %v17163_v11  ;;  %v7358_v28 = vperm.slane %v7284_v43, %v17163_v11  ;;  %v7366_v12 = vperm.slane %v7286_v25, %v17163_v11  ;;  %7489 = vst [vmem:[%s12266_s6 + $0x44] sm:$0x2] %v7488_v29  ;;  %v7491_v24 = vsel %vm13031_vm12, %v7342_v40, %v7490_v18  ;;  %v7514_v13 = vld [vmem:[%s12266_s6 + $0x8c] sm:$0x2]  ;;  %v7517_v43 = vld [vmem:[%s12266_s6 + $0x94] sm:$0x2] }
 0x4b5   : > { %7492 = vst [vmem:[%s12266_s6 + $0x4c] sm:$0x2] %v7491_v24  ;;  %v7494_v39 = vsel %vm13031_vm12, %v7346_v16, %v7493_v46  ;;  %v7500_v58 = vsel %vm13031_vm12, %v7354_v19, %v7499_v54  ;;  %v7506_v56 = vsel %vm13031_vm12, %v7362_v31, %v7505_v63  ;;  %v7215_v52 = vsel %vm817_vm8, %v7177_v37, %v7185_v51  ;;  %v7523_v19 = vld [vmem:[%s12266_s6 + $0xa4] sm:$0x2]  ;;  %v7529_v31 = vld [vmem:[%s12266_s6 + $0xb4] sm:$0x2] }
 0x4b6   : > { %7495 = vst [vmem:[%s12266_s6 + $0x54] sm:$0x2] %v7494_v39  ;;  %v7497_v30 = vsel %vm13031_vm12, %v7350_v38, %v7496_v20  ;;  %v7503_v45 = vsel %vm13031_vm12, %v7358_v28, %v7502_v62  ;;  %v7509_v6 = vsel %vm13031_vm12, %v7366_v12, %v7508_v14  ;;  %v7217_v27 = vsel %vm501_vm0, %v7177_v37, %v7185_v51  ;;  %v7520_v46 = vld [vmem:[%s12266_s6 + $0x9c] sm:$0x2]  ;;  %v7526_v12 = vld [vmem:[%s12266_s6 + $0xac] sm:$0x2] }
 0x4b7   : > { %7498 = vst [vmem:[%s12266_s6 + $0x5c] sm:$0x2] %v7497_v30  ;;  %v7219_v23 = vrot.slane %v7217_v27, 1  ;;  %v7220_v33 = vsel %vm504_vm1, %v7177_v37, %v7185_v51  ;;  %v7223_v50 = vsel %vm507_vm2, %v7177_v37, %v7185_v51  ;;  %v7256_v35 = vunpack.i.h.s16 %v7215_v52  ;;  %v7532_v24 = vld [vmem:[%s12266_s6 + $0xbc] sm:$0x2] }
 0x4b8   : > { %7501 = vst [vmem:[%s12266_s6 + $0x64] sm:$0x2] %v7500_v58  ;;  %v7222_v61 = vrot.slane %v7220_v33, 2  ;;  %v7225_v34 = vrot.slane %v7223_v50, 3  ;;  %v10473_v59 = vpack.i.b16 %v7215_v52, %v7215_v52  ;;  %v7228_v54 = vsel %vm817_vm8, %v15860_v22, %v7186_v41 }
 0x4b9   : > { %7504 = vst [vmem:[%s12266_s6 + $0x6c] sm:$0x2] %v7503_v45  ;;  %v7258_v8 = vunpack.i.h.s16 %v7219_v23  ;;  %v7288_v4 = vpack.i.b16 %v7256_v35, %v7256_v35  ;;  %v10474_v9 = vpack.i.b16 %v7219_v23, %v7219_v23  ;;  %v7230_v63 = vsel %vm501_vm0, %v15860_v22, %v7186_v41 }
 0x4ba   : > { %7507 = vst [vmem:[%s12266_s6 + $0x74] sm:$0x2] %v7506_v56  ;;  %v7260_v37 = vunpack.i.h.s16 %v7222_v61  ;;  %v7262_v10 = vunpack.i.h.s16 %v7225_v34  ;;  %v10475_v17 = vpack.i.b16 %v7222_v61, %v7222_v61  ;;  %v10476_v47 = vpack.i.b16 %v7225_v34, %v7225_v34 }
 0x4bb   : > { %7510 = vst [vmem:[%s12266_s6 + $0x7c] sm:$0x2] %v7509_v6  ;;  %v7290_v57 = vpack.i.b16 %v7258_v8, %v7258_v8  ;;  %v7370_v51 = vperm.slane %v10473_v59, %v17163_v11  ;;  %v7374_v49 = vperm.slane %v7288_v4, %v17163_v11  ;;  %v7378_v32 = vperm.slane %v10474_v9, %v17163_v11  ;;  %v15975_v59 = vpop.f32.mrf.mxu1 }
 0x4bc   : > { %v7292_v5 = vpack.i.b16 %v7260_v37, %v7260_v37  ;;  %v7294_v36 = vpack.i.b16 %v7262_v10, %v7262_v10  ;;  %v7386_v0 = vperm.slane %v10475_v17, %v17163_v11  ;;  %v7394_v2 = vperm.slane %v10476_v47, %v17163_v11  ;;  %v7535_v37 = vld [vmem:[%s12266_s6 + $0xc4] sm:$0x2] }
 0x4bd   : > { %v7382_v25 = vperm.slane %v7290_v57, %v17163_v11  ;;  %v7512_v40 = vsel %vm13031_vm12, %v7370_v51, %v7511_v42  ;;  %v7515_v53 = vsel %vm13031_vm12, %v7374_v49, %v7514_v13  ;;  %v7518_v16 = vsel %vm13031_vm12, %v7378_v32, %v7517_v43  ;;  %v7538_v51 = vld [vmem:[%s12266_s6 + $0xcc] sm:$0x2]  ;;  %v7541_v49 = vld [vmem:[%s12266_s6 + $0xd4] sm:$0x2]  ;;  %v15987_v32 = vpop.f32.mrf.mxu0  ;;  %v7544_v42 = vld [vmem:[%s12266_s6 + $0xdc] sm:$0x2] }
 0x4be   : > { %v7390_v29 = vperm.slane %v7292_v5, %v17163_v11  ;;  %v7398_v18 = vperm.slane %v7294_v36, %v17163_v11  ;;  %7513 = vst [vmem:[%s12266_s6 + $0x84] sm:$0x2] %v7512_v40  ;;  %v7524_v20 = vsel %vm13031_vm12, %v7386_v0, %v7523_v19  ;;  %v7530_v38 = vsel %vm13031_vm12, %v7394_v2, %v7529_v31  ;;  %v7547_v13 = vld [vmem:[%s12266_s6 + $0xe4] sm:$0x2] }
 0x4bf   : > { %7516 = vst [vmem:[%s12266_s6 + $0x8c] sm:$0x2] %v7515_v53  ;;  %v7521_v28 = vsel %vm13031_vm12, %v7382_v25, %v7520_v46  ;;  %v7233_v39 = vsel %vm504_vm1, %v15860_v22, %v7186_v41  ;;  %v7232_v56 = vrot.slane %v7230_v63, 1  ;;  %v7236_v52 = vsel %vm507_vm2, %v15860_v22, %v7186_v41  ;;  %v7550_v53 = vld [vmem:[%s12266_s6 + $0xec] sm:$0x2] }
 0x4c0   : > { %7519 = vst [vmem:[%s12266_s6 + $0x94] sm:$0x2] %v7518_v16  ;;  %v7527_v58 = vsel %vm13031_vm12, %v7390_v29, %v7526_v12  ;;  %v7533_v62 = vsel %vm13031_vm12, %v7398_v18, %v7532_v24  ;;  %v7235_v14 = vrot.slane %v7233_v39, 2  ;;  %v7264_v30 = vunpack.i.h.s16 %v7228_v54  ;;  %v7553_v16 = vld [vmem:[%s12266_s6 + $0xf4] sm:$0x2] }
 0x4c1   : > { %7522 = vst [vmem:[%s12266_s6 + $0x9c] sm:$0x2] %v7521_v28  ;;  %v10477_v45 = vpack.i.b16 %v7228_v54, %v7228_v54  ;;  %v15967_v6 = vsel %vm817_vm8, %v15862_v44, %v15912_v1  ;;  %v7238_v27 = vrot.slane %v7236_v52, 3  ;;  %v7266_v23 = vunpack.i.h.s16 %v7232_v56 }
 0x4c2   : > { %7525 = vst [vmem:[%s12266_s6 + $0xa4] sm:$0x2] %v7524_v20  ;;  %v7268_v33 = vunpack.i.h.s16 %v7235_v14  ;;  %v10478_v50 = vpack.i.b16 %v7232_v56, %v7232_v56  ;;  %v7296_v35 = vpack.i.b16 %v7264_v30, %v7264_v30  ;;  %v10479_v61 = vpack.i.b16 %v7235_v14, %v7235_v14  ;;  %v7556_v20 = vld [vmem:[%s12266_s6 + $0xfc] sm:$0x2] }
 0x4c3   : > { %7528 = vst [vmem:[%s12266_s6 + $0xac] sm:$0x2] %v7527_v58  ;;  %v7402_v22 = vperm.slane %v10477_v45, %v17163_v11  ;;  %v7916_v34 = vsel %vm501_vm0, %v15862_v44, %v15912_v1  ;;  %v7270_v41 = vunpack.i.h.s16 %v7238_v27  ;;  %v7298_v8 = vpack.i.b16 %v7266_v23, %v7266_v23  ;;  %v8194_v23 = vld [vmem:[%s12266_s6 + $0x14] sm:$0x4] }
 0x4c4   : > { %7531 = vst [vmem:[%s12266_s6 + $0xb4] sm:$0x2] %v7530_v38  ;;  %v7300_v4 = vpack.i.b16 %v7268_v33, %v7268_v33  ;;  %v10480_v9 = vpack.i.b16 %v7238_v27, %v7238_v27  ;;  %v7406_v10 = vperm.slane %v7296_v35, %v17163_v11  ;;  %v7410_v17 = vperm.slane %v10478_v50, %v17163_v11  ;;  %v8191_v27 = vld [vmem:[%s12266_s6 + $0xc] sm:$0x4] }
 0x4c5   : > { %7534 = vst [vmem:[%s12266_s6 + $0xbc] sm:$0x2] %v7533_v62  ;;  %v7418_v47 = vperm.slane %v10479_v61, %v17163_v11  ;;  %v7536_v57 = vsel %vm13031_vm12, %v7402_v22, %v7535_v37  ;;  %v7302_v5 = vpack.i.b16 %v7270_v41, %v7270_v41  ;;  %v7414_v36 = vperm.slane %v7298_v8, %v17163_v11  ;;  %v8309_v61 = vpop.f32.mrf.mxu0  ;;  %v8344_v22 = vpop.f32.mrf.mxu1 }
 0x4c6   : > { %v7422_v0 = vperm.slane %v7300_v4, %v17163_v11  ;;  %v7426_v2 = vperm.slane %v10480_v9, %v17163_v11  ;;  %7537 = vst [vmem:[%s12266_s6 + $0xc4] sm:$0x2] %v7536_v57  ;;  %v7539_v43 = vsel %vm13031_vm12, %v7406_v10, %v7538_v51  ;;  %v7542_v25 = vsel %vm13031_vm12, %v7410_v17, %v7541_v49  ;;  %v8203_v17 = vld [vmem:[%s12266_s6 + $0x2c] sm:$0x4] }
 0x4c7   : > { %v7548_v40 = vsel %vm13031_vm12, %v7418_v47, %v7547_v13  ;;  %v7918_v19 = vrot.slane %v7916_v34, 1  ;;  %v7430_v31 = vperm.slane %v7302_v5, %v17163_v11  ;;  %7540 = vst [vmem:[%s12266_s6 + $0xcc] sm:$0x2] %v7539_v43  ;;  %v7545_v29 = vsel %vm13031_vm12, %v7414_v36, %v7544_v42  ;;  %v8206_v47 = vld [vmem:[%s12266_s6 + $0x34] sm:$0x4] }
 0x4c8   : > { %v7551_v18 = vsel %vm13031_vm12, %v7422_v0, %v7550_v53  ;;  %v7554_v46 = vsel %vm13031_vm12, %v7426_v2, %v7553_v16  ;;  %7543 = vst [vmem:[%s12266_s6 + $0xd4] sm:$0x2] %v7542_v25  ;;  %v7919_v38 = vsel %vm504_vm1, %v15862_v44, %v15912_v1  ;;  %v7922_v28 = vsel %vm507_vm2, %v15862_v44, %v15912_v1  ;;  %v8188_v1 = vld [vmem:[%s12266_s6 + $0x4] sm:$0x4]  ;;  %v8209_v36 = vld [vmem:[%s12266_s6 + $0x3c] sm:$0x4] }
 0x4c9   : > { %v7965_v12 = vunpack.i.h.s16 %v15967_v6  ;;  %v7967_v24 = vunpack.i.h.s16 %v7918_v19  ;;  %7546 = vst [vmem:[%s12266_s6 + $0xdc] sm:$0x2] %v7545_v29  ;;  %v7557_v54 = vsel %vm13031_vm12, %v7430_v31, %v7556_v20  ;;  %v7921_v63 = vrot.slane %v7919_v38, 2 }
 0x4ca   : > { %v7924_v39 = vrot.slane %v7922_v28, 3  ;;  %v10509_v58 = vpack.i.b16 %v15967_v6, %v15967_v6  ;;  %7549 = vst [vmem:[%s12266_s6 + $0xe4] sm:$0x2] %v7548_v40  ;;  %v10510_v56 = vpack.i.b16 %v7918_v19, %v7918_v19  ;;  %v7893_v14 = vadd.f32 %v15864_v7, %v15867_v48  ;;  %v8197_v7 = vld [vmem:[%s12266_s6 + $0x1c] sm:$0x4] }
 0x4cb   : > { %v7997_v62 = vpack.i.b16 %v7965_v12, %v7965_v12  ;;  %v7999_v44 = vpack.i.b16 %v7967_v24, %v7967_v24  ;;  %7552 = vst [vmem:[%s12266_s6 + $0xec] sm:$0x2] %v7551_v18  ;;  %v7969_v21 = vunpack.i.h.s16 %v7921_v63  ;;  %v10511_v30 = vpack.i.b16 %v7921_v63, %v7921_v63  ;;  %v8200_v48 = vld [vmem:[%s12266_s6 + $0x24] sm:$0x4] }
 0x4cc   : > { %v7971_v52 = vunpack.i.h.s16 %v7924_v39  ;;  %v10512_v45 = vpack.i.b16 %v7924_v39, %v7924_v39  ;;  %7555 = vst [vmem:[%s12266_s6 + $0xf4] sm:$0x2] %v7554_v46  ;;  %v8031_v6 = vperm.slane %v10509_v58, %v17163_v11  ;;  %v8039_v50 = vperm.slane %v10510_v56, %v17163_v11 }
 0x4cd   : > { %v8035_v33 = vperm.slane %v7997_v62, %v17163_v11  ;;  %v8043_v35 = vperm.slane %v7999_v44, %v17163_v11  ;;  %7558 = vst [vmem:[%s12266_s6 + $0xfc] sm:$0x2] %v7557_v54  ;;  %v8001_v34 = vpack.i.b16 %v7969_v21, %v7969_v21  ;;  %v8047_v8 = vperm.slane %v10511_v30, %v17163_v11  ;;  %v16092_v54 = vpop.f32.mrf.mxu0  ;;  %v16094_v63 = vpop.f32.mrf.mxu1  ;;  %v8212_v44 = vld [vmem:[%s12266_s6 + $0x44] sm:$0x4]  ;;  %v8215_v30 = vld [vmem:[%s12266_s6 + $0x4c] sm:$0x4] }
 0x4ce   : > { %v8003_v41 = vpack.i.b16 %v7971_v52, %v7971_v52  ;;  %v8055_v4 = vperm.slane %v10512_v45, %v17163_v11  ;;  %v8189_v9 = vsel %vm13932_vm5, %v8031_v6, %v8188_v1  ;;  %v8195_v10 = vsel %vm13932_vm5, %v8039_v50, %v8194_v23  ;;  %v8224_v50 = vld [vmem:[%s12266_s6 + $0x64] sm:$0x4] }
 0x4cf   : > { %v8192_v37 = vsel %vm13932_vm5, %v8035_v33, %v8191_v27  ;;  %v8051_v57 = vperm.slane %v8001_v34, %v17163_v11  ;;  %8190 = vst [vmem:[%s12266_s6 + $0x4] sm:$0x4] %v8189_v9  ;;  %v8198_v49 = vsel %vm13932_vm5, %v8043_v35, %v8197_v7  ;;  %v8201_v5 = vsel %vm13932_vm5, %v8047_v8, %v8200_v48  ;;  %v8218_v33 = vld [vmem:[%s12266_s6 + $0x54] sm:$0x4]  ;;  %v8221_v34 = vld [vmem:[%s12266_s6 + $0x5c] sm:$0x4] }
 0x4d0   : > { %v8059_v51 = vperm.slane %v8003_v41, %v17163_v11  ;;  %8193 = vst [vmem:[%s12266_s6 + $0xc] sm:$0x4] %v8192_v37  ;;  %v7901_v0 = vpack.c.bf16 %v7893_v14, %v7893_v14  ;;  %v7896_v2 = vadd.f32 %v15914_v3, %v15921_v60  ;;  %v7898_v42 = vadd.f32 %v15975_v59, %v15987_v32  ;;  %v8230_v35 = vld [vmem:[%s12266_s6 + $0x74] sm:$0x4]  ;;  %v8227_v41 = vld [vmem:[%s12266_s6 + $0x6c] sm:$0x4] }
 0x4d1   : > { %v8345_v13 = vadd.f32 %v8344_v22, %v8309_v61  ;;  %8196 = vst [vmem:[%s12266_s6 + $0x14] sm:$0x4] %v8195_v10  ;;  %v8204_v43 = vsel %vm13932_vm5, %v8051_v57, %v8203_v17  ;;  %v8207_v25 = vsel %vm13932_vm5, %v8055_v4, %v8206_v47  ;;  %v8233_v8 = vld [vmem:[%s12266_s6 + $0x7c] sm:$0x4] }
 0x4d2   : > { %8199 = vst [vmem:[%s12266_s6 + $0x1c] sm:$0x4] %v8198_v49  ;;  %v7909_v40 = vrot.slane %v7901_v0, 3  ;;  %v16069_v53 = vpack.c.bf16 %v7896_v2, %v7896_v2  ;;  %v16071_v16 = vpack.c.bf16 %v7898_v42, %v7898_v42  ;;  %v8210_v60 = vsel %vm13932_vm5, %v8059_v51, %v8209_v36 }
 0x4d3   : > { %v16073_v3 = vpack.c.bf16 %v8345_v13, %v8345_v13  ;;  %8202 = vst [vmem:[%s12266_s6 + $0x24] sm:$0x4] %v8201_v5 }
 0x4d4   : > { %8205 = vst [vmem:[%s12266_s6 + $0x2c] sm:$0x4] %v8204_v43  ;;  %v7927_v59 = vsel %vm817_vm8, %v7901_v0, %v7909_v40  ;;  %v7929_v32 = vsel %vm501_vm0, %v7901_v0, %v7909_v40  ;;  %v7932_v19 = vsel %vm504_vm1, %v7901_v0, %v7909_v40  ;;  %v7935_v31 = vsel %vm507_vm2, %v7901_v0, %v7909_v40 }
 0x4d5   : > { %8208 = vst [vmem:[%s12266_s6 + $0x34] sm:$0x4] %v8207_v25  ;;  %v7931_v29 = vrot.slane %v7929_v32, 1  ;;  %v7934_v18 = vrot.slane %v7932_v19, 2  ;;  %v7937_v46 = vrot.slane %v7935_v31, 3  ;;  %v7973_v20 = vunpack.i.h.s16 %v7927_v59 }
 0x4d6   : > { %8211 = vst [vmem:[%s12266_s6 + $0x3c] sm:$0x4] %v8210_v60  ;;  %v10513_v38 = vpack.i.b16 %v7927_v59, %v7927_v59  ;;  %v7910_v28 = vrot.slane %v16069_v53, 3  ;;  %v16087_v12 = vrot.slane %v16071_v16, 3  ;;  %v16090_v24 = vrot.slane %v16073_v3, 3 }
 0x4d7   : > { %v7975_v39 = vunpack.i.h.s16 %v7931_v29  ;;  %v7977_v58 = vunpack.i.h.s16 %v7934_v18  ;;  %v7979_v62 = vunpack.i.h.s16 %v7937_v46  ;;  %v8005_v56 = vpack.i.b16 %v7973_v20, %v7973_v20 }
 0x4d8   : > { %v10514_v1 = vpack.i.b16 %v7931_v29, %v7931_v29  ;;  %v10515_v14 = vpack.i.b16 %v7934_v18, %v7934_v18  ;;  %v10516_v21 = vpack.i.b16 %v7937_v46, %v7937_v46  ;;  %v8063_v52 = vperm.slane %v10513_v38, %v17163_v11  ;;  %v8236_v29 = vld [vmem:[%s12266_s6 + $0x84] sm:$0x4]  ;;  %v16151_v18 = vpop.f32.mrf.mxu0  ;;  %v16153_v46 = vpop.f32.mrf.mxu1 }
 0x4d9   : > { %v8007_v45 = vpack.i.b16 %v7975_v39, %v7975_v39  ;;  %v8009_v27 = vpack.i.b16 %v7977_v58, %v7977_v58  ;;  %v8011_v23 = vpack.i.b16 %v7979_v62, %v7979_v62  ;;  %v8067_v6 = vperm.slane %v8005_v56, %v17163_v11  ;;  %v8239_v58 = vld [vmem:[%s12266_s6 + $0x8c] sm:$0x4]  ;;  %v8242_v62 = vld [vmem:[%s12266_s6 + $0x94] sm:$0x4] }
 0x4da   : > { %v8071_v7 = vperm.slane %v10514_v1, %v17163_v11  ;;  %v8079_v48 = vperm.slane %v10515_v14, %v17163_v11  ;;  %v8087_v61 = vperm.slane %v10516_v21, %v17163_v11  ;;  %v8213_v22 = vsel %vm13932_vm5, %v8063_v52, %v8212_v44  ;;  %v8248_v21 = vld [vmem:[%s12266_s6 + $0xa4] sm:$0x4]  ;;  %v8254_v52 = vld [vmem:[%s12266_s6 + $0xb4] sm:$0x4] }
 0x4db   : > { %v8075_v4 = vperm.slane %v8007_v45, %v17163_v11  ;;  %v8083_v9 = vperm.slane %v8009_v27, %v17163_v11  ;;  %v8091_v37 = vperm.slane %v8011_v23, %v17163_v11  ;;  %8214 = vst [vmem:[%s12266_s6 + $0x44] sm:$0x4] %v8213_v22  ;;  %v8216_v10 = vsel %vm13932_vm5, %v8067_v6, %v8215_v30  ;;  %v8245_v6 = vld [vmem:[%s12266_s6 + $0x9c] sm:$0x4] }
 0x4dc   : > { %8217 = vst [vmem:[%s12266_s6 + $0x4c] sm:$0x4] %v8216_v10  ;;  %v8219_v17 = vsel %vm13932_vm5, %v8071_v7, %v8218_v33  ;;  %v8225_v47 = vsel %vm13932_vm5, %v8079_v48, %v8224_v50  ;;  %v8231_v57 = vsel %vm13932_vm5, %v8087_v61, %v8230_v35  ;;  %v7940_v51 = vsel %vm817_vm8, %v16069_v53, %v7910_v28  ;;  %v8251_v48 = vld [vmem:[%s12266_s6 + $0xac] sm:$0x4]  ;;  %v8257_v61 = vld [vmem:[%s12266_s6 + $0xbc] sm:$0x4] }
 0x4dd   : > { %8220 = vst [vmem:[%s12266_s6 + $0x54] sm:$0x4] %v8219_v17  ;;  %v8222_v49 = vsel %vm13932_vm5, %v8075_v4, %v8221_v34  ;;  %v8228_v5 = vsel %vm13932_vm5, %v8083_v9, %v8227_v41  ;;  %v8234_v36 = vsel %vm13932_vm5, %v8091_v37, %v8233_v8  ;;  %v7942_v0 = vsel %vm501_vm0, %v16069_v53, %v7910_v28 }
 0x4de   : > { %8223 = vst [vmem:[%s12266_s6 + $0x5c] sm:$0x4] %v8222_v49  ;;  %v7944_v2 = vrot.slane %v7942_v0, 1  ;;  %v7945_v42 = vsel %vm504_vm1, %v16069_v53, %v7910_v28  ;;  %v7948_v13 = vsel %vm507_vm2, %v16069_v53, %v7910_v28  ;;  %v7981_v43 = vunpack.i.h.s16 %v7940_v51 }
 0x4df   : > { %8226 = vst [vmem:[%s12266_s6 + $0x64] sm:$0x4] %v8225_v47  ;;  %v7947_v25 = vrot.slane %v7945_v42, 2  ;;  %v7950_v40 = vrot.slane %v7948_v13, 3  ;;  %v10517_v60 = vpack.i.b16 %v7940_v51, %v7940_v51  ;;  %v16144_v59 = vsel %vm817_vm8, %v16071_v16, %v16087_v12 }
 0x4e0   : > { %8229 = vst [vmem:[%s12266_s6 + $0x6c] sm:$0x4] %v8228_v5  ;;  %v7983_v32 = vunpack.i.h.s16 %v7944_v2  ;;  %v8013_v19 = vpack.i.b16 %v7981_v43, %v7981_v43  ;;  %v10518_v31 = vpack.i.b16 %v7944_v2, %v7944_v2  ;;  %v7955_v53 = vsel %vm501_vm0, %v16071_v16, %v16087_v12  ;;  %v8266_v43 = vld [vmem:[%s12266_s6 + $0xd4] sm:$0x4] }
 0x4e1   : > { %8232 = vst [vmem:[%s12266_s6 + $0x74] sm:$0x4] %v8231_v57  ;;  %v7985_v20 = vunpack.i.h.s16 %v7947_v25  ;;  %v7987_v38 = vunpack.i.h.s16 %v7950_v40  ;;  %v10519_v28 = vpack.i.b16 %v7947_v25, %v7947_v25  ;;  %v10520_v39 = vpack.i.b16 %v7950_v40, %v7950_v40 }
 0x4e2   : > { %8235 = vst [vmem:[%s12266_s6 + $0x7c] sm:$0x4] %v8234_v36  ;;  %v8015_v56 = vpack.i.b16 %v7983_v32, %v7983_v32  ;;  %v8095_v44 = vperm.slane %v10517_v60, %v17163_v11  ;;  %v8099_v1 = vperm.slane %v8013_v19, %v17163_v11  ;;  %v8103_v14 = vperm.slane %v10518_v31, %v17163_v11  ;;  %v8260_v36 = vld [vmem:[%s12266_s6 + $0xc4] sm:$0x4]  ;;  %v8278_v19 = vld [vmem:[%s12266_s6 + $0xf4] sm:$0x4]  ;;  %v16209_v31 = vpop.f32.mrf.mxu0 }
 0x4e3   : > { %v8017_v30 = vpack.i.b16 %v7985_v20, %v7985_v20  ;;  %v8019_v45 = vpack.i.b16 %v7987_v38, %v7987_v38  ;;  %v8111_v27 = vperm.slane %v10519_v28, %v17163_v11  ;;  %v8119_v23 = vperm.slane %v10520_v39, %v17163_v11  ;;  %v8263_v39 = vld [vmem:[%s12266_s6 + $0xcc] sm:$0x4] }
 0x4e4   : > { %v8107_v33 = vperm.slane %v8015_v56, %v17163_v11  ;;  %v8237_v50 = vsel %vm13932_vm5, %v8095_v44, %v8236_v29  ;;  %v8240_v35 = vsel %vm13932_vm5, %v8099_v1, %v8239_v58  ;;  %v8243_v7 = vsel %vm13932_vm5, %v8103_v14, %v8242_v62  ;;  %v16211_v29 = vpop.f32.mrf.mxu1  ;;  %v8269_v58 = vld [vmem:[%s12266_s6 + $0xdc] sm:$0x4]  ;;  %v8275_v14 = vld [vmem:[%s12266_s6 + $0xec] sm:$0x4] }
 0x4e5   : > { %v8115_v22 = vperm.slane %v8017_v30, %v17163_v11  ;;  %v8123_v34 = vperm.slane %v8019_v45, %v17163_v11  ;;  %8238 = vst [vmem:[%s12266_s6 + $0x84] sm:$0x4] %v8237_v50  ;;  %v8249_v41 = vsel %vm13932_vm5, %v8111_v27, %v8248_v21  ;;  %v8255_v8 = vsel %vm13932_vm5, %v8119_v23, %v8254_v52  ;;  %v8281_v21 = vld [vmem:[%s12266_s6 + $0xfc] sm:$0x4] }
 0x4e6   : > { %8241 = vst [vmem:[%s12266_s6 + $0x8c] sm:$0x4] %v8240_v35  ;;  %v8246_v4 = vsel %vm13932_vm5, %v8107_v33, %v8245_v6  ;;  %v7957_v9 = vrot.slane %v7955_v53, 1  ;;  %v7958_v37 = vsel %vm504_vm1, %v16071_v16, %v16087_v12  ;;  %v7961_v10 = vsel %vm507_vm2, %v16071_v16, %v16087_v12 }
 0x4e7   : > { %8244 = vst [vmem:[%s12266_s6 + $0x94] sm:$0x4] %v8243_v7  ;;  %v8252_v17 = vsel %vm13932_vm5, %v8115_v22, %v8251_v48  ;;  %v8258_v47 = vsel %vm13932_vm5, %v8123_v34, %v8257_v61  ;;  %v7960_v57 = vrot.slane %v7958_v37, 2  ;;  %v7963_v51 = vrot.slane %v7961_v10, 3 }
 0x4e8   : > { %8247 = vst [vmem:[%s12266_s6 + $0x9c] sm:$0x4] %v8246_v4  ;;  %v7989_v49 = vunpack.i.h.s16 %v16144_v59  ;;  %v7991_v5 = vunpack.i.h.s16 %v7957_v9  ;;  %v10521_v16 = vpack.i.b16 %v16144_v59, %v16144_v59  ;;  %v10522_v12 = vpack.i.b16 %v7957_v9, %v7957_v9  ;;  %v8272_v59 = vld [vmem:[%s12266_s6 + $0xe4] sm:$0x4] }
 0x4e9   : > { %8250 = vst [vmem:[%s12266_s6 + $0xa4] sm:$0x4] %v8249_v41  ;;  %v7993_v0 = vunpack.i.h.s16 %v7960_v57  ;;  %v7995_v2 = vunpack.i.h.s16 %v7963_v51  ;;  %v10523_v42 = vpack.i.b16 %v7960_v57, %v7960_v57  ;;  %v10524_v13 = vpack.i.b16 %v7963_v51, %v7963_v51 }
 0x4ea   : > { %8253 = vst [vmem:[%s12266_s6 + $0xac] sm:$0x4] %v8252_v17  ;;  %v8021_v25 = vpack.i.b16 %v7989_v49, %v7989_v49  ;;  %v8023_v40 = vpack.i.b16 %v7991_v5, %v7991_v5  ;;  %v8127_v60 = vperm.slane %v10521_v16, %v17163_v11  ;;  %v8135_v32 = vperm.slane %v10522_v12, %v17163_v11  ;;  %v8642_v5 = vld [vmem:[%s12266_s6 + $0x4] sm:$0x4] }
 0x4eb   : > { %8256 = vst [vmem:[%s12266_s6 + $0xb4] sm:$0x4] %v8255_v8  ;;  %v8025_v53 = vpack.i.b16 %v7993_v0, %v7993_v0  ;;  %v8027_v20 = vpack.i.b16 %v7995_v2, %v7995_v2  ;;  %v8143_v38 = vperm.slane %v10523_v42, %v17163_v11  ;;  %v8151_v28 = vperm.slane %v10524_v13, %v17163_v11  ;;  %v8648_v0 = vld [vmem:[%s12266_s6 + $0x14] sm:$0x4]  ;;  %v9034_v2 = vpop.f32.mrf.mxu0 }
 0x4ec   : > { %8259 = vst [vmem:[%s12266_s6 + $0xbc] sm:$0x4] %v8258_v47  ;;  %v8131_v62 = vperm.slane %v8021_v25, %v17163_v11  ;;  %v8139_v56 = vperm.slane %v8023_v40, %v17163_v11  ;;  %v8261_v44 = vsel %vm13932_vm5, %v8127_v60, %v8260_v36  ;;  %v8267_v1 = vsel %vm13932_vm5, %v8135_v32, %v8266_v43  ;;  %v9069_v42 = vpop.f32.mrf.mxu1  ;;  %v8645_v40 = vld [vmem:[%s12266_s6 + $0xc] sm:$0x4]  ;;  %v8654_v32 = vld [vmem:[%s12266_s6 + $0x24] sm:$0x4] }
 0x4ed   : > { %v8147_v52 = vperm.slane %v8025_v53, %v17163_v11  ;;  %v8155_v30 = vperm.slane %v8027_v20, %v17163_v11  ;;  %8262 = vst [vmem:[%s12266_s6 + $0xc4] sm:$0x4] %v8261_v44  ;;  %v8273_v45 = vsel %vm13932_vm5, %v8143_v38, %v8272_v59  ;;  %v8279_v27 = vsel %vm13932_vm5, %v8151_v28, %v8278_v19  ;;  %v8651_v53 = vld [vmem:[%s12266_s6 + $0x1c] sm:$0x4]  ;;  %v8660_v38 = vld [vmem:[%s12266_s6 + $0x34] sm:$0x4] }
 0x4ee   : > { %v8264_v23 = vsel %vm13932_vm5, %v8131_v62, %v8263_v39  ;;  %8268 = vst [vmem:[%s12266_s6 + $0xd4] sm:$0x4] %v8267_v1  ;;  %v8270_v6 = vsel %vm13932_vm5, %v8139_v56, %v8269_v58  ;;  %v8368_v33 = vsel %vm817_vm8, %v16073_v3, %v16090_v24  ;;  %v8370_v50 = vsel %vm501_vm0, %v16073_v3, %v16090_v24  ;;  %v8657_v62 = vld [vmem:[%s12266_s6 + $0x2c] sm:$0x4] }
 0x4ef   : > { %8265 = vst [vmem:[%s12266_s6 + $0xcc] sm:$0x4] %v8264_v23  ;;  %v8276_v35 = vsel %vm13932_vm5, %v8147_v52, %v8275_v14  ;;  %v8282_v7 = vsel %vm13932_vm5, %v8155_v30, %v8281_v21  ;;  %v8372_v48 = vrot.slane %v8370_v50, 1  ;;  %v8373_v61 = vsel %vm504_vm1, %v16073_v3, %v16090_v24  ;;  %v8663_v14 = vld [vmem:[%s12266_s6 + $0x3c] sm:$0x4] }
 0x4f0   : > { %8271 = vst [vmem:[%s12266_s6 + $0xdc] sm:$0x4] %v8270_v6  ;;  %v8375_v22 = vrot.slane %v8373_v61, 2  ;;  %v8376_v34 = vsel %vm507_vm2, %v16073_v3, %v16090_v24  ;;  %v8419_v41 = vunpack.i.h.s16 %v8368_v33  ;;  %v10529_v8 = vpack.i.b16 %v8368_v33, %v8368_v33 }
 0x4f1   : > { %8274 = vst [vmem:[%s12266_s6 + $0xe4] sm:$0x4] %v8273_v45  ;;  %v8378_v4 = vrot.slane %v8376_v34, 3  ;;  %v8421_v26 = vunpack.i.h.s16 %v8372_v48  ;;  %v10530_v9 = vpack.i.b16 %v8372_v48, %v8372_v48  ;;  %v8347_v37 = vadd.f32 %v16094_v63, %v16092_v54 }
 0x4f2   : > { %8277 = vst [vmem:[%s12266_s6 + $0xec] sm:$0x4] %v8276_v35  ;;  %v8423_v10 = vunpack.i.h.s16 %v8375_v22  ;;  %v8451_v17 = vpack.i.b16 %v8419_v41, %v8419_v41  ;;  %v10531_v47 = vpack.i.b16 %v8375_v22, %v8375_v22  ;;  %v8485_v57 = vperm.slane %v10529_v8, %v17163_v11 }
 0x4f3   : > { %8280 = vst [vmem:[%s12266_s6 + $0xf4] sm:$0x4] %v8279_v27  ;;  %v8425_v3 = vunpack.i.h.s16 %v8378_v4  ;;  %v8453_v24 = vpack.i.b16 %v8421_v26, %v8421_v26  ;;  %v10532_v51 = vpack.i.b16 %v8378_v4, %v8378_v4  ;;  %v8493_v49 = vperm.slane %v10530_v9, %v17163_v11 }
 0x4f4   : > { %8283 = vst [vmem:[%s12266_s6 + $0xfc] sm:$0x4] %v8282_v7  ;;  %v8455_v16 = vpack.i.b16 %v8423_v10, %v8423_v10  ;;  %v8489_v54 = vperm.slane %v8451_v17, %v17163_v11  ;;  %v8501_v63 = vperm.slane %v10531_v47, %v17163_v11  ;;  %v8643_v36 = vsel %vm14222_vm14, %v8485_v57, %v8642_v5  ;;  %v16316_v10 = vpop.f32.mrf.mxu0  ;;  %v16318_v17 = vpop.f32.mrf.mxu1 }
 0x4f5   : > { %v8457_v13 = vpack.i.b16 %v8425_v3, %v8425_v3  ;;  %v8497_v43 = vperm.slane %v8453_v24, %v17163_v11  ;;  %v8509_v25 = vperm.slane %v10532_v51, %v17163_v11  ;;  %8644 = vst [vmem:[%s12266_s6 + $0x4] sm:$0x4] %v8643_v36  ;;  %v8649_v60 = vsel %vm14222_vm14, %v8493_v49, %v8648_v0  ;;  %v8666_v51 = vld [vmem:[%s12266_s6 + $0x44] sm:$0x4]  ;;  %v8672_v36 = vld [vmem:[%s12266_s6 + $0x54] sm:$0x4] }
 0x4f6   : > { %v8505_v59 = vperm.slane %v8455_v16, %v17163_v11  ;;  %v8646_v19 = vsel %vm14222_vm14, %v8489_v54, %v8645_v40  ;;  %8650 = vst [vmem:[%s12266_s6 + $0x14] sm:$0x4] %v8649_v60  ;;  %v8655_v20 = vsel %vm14222_vm14, %v8501_v63, %v8654_v32  ;;  %v8355_v28 = vpack.c.bf16 %v8347_v37, %v8347_v37  ;;  %v8669_v63 = vld [vmem:[%s12266_s6 + $0x4c] sm:$0x4]  ;;  %v8675_v0 = vld [vmem:[%s12266_s6 + $0x5c] sm:$0x4] }
 0x4f7   : > { %v8513_v39 = vperm.slane %v8457_v13, %v17163_v11  ;;  %8647 = vst [vmem:[%s12266_s6 + $0xc] sm:$0x4] %v8646_v19  ;;  %v8652_v58 = vsel %vm14222_vm14, %v8497_v43, %v8651_v53  ;;  %v8661_v56 = vsel %vm14222_vm14, %v8509_v25, %v8660_v38  ;;  %v8350_v44 = vadd.f32 %v16153_v46, %v16151_v18  ;;  %v8678_v25 = vld [vmem:[%s12266_s6 + $0x64] sm:$0x4]  ;;  %v8684_v40 = vld [vmem:[%s12266_s6 + $0x74] sm:$0x4] }
 0x4f8   : > { %8653 = vst [vmem:[%s12266_s6 + $0x1c] sm:$0x4] %v8652_v58  ;;  %v8658_v1 = vsel %vm14222_vm14, %v8505_v59, %v8657_v62  ;;  %v8363_v21 = vrot.slane %v8355_v28, 3  ;;  %v8352_v52 = vadd.f32 %v16211_v29, %v16209_v31  ;;  %v9070_v30 = vadd.f32 %v9069_v42, %v9034_v2  ;;  %v8681_v59 = vld [vmem:[%s12266_s6 + $0x6c] sm:$0x4] }
 0x4f9   : > { %8656 = vst [vmem:[%s12266_s6 + $0x24] sm:$0x4] %v8655_v20  ;;  %v8664_v45 = vsel %vm14222_vm14, %v8513_v39, %v8663_v14  ;;  %v8356_v27 = vpack.c.bf16 %v8350_v44, %v8350_v44  ;;  %v8687_v53 = vld [vmem:[%s12266_s6 + $0x7c] sm:$0x4]  ;;  %v9072_v12 = vadd.f32 %v16318_v17, %v16316_v10  ;;  %v9379_v10 = vld [vmem:[%s12266_s6 + $0x24] sm:$0x8] }
 0x4fa   : > { %8659 = vst [vmem:[%s12266_s6 + $0x2c] sm:$0x4] %v8658_v1  ;;  %v8381_v23 = vsel %vm817_vm8, %v8355_v28, %v8363_v21  ;;  %v8383_v18 = vsel %vm501_vm0, %v8355_v28, %v8363_v21  ;;  %v8386_v46 = vsel %vm504_vm1, %v8355_v28, %v8363_v21  ;;  %v8389_v6 = vsel %vm507_vm2, %v8355_v28, %v8363_v21 }
 0x4fb   : > { %8662 = vst [vmem:[%s12266_s6 + $0x34] sm:$0x4] %v8661_v56  ;;  %v8385_v33 = vrot.slane %v8383_v18, 1  ;;  %v8388_v50 = vrot.slane %v8386_v46, 2  ;;  %v8391_v35 = vrot.slane %v8389_v6, 3  ;;  %v8427_v31 = vunpack.i.h.s16 %v8381_v23 }
 0x4fc   : > { %8665 = vst [vmem:[%s12266_s6 + $0x3c] sm:$0x4] %v8664_v45  ;;  %v10533_v29 = vpack.i.b16 %v8381_v23, %v8381_v23  ;;  %v8364_v7 = vrot.slane %v8356_v27, 3  ;;  %v16311_v48 = vpack.c.bf16 %v8352_v52, %v8352_v52  ;;  %v16313_v61 = vpack.c.bf16 %v9070_v30, %v9070_v30 }
 0x4fd   : > { %v8429_v22 = vunpack.i.h.s16 %v8385_v33  ;;  %v8431_v34 = vunpack.i.h.s16 %v8388_v50  ;;  %v8433_v41 = vunpack.i.h.s16 %v8391_v35  ;;  %v8459_v8 = vpack.i.b16 %v8427_v31, %v8427_v31 }
 0x4fe   : > { %v10534_v4 = vpack.i.b16 %v8385_v33, %v8385_v33  ;;  %v10535_v26 = vpack.i.b16 %v8388_v50, %v8388_v50  ;;  %v10536_v9 = vpack.i.b16 %v8391_v35, %v8391_v35  ;;  %v8517_v37 = vperm.slane %v10533_v29, %v17163_v11 }
 0x4ff   : > { %v8461_v47 = vpack.i.b16 %v8429_v22, %v8429_v22  ;;  %v8463_v57 = vpack.i.b16 %v8431_v34, %v8431_v34  ;;  %v8465_v3 = vpack.i.b16 %v8433_v41, %v8433_v41  ;;  %v8521_v24 = vperm.slane %v8459_v8, %v17163_v11  ;;  %v16370_v22 = vpop.f32.mrf.mxu0  ;;  %v16372_v34 = vpop.f32.mrf.mxu1 }
 0x500   : > { %v8525_v49 = vperm.slane %v10534_v4, %v17163_v11  ;;  %v8533_v5 = vperm.slane %v10535_v26, %v17163_v11  ;;  %v8541_v16 = vperm.slane %v10536_v9, %v17163_v11  ;;  %v8667_v54 = vsel %vm14222_vm14, %v8517_v37, %v8666_v51  ;;  %v8690_v9 = vld [vmem:[%s12266_s6 + $0x84] sm:$0x4]  ;;  %v8693_v37 = vld [vmem:[%s12266_s6 + $0x8c] sm:$0x4] }
 0x501   : > { %v8529_v2 = vperm.slane %v8461_v47, %v17163_v11  ;;  %v8537_v42 = vperm.slane %v8463_v57, %v17163_v11  ;;  %v8545_v13 = vperm.slane %v8465_v3, %v17163_v11  ;;  %8668 = vst [vmem:[%s12266_s6 + $0x44] sm:$0x4] %v8667_v54  ;;  %v8670_v43 = vsel %vm14222_vm14, %v8521_v24, %v8669_v63  ;;  %v8696_v47 = vld [vmem:[%s12266_s6 + $0x94] sm:$0x4]  ;;  %v8699_v63 = vld [vmem:[%s12266_s6 + $0x9c] sm:$0x4] }
 0x502   : > { %8671 = vst [vmem:[%s12266_s6 + $0x4c] sm:$0x4] %v8670_v43  ;;  %v8673_v60 = vsel %vm14222_vm14, %v8525_v49, %v8672_v36  ;;  %v8679_v32 = vsel %vm14222_vm14, %v8533_v5, %v8678_v25  ;;  %v8685_v19 = vsel %vm14222_vm14, %v8541_v16, %v8684_v40  ;;  %v8394_v20 = vsel %vm817_vm8, %v8356_v27, %v8364_v7  ;;  %v8702_v49 = vld [vmem:[%s12266_s6 + $0xa4] sm:$0x4]  ;;  %v8708_v5 = vld [vmem:[%s12266_s6 + $0xb4] sm:$0x4] }
 0x503   : > { %8674 = vst [vmem:[%s12266_s6 + $0x54] sm:$0x4] %v8673_v60  ;;  %v8676_v38 = vsel %vm14222_vm14, %v8529_v2, %v8675_v0  ;;  %v8682_v28 = vsel %vm14222_vm14, %v8537_v42, %v8681_v59  ;;  %v8688_v39 = vsel %vm14222_vm14, %v8545_v13, %v8687_v53  ;;  %v8396_v58 = vsel %vm501_vm0, %v8356_v27, %v8364_v7  ;;  %v8705_v42 = vld [vmem:[%s12266_s6 + $0xac] sm:$0x4]  ;;  %v8711_v13 = vld [vmem:[%s12266_s6 + $0xbc] sm:$0x4] }
 0x504   : > { %8677 = vst [vmem:[%s12266_s6 + $0x5c] sm:$0x4] %v8676_v38  ;;  %v8398_v62 = vrot.slane %v8396_v58, 1  ;;  %v8399_v56 = vsel %vm504_vm1, %v8356_v27, %v8364_v7  ;;  %v8402_v44 = vsel %vm507_vm2, %v8356_v27, %v8364_v7  ;;  %v8435_v1 = vunpack.i.h.s16 %v8394_v20 }
 0x505   : > { %8680 = vst [vmem:[%s12266_s6 + $0x64] sm:$0x4] %v8679_v32  ;;  %v8401_v14 = vrot.slane %v8399_v56, 2  ;;  %v8404_v21 = vrot.slane %v8402_v44, 3  ;;  %v10537_v52 = vpack.i.b16 %v8394_v20, %v8394_v20  ;;  %v8365_v30 = vrot.slane %v16311_v48, 3 }
 0x506   : > { %8683 = vst [vmem:[%s12266_s6 + $0x6c] sm:$0x4] %v8682_v28  ;;  %v8437_v45 = vunpack.i.h.s16 %v8398_v62  ;;  %v8467_v23 = vpack.i.b16 %v8435_v1, %v8435_v1  ;;  %v10538_v18 = vpack.i.b16 %v8398_v62, %v8398_v62  ;;  %v16363_v46 = vrot.slane %v16313_v61, 3 }
 0x507   : > { %8686 = vst [vmem:[%s12266_s6 + $0x74] sm:$0x4] %v8685_v19  ;;  %v8439_v6 = vunpack.i.h.s16 %v8401_v14  ;;  %v8441_v27 = vunpack.i.h.s16 %v8404_v21  ;;  %v10539_v33 = vpack.i.b16 %v8401_v14, %v8401_v14  ;;  %v10540_v50 = vpack.i.b16 %v8404_v21, %v8404_v21 }
 0x508   : > { %8689 = vst [vmem:[%s12266_s6 + $0x7c] sm:$0x4] %v8688_v39  ;;  %v8469_v35 = vpack.i.b16 %v8437_v45, %v8437_v45  ;;  %v8549_v31 = vperm.slane %v10537_v52, %v17163_v11  ;;  %v8553_v29 = vperm.slane %v8467_v23, %v17163_v11  ;;  %v8557_v7 = vperm.slane %v10538_v18, %v17163_v11  ;;  %v8714_v23 = vld [vmem:[%s12266_s6 + $0xc4] sm:$0x4] }
 0x509   : > { %v8471_v41 = vpack.i.b16 %v8439_v6, %v8439_v6  ;;  %v8473_v8 = vpack.i.b16 %v8441_v27, %v8441_v27  ;;  %v8565_v4 = vperm.slane %v10539_v33, %v17163_v11  ;;  %v8573_v26 = vperm.slane %v10540_v50, %v17163_v11  ;;  %v8717_v50 = vld [vmem:[%s12266_s6 + $0xcc] sm:$0x4] }
 0x50a   : > { %v8561_v57 = vperm.slane %v8469_v35, %v17163_v11  ;;  %v8691_v3 = vsel %vm14222_vm14, %v8549_v31, %v8690_v9  ;;  %v8694_v24 = vsel %vm14222_vm14, %v8553_v29, %v8693_v37  ;;  %v8697_v51 = vsel %vm14222_vm14, %v8557_v7, %v8696_v47  ;;  %v8720_v35 = vld [vmem:[%s12266_s6 + $0xd4] sm:$0x4]  ;;  %v16436_v31 = vpop.f32.mrf.mxu0  ;;  %v16438_v29 = vpop.f32.mrf.mxu1  ;;  %v8726_v9 = vld [vmem:[%s12266_s6 + $0xe4] sm:$0x4] }
 0x50b   : > { %v8569_v16 = vperm.slane %v8471_v41, %v17163_v11  ;;  %v8577_v54 = vperm.slane %v8473_v8, %v17163_v11  ;;  %8692 = vst [vmem:[%s12266_s6 + $0x84] sm:$0x4] %v8691_v3  ;;  %v8703_v36 = vsel %vm14222_vm14, %v8565_v4, %v8702_v49  ;;  %v8709_v0 = vsel %vm14222_vm14, %v8573_v26, %v8708_v5  ;;  %v8723_v26 = vld [vmem:[%s12266_s6 + $0xdc] sm:$0x4]  ;;  %v8729_v3 = vld [vmem:[%s12266_s6 + $0xec] sm:$0x4] }
 0x50c   : > { %8695 = vst [vmem:[%s12266_s6 + $0x8c] sm:$0x4] %v8694_v24  ;;  %v8700_v2 = vsel %vm14222_vm14, %v8561_v57, %v8699_v63  ;;  %v8407_v43 = vsel %vm817_vm8, %v16311_v48, %v8365_v30  ;;  %v8409_v25 = vsel %vm501_vm0, %v16311_v48, %v8365_v30  ;;  %v8412_v40 = vsel %vm504_vm1, %v16311_v48, %v8365_v30  ;;  %v8732_v24 = vld [vmem:[%s12266_s6 + $0xf4] sm:$0x4]  ;;  %v8735_v63 = vld [vmem:[%s12266_s6 + $0xfc] sm:$0x4] }
 0x50d   : > { %8698 = vst [vmem:[%s12266_s6 + $0x94] sm:$0x4] %v8697_v51  ;;  %v8706_v60 = vsel %vm14222_vm14, %v8569_v16, %v8705_v42  ;;  %v8712_v32 = vsel %vm14222_vm14, %v8577_v54, %v8711_v13  ;;  %v8411_v59 = vrot.slane %v8409_v25, 1  ;;  %v8414_v19 = vrot.slane %v8412_v40, 2 }
 0x50e   : > { %8701 = vst [vmem:[%s12266_s6 + $0x9c] sm:$0x4] %v8700_v2  ;;  %v8415_v53 = vsel %vm507_vm2, %v16311_v48, %v8365_v30  ;;  %v8443_v20 = vunpack.i.h.s16 %v8407_v43  ;;  %v10541_v38 = vpack.i.b16 %v8407_v43, %v8407_v43  ;;  %v16418_v28 = vsel %vm817_vm8, %v16313_v61, %v16363_v46 }
 0x50f   : > { %8704 = vst [vmem:[%s12266_s6 + $0xa4] sm:$0x4] %v8703_v36  ;;  %v8417_v39 = vrot.slane %v8415_v53, 3  ;;  %v8445_v58 = vunpack.i.h.s16 %v8411_v59  ;;  %v8447_v62 = vunpack.i.h.s16 %v8414_v19  ;;  %v10542_v56 = vpack.i.b16 %v8411_v59, %v8411_v59 }
 0x510   : > { %8707 = vst [vmem:[%s12266_s6 + $0xac] sm:$0x4] %v8706_v60  ;;  %v8475_v44 = vpack.i.b16 %v8443_v20, %v8443_v20  ;;  %v10543_v1 = vpack.i.b16 %v8414_v19, %v8414_v19  ;;  %v8581_v48 = vperm.slane %v10541_v38, %v17163_v11  ;;  %v9095_v14 = vsel %vm501_vm0, %v16313_v61, %v16363_v46  ;;  %v9370_v38 = vld [vmem:[%s12266_s6 + $0xc] sm:$0x8] }
 0x511   : > { %8710 = vst [vmem:[%s12266_s6 + $0xb4] sm:$0x4] %v8709_v0  ;;  %v8449_v21 = vunpack.i.h.s16 %v8417_v39  ;;  %v8477_v52 = vpack.i.b16 %v8445_v58, %v8445_v58  ;;  %v8479_v30 = vpack.i.b16 %v8447_v62, %v8447_v62  ;;  %v10544_v45 = vpack.i.b16 %v8417_v39, %v8417_v39  ;;  %v9373_v39 = vld [vmem:[%s12266_s6 + $0x14] sm:$0x8] }
 0x512   : > { %8713 = vst [vmem:[%s12266_s6 + $0xbc] sm:$0x4] %v8712_v32  ;;  %v8585_v18 = vperm.slane %v8475_v44, %v17163_v11  ;;  %v8589_v6 = vperm.slane %v10542_v56, %v17163_v11  ;;  %v8597_v27 = vperm.slane %v10543_v1, %v17163_v11  ;;  %v8715_v33 = vsel %vm14222_vm14, %v8581_v48, %v8714_v23  ;;  %v9376_v44 = vld [vmem:[%s12266_s6 + $0x1c] sm:$0x8]  ;;  %v9382_v23 = vld [vmem:[%s12266_s6 + $0x2c] sm:$0x8] }
 0x513   : > { %v8481_v7 = vpack.i.b16 %v8449_v21, %v8449_v21  ;;  %v8593_v41 = vperm.slane %v8477_v52, %v17163_v11  ;;  %v8601_v8 = vperm.slane %v8479_v30, %v17163_v11  ;;  %v8605_v4 = vperm.slane %v10544_v45, %v17163_v11  ;;  %8716 = vst [vmem:[%s12266_s6 + $0xc4] sm:$0x4] %v8715_v33  ;;  %v9488_v21 = vpop.f32.mrf.mxu0 }
 0x514   : > { %v8718_v37 = vsel %vm14222_vm14, %v8585_v18, %v8717_v50  ;;  %v8721_v47 = vsel %vm14222_vm14, %v8589_v6, %v8720_v35  ;;  %v8727_v57 = vsel %vm14222_vm14, %v8597_v27, %v8726_v9  ;;  %v9097_v51 = vrot.slane %v9095_v14, 1  ;;  %v9385_v18 = vld [vmem:[%s12266_s6 + $0x34] sm:$0x8]  ;;  %v9523_v6 = vpop.f32.mrf.mxu1 }
 0x515   : > { %v8609_v49 = vperm.slane %v8481_v7, %v17163_v11  ;;  %8719 = vst [vmem:[%s12266_s6 + $0xcc] sm:$0x4] %v8718_v37  ;;  %v8724_v5 = vsel %vm14222_vm14, %v8593_v41, %v8723_v26  ;;  %v8730_v16 = vsel %vm14222_vm14, %v8601_v8, %v8729_v3  ;;  %v8733_v54 = vsel %vm14222_vm14, %v8605_v4, %v8732_v24  ;;  %v9388_v7 = vld [vmem:[%s12266_s6 + $0x3c] sm:$0x8] }
 0x516   : > { %8722 = vst [vmem:[%s12266_s6 + $0xd4] sm:$0x4] %v8721_v47  ;;  %v9098_v36 = vsel %vm504_vm1, %v16313_v61, %v16363_v46  ;;  %v9101_v0 = vsel %vm507_vm2, %v16313_v61, %v16363_v46  ;;  %v9144_v2 = vunpack.i.h.s16 %v16418_v28  ;;  %v9146_v42 = vunpack.i.h.s16 %v9097_v51  ;;  %v9367_v46 = vld [vmem:[%s12266_s6 + $0x4] sm:$0x8] }
 0x517   : > { %8725 = vst [vmem:[%s12266_s6 + $0xdc] sm:$0x4] %v8724_v5  ;;  %v8736_v13 = vsel %vm14222_vm14, %v8609_v49, %v8735_v63  ;;  %v9100_v43 = vrot.slane %v9098_v36, 2  ;;  %v9103_v25 = vrot.slane %v9101_v0, 3  ;;  %v10573_v40 = vpack.i.b16 %v16418_v28, %v16418_v28 }
 0x518   : > { %8728 = vst [vmem:[%s12266_s6 + $0xe4] sm:$0x4] %v8727_v57  ;;  %v9176_v60 = vpack.i.b16 %v9144_v2, %v9144_v2  ;;  %v10574_v32 = vpack.i.b16 %v9097_v51, %v9097_v51  ;;  %v9178_v61 = vpack.i.b16 %v9146_v42, %v9146_v42  ;;  %v9080_v41 = vpack.c.bf16 %v9072_v12, %v9072_v12  ;;  %v9394_v12 = vld [vmem:[%s12266_s6 + $0x4c] sm:$0x8] }
 0x519   : > { %8731 = vst [vmem:[%s12266_s6 + $0xec] sm:$0x4] %v8730_v16  ;;  %v9148_v59 = vunpack.i.h.s16 %v9100_v43  ;;  %v9150_v19 = vunpack.i.h.s16 %v9103_v25  ;;  %v10575_v53 = vpack.i.b16 %v9100_v43, %v9100_v43  ;;  %v10576_v20 = vpack.i.b16 %v9103_v25, %v9103_v25 }
 0x51a   : > { %8734 = vst [vmem:[%s12266_s6 + $0xf4] sm:$0x4] %v8733_v54  ;;  %v9210_v28 = vperm.slane %v10573_v40, %v17163_v11  ;;  %v9214_v58 = vperm.slane %v9176_v60, %v17163_v11  ;;  %v9218_v62 = vperm.slane %v10574_v32, %v17163_v11  ;;  %v9222_v56 = vperm.slane %v9178_v61, %v17163_v11  ;;  %v9391_v40 = vld [vmem:[%s12266_s6 + $0x44] sm:$0x8] }
 0x51b   : > { %8737 = vst [vmem:[%s12266_s6 + $0xfc] sm:$0x4] %v8736_v13  ;;  %v9180_v17 = vpack.i.b16 %v9148_v59, %v9148_v59  ;;  %v9182_v1 = vpack.i.b16 %v9150_v19, %v9150_v19  ;;  %v9226_v48 = vperm.slane %v10575_v53, %v17163_v11  ;;  %v9234_v14 = vperm.slane %v10576_v20, %v17163_v11 }
 0x51c   : > { %v9368_v52 = vsel %vm14511_vm3, %v9210_v28, %v9367_v46  ;;  %v9371_v30 = vsel %vm14511_vm3, %v9214_v58, %v9370_v38  ;;  %v9374_v45 = vsel %vm14511_vm3, %v9218_v62, %v9373_v39  ;;  %v9377_v50 = vsel %vm14511_vm3, %v9222_v56, %v9376_v44  ;;  %v9397_v38 = vld [vmem:[%s12266_s6 + $0x54] sm:$0x8]  ;;  %v9403_v39 = vld [vmem:[%s12266_s6 + $0x64] sm:$0x8] }
 0x51d   : > { %v9230_v27 = vperm.slane %v9180_v17, %v17163_v11  ;;  %v9238_v33 = vperm.slane %v9182_v1, %v17163_v11  ;;  %9369 = vst [vmem:[%s12266_s6 + $0x4] sm:$0x8] %v9368_v52  ;;  %v9380_v35 = vsel %vm14511_vm3, %v9226_v48, %v9379_v10  ;;  %v9075_v8 = vadd.f32 %v16372_v34, %v16370_v22  ;;  %v9409_v28 = vld [vmem:[%s12266_s6 + $0x74] sm:$0x8]  ;;  %v9400_v10 = vld [vmem:[%s12266_s6 + $0x5c] sm:$0x8] }
 0x51e   : > { %9372 = vst [vmem:[%s12266_s6 + $0xc] sm:$0x8] %v9371_v30  ;;  %v9077_v4 = vadd.f32 %v16438_v29, %v16436_v31  ;;  %v9524_v26 = vadd.f32 %v9523_v6, %v9488_v21  ;;  %v9386_v37 = vsel %vm14511_vm3, %v9234_v14, %v9385_v18  ;;  %v9088_v47 = vrot.slane %v9080_v41, 3  ;;  %v9406_v17 = vld [vmem:[%s12266_s6 + $0x6c] sm:$0x8] }
 0x51f   : > { %9375 = vst [vmem:[%s12266_s6 + $0x14] sm:$0x8] %v9374_v45  ;;  %v9383_v9 = vsel %vm14511_vm3, %v9230_v27, %v9382_v23  ;;  %v16520_v57 = vpack.c.bf16 %v9075_v8, %v9075_v8  ;;  %v9389_v34 = vsel %vm14511_vm3, %v9238_v33, %v9388_v7  ;;  %v9412_v1 = vld [vmem:[%s12266_s6 + $0x7c] sm:$0x8] }
 0x520   : > { %9378 = vst [vmem:[%s12266_s6 + $0x1c] sm:$0x8] %v9377_v50  ;;  %v16522_v3 = vpack.c.bf16 %v9077_v4, %v9077_v4  ;;  %v16524_v22 = vpack.c.bf16 %v9524_v26, %v9524_v26  ;;  %v9106_v31 = vsel %vm817_vm8, %v9080_v41, %v9088_v47  ;;  %v9108_v29 = vsel %vm501_vm0, %v9080_v41, %v9088_v47 }
 0x521   : > { %9381 = vst [vmem:[%s12266_s6 + $0x24] sm:$0x8] %v9380_v35  ;;  %v9111_v24 = vsel %vm504_vm1, %v9080_v41, %v9088_v47  ;;  %v9114_v51 = vsel %vm507_vm2, %v9080_v41, %v9088_v47  ;;  %v9110_v49 = vrot.slane %v9108_v29, 1  ;;  %v9152_v54 = vunpack.i.h.s16 %v9106_v31 }
 0x522   : > { %9384 = vst [vmem:[%s12266_s6 + $0x2c] sm:$0x8] %v9383_v9  ;;  %v9113_v5 = vrot.slane %v9111_v24, 2  ;;  %v9116_v16 = vrot.slane %v9114_v51, 3  ;;  %v10577_v63 = vpack.i.b16 %v9106_v31, %v9106_v31  ;;  %v9089_v36 = vrot.slane %v16520_v57, 3 }
 0x523   : > { %9387 = vst [vmem:[%s12266_s6 + $0x34] sm:$0x8] %v9386_v37  ;;  %v16538_v0 = vrot.slane %v16522_v3, 3  ;;  %v16541_v2 = vrot.slane %v16524_v22, 3  ;;  %v9154_v42 = vunpack.i.h.s16 %v9110_v49  ;;  %v9184_v25 = vpack.i.b16 %v9152_v54, %v9152_v54  ;;  %v9421_v54 = vld [vmem:[%s12266_s6 + $0x94] sm:$0x8] }
 0x524   : > { %9390 = vst [vmem:[%s12266_s6 + $0x3c] sm:$0x8] %v9389_v34  ;;  %v9156_v13 = vunpack.i.h.s16 %v9113_v5  ;;  %v9158_v43 = vunpack.i.h.s16 %v9116_v16  ;;  %v10578_v60 = vpack.i.b16 %v9110_v49, %v9110_v49  ;;  %v10579_v32 = vpack.i.b16 %v9113_v5, %v9113_v5 }
 0x525   : > { %v10580_v61 = vpack.i.b16 %v9116_v16, %v9116_v16  ;;  %v9242_v46 = vperm.slane %v10577_v63, %v17163_v11  ;;  %v9186_v59 = vpack.i.b16 %v9154_v42, %v9154_v42  ;;  %v9246_v20 = vperm.slane %v9184_v25, %v17163_v11  ;;  %v9418_v16 = vld [vmem:[%s12266_s6 + $0x8c] sm:$0x8]  ;;  %v9433_v25 = vld [vmem:[%s12266_s6 + $0xb4] sm:$0x8] }
 0x526   : > { %v9188_v19 = vpack.i.b16 %v9156_v13, %v9156_v13  ;;  %v9190_v53 = vpack.i.b16 %v9158_v43, %v9158_v43  ;;  %v9250_v58 = vperm.slane %v10578_v60, %v17163_v11  ;;  %v9258_v62 = vperm.slane %v10579_v32, %v17163_v11  ;;  %v9427_v43 = vld [vmem:[%s12266_s6 + $0xa4] sm:$0x8] }
 0x527   : > { %v9266_v56 = vperm.slane %v10580_v61, %v17163_v11  ;;  %v9392_v44 = vsel %vm14511_vm3, %v9242_v46, %v9391_v40  ;;  %v9254_v48 = vperm.slane %v9186_v59, %v17163_v11  ;;  %v9395_v52 = vsel %vm14511_vm3, %v9246_v20, %v9394_v12  ;;  %v9424_v46 = vld [vmem:[%s12266_s6 + $0x9c] sm:$0x8]  ;;  %v9430_v20 = vld [vmem:[%s12266_s6 + $0xac] sm:$0x8] }
 0x528   : > { %v9262_v14 = vperm.slane %v9188_v19, %v17163_v11  ;;  %v9270_v21 = vperm.slane %v9190_v53, %v17163_v11  ;;  %9393 = vst [vmem:[%s12266_s6 + $0x44] sm:$0x8] %v9392_v44  ;;  %v9398_v30 = vsel %vm14511_vm3, %v9250_v58, %v9397_v38  ;;  %v9404_v45 = vsel %vm14511_vm3, %v9258_v62, %v9403_v39  ;;  %v9436_v38 = vld [vmem:[%s12266_s6 + $0xbc] sm:$0x8] }
 0x529   : > { %9396 = vst [vmem:[%s12266_s6 + $0x4c] sm:$0x8] %v9395_v52  ;;  %v9410_v23 = vsel %vm14511_vm3, %v9266_v56, %v9409_v28  ;;  %v9119_v18 = vsel %vm817_vm8, %v16520_v57, %v9089_v36  ;;  %v9401_v6 = vsel %vm14511_vm3, %v9254_v48, %v9400_v10  ;;  %v9121_v50 = vsel %vm501_vm0, %v16520_v57, %v9089_v36  ;;  %v16626_v56 = vpop.f32.mrf.mxu0  ;;  %v16637_v48 = vpop.f32.mrf.mxu1 }
 0x52a   : > { %9399 = vst [vmem:[%s12266_s6 + $0x54] sm:$0x8] %v9398_v30  ;;  %v9407_v27 = vsel %vm14511_vm3, %v9262_v14, %v9406_v17  ;;  %v9413_v33 = vsel %vm14511_vm3, %v9270_v21, %v9412_v1  ;;  %v9123_v35 = vrot.slane %v9121_v50, 1  ;;  %v9124_v7 = vsel %vm504_vm1, %v16520_v57, %v9089_v36  ;;  %v9439_v50 = vld [vmem:[%s12266_s6 + $0xc4] sm:$0x8] }
 0x52b   : > { %9402 = vst [vmem:[%s12266_s6 + $0x5c] sm:$0x8] %v9401_v6  ;;  %v9127_v41 = vsel %vm507_vm2, %v16520_v57, %v9089_v36  ;;  %v9160_v8 = vunpack.i.h.s16 %v9119_v18  ;;  %v9126_v4 = vrot.slane %v9124_v7, 2  ;;  %v10581_v9 = vpack.i.b16 %v9119_v18, %v9119_v18  ;;  %v9415_v57 = vld [vmem:[%s12266_s6 + $0x84] sm:$0x8] }
 0x52c   : > { %9405 = vst [vmem:[%s12266_s6 + $0x64] sm:$0x8] %v9404_v45  ;;  %v9129_v26 = vrot.slane %v9127_v41, 3  ;;  %v16591_v37 = vsel %vm817_vm8, %v16522_v3, %v16538_v0  ;;  %v9162_v47 = vunpack.i.h.s16 %v9123_v35  ;;  %v10582_v31 = vpack.i.b16 %v9123_v35, %v9123_v35  ;;  %v9445_v35 = vld [vmem:[%s12266_s6 + $0xd4] sm:$0x8] }
 0x52d   : > { %9408 = vst [vmem:[%s12266_s6 + $0x6c] sm:$0x8] %v9407_v27  ;;  %v9192_v34 = vpack.i.b16 %v9160_v8, %v9160_v8  ;;  %v9134_v29 = vsel %vm501_vm0, %v16522_v3, %v16538_v0  ;;  %v9164_v24 = vunpack.i.h.s16 %v9126_v4  ;;  %v10583_v49 = vpack.i.b16 %v9126_v4, %v9126_v4 }
 0x52e   : > { %9411 = vst [vmem:[%s12266_s6 + $0x74] sm:$0x8] %v9410_v23  ;;  %v9166_v51 = vunpack.i.h.s16 %v9129_v26  ;;  %v10584_v5 = vpack.i.b16 %v9129_v26, %v9129_v26  ;;  %v9194_v63 = vpack.i.b16 %v9162_v47, %v9162_v47  ;;  %v9274_v36 = vperm.slane %v10581_v9, %v17163_v11  ;;  %v9451_v26 = vld [vmem:[%s12266_s6 + $0xe4] sm:$0x8]  ;;  %v9457_v9 = vld [vmem:[%s12266_s6 + $0xf4] sm:$0x8] }
 0x52f   : > { %9414 = vst [vmem:[%s12266_s6 + $0x7c] sm:$0x8] %v9413_v33  ;;  %v9278_v42 = vperm.slane %v9192_v34, %v17163_v11  ;;  %v9282_v13 = vperm.slane %v10582_v31, %v17163_v11  ;;  %v9196_v40 = vpack.i.b16 %v9164_v24, %v9164_v24  ;;  %v9290_v32 = vperm.slane %v10583_v49, %v17163_v11 }
 0x530   : > { %v9198_v60 = vpack.i.b16 %v9166_v51, %v9166_v51  ;;  %v9298_v61 = vperm.slane %v10584_v5, %v17163_v11  ;;  %v9286_v12 = vperm.slane %v9194_v63, %v17163_v11  ;;  %v9416_v59 = vsel %vm14511_vm3, %v9274_v36, %v9415_v57  ;;  %v9442_v57 = vld [vmem:[%s12266_s6 + $0xcc] sm:$0x8] }
 0x531   : > { %v9419_v19 = vsel %vm14511_vm3, %v9278_v42, %v9418_v16  ;;  %v9422_v53 = vsel %vm14511_vm3, %v9282_v13, %v9421_v54  ;;  %v9294_v39 = vperm.slane %v9196_v40, %v17163_v11  ;;  %9417 = vst [vmem:[%s12266_s6 + $0x84] sm:$0x8] %v9416_v59  ;;  %v9428_v58 = vsel %vm14511_vm3, %v9290_v32, %v9427_v43  ;;  %v9454_v16 = vld [vmem:[%s12266_s6 + $0xec] sm:$0x8]  ;;  %v9460_v54 = vld [vmem:[%s12266_s6 + $0xfc] sm:$0x8]  ;;  %v9493_v59 = vpop.f32.mrf.mxu0 }
 0x532   : > { %v9302_v28 = vperm.slane %v9198_v60, %v17163_v11  ;;  %v9434_v62 = vsel %vm14511_vm3, %v9298_v61, %v9433_v25  ;;  %9420 = vst [vmem:[%s12266_s6 + $0x8c] sm:$0x8] %v9419_v19  ;;  %v9425_v44 = vsel %vm14511_vm3, %v9286_v12, %v9424_v46  ;;  %v9136_v10 = vrot.slane %v9134_v29, 1  ;;  %v9448_v29 = vld [vmem:[%s12266_s6 + $0xdc] sm:$0x8] }
 0x533   : > { %v9137_v17 = vsel %vm504_vm1, %v16522_v3, %v16538_v0  ;;  %v9140_v1 = vsel %vm507_vm2, %v16522_v3, %v16538_v0  ;;  %9423 = vst [vmem:[%s12266_s6 + $0x94] sm:$0x8] %v9422_v53  ;;  %v9431_v14 = vsel %vm14511_vm3, %v9294_v39, %v9430_v20  ;;  %v9168_v45 = vunpack.i.h.s16 %v16591_v37  ;;  %v9528_v39 = vpop.f32.mrf.mxu1 }
 0x534   : > { %v9437_v21 = vsel %vm14511_vm3, %v9302_v28, %v9436_v38  ;;  %v9139_v52 = vrot.slane %v9137_v17, 2  ;;  %v9142_v30 = vrot.slane %v9140_v1, 3  ;;  %9426 = vst [vmem:[%s12266_s6 + $0x9c] sm:$0x8] %v9425_v44  ;;  %v9170_v23 = vunpack.i.h.s16 %v9136_v10 }
 0x535   : > { %v10585_v3 = vpack.i.b16 %v16591_v37, %v16591_v37  ;;  %v10586_v0 = vpack.i.b16 %v9136_v10, %v9136_v10  ;;  %9429 = vst [vmem:[%s12266_s6 + $0xa4] sm:$0x8] %v9428_v58  ;;  %v9200_v7 = vpack.i.b16 %v9168_v45, %v9168_v45  ;;  %v9547_v40 = vsel %vm817_vm8, %v16524_v22, %v16541_v2 }
 0x536   : > { %v9172_v18 = vunpack.i.h.s16 %v9139_v52  ;;  %v9174_v6 = vunpack.i.h.s16 %v9142_v30  ;;  %v10587_v27 = vpack.i.b16 %v9139_v52, %v9139_v52  ;;  %v10588_v33 = vpack.i.b16 %v9142_v30, %v9142_v30  ;;  %9432 = vst [vmem:[%s12266_s6 + $0xac] sm:$0x8] %v9431_v14  ;;  %v9821_v52 = vld [vmem:[%s12266_s6 + $0x4] sm:$0x8] }
 0x537   : > { %v9202_v41 = vpack.i.b16 %v9170_v23, %v9170_v23  ;;  %v9306_v8 = vperm.slane %v10585_v3, %v17163_v11  ;;  %v9314_v4 = vperm.slane %v10586_v0, %v17163_v11  ;;  %9435 = vst [vmem:[%s12266_s6 + $0xb4] sm:$0x8] %v9434_v62  ;;  %v9310_v24 = vperm.slane %v9200_v7, %v17163_v11  ;;  %v9827_v23 = vld [vmem:[%s12266_s6 + $0x14] sm:$0x8]  ;;  %v9830_v7 = vld [vmem:[%s12266_s6 + $0x1c] sm:$0x8] }
 0x538   : > { %v9204_v37 = vpack.i.b16 %v9172_v18, %v9172_v18  ;;  %v9206_v47 = vpack.i.b16 %v9174_v6, %v9174_v6  ;;  %v9322_v34 = vperm.slane %v10587_v27, %v17163_v11  ;;  %v9330_v31 = vperm.slane %v10588_v33, %v17163_v11  ;;  %9438 = vst [vmem:[%s12266_s6 + $0xbc] sm:$0x8] %v9437_v21  ;;  %v9824_v6 = vld [vmem:[%s12266_s6 + $0xc] sm:$0x8]  ;;  %v9833_v33 = vld [vmem:[%s12266_s6 + $0x24] sm:$0x8] }
 0x539   : > { %v9318_v51 = vperm.slane %v9202_v41, %v17163_v11  ;;  %v9440_v49 = vsel %vm14511_vm3, %v9306_v8, %v9439_v50  ;;  %v9446_v5 = vsel %vm14511_vm3, %v9314_v4, %v9445_v35  ;;  %v9443_v43 = vsel %vm14511_vm3, %v9310_v24, %v9442_v57  ;;  %v9842_v57 = vld [vmem:[%s12266_s6 + $0x3c] sm:$0x8] }
 0x53a   : > { %v9326_v63 = vperm.slane %v9204_v37, %v17163_v11  ;;  %v9334_v36 = vperm.slane %v9206_v47, %v17163_v11  ;;  %9441 = vst [vmem:[%s12266_s6 + $0xc4] sm:$0x8] %v9440_v49  ;;  %v9452_v42 = vsel %vm14511_vm3, %v9322_v34, %v9451_v26  ;;  %v9458_v13 = vsel %vm14511_vm3, %v9330_v31, %v9457_v9  ;;  %v9836_v9 = vld [vmem:[%s12266_s6 + $0x2c] sm:$0x8]  ;;  %v9839_v37 = vld [vmem:[%s12266_s6 + $0x34] sm:$0x8]  ;;  %v9495_v49 = vpop.f32.mrf.mxu0 }
 0x53b   : > { %9447 = vst [vmem:[%s12266_s6 + $0xd4] sm:$0x8] %v9446_v5  ;;  %v9449_v25 = vsel %vm14511_vm3, %v9318_v51, %v9448_v29  ;;  %v9549_v60 = vsel %vm501_vm0, %v16524_v22, %v16541_v2  ;;  %v9552_v12 = vsel %vm504_vm1, %v16524_v22, %v16541_v2  ;;  %v9555_v53 = vsel %vm507_vm2, %v16524_v22, %v16541_v2 }
 0x53c   : > { %9444 = vst [vmem:[%s12266_s6 + $0xcc] sm:$0x8] %v9443_v43  ;;  %v9455_v32 = vsel %vm14511_vm3, %v9326_v63, %v9454_v16  ;;  %v9461_v61 = vsel %vm14511_vm3, %v9334_v36, %v9460_v54  ;;  %v9551_v46 = vrot.slane %v9549_v60, 1  ;;  %v9554_v19 = vrot.slane %v9552_v12, 2  ;;  %v9530_v36 = vpop.f32.mrf.mxu1 }
 0x53d   : > { %9450 = vst [vmem:[%s12266_s6 + $0xdc] sm:$0x8] %v9449_v25  ;;  %v9598_v20 = vunpack.i.h.s16 %v9547_v40  ;;  %v10593_v38 = vpack.i.b16 %v9547_v40, %v9547_v40  ;;  %v9557_v55 = vrot.slane %v9555_v53, 3  ;;  %v9526_v62 = vadd.f32 %v16637_v48, %v16626_v56 }
 0x53e   : > { %9453 = vst [vmem:[%s12266_s6 + $0xe4] sm:$0x8] %v9452_v42  ;;  %v9600_v28 = vunpack.i.h.s16 %v9551_v46  ;;  %v10594_v58 = vpack.i.b16 %v9551_v46, %v9551_v46  ;;  %v9602_v44 = vunpack.i.h.s16 %v9554_v19  ;;  %v10595_v17 = vpack.i.b16 %v9554_v19, %v9554_v19 }
 0x53f   : > { %9456 = vst [vmem:[%s12266_s6 + $0xec] sm:$0x8] %v9455_v32  ;;  %v9630_v10 = vpack.i.b16 %v9598_v20, %v9598_v20  ;;  %v9664_v1 = vperm.slane %v10593_v38, %v17163_v11  ;;  %v9604_v22 = vunpack.i.h.s16 %v9557_v55  ;;  %v10596_v14 = vpack.i.b16 %v9557_v55, %v9557_v55 }
 0x540   : > { %9459 = vst [vmem:[%s12266_s6 + $0xf4] sm:$0x8] %v9458_v13  ;;  %v9632_v2 = vpack.i.b16 %v9600_v28, %v9600_v28  ;;  %v9672_v21 = vperm.slane %v10594_v58, %v17163_v11  ;;  %v9634_v56 = vpack.i.b16 %v9602_v44, %v9602_v44  ;;  %v9680_v30 = vperm.slane %v10595_v17, %v17163_v11 }
 0x541   : > { %9462 = vst [vmem:[%s12266_s6 + $0xfc] sm:$0x8] %v9461_v61  ;;  %v9668_v48 = vperm.slane %v9630_v10, %v17163_v11  ;;  %v9822_v45 = vsel %vm14805_vm6, %v9664_v1, %v9821_v52  ;;  %v9636_v3 = vpack.i.b16 %v9604_v22, %v9604_v22  ;;  %v9688_v18 = vperm.slane %v10596_v14, %v17163_v11  ;;  %v9848_v22 = vld [vmem:[%s12266_s6 + $0x4c] sm:$0x8] }
 0x542   : > { %v9676_v0 = vperm.slane %v9632_v2, %v17163_v11  ;;  %9823 = vst [vmem:[%s12266_s6 + $0x4] sm:$0x8] %v9822_v45  ;;  %v9828_v27 = vsel %vm14805_vm6, %v9672_v21, %v9827_v23  ;;  %v9684_v50 = vperm.slane %v9634_v56, %v17163_v11  ;;  %v9834_v41 = vsel %vm14805_vm6, %v9680_v30, %v9833_v33  ;;  %v9851_v2 = vld [vmem:[%s12266_s6 + $0x54] sm:$0x8]  ;;  %v9857_v30 = vld [vmem:[%s12266_s6 + $0x64] sm:$0x8] }
 0x543   : > { %v9825_v35 = vsel %vm14805_vm6, %v9668_v48, %v9824_v6  ;;  %9829 = vst [vmem:[%s12266_s6 + $0x14] sm:$0x8] %v9828_v27  ;;  %v9534_v8 = vpack.c.bf16 %v9526_v62, %v9526_v62  ;;  %v9692_v4 = vperm.slane %v9636_v3, %v17163_v11  ;;  %v9529_v47 = vadd.f32 %v9528_v39, %v9493_v59  ;;  %v9845_v62 = vld [vmem:[%s12266_s6 + $0x44] sm:$0x8]  ;;  %v9854_v48 = vld [vmem:[%s12266_s6 + $0x5c] sm:$0x8] }
 0x544   : > { %9826 = vst [vmem:[%s12266_s6 + $0xc] sm:$0x8] %v9825_v35  ;;  %v9831_v26 = vsel %vm14805_vm6, %v9676_v0, %v9830_v7  ;;  %v9837_v34 = vsel %vm14805_vm6, %v9684_v50, %v9836_v9  ;;  %v9840_v31 = vsel %vm14805_vm6, %v9688_v18, %v9839_v37  ;;  %v9531_v32 = vadd.f32 %v9530_v36, %v9495_v49  ;;  %v9860_v3 = vld [vmem:[%s12266_s6 + $0x6c] sm:$0x8]  ;;  %v9863_v0 = vld [vmem:[%s12266_s6 + $0x74] sm:$0x8] }
 0x545   : > { %9832 = vst [vmem:[%s12266_s6 + $0x1c] sm:$0x8] %v9831_v26  ;;  %v9542_v29 = vrot.slane %v9534_v8, 3  ;;  %v9843_v24 = vsel %vm14805_vm6, %v9692_v4, %v9842_v57  ;;  %v9535_v51 = vpack.c.bf16 %v9529_v47, %v9529_v47  ;;  %v9866_v7 = vld [vmem:[%s12266_s6 + $0x7c] sm:$0x8] }
 0x546   : > { %9835 = vst [vmem:[%s12266_s6 + $0x24] sm:$0x8] %v9834_v41  ;;  %v16776_v6 = vpack.c.bf16 %v9531_v32, %v9531_v32  ;;  %v9872_v32 = vld [vmem:[%s12266_s6 + $0x8c] sm:$0x8] }
 0x547   : > { %9838 = vst [vmem:[%s12266_s6 + $0x2c] sm:$0x8] %v9837_v34  ;;  %v9560_v5 = vsel %vm817_vm8, %v9534_v8, %v9542_v29  ;;  %v9562_v16 = vsel %vm501_vm0, %v9534_v8, %v9542_v29  ;;  %v9565_v54 = vsel %vm504_vm1, %v9534_v8, %v9542_v29  ;;  %v9568_v63 = vsel %vm507_vm2, %v9534_v8, %v9542_v29 }
 0x548   : > { %9841 = vst [vmem:[%s12266_s6 + $0x34] sm:$0x8] %v9840_v31  ;;  %v9564_v42 = vrot.slane %v9562_v16, 1  ;;  %v9567_v13 = vrot.slane %v9565_v54, 2  ;;  %v9570_v43 = vrot.slane %v9568_v63, 3  ;;  %v9606_v25 = vunpack.i.h.s16 %v9560_v5 }
 0x549   : > { %9844 = vst [vmem:[%s12266_s6 + $0x3c] sm:$0x8] %v9843_v24  ;;  %v10597_v40 = vpack.i.b16 %v9560_v5, %v9560_v5  ;;  %v9543_v60 = vrot.slane %v9535_v51, 3  ;;  %v9544_v24 = vrot.slane %v16776_v6, 3 }
 0x54a   : > { %v9608_v61 = vunpack.i.h.s16 %v9564_v42  ;;  %v9610_v46 = vunpack.i.h.s16 %v9567_v13  ;;  %v9612_v12 = vunpack.i.h.s16 %v9570_v43  ;;  %v9638_v59 = vpack.i.b16 %v9606_v25, %v9606_v25 }
 0x54b   : > { %v10598_v19 = vpack.i.b16 %v9564_v42, %v9564_v42  ;;  %v10599_v53 = vpack.i.b16 %v9567_v13, %v9567_v13  ;;  %v10600_v20 = vpack.i.b16 %v9570_v43, %v9570_v43  ;;  %v9696_v38 = vperm.slane %v10597_v40, %v17163_v11 }
 0x54c   : > { %v9640_v39 = vpack.i.b16 %v9608_v61, %v9608_v61  ;;  %v9642_v55 = vpack.i.b16 %v9610_v46, %v9610_v46  ;;  %v9644_v28 = vpack.i.b16 %v9612_v12, %v9612_v12  ;;  %v9700_v58 = vperm.slane %v9638_v59, %v17163_v11  ;;  %v9875_v61 = vld [vmem:[%s12266_s6 + $0x94] sm:$0x8] }
 0x54d   : > { %v9704_v44 = vperm.slane %v10598_v19, %v17163_v11  ;;  %v9712_v10 = vperm.slane %v10599_v53, %v17163_v11  ;;  %v9720_v17 = vperm.slane %v10600_v20, %v17163_v11  ;;  %v9846_v1 = vsel %vm14805_vm6, %v9696_v38, %v9845_v62  ;;  %v9881_v53 = vld [vmem:[%s12266_s6 + $0xa4] sm:$0x8]  ;;  %v9887_v62 = vld [vmem:[%s12266_s6 + $0xb4] sm:$0x8] }
 0x54e   : > { %v9708_v14 = vperm.slane %v9640_v39, %v17163_v11  ;;  %v9716_v21 = vperm.slane %v9642_v55, %v17163_v11  ;;  %v9724_v52 = vperm.slane %v9644_v28, %v17163_v11  ;;  %9847 = vst [vmem:[%s12266_s6 + $0x44] sm:$0x8] %v9846_v1  ;;  %v9849_v56 = vsel %vm14805_vm6, %v9700_v58, %v9848_v22  ;;  %v9878_v39 = vld [vmem:[%s12266_s6 + $0x9c] sm:$0x8]  ;;  %v9884_v58 = vld [vmem:[%s12266_s6 + $0xac] sm:$0x8] }
 0x54f   : > { %9850 = vst [vmem:[%s12266_s6 + $0x4c] sm:$0x8] %v9849_v56  ;;  %v9852_v45 = vsel %vm14805_vm6, %v9704_v44, %v9851_v2  ;;  %v9858_v23 = vsel %vm14805_vm6, %v9712_v10, %v9857_v30  ;;  %v9573_v18 = vsel %vm817_vm8, %v9535_v51, %v9543_v60  ;;  %v9864_v50 = vsel %vm14805_vm6, %v9720_v17, %v9863_v0  ;;  %v9890_v2 = vld [vmem:[%s12266_s6 + $0xbc] sm:$0x8] }
 0x550   : > { %9853 = vst [vmem:[%s12266_s6 + $0x54] sm:$0x8] %v9852_v45  ;;  %v9855_v27 = vsel %vm14805_vm6, %v9708_v14, %v9854_v48  ;;  %v9861_v33 = vsel %vm14805_vm6, %v9716_v21, %v9860_v3  ;;  %v9575_v35 = vsel %vm501_vm0, %v9535_v51, %v9543_v60  ;;  %v9578_v8 = vsel %vm504_vm1, %v9535_v51, %v9543_v60 }
 0x551   : > { %9856 = vst [vmem:[%s12266_s6 + $0x5c] sm:$0x8] %v9855_v27  ;;  %v9577_v41 = vrot.slane %v9575_v35, 1  ;;  %v9581_v4 = vsel %vm507_vm2, %v9535_v51, %v9543_v60  ;;  %v9614_v26 = vunpack.i.h.s16 %v9573_v18  ;;  %v9867_v9 = vsel %vm14805_vm6, %v9724_v52, %v9866_v7  ;;  %v9869_v60 = vld [vmem:[%s12266_s6 + $0x84] sm:$0x8] }
 0x552   : > { %9859 = vst [vmem:[%s12266_s6 + $0x64] sm:$0x8] %v9858_v23  ;;  %v9580_v37 = vrot.slane %v9578_v8, 2  ;;  %v9583_v47 = vrot.slane %v9581_v4, 3  ;;  %v10601_v34 = vpack.i.b16 %v9573_v18, %v9573_v18  ;;  %v9586_v44 = vsel %vm817_vm8, %v16776_v6, %v9544_v24 }
 0x553   : > { %9862 = vst [vmem:[%s12266_s6 + $0x6c] sm:$0x8] %v9861_v33  ;;  %v9616_v31 = vunpack.i.h.s16 %v9577_v41  ;;  %v9646_v57 = vpack.i.b16 %v9614_v26, %v9614_v26  ;;  %v10602_v29 = vpack.i.b16 %v9577_v41, %v9577_v41  ;;  %v9588_v10 = vsel %vm501_vm0, %v16776_v6, %v9544_v24  ;;  %v9893_v41 = vld [vmem:[%s12266_s6 + $0xc4] sm:$0x8] }
 0x554   : > { %9865 = vst [vmem:[%s12266_s6 + $0x74] sm:$0x8] %v9864_v50  ;;  %v9618_v51 = vunpack.i.h.s16 %v9580_v37  ;;  %v9620_v49 = vunpack.i.h.s16 %v9583_v47  ;;  %v10603_v5 = vpack.i.b16 %v9580_v37, %v9580_v37  ;;  %v10604_v16 = vpack.i.b16 %v9583_v47, %v9583_v47 }
 0x555   : > { %9868 = vst [vmem:[%s12266_s6 + $0x7c] sm:$0x8] %v9867_v9  ;;  %v9648_v54 = vpack.i.b16 %v9616_v31, %v9616_v31  ;;  %v9728_v63 = vperm.slane %v10601_v34, %v17163_v11  ;;  %v9732_v36 = vperm.slane %v9646_v57, %v17163_v11  ;;  %v9736_v42 = vperm.slane %v10602_v29, %v17163_v11  ;;  %v9896_v57 = vld [vmem:[%s12266_s6 + $0xcc] sm:$0x8]  ;;  %v9899_v29 = vld [vmem:[%s12266_s6 + $0xd4] sm:$0x8] }
 0x556   : > { %v9650_v13 = vpack.i.b16 %v9618_v51, %v9618_v51  ;;  %v9652_v43 = vpack.i.b16 %v9620_v49, %v9620_v49  ;;  %v9744_v25 = vperm.slane %v10603_v5, %v17163_v11  ;;  %v9752_v40 = vperm.slane %v10604_v16, %v17163_v11  ;;  %v9902_v49 = vld [vmem:[%s12266_s6 + $0xdc] sm:$0x8]  ;;  %v9905_v5 = vld [vmem:[%s12266_s6 + $0xe4] sm:$0x8] }
 0x557   : > { %v9740_v46 = vperm.slane %v9648_v54, %v17163_v11  ;;  %v9870_v12 = vsel %vm14805_vm6, %v9728_v63, %v9869_v60  ;;  %v9873_v59 = vsel %vm14805_vm6, %v9732_v36, %v9872_v32  ;;  %v9876_v19 = vsel %vm14805_vm6, %v9736_v42, %v9875_v61  ;;  %v9908_v36 = vld [vmem:[%s12266_s6 + $0xec] sm:$0x8] }
 0x558   : > { %v9748_v20 = vperm.slane %v9650_v13, %v17163_v11  ;;  %v9756_v38 = vperm.slane %v9652_v43, %v17163_v11  ;;  %9871 = vst [vmem:[%s12266_s6 + $0x84] sm:$0x8] %v9870_v12  ;;  %v9882_v55 = vsel %vm14805_vm6, %v9744_v25, %v9881_v53  ;;  %v9591_v17 = vsel %vm504_vm1, %v16776_v6, %v9544_v24  ;;  %v9911_v13 = vld [vmem:[%s12266_s6 + $0xf4] sm:$0x8]  ;;  %v9914_v25 = vld [vmem:[%s12266_s6 + $0xfc] sm:$0x8] }
 0x559   : > { %9874 = vst [vmem:[%s12266_s6 + $0x8c] sm:$0x8] %v9873_v59  ;;  %v9879_v28 = vsel %vm14805_vm6, %v9740_v46, %v9878_v39  ;;  %v9888_v22 = vsel %vm14805_vm6, %v9752_v40, %v9887_v62  ;;  %v9590_v14 = vrot.slane %v9588_v10, 1  ;;  %v9593_v21 = vrot.slane %v9591_v17, 2 }
 0x55a   : > { %9877 = vst [vmem:[%s12266_s6 + $0x94] sm:$0x8] %v9876_v19  ;;  %v9885_v1 = vsel %vm14805_vm6, %v9748_v20, %v9884_v58  ;;  %v9891_v52 = vsel %vm14805_vm6, %v9756_v38, %v9890_v2  ;;  %v9594_v56 = vsel %vm507_vm2, %v16776_v6, %v9544_v24  ;;  %v9622_v48 = vunpack.i.h.s16 %v9586_v44 }
 0x55b   : > { %9880 = vst [vmem:[%s12266_s6 + $0x9c] sm:$0x8] %v9879_v28  ;;  %v10605_v30 = vpack.i.b16 %v9586_v44, %v9586_v44  ;;  %v9596_v45 = vrot.slane %v9594_v56, 3  ;;  %v9624_v23 = vunpack.i.h.s16 %v9590_v14  ;;  %v9626_v3 = vunpack.i.h.s16 %v9593_v21 }
 0x55c   : > { %9883 = vst [vmem:[%s12266_s6 + $0xa4] sm:$0x8] %v9882_v55  ;;  %v10606_v0 = vpack.i.b16 %v9590_v14, %v9590_v14  ;;  %v9654_v18 = vpack.i.b16 %v9622_v48, %v9622_v48  ;;  %v10607_v27 = vpack.i.b16 %v9593_v21, %v9593_v21 }
 0x55d   : > { %9886 = vst [vmem:[%s12266_s6 + $0xac] sm:$0x8] %v9885_v1  ;;  %v9760_v33 = vperm.slane %v10605_v30, %v17163_v11  ;;  %v9628_v50 = vunpack.i.h.s16 %v9596_v45  ;;  %v9656_v6 = vpack.i.b16 %v9624_v23, %v9624_v23  ;;  %v9658_v35 = vpack.i.b16 %v9626_v3, %v9626_v3 }
 0x55e   : > { %9889 = vst [vmem:[%s12266_s6 + $0xb4] sm:$0x8] %v9888_v22  ;;  %v10608_v7 = vpack.i.b16 %v9596_v45, %v9596_v45  ;;  %v9764_v8 = vperm.slane %v9654_v18, %v17163_v11  ;;  %v9768_v4 = vperm.slane %v10606_v0, %v17163_v11  ;;  %v9776_v26 = vperm.slane %v10607_v27, %v17163_v11 }
 0x55f   : > { %9892 = vst [vmem:[%s12266_s6 + $0xbc] sm:$0x8] %v9891_v52  ;;  %v9894_v9 = vsel %vm14805_vm6, %v9760_v33, %v9893_v41  ;;  %v9660_v37 = vpack.i.b16 %v9628_v50, %v9628_v50  ;;  %v9772_v47 = vperm.slane %v9656_v6, %v17163_v11  ;;  %v9780_v34 = vperm.slane %v9658_v35, %v17163_v11 }
 0x560   : > { %v9784_v31 = vperm.slane %v10608_v7, %v17163_v11  ;;  %9895 = vst [vmem:[%s12266_s6 + $0xc4] sm:$0x8] %v9894_v9  ;;  %v9897_v24 = vsel %vm14805_vm6, %v9764_v8, %v9896_v57  ;;  %v9900_v51 = vsel %vm14805_vm6, %v9768_v4, %v9899_v29  ;;  %v9906_v63 = vsel %vm14805_vm6, %v9776_v26, %v9905_v5 }
 0x561   : > { %v9788_v16 = vperm.slane %v9660_v37, %v17163_v11  ;;  %9898 = vst [vmem:[%s12266_s6 + $0xcc] sm:$0x8] %v9897_v24  ;;  %v9903_v54 = vsel %vm14805_vm6, %v9772_v47, %v9902_v49  ;;  %v9909_v42 = vsel %vm14805_vm6, %v9780_v34, %v9908_v36 }
 0x562   : > { %9901 = vst [vmem:[%s12266_s6 + $0xd4] sm:$0x8] %v9900_v51  ;;  %v9912_v43 = vsel %vm14805_vm6, %v9784_v31, %v9911_v13 }
 0x563   : > { %9904 = vst [vmem:[%s12266_s6 + $0xdc] sm:$0x8] %v9903_v54  ;;  %v9915_v11 = vsel %vm14805_vm6, %v9788_v16, %v9914_v25 }
 0x564   : > { %9907 = vst [vmem:[%s12266_s6 + $0xe4] sm:$0x8] %v9906_v63 }
 0x565   : > { %9910 = vst [vmem:[%s12266_s6 + $0xec] sm:$0x8] %v9909_v42 }
 0x566   : > { %9913 = vst [vmem:[%s12266_s6 + $0xf4] sm:$0x8] %v9912_v43 }
 0x567   : > { %9916 = vst [vmem:[%s12266_s6 + $0xfc] sm:$0x8] %v9915_v11 }
 0x568   : > { %s10610_s7 = sshll.u32 %s11352_s21, 1  ;;  %s10611_s20 = sshll.u32 %s11356_s22, 7 }
 0x569   : > { %s9929_s28 = sadd.s32 %s10611_s20, %s10610_s7  ;;  %s9942_s8 = sshll.u32 %s12266_s6, 4  ;;  %s9943_s8 = int_to_ptr.vmem [resolvable:$true] %s9942_s8 }
 0x56a   : > { %s10612_s12 = sshll.u32 %s9929_s28, 2  ;;  %s11375_s26 = smov 128  }
 0x56b   : > { %s9931_s17 = scalar_lea.hbm %s16939_s5, %s10612_s12  ;;  %10627 = sst [smem:[#allocation7]] (%p11477_p9), %s11375_s26 }
 0x56c   : > { %s9944_s15 = sshll.u32 %s9931_s17, 4  ;;  %s11376_s27 = smov 256   ;;  %s9945_s15 = int_to_ptr.hbm [resolvable:$true] %s9944_s15 }
 0x56d   : > { %10628 = sst [smem:[#allocation7 + $0x1]] (%p11477_p9), %s11376_s27  ;;  %s11377_s21 = smov 2  }
 0x56e   : > { %10629 = sst [smem:[#allocation7 + $0x2]] (%p11477_p9), %s11377_s21  ;;  %s11378_s22 = smov 64  }
 0x56f   : > { %10630 = sst [smem:[#allocation7 + $0x3]] (%p11477_p9), %s11378_s22  ;;  %s11379_s6 = smov 4  }
 0x570   : > { %10631 = sst [smem:[#allocation7 + $0x4]] (%p11477_p9), %s11378_s22  ;;  %s11380_s10 = smov [#allocation6]  }
 0x571   : > { %10632 = sst [smem:[#allocation7 + $0x5]] (%p11477_p9), %s11379_s6  ;;  %s11381_s11 = smov 0  }
 0x572   : > { %10633 = dma.general (%p11477_p9), %s9943_s8, 4096, %s9945_s15, %s9918_s16, %s11380_s10, [#allocation7], %s11381_s11, 0  }
 0x573 PF: > { %p10644_p3 = scmp.ge.s32.totalorder %s11368_s25, 2  ;;  %s9972_s29 = sand.u32 1, %s11340_s18  }
 0x574   : > { %s9973_s7 = scalar_lea.sflag [#allocation4], %s9972_s29 }
 0x575   : > { %p10640_p5 = pnand %p10644_p3, %p11483_p12 }
 0x577   : > { %p10641_p6 = pneg %p10640_p5 }
 0x579   : > { %11335 = dma.done.wait (%p10641_p6), %s9973_s7, 4096  }
 0x57a   : > { %11337 = vsyncadd (%p10641_p6), %s9973_s7, 4294963200  ;;  %s21_s25 = sadd.s32 1, %s11368_s25   ;;  %s17217_s20 = sld [smem:[#allocation10_spill]] }
 0x57b   : > { %p18_p7 = scmp.ge.s32.totalorder %s21_s25, 6   ;;  %s17218_s28 = sld [smem:[#allocation14_spill]] }
 0x57c   : > { %s17219_s9 = sld [smem:[#allocation11_spill]]  ;;  %s17221_s18 = smov %s11344_s19 }
 0x57d   : > { %s17220_s16 = sld [smem:[#allocation12_spill]]  ;;  %s17224_s21 = smov %s11360_s23 }
 0x57e   : > { %s17225_s22 = smov %s11364_s24 }
 0x57f   :  { %20 = sbr.rel (!%p18_p7) target bundleno = 7 (0x7), region = 90 }
 0x580   : > { %s17222_s19 = smov %s17217_s20 }
 0x581   : > { %s17223_s20 = smov %s17218_s28 }
 0x582   : > { %s17226_s23 = smov %s17219_s9 }
 0x583   : > { %s17227_s24 = smov %s17220_s16 }
 0x584   :  { %9979 = vsyncpa [#allocation3], 1 }
 0x585   :  { %9981 = vsyncpa [#allocation3 + $0x1], 1 }
 0x586   :  { %9982 = vsyncpa [#allocation4], 1 }
 0x587   :  { %9984 = vsyncpa [#allocation4 + $0x1], 1 }

</bundles_post_ra>
